<compile_context>
chip_gen: v6e
topology: v6e:2x2x1
jax: 0.10.0
libtpu: 0.0.40
codegen_flags: <defaults>
</compile_context>

<pallas_src>
import math
import functools

import jax
import jax.numpy as jnp
from jax.experimental import pallas as pl
from jax.experimental.pallas import tpu as pltpu


# ------------------------------ constants ----------------------------------

DIM = 128
NUM_HEADS = 2
FFN_FACTOR = 2.66
HIDDEN = int(DIM * FFN_FACTOR)      # 340  (true hidden width of the module)
HP = 384                            # hidden padded to a multiple of 128 lanes

_SQRT2 = math.sqrt(2.0)
_LN_EPS = 1e-5


# ------------------------------ in-kernel helpers ---------------------------

def _layernorm(x, g_ref, b_ref):
    # WithBias_LayerNorm: biased variance, eps = 1e-5.
    mu = jnp.mean(x, axis=-1, keepdims=True)
    xc = x - mu
    var = jnp.mean(xc * xc, axis=-1, keepdims=True)
    return xc * jax.lax.rsqrt(var + _LN_EPS) * g_ref[...] + b_ref[...]


def _dwconv3x3(pad_ref, x_hwc, w, H, W, C):
    # 3x3 depthwise conv, stride 1, padding 1.  The 1-px zero halo is built in
    # a VMEM scratch (no wrapper-side jnp.pad / extra HBM round trip).
    pad_ref[...] = jnp.zeros(pad_ref.shape, pad_ref.dtype)
    pad_ref[pl.ds(1, H), pl.ds(1, W), :] = x_hwc
    acc = jnp.zeros((H, W, C), jnp.float32)
    for di in range(3):
        band = pad_ref[pl.ds(di, H), :, :]            # (H, W+2, C), loaded once
        for dj in range(3):
            acc = acc + band[:, dj:dj + W, :] * w[di, dj, :]
    return acc


# ----------------- fused attention branch (x + MDTA(LN1(x), LN2(f))) --------

def _attn_branch_kernel(temp_ref, x_ref, f_ref,
                        ln1g_ref, ln1b_ref, ln2g_ref, ln2b_ref,
                        qw_ref, kvw_ref, qdw_ref, kvdw_ref, pw_ref,
                        o_ref, qp_ref, kvp_ref, *, H, W, num_heads):
    C = x_ref.shape[-1]
    HW = H * W

    x = x_ref[0].astype(jnp.float32)                     # (HW, C) residual + LN1 input
    f = f_ref[0].astype(jnp.float32)                     # (HW, C)

    # LN + 1x1 conv (as matmul) for q and kv.
    q1 = jnp.dot(_layernorm(x, ln1g_ref, ln1b_ref), qw_ref[...],
                 preferred_element_type=jnp.float32)     # (HW, C)
    kv1 = jnp.dot(_layernorm(f, ln2g_ref, ln2b_ref), kvw_ref[...],
                  preferred_element_type=jnp.float32)    # (HW, 2C)

    # depthwise 3x3 on q and kv (halo built in VMEM scratch).
    q = _dwconv3x3(qp_ref, q1.reshape(H, W, C),
                   qdw_ref[...].astype(jnp.float32), H, W, C).reshape(HW, C)
    kv = _dwconv3x3(kvp_ref, kv1.reshape(H, W, 2 * C),
                    kvdw_ref[...].astype(jnp.float32), H, W, 2 * C).reshape(HW, 2 * C)

    ch = C // num_heads
    pw = pw_ref[...].astype(jnp.float32)                 # (C, C) project_out
    acc = x                                              # residual
    for h in range(num_heads):
        qh = q[:, h * ch:(h + 1) * ch]                   # (HW, ch)
        kh = kv[:, h * ch:(h + 1) * ch]
        vh = kv[:, C + h * ch: C + (h + 1) * ch]
        # F.normalize(..., dim=-1) over the HW axis (axis 0 in this layout):
        # x / max(||x||, 1e-12) == x * rsqrt(max(||x||^2, 1e-24))
        qn = qh * jax.lax.rsqrt(
            jnp.maximum(jnp.sum(qh * qh, axis=0, keepdims=True), 1e-24))
        kn = kh * jax.lax.rsqrt(
            jnp.maximum(jnp.sum(kh * kh, axis=0, keepdims=True), 1e-24))
        attn = jnp.dot(qn.T, kn,
                       preferred_element_type=jnp.float32) * temp_ref[h]  # (ch, ch)
        attn = attn - jnp.max(attn, axis=-1, keepdims=True)
        e = jnp.exp(attn)
        p = e * pl.reciprocal(jnp.sum(e, axis=-1, keepdims=True), approx=True)
        out_h = jnp.dot(vh, p.T, preferred_element_type=jnp.float32)      # (HW, ch)
        # fused project_out: out @ proj_w == sum_h out_h @ proj_w[h*ch:(h+1)*ch]
        acc = acc + jnp.dot(out_h, pw[h * ch:(h + 1) * ch, :],
                            preferred_element_type=jnp.float32)
    o_ref[0] = acc.astype(o_ref.dtype)


def attn_branch(x3, f3, params, H, W):
    B, HW, C = x3.shape
    kern = functools.partial(_attn_branch_kernel, H=H, W=W, num_heads=NUM_HEADS)
    rep2 = lambda i: (0, 0)
    rep3 = lambda i: (0, 0, 0)
    return pl.pallas_call(
        kern,
        grid=(B,),
        in_specs=[pl.BlockSpec(memory_space=pltpu.MemorySpace.SMEM),       # temperature
                  pl.BlockSpec((1, HW, C), lambda i: (i, 0, 0)),           # x3
                  pl.BlockSpec((1, HW, C), lambda i: (i, 0, 0)),           # f3
                  pl.BlockSpec((1, C), rep2),                              # ln1 gamma
                  pl.BlockSpec((1, C), rep2),                              # ln1 beta
                  pl.BlockSpec((1, C), rep2),                              # ln2 gamma
                  pl.BlockSpec((1, C), rep2),                              # ln2 beta
                  pl.BlockSpec((C, C), rep2),                              # q 1x1 weight
                  pl.BlockSpec((C, 2 * C), rep2),                          # kv 1x1 weight
                  pl.BlockSpec((3, 3, C), rep3),                           # q dwconv
                  pl.BlockSpec((3, 3, 2 * C), rep3),                       # kv dwconv
                  pl.BlockSpec((C, C), rep2)],                             # project_out
        out_specs=pl.BlockSpec((1, HW, C), lambda i: (i, 0, 0)),
        out_shape=jax.ShapeDtypeStruct((B, HW, C), jnp.float32),
        scratch_shapes=[pltpu.VMEM((H + 2, W + 2, C), jnp.float32),
                        pltpu.VMEM((H + 2, W + 2, 2 * C), jnp.float32)],
        compiler_params=pltpu.CompilerParams(dimension_semantics=("parallel",)),
    )(params["temperature"], x3, f3,
      params["ln1_w"].reshape(1, C), params["ln1_b"].reshape(1, C),
      params["ln2_w"].reshape(1, C), params["ln2_b"].reshape(1, C),
      params["q_w"], params["kv_w"], params["q_dw"], params["kv_dw"],
      params["proj_w"])


# --------------------- fused FFN branch (x + FFN(LN3(x))) -------------------

def _ffn_branch_kernel(x_ref, ln3g_ref, ln3b_ref, win_ref, dw_ref, wout_ref,
                       o_ref, pp_ref, *, H, W, hp):
    C = x_ref.shape[-1]
    HW = H * W

    x = x_ref[0].astype(jnp.float32)                     # (HW, C) residual + LN3 input
    pin = jnp.dot(_layernorm(x, ln3g_ref, ln3b_ref), win_ref[...],
                  preferred_element_type=jnp.float32)    # (HW, 2*hp)

    d = _dwconv3x3(pp_ref, pin.reshape(H, W, 2 * hp),
                   dw_ref[...].astype(jnp.float32), H, W, 2 * hp).reshape(HW, 2 * hp)

    g1 = d[:, :hp]
    g2 = d[:, hp:]
    g = 0.5 * g1 * (1.0 + jax.lax.erf(g1 * (1.0 / _SQRT2))) * g2   # exact GELU gate
    y = jnp.dot(g, wout_ref[...], preferred_element_type=jnp.float32)
    o_ref[0] = (x + y).astype(o_ref.dtype)


def ffn_branch(x3, params, H, W):
    B, HW, C = x3.shape
    kern = functools.partial(_ffn_branch_kernel, H=H, W=W, hp=HP)
    rep2 = lambda i: (0, 0)
    rep3 = lambda i: (0, 0, 0)
    return pl.pallas_call(
        kern,
        grid=(B,),
        in_specs=[pl.BlockSpec((1, HW, C), lambda i: (i, 0, 0)),           # x3
                  pl.BlockSpec((1, C), rep2),                              # ln3 gamma
                  pl.BlockSpec((1, C), rep2),                              # ln3 beta
                  pl.BlockSpec((C, 2 * HP), rep2),                         # project_in
                  pl.BlockSpec((3, 3, 2 * HP), rep3),                      # dwconv
                  pl.BlockSpec((HP, C), rep2)],                            # project_out
        out_specs=pl.BlockSpec((1, HW, C), lambda i: (i, 0, 0)),
        out_shape=jax.ShapeDtypeStruct((B, HW, C), jnp.float32),
        scratch_shapes=[pltpu.VMEM((H + 2, W + 2, 2 * HP), jnp.float32)],
        compiler_params=pltpu.CompilerParams(dimension_semantics=("parallel",)),
    )(x3, params["ln3_w"].reshape(1, C), params["ln3_b"].reshape(1, C),
      params["ffn_in_w"], params["ffn_dw"], params["ffn_out_w"])


# ------------------------------ parameters ----------------------------------

def init_params(key):
    ks = jax.random.split(key, 8)
    s = 0.02
    pad = HP - HIDDEN

    # FFN weights at the true width, then zero-padded to HP (numerically inert).
    ffn_in = s * jax.random.normal(ks[5], (DIM, 2 * HIDDEN), jnp.float32)
    ffn_dw = s * jax.random.normal(ks[6], (3, 3, 2 * HIDDEN), jnp.float32)
    ffn_out = s * jax.random.normal(ks[7], (HIDDEN, DIM), jnp.float32)

    zc = jnp.zeros((DIM, pad), jnp.float32)
    ffn_in_p = jnp.concatenate(
        [ffn_in[:, :HIDDEN], zc, ffn_in[:, HIDDEN:], zc], axis=1)          # (DIM, 2*HP)
    zd = jnp.zeros((3, 3, pad), jnp.float32)
    ffn_dw_p = jnp.concatenate(
        [ffn_dw[..., :HIDDEN], zd, ffn_dw[..., HIDDEN:], zd], axis=-1)     # (3,3,2*HP)
    ffn_out_p = jnp.concatenate(
        [ffn_out, jnp.zeros((pad, DIM), jnp.float32)], axis=0)             # (HP, DIM)

    return {
        "ln1_w": jnp.ones((DIM,), jnp.float32),
        "ln1_b": jnp.zeros((DIM,), jnp.float32),
        "ln2_w": jnp.ones((DIM,), jnp.float32),
        "ln2_b": jnp.zeros((DIM,), jnp.float32),
        "ln3_w": jnp.ones((DIM,), jnp.float32),
        "ln3_b": jnp.zeros((DIM,), jnp.float32),
        "temperature": jnp.ones((NUM_HEADS,), jnp.float32),
        # 1x1 conv weights stored as (Cin, Cout) for y = x @ W
        "q_w": s * jax.random.normal(ks[0], (DIM, DIM), jnp.float32),
        "q_dw": s * jax.random.normal(ks[1], (3, 3, DIM), jnp.float32),
        "kv_w": s * jax.random.normal(ks[2], (DIM, 2 * DIM), jnp.float32),
        "kv_dw": s * jax.random.normal(ks[3], (3, 3, 2 * DIM), jnp.float32),
        "proj_w": s * jax.random.normal(ks[4], (DIM, DIM), jnp.float32),
        "ffn_in_w": ffn_in_p,      # (DIM, 2*HP)
        "ffn_dw": ffn_dw_p,        # (3, 3, 2*HP)
        "ffn_out_w": ffn_out_p,    # (HP, DIM)
    }


# ------------------------------ forward pass --------------------------------

def injector_forward(params, image_embeddings_nchw, flow_nchw):
    # NCHW -> NHWC (single boundary transpose each way)
    x = jnp.transpose(image_embeddings_nchw, (0, 2, 3, 1)).astype(jnp.float32)
    f = jnp.transpose(flow_nchw, (0, 2, 3, 1)).astype(jnp.float32)
    B, H, W, C = x.shape
    HW = H * W
    x3 = x.reshape(B, HW, C)
    f3 = f.reshape(B, HW, C)

    # ---- x + Attention_MDTA(norm1(x), norm2(flow))  (one fused kernel) ----
    x3 = attn_branch(x3, f3, params, H, W)

    # ---- x + FeedForward(norm3(x))                  (one fused kernel) ----
    x3 = ffn_branch(x3, params, H, W)

    out = x3.reshape(B, H, W, C)
    return jnp.transpose(out, (0, 3, 1, 2))   # back to NCHW


# --------------------------------- main --------------------------------------

if __name__ == "__main__":
    key = jax.random.PRNGKey(0)
    kp, kx, kf = jax.random.split(key, 3)

    params = init_params(kp)

    # dim is fixed to 128 by the module's __init__; keep batch & spatial small.
    B, H, W = 2, 8, 8
    image_embeddings = jax.random.normal(kx, (B, DIM, H, W), jnp.float32)
    flow = jax.random.normal(kf, (B, DIM, H, W), jnp.float32)

    fwd = jax.jit(injector_forward)
    out = fwd(params, image_embeddings, flow)
    jax.block_until_ready(out)

    assert out.shape == (B, DIM, H, W)
    assert jnp.all(jnp.isfinite(out))
    print("KERNEL_OK")
</pallas_src>

<mosaic_0001>
module attributes {stable_mosaic.version = 11 : i64} {
  func.func @_ffn_branch_kernel(%arg0: i32, %arg1: memref<1x64x128xf32, #tpu.memory_space<vmem>>, %arg2: memref<1x128xf32, #tpu.memory_space<vmem>>, %arg3: memref<1x128xf32, #tpu.memory_space<vmem>>, %arg4: memref<128x768xf32, #tpu.memory_space<vmem>>, %arg5: memref<3x3x768xf32, #tpu.memory_space<vmem>>, %arg6: memref<384x128xf32, #tpu.memory_space<vmem>>, %arg7: memref<1x64x128xf32, #tpu.memory_space<vmem>>, %arg8: memref<10x10x768xf32, #tpu.memory_space<vmem>>) attributes {dimension_semantics = [#tpu.dimension_semantics<parallel>], iteration_bounds = array<i64: 2>, scalar_prefetch = 0 : i64, scratch_operands = 1 : i64, tpu.core_type = #tpu.core_type<tc>, window_params = [{transform_indices = @transform_0, window_bounds = array<i64: 1, 64, 128>}, {pipeline_mode = #tpu.pipeline_mode<synchronous>, transform_indices = @transform_1, window_bounds = array<i64: 1, 128>}, {pipeline_mode = #tpu.pipeline_mode<synchronous>, transform_indices = @transform_2, window_bounds = array<i64: 1, 128>}, {pipeline_mode = #tpu.pipeline_mode<synchronous>, transform_indices = @transform_3, window_bounds = array<i64: 128, 768>}, {pipeline_mode = #tpu.pipeline_mode<synchronous>, transform_indices = @transform_4, window_bounds = array<i64: 3, 3, 768>}, {pipeline_mode = #tpu.pipeline_mode<synchronous>, transform_indices = @transform_5, window_bounds = array<i64: 384, 128>}, {transform_indices = @transform_6, window_bounds = array<i64: 1, 64, 128>}]} {
    %c0 = arith.constant 0 : index
    %c0_0 = arith.constant 0 : index
    %c0_1 = arith.constant 0 : index
    %0 = vector.load %arg1[%c0, %c0_0, %c0_1] : memref<1x64x128xf32, #tpu.memory_space<vmem>>, vector<1x64x128xf32>
    %1 = vector.shape_cast %0 : vector<1x64x128xf32> to vector<64x128xf32>
    %cst = arith.constant dense<0.000000e+00> : vector<64xf32>
    %2 = vector.multi_reduction <add>, %1, %cst [1] : vector<64x128xf32> to vector<64xf32>
    %3 = vector.shape_cast %2 : vector<64xf32> to vector<64x1xf32>
    %cst_2 = arith.constant 1.280000e+02 : f32
    %4 = vector.broadcast %cst_2 : f32 to vector<64x1xf32>
    %5 = arith.divf %3, %4 : vector<64x1xf32>
    %6 = vector.broadcast %5 : vector<64x1xf32> to vector<64x128xf32>
    %7 = arith.subf %1, %6 : vector<64x128xf32>
    %8 = arith.mulf %7, %7 : vector<64x128xf32>
    %cst_3 = arith.constant dense<0.000000e+00> : vector<64xf32>
    %9 = vector.multi_reduction <add>, %8, %cst_3 [1] : vector<64x128xf32> to vector<64xf32>
    %10 = vector.shape_cast %9 : vector<64xf32> to vector<64x1xf32>
    %cst_4 = arith.constant 1.280000e+02 : f32
    %11 = vector.broadcast %cst_4 : f32 to vector<64x1xf32>
    %12 = arith.divf %10, %11 : vector<64x1xf32>
    %cst_5 = arith.constant 9.99999974E-6 : f32
    %13 = vector.broadcast %cst_5 : f32 to vector<64x1xf32>
    %14 = arith.addf %12, %13 : vector<64x1xf32>
    %15 = math.rsqrt %14 : vector<64x1xf32>
    %16 = vector.broadcast %15 : vector<64x1xf32> to vector<64x128xf32>
    %17 = arith.mulf %7, %16 : vector<64x128xf32>
    %c0_6 = arith.constant 0 : index
    %c0_7 = arith.constant 0 : index
    %18 = vector.load %arg2[%c0_6, %c0_7] : memref<1x128xf32, #tpu.memory_space<vmem>>, vector<1x128xf32>
    %19 = vector.broadcast %18 : vector<1x128xf32> to vector<64x128xf32>
    %20 = arith.mulf %17, %19 : vector<64x128xf32>
    %c0_8 = arith.constant 0 : index
    %c0_9 = arith.constant 0 : index
    %21 = vector.load %arg3[%c0_8, %c0_9] : memref<1x128xf32, #tpu.memory_space<vmem>>, vector<1x128xf32>
    %22 = vector.broadcast %21 : vector<1x128xf32> to vector<64x128xf32>
    %23 = arith.addf %20, %22 : vector<64x128xf32>
    %c0_10 = arith.constant 0 : index
    %c0_11 = arith.constant 0 : index
    %24 = vector.load %arg4[%c0_10, %c0_11] : memref<128x768xf32, #tpu.memory_space<vmem>>, vector<128x768xf32>
    %cst_12 = arith.constant dense<0.000000e+00> : vector<64x768xf32>
    %25 = tpu.matmul %23, %24, %cst_12 {dimension_numbers = #tpu.dot_dimension_numbers<[1], [0], [0], [1], [0, 0, 1, 1], [], []>} : vector<64x128xf32>, vector<128x768xf32>, vector<64x768xf32> -> vector<64x768xf32>
    %26 = vector.shape_cast %25 : vector<64x768xf32> to vector<8x8x768xf32>
    %c0_13 = arith.constant 0 : index
    %c0_14 = arith.constant 0 : index
    %c0_15 = arith.constant 0 : index
    %27 = vector.load %arg5[%c0_13, %c0_14, %c0_15] : memref<3x3x768xf32, #tpu.memory_space<vmem>>, vector<3x3x768xf32>
    %cst_16 = arith.constant 0.000000e+00 : f32
    %28 = vector.broadcast %cst_16 : f32 to vector<10x10x768xf32>
    %c0_17 = arith.constant 0 : index
    %c0_18 = arith.constant 0 : index
    %c0_19 = arith.constant 0 : index
    %29 = vector.load %arg8[%c0_17, %c0_18, %c0_19] : memref<10x10x768xf32, #tpu.memory_space<vmem>>, vector<10x10x768xf32>
    tpu.vector_store %arg8[%c0_17, %c0_18, %c0_19], %28 {strides = array<i32>} : memref<10x10x768xf32, #tpu.memory_space<vmem>>, vector<10x10x768xf32>,
    %c1 = arith.constant 1 : index
    %c1_20 = arith.constant 1 : index
    %c0_21 = arith.constant 0 : index
    %30 = vector.load %arg8[%c1, %c1_20, %c0_21] : memref<10x10x768xf32, #tpu.memory_space<vmem>>, vector<8x8x768xf32>
    tpu.vector_store %arg8[%c1, %c1_20, %c0_21], %26 {strides = array<i32>} : memref<10x10x768xf32, #tpu.memory_space<vmem>>, vector<8x8x768xf32>,
    %cst_22 = arith.constant 0.000000e+00 : f32
    %31 = vector.broadcast %cst_22 : f32 to vector<8x8x768xf32>
    %c0_23 = arith.constant 0 : index
    %c0_24 = arith.constant 0 : index
    %c0_25 = arith.constant 0 : index
    %32 = vector.load %arg8[%c0_23, %c0_24, %c0_25] : memref<10x10x768xf32, #tpu.memory_space<vmem>>, vector<8x10x768xf32>
    %33 = vector.extract_strided_slice %32 {offsets = [0, 0, 0], sizes = [8, 8, 768], strides = [1, 1, 1]} : vector<8x10x768xf32> to vector<8x8x768xf32>
    %34 = vector.extract_strided_slice %27 {offsets = [0, 0, 0], sizes = [1, 1, 768], strides = [1, 1, 1]} : vector<3x3x768xf32> to vector<1x1x768xf32>
    %35 = vector.shape_cast %34 : vector<1x1x768xf32> to vector<768xf32>
    %36 = vector.shape_cast %35 : vector<768xf32> to vector<1x1x768xf32>
    %37 = vector.broadcast %36 : vector<1x1x768xf32> to vector<8x8x768xf32>
    %38 = arith.mulf %33, %37 : vector<8x8x768xf32>
    %39 = arith.addf %31, %38 : vector<8x8x768xf32>
    %40 = vector.extract_strided_slice %32 {offsets = [0, 1, 0], sizes = [8, 8, 768], strides = [1, 1, 1]} : vector<8x10x768xf32> to vector<8x8x768xf32>
    %41 = vector.extract_strided_slice %27 {offsets = [0, 1, 0], sizes = [1, 1, 768], strides = [1, 1, 1]} : vector<3x3x768xf32> to vector<1x1x768xf32>
    %42 = vector.shape_cast %41 : vector<1x1x768xf32> to vector<768xf32>
    %43 = vector.shape_cast %42 : vector<768xf32> to vector<1x1x768xf32>
    %44 = vector.broadcast %43 : vector<1x1x768xf32> to vector<8x8x768xf32>
    %45 = arith.mulf %40, %44 : vector<8x8x768xf32>
    %46 = arith.addf %39, %45 : vector<8x8x768xf32>
    %47 = vector.extract_strided_slice %32 {offsets = [0, 2, 0], sizes = [8, 8, 768], strides = [1, 1, 1]} : vector<8x10x768xf32> to vector<8x8x768xf32>
    %48 = vector.extract_strided_slice %27 {offsets = [0, 2, 0], sizes = [1, 1, 768], strides = [1, 1, 1]} : vector<3x3x768xf32> to vector<1x1x768xf32>
    %49 = vector.shape_cast %48 : vector<1x1x768xf32> to vector<768xf32>
    %50 = vector.shape_cast %49 : vector<768xf32> to vector<1x1x768xf32>
    %51 = vector.broadcast %50 : vector<1x1x768xf32> to vector<8x8x768xf32>
    %52 = arith.mulf %47, %51 : vector<8x8x768xf32>
    %53 = arith.addf %46, %52 : vector<8x8x768xf32>
    %c1_26 = arith.constant 1 : index
    %c0_27 = arith.constant 0 : index
    %c0_28 = arith.constant 0 : index
    %54 = vector.load %arg8[%c1_26, %c0_27, %c0_28] : memref<10x10x768xf32, #tpu.memory_space<vmem>>, vector<8x10x768xf32>
    %55 = vector.extract_strided_slice %54 {offsets = [0, 0, 0], sizes = [8, 8, 768], strides = [1, 1, 1]} : vector<8x10x768xf32> to vector<8x8x768xf32>
    %56 = vector.extract_strided_slice %27 {offsets = [1, 0, 0], sizes = [1, 1, 768], strides = [1, 1, 1]} : vector<3x3x768xf32> to vector<1x1x768xf32>
    %57 = vector.shape_cast %56 : vector<1x1x768xf32> to vector<768xf32>
    %58 = vector.shape_cast %57 : vector<768xf32> to vector<1x1x768xf32>
    %59 = vector.broadcast %58 : vector<1x1x768xf32> to vector<8x8x768xf32>
    %60 = arith.mulf %55, %59 : vector<8x8x768xf32>
    %61 = arith.addf %53, %60 : vector<8x8x768xf32>
    %62 = vector.extract_strided_slice %54 {offsets = [0, 1, 0], sizes = [8, 8, 768], strides = [1, 1, 1]} : vector<8x10x768xf32> to vector<8x8x768xf32>
    %63 = vector.extract_strided_slice %27 {offsets = [1, 1, 0], sizes = [1, 1, 768], strides = [1, 1, 1]} : vector<3x3x768xf32> to vector<1x1x768xf32>
    %64 = vector.shape_cast %63 : vector<1x1x768xf32> to vector<768xf32>
    %65 = vector.shape_cast %64 : vector<768xf32> to vector<1x1x768xf32>
    %66 = vector.broadcast %65 : vector<1x1x768xf32> to vector<8x8x768xf32>
    %67 = arith.mulf %62, %66 : vector<8x8x768xf32>
    %68 = arith.addf %61, %67 : vector<8x8x768xf32>
    %69 = vector.extract_strided_slice %54 {offsets = [0, 2, 0], sizes = [8, 8, 768], strides = [1, 1, 1]} : vector<8x10x768xf32> to vector<8x8x768xf32>
    %70 = vector.extract_strided_slice %27 {offsets = [1, 2, 0], sizes = [1, 1, 768], strides = [1, 1, 1]} : vector<3x3x768xf32> to vector<1x1x768xf32>
    %71 = vector.shape_cast %70 : vector<1x1x768xf32> to vector<768xf32>
    %72 = vector.shape_cast %71 : vector<768xf32> to vector<1x1x768xf32>
    %73 = vector.broadcast %72 : vector<1x1x768xf32> to vector<8x8x768xf32>
    %74 = arith.mulf %69, %73 : vector<8x8x768xf32>
    %75 = arith.addf %68, %74 : vector<8x8x768xf32>
    %c2 = arith.constant 2 : index
    %c0_29 = arith.constant 0 : index
    %c0_30 = arith.constant 0 : index
    %76 = vector.load %arg8[%c2, %c0_29, %c0_30] : memref<10x10x768xf32, #tpu.memory_space<vmem>>, vector<8x10x768xf32>
    %77 = vector.extract_strided_slice %76 {offsets = [0, 0, 0], sizes = [8, 8, 768], strides = [1, 1, 1]} : vector<8x10x768xf32> to vector<8x8x768xf32>
    %78 = vector.extract_strided_slice %27 {offsets = [2, 0, 0], sizes = [1, 1, 768], strides = [1, 1, 1]} : vector<3x3x768xf32> to vector<1x1x768xf32>
    %79 = vector.shape_cast %78 : vector<1x1x768xf32> to vector<768xf32>
    %80 = vector.shape_cast %79 : vector<768xf32> to vector<1x1x768xf32>
    %81 = vector.broadcast %80 : vector<1x1x768xf32> to vector<8x8x768xf32>
    %82 = arith.mulf %77, %81 : vector<8x8x768xf32>
    %83 = arith.addf %75, %82 : vector<8x8x768xf32>
    %84 = vector.extract_strided_slice %76 {offsets = [0, 1, 0], sizes = [8, 8, 768], strides = [1, 1, 1]} : vector<8x10x768xf32> to vector<8x8x768xf32>
    %85 = vector.extract_strided_slice %27 {offsets = [2, 1, 0], sizes = [1, 1, 768], strides = [1, 1, 1]} : vector<3x3x768xf32> to vector<1x1x768xf32>
    %86 = vector.shape_cast %85 : vector<1x1x768xf32> to vector<768xf32>
    %87 = vector.shape_cast %86 : vector<768xf32> to vector<1x1x768xf32>
    %88 = vector.broadcast %87 : vector<1x1x768xf32> to vector<8x8x768xf32>
    %89 = arith.mulf %84, %88 : vector<8x8x768xf32>
    %90 = arith.addf %83, %89 : vector<8x8x768xf32>
    %91 = vector.extract_strided_slice %76 {offsets = [0, 2, 0], sizes = [8, 8, 768], strides = [1, 1, 1]} : vector<8x10x768xf32> to vector<8x8x768xf32>
    %92 = vector.extract_strided_slice %27 {offsets = [2, 2, 0], sizes = [1, 1, 768], strides = [1, 1, 1]} : vector<3x3x768xf32> to vector<1x1x768xf32>
    %93 = vector.shape_cast %92 : vector<1x1x768xf32> to vector<768xf32>
    %94 = vector.shape_cast %93 : vector<768xf32> to vector<1x1x768xf32>
    %95 = vector.broadcast %94 : vector<1x1x768xf32> to vector<8x8x768xf32>
    %96 = arith.mulf %91, %95 : vector<8x8x768xf32>
    %97 = arith.addf %90, %96 : vector<8x8x768xf32>
    %98 = vector.shape_cast %97 : vector<8x8x768xf32> to vector<64x768xf32>
    %99 = vector.extract_strided_slice %98 {offsets = [0, 0], sizes = [64, 384], strides = [1, 1]} : vector<64x768xf32> to vector<64x384xf32>
    %100 = vector.extract_strided_slice %98 {offsets = [0, 384], sizes = [64, 384], strides = [1, 1]} : vector<64x768xf32> to vector<64x384xf32>
    %cst_31 = arith.constant 5.000000e-01 : f32
    %101 = vector.broadcast %cst_31 : f32 to vector<64x384xf32>
    %102 = arith.mulf %101, %99 : vector<64x384xf32>
    %cst_32 = arith.constant 0.707106769 : f32
    %103 = vector.broadcast %cst_32 : f32 to vector<64x384xf32>
    %104 = arith.mulf %99, %103 : vector<64x384xf32>
    %105 = math.erf %104 : vector<64x384xf32>
    %cst_33 = arith.constant 1.000000e+00 : f32
    %106 = vector.broadcast %cst_33 : f32 to vector<64x384xf32>
    %107 = arith.addf %106, %105 : vector<64x384xf32>
    %108 = arith.mulf %102, %107 : vector<64x384xf32>
    %109 = arith.mulf %108, %100 : vector<64x384xf32>
    %c0_34 = arith.constant 0 : index
    %c0_35 = arith.constant 0 : index
    %110 = vector.load %arg6[%c0_34, %c0_35] : memref<384x128xf32, #tpu.memory_space<vmem>>, vector<384x128xf32>
    %cst_36 = arith.constant dense<0.000000e+00> : vector<64x128xf32>
    %111 = tpu.matmul %109, %110, %cst_36 {dimension_numbers = #tpu.dot_dimension_numbers<[1], [0], [0], [1], [0, 0, 1, 1], [], []>} : vector<64x384xf32>, vector<384x128xf32>, vector<64x128xf32> -> vector<64x128xf32>
    %112 = arith.addf %1, %111 : vector<64x128xf32>
    %c0_37 = arith.constant 0 : index
    %c0_38 = arith.constant 0 : index
    %c0_39 = arith.constant 0 : index
    %113 = vector.load %arg7[%c0_37, %c0_38, %c0_39] : memref<1x64x128xf32, #tpu.memory_space<vmem>>, vector<1x64x128xf32>
    %114 = vector.shape_cast %113 : vector<1x64x128xf32> to vector<64x128xf32>
    %115 = vector.shape_cast %112 : vector<64x128xf32> to vector<1x64x128xf32>
    tpu.vector_store %arg7[%c0_37, %c0_38, %c0_39], %115 {strides = array<i32>} : memref<1x64x128xf32, #tpu.memory_space<vmem>>, vector<1x64x128xf32>,
    return
  }
  func.func @transform_0(%arg0: i32) -> (i32, i32, i32) {
    %c0_i32 = arith.constant 0 : i32
    %c0_i32_0 = arith.constant 0 : i32
    %c0_i32_1 = arith.constant 0 : i32
    return %arg0, %c0_i32, %c0_i32_0 : i32, i32, i32
  }
  func.func @transform_1(%arg0: i32) -> (i32, i32) {
    %c0_i32 = arith.constant 0 : i32
    %c0_i32_0 = arith.constant 0 : i32
    %c0_i32_1 = arith.constant 0 : i32
    return %c0_i32, %c0_i32_0 : i32, i32
  }
  func.func @transform_2(%arg0: i32) -> (i32, i32) {
    %c0_i32 = arith.constant 0 : i32
    %c0_i32_0 = arith.constant 0 : i32
    %c0_i32_1 = arith.constant 0 : i32
    return %c0_i32, %c0_i32_0 : i32, i32
  }
  func.func @transform_3(%arg0: i32) -> (i32, i32) {
    %c0_i32 = arith.constant 0 : i32
    %c0_i32_0 = arith.constant 0 : i32
    %c0_i32_1 = arith.constant 0 : i32
    return %c0_i32, %c0_i32_0 : i32, i32
  }
  func.func @transform_4(%arg0: i32) -> (i32, i32, i32) {
    %c0_i32 = arith.constant 0 : i32
    %c0_i32_0 = arith.constant 0 : i32
    %c0_i32_1 = arith.constant 0 : i32
    %c0_i32_2 = arith.constant 0 : i32
    return %c0_i32, %c0_i32_0, %c0_i32_1 : i32, i32, i32
  }
  func.func @transform_5(%arg0: i32) -> (i32, i32) {
    %c0_i32 = arith.constant 0 : i32
    %c0_i32_0 = arith.constant 0 : i32
    %c0_i32_1 = arith.constant 0 : i32
    return %c0_i32, %c0_i32_0 : i32, i32
  }
  func.func @transform_6(%arg0: i32) -> (i32, i32, i32) {
    %c0_i32 = arith.constant 0 : i32
    %c0_i32_0 = arith.constant 0 : i32
    %c0_i32_1 = arith.constant 0 : i32
    return %arg0, %c0_i32, %c0_i32_0 : i32, i32, i32
  }
}

module attributes {stable_mosaic.version = 11 : i64} {
  func.func @_attn_branch_kernel(%arg0: i32, %arg1: memref<2xf32, #tpu.memory_space<smem>>, %arg2: memref<1x64x128xf32, #tpu.memory_space<vmem>>, %arg3: memref<1x64x128xf32, #tpu.memory_space<vmem>>, %arg4: memref<1x128xf32, #tpu.memory_space<vmem>>, %arg5: memref<1x128xf32, #tpu.memory_space<vmem>>, %arg6: memref<1x128xf32, #tpu.memory_space<vmem>>, %arg7: memref<1x128xf32, #tpu.memory_space<vmem>>, %arg8: memref<128x128xf32, #tpu.memory_space<vmem>>, %arg9: memref<128x256xf32, #tpu.memory_space<vmem>>, %arg10: memref<3x3x128xf32, #tpu.memory_space<vmem>>, %arg11: memref<3x3x256xf32, #tpu.memory_space<vmem>>, %arg12: memref<128x128xf32, #tpu.memory_space<vmem>>, %arg13: memref<1x64x128xf32, #tpu.memory_space<vmem>>, %arg14: memref<10x10x128xf32, #tpu.memory_space<vmem>>, %arg15: memref<10x10x256xf32, #tpu.memory_space<vmem>>) attributes {dimension_semantics = [#tpu.dimension_semantics<parallel>], iteration_bounds = array<i64: 2>, scalar_prefetch = 0 : i64, scratch_operands = 2 : i64, tpu.core_type = #tpu.core_type<tc>, window_params = [{transform_indices = @transform_0, window_bounds = array<i64: 2>}, {transform_indices = @transform_1, window_bounds = array<i64: 1, 64, 128>}, {transform_indices = @transform_2, window_bounds = array<i64: 1, 64, 128>}, {pipeline_mode = #tpu.pipeline_mode<synchronous>, transform_indices = @transform_3, window_bounds = array<i64: 1, 128>}, {pipeline_mode = #tpu.pipeline_mode<synchronous>, transform_indices = @transform_4, window_bounds = array<i64: 1, 128>}, {pipeline_mode = #tpu.pipeline_mode<synchronous>, transform_indices = @transform_5, window_bounds = array<i64: 1, 128>}, {pipeline_mode = #tpu.pipeline_mode<synchronous>, transform_indices = @transform_6, window_bounds = array<i64: 1, 128>}, {pipeline_mode = #tpu.pipeline_mode<synchronous>, transform_indices = @transform_7, window_bounds = array<i64: 128, 128>}, {pipeline_mode = #tpu.pipeline_mode<synchronous>, transform_indices = @transform_8, window_bounds = array<i64: 128, 256>}, {pipeline_mode = #tpu.pipeline_mode<synchronous>, transform_indices = @transform_9, window_bounds = array<i64: 3, 3, 128>}, {pipeline_mode = #tpu.pipeline_mode<synchronous>, transform_indices = @transform_10, window_bounds = array<i64: 3, 3, 256>}, {pipeline_mode = #tpu.pipeline_mode<synchronous>, transform_indices = @transform_11, window_bounds = array<i64: 128, 128>}, {transform_indices = @transform_12, window_bounds = array<i64: 1, 64, 128>}]} {
    %c0 = arith.constant 0 : index
    %c0_0 = arith.constant 0 : index
    %c0_1 = arith.constant 0 : index
    %0 = vector.load %arg2[%c0, %c0_0, %c0_1] : memref<1x64x128xf32, #tpu.memory_space<vmem>>, vector<1x64x128xf32>
    %1 = vector.shape_cast %0 : vector<1x64x128xf32> to vector<64x128xf32>
    %c0_2 = arith.constant 0 : index
    %c0_3 = arith.constant 0 : index
    %c0_4 = arith.constant 0 : index
    %2 = vector.load %arg3[%c0_2, %c0_3, %c0_4] : memref<1x64x128xf32, #tpu.memory_space<vmem>>, vector<1x64x128xf32>
    %3 = vector.shape_cast %2 : vector<1x64x128xf32> to vector<64x128xf32>
    %cst = arith.constant dense<0.000000e+00> : vector<64xf32>
    %4 = vector.multi_reduction <add>, %1, %cst [1] : vector<64x128xf32> to vector<64xf32>
    %5 = vector.shape_cast %4 : vector<64xf32> to vector<64x1xf32>
    %cst_5 = arith.constant 1.280000e+02 : f32
    %6 = vector.broadcast %cst_5 : f32 to vector<64x1xf32>
    %7 = arith.divf %5, %6 : vector<64x1xf32>
    %8 = vector.broadcast %7 : vector<64x1xf32> to vector<64x128xf32>
    %9 = arith.subf %1, %8 : vector<64x128xf32>
    %10 = arith.mulf %9, %9 : vector<64x128xf32>
    %cst_6 = arith.constant dense<0.000000e+00> : vector<64xf32>
    %11 = vector.multi_reduction <add>, %10, %cst_6 [1] : vector<64x128xf32> to vector<64xf32>
    %12 = vector.shape_cast %11 : vector<64xf32> to vector<64x1xf32>
    %cst_7 = arith.constant 1.280000e+02 : f32
    %13 = vector.broadcast %cst_7 : f32 to vector<64x1xf32>
    %14 = arith.divf %12, %13 : vector<64x1xf32>
    %cst_8 = arith.constant 9.99999974E-6 : f32
    %15 = vector.broadcast %cst_8 : f32 to vector<64x1xf32>
    %16 = arith.addf %14, %15 : vector<64x1xf32>
    %17 = math.rsqrt %16 : vector<64x1xf32>
    %18 = vector.broadcast %17 : vector<64x1xf32> to vector<64x128xf32>
    %19 = arith.mulf %9, %18 : vector<64x128xf32>
    %c0_9 = arith.constant 0 : index
    %c0_10 = arith.constant 0 : index
    %20 = vector.load %arg4[%c0_9, %c0_10] : memref<1x128xf32, #tpu.memory_space<vmem>>, vector<1x128xf32>
    %21 = vector.broadcast %20 : vector<1x128xf32> to vector<64x128xf32>
    %22 = arith.mulf %19, %21 : vector<64x128xf32>
    %c0_11 = arith.constant 0 : index
    %c0_12 = arith.constant 0 : index
    %23 = vector.load %arg5[%c0_11, %c0_12] : memref<1x128xf32, #tpu.memory_space<vmem>>, vector<1x128xf32>
    %24 = vector.broadcast %23 : vector<1x128xf32> to vector<64x128xf32>
    %25 = arith.addf %22, %24 : vector<64x128xf32>
    %c0_13 = arith.constant 0 : index
    %c0_14 = arith.constant 0 : index
    %26 = vector.load %arg8[%c0_13, %c0_14] : memref<128x128xf32, #tpu.memory_space<vmem>>, vector<128x128xf32>
    %cst_15 = arith.constant dense<0.000000e+00> : vector<64x128xf32>
    %27 = tpu.matmul %25, %26, %cst_15 {dimension_numbers = #tpu.dot_dimension_numbers<[1], [0], [0], [1], [0, 0, 1, 1], [], []>} : vector<64x128xf32>, vector<128x128xf32>, vector<64x128xf32> -> vector<64x128xf32>
    %cst_16 = arith.constant dense<0.000000e+00> : vector<64xf32>
    %28 = vector.multi_reduction <add>, %3, %cst_16 [1] : vector<64x128xf32> to vector<64xf32>
    %29 = vector.shape_cast %28 : vector<64xf32> to vector<64x1xf32>
    %cst_17 = arith.constant 1.280000e+02 : f32
    %30 = vector.broadcast %cst_17 : f32 to vector<64x1xf32>
    %31 = arith.divf %29, %30 : vector<64x1xf32>
    %32 = vector.broadcast %31 : vector<64x1xf32> to vector<64x128xf32>
    %33 = arith.subf %3, %32 : vector<64x128xf32>
    %34 = arith.mulf %33, %33 : vector<64x128xf32>
    %cst_18 = arith.constant dense<0.000000e+00> : vector<64xf32>
    %35 = vector.multi_reduction <add>, %34, %cst_18 [1] : vector<64x128xf32> to vector<64xf32>
    %36 = vector.shape_cast %35 : vector<64xf32> to vector<64x1xf32>
    %cst_19 = arith.constant 1.280000e+02 : f32
    %37 = vector.broadcast %cst_19 : f32 to vector<64x1xf32>
    %38 = arith.divf %36, %37 : vector<64x1xf32>
    %cst_20 = arith.constant 9.99999974E-6 : f32
    %39 = vector.broadcast %cst_20 : f32 to vector<64x1xf32>
    %40 = arith.addf %38, %39 : vector<64x1xf32>
    %41 = math.rsqrt %40 : vector<64x1xf32>
    %42 = vector.broadcast %41 : vector<64x1xf32> to vector<64x128xf32>
    %43 = arith.mulf %33, %42 : vector<64x128xf32>
    %c0_21 = arith.constant 0 : index
    %c0_22 = arith.constant 0 : index
    %44 = vector.load %arg6[%c0_21, %c0_22] : memref<1x128xf32, #tpu.memory_space<vmem>>, vector<1x128xf32>
    %45 = vector.broadcast %44 : vector<1x128xf32> to vector<64x128xf32>
    %46 = arith.mulf %43, %45 : vector<64x128xf32>
    %c0_23 = arith.constant 0 : index
    %c0_24 = arith.constant 0 : index
    %47 = vector.load %arg7[%c0_23, %c0_24] : memref<1x128xf32, #tpu.memory_space<vmem>>, vector<1x128xf32>
    %48 = vector.broadcast %47 : vector<1x128xf32> to vector<64x128xf32>
    %49 = arith.addf %46, %48 : vector<64x128xf32>
    %c0_25 = arith.constant 0 : index
    %c0_26 = arith.constant 0 : index
    %50 = vector.load %arg9[%c0_25, %c0_26] : memref<128x256xf32, #tpu.memory_space<vmem>>, vector<128x256xf32>
    %cst_27 = arith.constant dense<0.000000e+00> : vector<64x256xf32>
    %51 = tpu.matmul %49, %50, %cst_27 {dimension_numbers = #tpu.dot_dimension_numbers<[1], [0], [0], [1], [0, 0, 1, 1], [], []>} : vector<64x128xf32>, vector<128x256xf32>, vector<64x256xf32> -> vector<64x256xf32>
    %52 = vector.shape_cast %27 : vector<64x128xf32> to vector<8x8x128xf32>
    %c0_28 = arith.constant 0 : index
    %c0_29 = arith.constant 0 : index
    %c0_30 = arith.constant 0 : index
    %53 = vector.load %arg10[%c0_28, %c0_29, %c0_30] : memref<3x3x128xf32, #tpu.memory_space<vmem>>, vector<3x3x128xf32>
    %cst_31 = arith.constant 0.000000e+00 : f32
    %54 = vector.broadcast %cst_31 : f32 to vector<10x10x128xf32>
    %c0_32 = arith.constant 0 : index
    %c0_33 = arith.constant 0 : index
    %c0_34 = arith.constant 0 : index
    %55 = vector.load %arg14[%c0_32, %c0_33, %c0_34] : memref<10x10x128xf32, #tpu.memory_space<vmem>>, vector<10x10x128xf32>
    tpu.vector_store %arg14[%c0_32, %c0_33, %c0_34], %54 {strides = array<i32>} : memref<10x10x128xf32, #tpu.memory_space<vmem>>, vector<10x10x128xf32>,
    %c1 = arith.constant 1 : index
    %c1_35 = arith.constant 1 : index
    %c0_36 = arith.constant 0 : index
    %56 = vector.load %arg14[%c1, %c1_35, %c0_36] : memref<10x10x128xf32, #tpu.memory_space<vmem>>, vector<8x8x128xf32>
    tpu.vector_store %arg14[%c1, %c1_35, %c0_36], %52 {strides = array<i32>} : memref<10x10x128xf32, #tpu.memory_space<vmem>>, vector<8x8x128xf32>,
    %cst_37 = arith.constant 0.000000e+00 : f32
    %57 = vector.broadcast %cst_37 : f32 to vector<8x8x128xf32>
    %c0_38 = arith.constant 0 : index
    %c0_39 = arith.constant 0 : index
    %c0_40 = arith.constant 0 : index
    %58 = vector.load %arg14[%c0_38, %c0_39, %c0_40] : memref<10x10x128xf32, #tpu.memory_space<vmem>>, vector<8x10x128xf32>
    %59 = vector.extract_strided_slice %58 {offsets = [0, 0, 0], sizes = [8, 8, 128], strides = [1, 1, 1]} : vector<8x10x128xf32> to vector<8x8x128xf32>
    %60 = vector.extract_strided_slice %53 {offsets = [0, 0, 0], sizes = [1, 1, 128], strides = [1, 1, 1]} : vector<3x3x128xf32> to vector<1x1x128xf32>
    %61 = vector.shape_cast %60 : vector<1x1x128xf32> to vector<128xf32>
    %62 = vector.shape_cast %61 : vector<128xf32> to vector<1x1x128xf32>
    %63 = vector.broadcast %62 : vector<1x1x128xf32> to vector<8x8x128xf32>
    %64 = arith.mulf %59, %63 : vector<8x8x128xf32>
    %65 = arith.addf %57, %64 : vector<8x8x128xf32>
    %66 = vector.extract_strided_slice %58 {offsets = [0, 1, 0], sizes = [8, 8, 128], strides = [1, 1, 1]} : vector<8x10x128xf32> to vector<8x8x128xf32>
    %67 = vector.extract_strided_slice %53 {offsets = [0, 1, 0], sizes = [1, 1, 128], strides = [1, 1, 1]} : vector<3x3x128xf32> to vector<1x1x128xf32>
    %68 = vector.shape_cast %67 : vector<1x1x128xf32> to vector<128xf32>
    %69 = vector.shape_cast %68 : vector<128xf32> to vector<1x1x128xf32>
    %70 = vector.broadcast %69 : vector<1x1x128xf32> to vector<8x8x128xf32>
    %71 = arith.mulf %66, %70 : vector<8x8x128xf32>
    %72 = arith.addf %65, %71 : vector<8x8x128xf32>
    %73 = vector.extract_strided_slice %58 {offsets = [0, 2, 0], sizes = [8, 8, 128], strides = [1, 1, 1]} : vector<8x10x128xf32> to vector<8x8x128xf32>
    %74 = vector.extract_strided_slice %53 {offsets = [0, 2, 0], sizes = [1, 1, 128], strides = [1, 1, 1]} : vector<3x3x128xf32> to vector<1x1x128xf32>
    %75 = vector.shape_cast %74 : vector<1x1x128xf32> to vector<128xf32>
    %76 = vector.shape_cast %75 : vector<128xf32> to vector<1x1x128xf32>
    %77 = vector.broadcast %76 : vector<1x1x128xf32> to vector<8x8x128xf32>
    %78 = arith.mulf %73, %77 : vector<8x8x128xf32>
    %79 = arith.addf %72, %78 : vector<8x8x128xf32>
    %c1_41 = arith.constant 1 : index
    %c0_42 = arith.constant 0 : index
    %c0_43 = arith.constant 0 : index
    %80 = vector.load %arg14[%c1_41, %c0_42, %c0_43] : memref<10x10x128xf32, #tpu.memory_space<vmem>>, vector<8x10x128xf32>
    %81 = vector.extract_strided_slice %80 {offsets = [0, 0, 0], sizes = [8, 8, 128], strides = [1, 1, 1]} : vector<8x10x128xf32> to vector<8x8x128xf32>
    %82 = vector.extract_strided_slice %53 {offsets = [1, 0, 0], sizes = [1, 1, 128], strides = [1, 1, 1]} : vector<3x3x128xf32> to vector<1x1x128xf32>
    %83 = vector.shape_cast %82 : vector<1x1x128xf32> to vector<128xf32>
    %84 = vector.shape_cast %83 : vector<128xf32> to vector<1x1x128xf32>
    %85 = vector.broadcast %84 : vector<1x1x128xf32> to vector<8x8x128xf32>
    %86 = arith.mulf %81, %85 : vector<8x8x128xf32>
    %87 = arith.addf %79, %86 : vector<8x8x128xf32>
    %88 = vector.extract_strided_slice %80 {offsets = [0, 1, 0], sizes = [8, 8, 128], strides = [1, 1, 1]} : vector<8x10x128xf32> to vector<8x8x128xf32>
    %89 = vector.extract_strided_slice %53 {offsets = [1, 1, 0], sizes = [1, 1, 128], strides = [1, 1, 1]} : vector<3x3x128xf32> to vector<1x1x128xf32>
    %90 = vector.shape_cast %89 : vector<1x1x128xf32> to vector<128xf32>
    %91 = vector.shape_cast %90 : vector<128xf32> to vector<1x1x128xf32>
    %92 = vector.broadcast %91 : vector<1x1x128xf32> to vector<8x8x128xf32>
    %93 = arith.mulf %88, %92 : vector<8x8x128xf32>
    %94 = arith.addf %87, %93 : vector<8x8x128xf32>
    %95 = vector.extract_strided_slice %80 {offsets = [0, 2, 0], sizes = [8, 8, 128], strides = [1, 1, 1]} : vector<8x10x128xf32> to vector<8x8x128xf32>
    %96 = vector.extract_strided_slice %53 {offsets = [1, 2, 0], sizes = [1, 1, 128], strides = [1, 1, 1]} : vector<3x3x128xf32> to vector<1x1x128xf32>
    %97 = vector.shape_cast %96 : vector<1x1x128xf32> to vector<128xf32>
    %98 = vector.shape_cast %97 : vector<128xf32> to vector<1x1x128xf32>
    %99 = vector.broadcast %98 : vector<1x1x128xf32> to vector<8x8x128xf32>
    %100 = arith.mulf %95, %99 : vector<8x8x128xf32>
    %101 = arith.addf %94, %100 : vector<8x8x128xf32>
    %c2 = arith.constant 2 : index
    %c0_44 = arith.constant 0 : index
    %c0_45 = arith.constant 0 : index
    %102 = vector.load %arg14[%c2, %c0_44, %c0_45] : memref<10x10x128xf32, #tpu.memory_space<vmem>>, vector<8x10x128xf32>
    %103 = vector.extract_strided_slice %102 {offsets = [0, 0, 0], sizes = [8, 8, 128], strides = [1, 1, 1]} : vector<8x10x128xf32> to vector<8x8x128xf32>
    %104 = vector.extract_strided_slice %53 {offsets = [2, 0, 0], sizes = [1, 1, 128], strides = [1, 1, 1]} : vector<3x3x128xf32> to vector<1x1x128xf32>
    %105 = vector.shape_cast %104 : vector<1x1x128xf32> to vector<128xf32>
    %106 = vector.shape_cast %105 : vector<128xf32> to vector<1x1x128xf32>
    %107 = vector.broadcast %106 : vector<1x1x128xf32> to vector<8x8x128xf32>
    %108 = arith.mulf %103, %107 : vector<8x8x128xf32>
    %109 = arith.addf %101, %108 : vector<8x8x128xf32>
    %110 = vector.extract_strided_slice %102 {offsets = [0, 1, 0], sizes = [8, 8, 128], strides = [1, 1, 1]} : vector<8x10x128xf32> to vector<8x8x128xf32>
    %111 = vector.extract_strided_slice %53 {offsets = [2, 1, 0], sizes = [1, 1, 128], strides = [1, 1, 1]} : vector<3x3x128xf32> to vector<1x1x128xf32>
    %112 = vector.shape_cast %111 : vector<1x1x128xf32> to vector<128xf32>
    %113 = vector.shape_cast %112 : vector<128xf32> to vector<1x1x128xf32>
    %114 = vector.broadcast %113 : vector<1x1x128xf32> to vector<8x8x128xf32>
    %115 = arith.mulf %110, %114 : vector<8x8x128xf32>
    %116 = arith.addf %109, %115 : vector<8x8x128xf32>
    %117 = vector.extract_strided_slice %102 {offsets = [0, 2, 0], sizes = [8, 8, 128], strides = [1, 1, 1]} : vector<8x10x128xf32> to vector<8x8x128xf32>
    %118 = vector.extract_strided_slice %53 {offsets = [2, 2, 0], sizes = [1, 1, 128], strides = [1, 1, 1]} : vector<3x3x128xf32> to vector<1x1x128xf32>
    %119 = vector.shape_cast %118 : vector<1x1x128xf32> to vector<128xf32>
    %120 = vector.shape_cast %119 : vector<128xf32> to vector<1x1x128xf32>
    %121 = vector.broadcast %120 : vector<1x1x128xf32> to vector<8x8x128xf32>
    %122 = arith.mulf %117, %121 : vector<8x8x128xf32>
    %123 = arith.addf %116, %122 : vector<8x8x128xf32>
    %124 = vector.shape_cast %123 : vector<8x8x128xf32> to vector<64x128xf32>
    %125 = vector.shape_cast %51 : vector<64x256xf32> to vector<8x8x256xf32>
    %c0_46 = arith.constant 0 : index
    %c0_47 = arith.constant 0 : index
    %c0_48 = arith.constant 0 : index
    %126 = vector.load %arg11[%c0_46, %c0_47, %c0_48] : memref<3x3x256xf32, #tpu.memory_space<vmem>>, vector<3x3x256xf32>
    %cst_49 = arith.constant 0.000000e+00 : f32
    %127 = vector.broadcast %cst_49 : f32 to vector<10x10x256xf32>
    %c0_50 = arith.constant 0 : index
    %c0_51 = arith.constant 0 : index
    %c0_52 = arith.constant 0 : index
    %128 = vector.load %arg15[%c0_50, %c0_51, %c0_52] : memref<10x10x256xf32, #tpu.memory_space<vmem>>, vector<10x10x256xf32>
    tpu.vector_store %arg15[%c0_50, %c0_51, %c0_52], %127 {strides = array<i32>} : memref<10x10x256xf32, #tpu.memory_space<vmem>>, vector<10x10x256xf32>,
    %c1_53 = arith.constant 1 : index
    %c1_54 = arith.constant 1 : index
    %c0_55 = arith.constant 0 : index
    %129 = vector.load %arg15[%c1_53, %c1_54, %c0_55] : memref<10x10x256xf32, #tpu.memory_space<vmem>>, vector<8x8x256xf32>
    tpu.vector_store %arg15[%c1_53, %c1_54, %c0_55], %125 {strides = array<i32>} : memref<10x10x256xf32, #tpu.memory_space<vmem>>, vector<8x8x256xf32>,
    %cst_56 = arith.constant 0.000000e+00 : f32
    %130 = vector.broadcast %cst_56 : f32 to vector<8x8x256xf32>
    %c0_57 = arith.constant 0 : index
    %c0_58 = arith.constant 0 : index
    %c0_59 = arith.constant 0 : index
    %131 = vector.load %arg15[%c0_57, %c0_58, %c0_59] : memref<10x10x256xf32, #tpu.memory_space<vmem>>, vector<8x10x256xf32>
    %132 = vector.extract_strided_slice %131 {offsets = [0, 0, 0], sizes = [8, 8, 256], strides = [1, 1, 1]} : vector<8x10x256xf32> to vector<8x8x256xf32>
    %133 = vector.extract_strided_slice %126 {offsets = [0, 0, 0], sizes = [1, 1, 256], strides = [1, 1, 1]} : vector<3x3x256xf32> to vector<1x1x256xf32>
    %134 = vector.shape_cast %133 : vector<1x1x256xf32> to vector<256xf32>
    %135 = vector.shape_cast %134 : vector<256xf32> to vector<1x1x256xf32>
    %136 = vector.broadcast %135 : vector<1x1x256xf32> to vector<8x8x256xf32>
    %137 = arith.mulf %132, %136 : vector<8x8x256xf32>
    %138 = arith.addf %130, %137 : vector<8x8x256xf32>
    %139 = vector.extract_strided_slice %131 {offsets = [0, 1, 0], sizes = [8, 8, 256], strides = [1, 1, 1]} : vector<8x10x256xf32> to vector<8x8x256xf32>
    %140 = vector.extract_strided_slice %126 {offsets = [0, 1, 0], sizes = [1, 1, 256], strides = [1, 1, 1]} : vector<3x3x256xf32> to vector<1x1x256xf32>
    %141 = vector.shape_cast %140 : vector<1x1x256xf32> to vector<256xf32>
    %142 = vector.shape_cast %141 : vector<256xf32> to vector<1x1x256xf32>
    %143 = vector.broadcast %142 : vector<1x1x256xf32> to vector<8x8x256xf32>
    %144 = arith.mulf %139, %143 : vector<8x8x256xf32>
    %145 = arith.addf %138, %144 : vector<8x8x256xf32>
    %146 = vector.extract_strided_slice %131 {offsets = [0, 2, 0], sizes = [8, 8, 256], strides = [1, 1, 1]} : vector<8x10x256xf32> to vector<8x8x256xf32>
    %147 = vector.extract_strided_slice %126 {offsets = [0, 2, 0], sizes = [1, 1, 256], strides = [1, 1, 1]} : vector<3x3x256xf32> to vector<1x1x256xf32>
    %148 = vector.shape_cast %147 : vector<1x1x256xf32> to vector<256xf32>
    %149 = vector.shape_cast %148 : vector<256xf32> to vector<1x1x256xf32>
    %150 = vector.broadcast %149 : vector<1x1x256xf32> to vector<8x8x256xf32>
    %151 = arith.mulf %146, %150 : vector<8x8x256xf32>
    %152 = arith.addf %145, %151 : vector<8x8x256xf32>
    %c1_60 = arith.constant 1 : index
    %c0_61 = arith.constant 0 : index
    %c0_62 = arith.constant 0 : index
    %153 = vector.load %arg15[%c1_60, %c0_61, %c0_62] : memref<10x10x256xf32, #tpu.memory_space<vmem>>, vector<8x10x256xf32>
    %154 = vector.extract_strided_slice %153 {offsets = [0, 0, 0], sizes = [8, 8, 256], strides = [1, 1, 1]} : vector<8x10x256xf32> to vector<8x8x256xf32>
    %155 = vector.extract_strided_slice %126 {offsets = [1, 0, 0], sizes = [1, 1, 256], strides = [1, 1, 1]} : vector<3x3x256xf32> to vector<1x1x256xf32>
    %156 = vector.shape_cast %155 : vector<1x1x256xf32> to vector<256xf32>
    %157 = vector.shape_cast %156 : vector<256xf32> to vector<1x1x256xf32>
    %158 = vector.broadcast %157 : vector<1x1x256xf32> to vector<8x8x256xf32>
    %159 = arith.mulf %154, %158 : vector<8x8x256xf32>
    %160 = arith.addf %152, %159 : vector<8x8x256xf32>
    %161 = vector.extract_strided_slice %153 {offsets = [0, 1, 0], sizes = [8, 8, 256], strides = [1, 1, 1]} : vector<8x10x256xf32> to vector<8x8x256xf32>
    %162 = vector.extract_strided_slice %126 {offsets = [1, 1, 0], sizes = [1, 1, 256], strides = [1, 1, 1]} : vector<3x3x256xf32> to vector<1x1x256xf32>
    %163 = vector.shape_cast %162 : vector<1x1x256xf32> to vector<256xf32>
    %164 = vector.shape_cast %163 : vector<256xf32> to vector<1x1x256xf32>
    %165 = vector.broadcast %164 : vector<1x1x256xf32> to vector<8x8x256xf32>
    %166 = arith.mulf %161, %165 : vector<8x8x256xf32>
    %167 = arith.addf %160, %166 : vector<8x8x256xf32>
    %168 = vector.extract_strided_slice %153 {offsets = [0, 2, 0], sizes = [8, 8, 256], strides = [1, 1, 1]} : vector<8x10x256xf32> to vector<8x8x256xf32>
    %169 = vector.extract_strided_slice %126 {offsets = [1, 2, 0], sizes = [1, 1, 256], strides = [1, 1, 1]} : vector<3x3x256xf32> to vector<1x1x256xf32>
    %170 = vector.shape_cast %169 : vector<1x1x256xf32> to vector<256xf32>
    %171 = vector.shape_cast %170 : vector<256xf32> to vector<1x1x256xf32>
    %172 = vector.broadcast %171 : vector<1x1x256xf32> to vector<8x8x256xf32>
    %173 = arith.mulf %168, %172 : vector<8x8x256xf32>
    %174 = arith.addf %167, %173 : vector<8x8x256xf32>
    %c2_63 = arith.constant 2 : index
    %c0_64 = arith.constant 0 : index
    %c0_65 = arith.constant 0 : index
    %175 = vector.load %arg15[%c2_63, %c0_64, %c0_65] : memref<10x10x256xf32, #tpu.memory_space<vmem>>, vector<8x10x256xf32>
    %176 = vector.extract_strided_slice %175 {offsets = [0, 0, 0], sizes = [8, 8, 256], strides = [1, 1, 1]} : vector<8x10x256xf32> to vector<8x8x256xf32>
    %177 = vector.extract_strided_slice %126 {offsets = [2, 0, 0], sizes = [1, 1, 256], strides = [1, 1, 1]} : vector<3x3x256xf32> to vector<1x1x256xf32>
    %178 = vector.shape_cast %177 : vector<1x1x256xf32> to vector<256xf32>
    %179 = vector.shape_cast %178 : vector<256xf32> to vector<1x1x256xf32>
    %180 = vector.broadcast %179 : vector<1x1x256xf32> to vector<8x8x256xf32>
    %181 = arith.mulf %176, %180 : vector<8x8x256xf32>
    %182 = arith.addf %174, %181 : vector<8x8x256xf32>
    %183 = vector.extract_strided_slice %175 {offsets = [0, 1, 0], sizes = [8, 8, 256], strides = [1, 1, 1]} : vector<8x10x256xf32> to vector<8x8x256xf32>
    %184 = vector.extract_strided_slice %126 {offsets = [2, 1, 0], sizes = [1, 1, 256], strides = [1, 1, 1]} : vector<3x3x256xf32> to vector<1x1x256xf32>
    %185 = vector.shape_cast %184 : vector<1x1x256xf32> to vector<256xf32>
    %186 = vector.shape_cast %185 : vector<256xf32> to vector<1x1x256xf32>
    %187 = vector.broadcast %186 : vector<1x1x256xf32> to vector<8x8x256xf32>
    %188 = arith.mulf %183, %187 : vector<8x8x256xf32>
    %189 = arith.addf %182, %188 : vector<8x8x256xf32>
    %190 = vector.extract_strided_slice %175 {offsets = [0, 2, 0], sizes = [8, 8, 256], strides = [1, 1, 1]} : vector<8x10x256xf32> to vector<8x8x256xf32>
    %191 = vector.extract_strided_slice %126 {offsets = [2, 2, 0], sizes = [1, 1, 256], strides = [1, 1, 1]} : vector<3x3x256xf32> to vector<1x1x256xf32>
    %192 = vector.shape_cast %191 : vector<1x1x256xf32> to vector<256xf32>
    %193 = vector.shape_cast %192 : vector<256xf32> to vector<1x1x256xf32>
    %194 = vector.broadcast %193 : vector<1x1x256xf32> to vector<8x8x256xf32>
    %195 = arith.mulf %190, %194 : vector<8x8x256xf32>
    %196 = arith.addf %189, %195 : vector<8x8x256xf32>
    %197 = vector.shape_cast %196 : vector<8x8x256xf32> to vector<64x256xf32>
    %c0_66 = arith.constant 0 : index
    %c0_67 = arith.constant 0 : index
    %198 = vector.load %arg12[%c0_66, %c0_67] : memref<128x128xf32, #tpu.memory_space<vmem>>, vector<128x128xf32>
    %199 = vector.extract_strided_slice %124 {offsets = [0, 0], sizes = [64, 64], strides = [1, 1]} : vector<64x128xf32> to vector<64x64xf32>
    %200 = vector.extract_strided_slice %197 {offsets = [0, 0], sizes = [64, 64], strides = [1, 1]} : vector<64x256xf32> to vector<64x64xf32>
    %201 = vector.extract_strided_slice %197 {offsets = [0, 128], sizes = [64, 64], strides = [1, 1]} : vector<64x256xf32> to vector<64x64xf32>
    %202 = arith.mulf %199, %199 : vector<64x64xf32>
    %cst_68 = arith.constant dense<0.000000e+00> : vector<64xf32>
    %203 = vector.multi_reduction <add>, %202, %cst_68 [0] : vector<64x64xf32> to vector<64xf32>
    %204 = vector.shape_cast %203 : vector<64xf32> to vector<1x64xf32>
    %cst_69 = arith.constant 1.000000e-24 : f32
    %205 = vector.broadcast %cst_69 : f32 to vector<1x64xf32>
    %206 = arith.maximumf %204, %205 : vector<1x64xf32>
    %207 = math.rsqrt %206 : vector<1x64xf32>
    %208 = vector.broadcast %207 : vector<1x64xf32> to vector<64x64xf32>
    %209 = arith.mulf %199, %208 : vector<64x64xf32>
    %210 = arith.mulf %200, %200 : vector<64x64xf32>
    %cst_70 = arith.constant dense<0.000000e+00> : vector<64xf32>
    %211 = vector.multi_reduction <add>, %210, %cst_70 [0] : vector<64x64xf32> to vector<64xf32>
    %212 = vector.shape_cast %211 : vector<64xf32> to vector<1x64xf32>
    %cst_71 = arith.constant 1.000000e-24 : f32
    %213 = vector.broadcast %cst_71 : f32 to vector<1x64xf32>
    %214 = arith.maximumf %212, %213 : vector<1x64xf32>
    %215 = math.rsqrt %214 : vector<1x64xf32>
    %216 = vector.broadcast %215 : vector<1x64xf32> to vector<64x64xf32>
    %217 = arith.mulf %200, %216 : vector<64x64xf32>
    %218 = tpu.transpose %209, [1, 0] : vector<64x64xf32> -> vector<64x64xf32>
    %cst_72 = arith.constant dense<0.000000e+00> : vector<64x64xf32>
    %219 = tpu.matmul %218, %217, %cst_72 {dimension_numbers = #tpu.dot_dimension_numbers<[1], [0], [0], [1], [0, 0, 1, 1], [], []>} : vector<64x64xf32>, vector<64x64xf32>, vector<64x64xf32> -> vector<64x64xf32>
    %c0_73 = arith.constant 0 : index
    %220 = memref.load %arg1[%c0_73] : memref<2xf32, #tpu.memory_space<smem>>
    %221 = vector.broadcast %220 : f32 to vector<64x64xf32>
    %222 = arith.mulf %219, %221 : vector<64x64xf32>
    %cst_74 = arith.constant dense<0xFF800000> : vector<64xf32>
    %223 = vector.multi_reduction <maximumf>, %222, %cst_74 [1] : vector<64x64xf32> to vector<64xf32>
    %224 = vector.shape_cast %223 : vector<64xf32> to vector<64x1xf32>
    %225 = vector.broadcast %224 : vector<64x1xf32> to vector<64x64xf32>
    %226 = arith.subf %222, %225 : vector<64x64xf32>
    %227 = math.exp %226 : vector<64x64xf32>
    %cst_75 = arith.constant dense<0.000000e+00> : vector<64xf32>
    %228 = vector.multi_reduction <add>, %227, %cst_75 [1] : vector<64x64xf32> to vector<64xf32>
    %229 = vector.shape_cast %228 : vector<64xf32> to vector<64x1xf32>
    %230 = tpu.reciprocal %229 {approx = true} : vector<64x1xf32> -> vector<64x1xf32>
    %231 = vector.broadcast %230 : vector<64x1xf32> to vector<64x64xf32>
    %232 = arith.mulf %227, %231 : vector<64x64xf32>
    %233 = tpu.transpose %232, [1, 0] : vector<64x64xf32> -> vector<64x64xf32>
    %cst_76 = arith.constant dense<0.000000e+00> : vector<64x64xf32>
    %234 = tpu.matmul %201, %233, %cst_76 {dimension_numbers = #tpu.dot_dimension_numbers<[1], [0], [0], [1], [0, 0, 1, 1], [], []>} : vector<64x64xf32>, vector<64x64xf32>, vector<64x64xf32> -> vector<64x64xf32>
    %235 = vector.extract_strided_slice %198 {offsets = [0, 0], sizes = [64, 128], strides = [1, 1]} : vector<128x128xf32> to vector<64x128xf32>
    %cst_77 = arith.constant dense<0.000000e+00> : vector<64x128xf32>
    %236 = tpu.matmul %234, %235, %cst_77 {dimension_numbers = #tpu.dot_dimension_numbers<[1], [0], [0], [1], [0, 0, 1, 1], [], []>} : vector<64x64xf32>, vector<64x128xf32>, vector<64x128xf32> -> vector<64x128xf32>
    %237 = arith.addf %1, %236 : vector<64x128xf32>
    %238 = vector.extract_strided_slice %124 {offsets = [0, 64], sizes = [64, 64], strides = [1, 1]} : vector<64x128xf32> to vector<64x64xf32>
    %239 = vector.extract_strided_slice %197 {offsets = [0, 64], sizes = [64, 64], strides = [1, 1]} : vector<64x256xf32> to vector<64x64xf32>
    %240 = vector.extract_strided_slice %197 {offsets = [0, 192], sizes = [64, 64], strides = [1, 1]} : vector<64x256xf32> to vector<64x64xf32>
    %241 = arith.mulf %238, %238 : vector<64x64xf32>
    %cst_78 = arith.constant dense<0.000000e+00> : vector<64xf32>
    %242 = vector.multi_reduction <add>, %241, %cst_78 [0] : vector<64x64xf32> to vector<64xf32>
    %243 = vector.shape_cast %242 : vector<64xf32> to vector<1x64xf32>
    %cst_79 = arith.constant 1.000000e-24 : f32
    %244 = vector.broadcast %cst_79 : f32 to vector<1x64xf32>
    %245 = arith.maximumf %243, %244 : vector<1x64xf32>
    %246 = math.rsqrt %245 : vector<1x64xf32>
    %247 = vector.broadcast %246 : vector<1x64xf32> to vector<64x64xf32>
    %248 = arith.mulf %238, %247 : vector<64x64xf32>
    %249 = arith.mulf %239, %239 : vector<64x64xf32>
    %cst_80 = arith.constant dense<0.000000e+00> : vector<64xf32>
    %250 = vector.multi_reduction <add>, %249, %cst_80 [0] : vector<64x64xf32> to vector<64xf32>
    %251 = vector.shape_cast %250 : vector<64xf32> to vector<1x64xf32>
    %cst_81 = arith.constant 1.000000e-24 : f32
    %252 = vector.broadcast %cst_81 : f32 to vector<1x64xf32>
    %253 = arith.maximumf %251, %252 : vector<1x64xf32>
    %254 = math.rsqrt %253 : vector<1x64xf32>
    %255 = vector.broadcast %254 : vector<1x64xf32> to vector<64x64xf32>
    %256 = arith.mulf %239, %255 : vector<64x64xf32>
    %257 = tpu.transpose %248, [1, 0] : vector<64x64xf32> -> vector<64x64xf32>
    %cst_82 = arith.constant dense<0.000000e+00> : vector<64x64xf32>
    %258 = tpu.matmul %257, %256, %cst_82 {dimension_numbers = #tpu.dot_dimension_numbers<[1], [0], [0], [1], [0, 0, 1, 1], [], []>} : vector<64x64xf32>, vector<64x64xf32>, vector<64x64xf32> -> vector<64x64xf32>
    %c1_83 = arith.constant 1 : index
    %259 = memref.load %arg1[%c1_83] : memref<2xf32, #tpu.memory_space<smem>>
    %260 = vector.broadcast %259 : f32 to vector<64x64xf32>
    %261 = arith.mulf %258, %260 : vector<64x64xf32>
    %cst_84 = arith.constant dense<0xFF800000> : vector<64xf32>
    %262 = vector.multi_reduction <maximumf>, %261, %cst_84 [1] : vector<64x64xf32> to vector<64xf32>
    %263 = vector.shape_cast %262 : vector<64xf32> to vector<64x1xf32>
    %264 = vector.broadcast %263 : vector<64x1xf32> to vector<64x64xf32>
    %265 = arith.subf %261, %264 : vector<64x64xf32>
    %266 = math.exp %265 : vector<64x64xf32>
    %cst_85 = arith.constant dense<0.000000e+00> : vector<64xf32>
    %267 = vector.multi_reduction <add>, %266, %cst_85 [1] : vector<64x64xf32> to vector<64xf32>
    %268 = vector.shape_cast %267 : vector<64xf32> to vector<64x1xf32>
    %269 = tpu.reciprocal %268 {approx = true} : vector<64x1xf32> -> vector<64x1xf32>
    %270 = vector.broadcast %269 : vector<64x1xf32> to vector<64x64xf32>
    %271 = arith.mulf %266, %270 : vector<64x64xf32>
    %272 = tpu.transpose %271, [1, 0] : vector<64x64xf32> -> vector<64x64xf32>
    %cst_86 = arith.constant dense<0.000000e+00> : vector<64x64xf32>
    %273 = tpu.matmul %240, %272, %cst_86 {dimension_numbers = #tpu.dot_dimension_numbers<[1], [0], [0], [1], [0, 0, 1, 1], [], []>} : vector<64x64xf32>, vector<64x64xf32>, vector<64x64xf32> -> vector<64x64xf32>
    %274 = vector.extract_strided_slice %198 {offsets = [64, 0], sizes = [64, 128], strides = [1, 1]} : vector<128x128xf32> to vector<64x128xf32>
    %cst_87 = arith.constant dense<0.000000e+00> : vector<64x128xf32>
    %275 = tpu.matmul %273, %274, %cst_87 {dimension_numbers = #tpu.dot_dimension_numbers<[1], [0], [0], [1], [0, 0, 1, 1], [], []>} : vector<64x64xf32>, vector<64x128xf32>, vector<64x128xf32> -> vector<64x128xf32>
    %276 = arith.addf %237, %275 : vector<64x128xf32>
    %c0_88 = arith.constant 0 : index
    %c0_89 = arith.constant 0 : index
    %c0_90 = arith.constant 0 : index
    %277 = vector.load %arg13[%c0_88, %c0_89, %c0_90] : memref<1x64x128xf32, #tpu.memory_space<vmem>>, vector<1x64x128xf32>
    %278 = vector.shape_cast %277 : vector<1x64x128xf32> to vector<64x128xf32>
    %279 = vector.shape_cast %276 : vector<64x128xf32> to vector<1x64x128xf32>
    tpu.vector_store %arg13[%c0_88, %c0_89, %c0_90], %279 {strides = array<i32>} : memref<1x64x128xf32, #tpu.memory_space<vmem>>, vector<1x64x128xf32>,
    return
  }
  func.func @transform_0(%arg0: i32) -> i32 {
    %c0_i32 = arith.constant 0 : i32
    %c0_i32_0 = arith.constant 0 : i32
    return %c0_i32 : i32
  }
  func.func @transform_1(%arg0: i32) -> (i32, i32, i32) {
    %c0_i32 = arith.constant 0 : i32
    %c0_i32_0 = arith.constant 0 : i32
    %c0_i32_1 = arith.constant 0 : i32
    return %arg0, %c0_i32, %c0_i32_0 : i32, i32, i32
  }
  func.func @transform_2(%arg0: i32) -> (i32, i32, i32) {
    %c0_i32 = arith.constant 0 : i32
    %c0_i32_0 = arith.constant 0 : i32
    %c0_i32_1 = arith.constant 0 : i32
    return %arg0, %c0_i32, %c0_i32_0 : i32, i32, i32
  }
  func.func @transform_3(%arg0: i32) -> (i32, i32) {
    %c0_i32 = arith.constant 0 : i32
    %c0_i32_0 = arith.constant 0 : i32
    %c0_i32_1 = arith.constant 0 : i32
    return %c0_i32, %c0_i32_0 : i32, i32
  }
  func.func @transform_4(%arg0: i32) -> (i32, i32) {
    %c0_i32 = arith.constant 0 : i32
    %c0_i32_0 = arith.constant 0 : i32
    %c0_i32_1 = arith.constant 0 : i32
    return %c0_i32, %c0_i32_0 : i32, i32
  }
  func.func @transform_5(%arg0: i32) -> (i32, i32) {
    %c0_i32 = arith.constant 0 : i32
    %c0_i32_0 = arith.constant 0 : i32
    %c0_i32_1 = arith.constant 0 : i32
    return %c0_i32, %c0_i32_0 : i32, i32
  }
  func.func @transform_6(%arg0: i32) -> (i32, i32) {
    %c0_i32 = arith.constant 0 : i32
    %c0_i32_0 = arith.constant 0 : i32
    %c0_i32_1 = arith.constant 0 : i32
    return %c0_i32, %c0_i32_0 : i32, i32
  }
  func.func @transform_7(%arg0: i32) -> (i32, i32) {
    %c0_i32 = arith.constant 0 : i32
    %c0_i32_0 = arith.constant 0 : i32
    %c0_i32_1 = arith.constant 0 : i32
    return %c0_i32, %c0_i32_0 : i32, i32
  }
  func.func @transform_8(%arg0: i32) -> (i32, i32) {
    %c0_i32 = arith.constant 0 : i32
    %c0_i32_0 = arith.constant 0 : i32
    %c0_i32_1 = arith.constant 0 : i32
    return %c0_i32, %c0_i32_0 : i32, i32
  }
  func.func @transform_9(%arg0: i32) -> (i32, i32, i32) {
    %c0_i32 = arith.constant 0 : i32
    %c0_i32_0 = arith.constant 0 : i32
    %c0_i32_1 = arith.constant 0 : i32
    %c0_i32_2 = arith.constant 0 : i32
    return %c0_i32, %c0_i32_0, %c0_i32_1 : i32, i32, i32
  }
  func.func @transform_10(%arg0: i32) -> (i32, i32, i32) {
    %c0_i32 = arith.constant 0 : i32
    %c0_i32_0 = arith.constant 0 : i32
    %c0_i32_1 = arith.constant 0 : i32
    %c0_i32_2 = arith.constant 0 : i32
    return %c0_i32, %c0_i32_0, %c0_i32_1 : i32, i32, i32
  }
  func.func @transform_11(%arg0: i32) -> (i32, i32) {
    %c0_i32 = arith.constant 0 : i32
    %c0_i32_0 = arith.constant 0 : i32
    %c0_i32_1 = arith.constant 0 : i32
    return %c0_i32, %c0_i32_0 : i32, i32
  }
  func.func @transform_12(%arg0: i32) -> (i32, i32, i32) {
    %c0_i32 = arith.constant 0 : i32
    %c0_i32_0 = arith.constant 0 : i32
    %c0_i32_1 = arith.constant 0 : i32
    return %arg0, %c0_i32, %c0_i32_0 : i32, i32, i32
  }
}

</mosaic_0001>

<bundles_post_ra>
// kernel: injector_forward.2
= control target key start
LH: loop header
LB: loop body
LE: loop exit
PB: predicated region body
PF: predicated region fallthrough
CT: control target
= control target key end

     0   :  { %s7675_s0 = inlined_call_operand.vmem [shape: f32[2], index: 0, kind: input, shape index: {}]   ;;  %s7676_s1 = inlined_call_operand.hbm [shape: f32[2,64,128], index: 1, kind: input, shape index: {}]   ;;  %s7677_s2 = inlined_call_operand.hbm [shape: f32[2,64,128], index: 2, kind: input, shape index: {}]   ;;  %s7678_s3 = inlined_call_operand.vmem [shape: f32[1,128], index: 3, kind: input, shape index: {}]   ;;  %s7679_s4 = inlined_call_operand.vmem [shape: f32[1,128], index: 4, kind: input, shape index: {}]   ;;  %s7680_s5 = inlined_call_operand.vmem [shape: f32[1,128], index: 5, kind: input, shape index: {}]   ;;  %s7681_s6 = inlined_call_operand.vmem [shape: f32[1,128], index: 6, kind: input, shape index: {}]   ;;  %s7682_s7 = inlined_call_operand.hbm [shape: f32[128,128], index: 7, kind: input, shape index: {}]   ;;  %s7683_s8 = inlined_call_operand.hbm [shape: f32[128,256], index: 8, kind: input, shape index: {}]   ;;  %s7684_s9 = inlined_call_operand.vmem [shape: f32[3,3,128], index: 9, kind: input, shape index: {}]   ;;  %s7685_s10 = inlined_call_operand.hbm [shape: f32[3,3,256], index: 10, kind: input, shape index: {}]   ;;  %s7686_s11 = inlined_call_operand.hbm [shape: f32[128,128], index: 11, kind: input, shape index: {}]   ;;  %s7687_s12 = inlined_call_operand.vmem [shape: f32[2,64,128], index: 12, kind: output, shape index: {}]  }
   0x1   :  { %7780 = sst [smem:[#allocation113_spill]] %s7675_s0 }
   0x2   :  { %7781 = sst [smem:[#allocation114_spill]] %s7682_s7 }
   0x3   :  { %7782 = sst [smem:[#allocation115_spill]] %s7683_s8 }
   0x4   :  { %7783 = sst [smem:[#allocation116_spill]] %s7685_s10 }
   0x5   :  { %7784 = sst [smem:[#allocation117_spill]] %s7686_s11 }
   0x6   :  { %17 = vsyncpa [#allocation6], 0 }
   0x7   :  { %18 = vsyncpa [#allocation5], 0 }
   0x8   :  { %20 = vsyncpa [#allocation5 + $0x1], 0 }
   0x9   :  { %21 = vsyncpa [#allocation9], 0 }
   0xa   :  { %23 = vsyncpa [#allocation9 + $0x1], 0 }
   0xb   :  { %24 = vsyncpa [#allocation12], 0 }
   0xc   :  { %25 = vsyncpa [#allocation15], 0  ;;  %s5446_s21 = smov 0   ;;  %s5448_s22 = smov 0  }
   0xd   :  { %s5450_s23 = smov 0   ;;  %s5452_s24 = smov 0  }
   0xe LB: > { %s5368_s25 = smov [#allocation10]   ;;  %s5467_s27 = sadd.s32 4294967295, %s5366_s24   ;;  %s5366_s24 = sphi %s5452_s24, %s8072_s24   ;;  %s5362_s23 = sphi %s5450_s23, %s8071_s23   ;;  %s5358_s22 = sphi %s5448_s22, %s8070_s22   ;;  %s5354_s21 = sphi %s5446_s21, %s8069_s21  }
   0xf   : > { %s359_s26 = sshll.u32 %s5368_s25, 4  ;;  %p4487_p0 = scmp.ge.s32.totalorder %s5366_s24, 1  ;;  %s360_s26 = int_to_ptr.vmem [resolvable:$true] %s359_s26 }
  0x10   : > { %p7692_p1 = scmp.eq.s32.totalorder %s5467_s27, 0  ;;  %p324_p2 = scmp.lt.s32.totalorder %s5366_s24, 3 }
  0x11   : > { %s5369_s29 = smov [#allocation11]   ;;  %s7787_s0 = sld [smem:[#allocation113_spill]] }
  0x12   : > { %p5472_p3 = pnand %p4487_p0, %p324_p2  ;;  %s372_s30 = sshll.u32 %s5369_s29, 4  ;;  %s5484_s30 = int_to_ptr.vmem [resolvable:$true] %s372_s30 }
  0x13   : > { %s5148_s18 = scalar_lea.vmem %s360_s26, 2048  ;;  %p5156_p10 = scmp.lt.s32.totalorder %s360_s26, %s360_s26 }
  0x14   : > { %p4940_p4 = pneg %p5472_p3  ;;  %p5149_p7 = scmp.ne.s32.totalorder %s360_s26, %s5148_s18 }
  0x15   : > { %p5157_p11 = scmp.lt.s32.totalorder %s5148_s18, %s5148_s18 }
  0x16   : > { %p5480_p5 = pnand %p4940_p4, %p7692_p1 }
  0x17   : > { %s337_s16 = sshll.u32 %s7787_s0, 4  ;;  %p5158_p12 = por %p5157_p11, %p5156_p10  ;;  %s5489_s16 = int_to_ptr.vmem [resolvable:$true] %s337_s16 }
  0x18   : > { %p5493_p6 = pneg %p5480_p5 }
  0x1a   : > { %p5151_p8 = pnand %p5149_p7, %p5493_p6 }
  0x1c   : > { %p5152_p9 = pneg %p5151_p8 }
  0x1e   : > { %p5159_p13 = pnand %p5158_p12, %p5152_p9 }
  0x20   : > { %5162 = shalt.err (!%p5159_p13)
}
  0x21   : > { %s7688_s19 = smov 128   ;;  %s7690_s20 = smov 8  }
  0x22   : > { %s7789_s7 = sld [smem:[#allocation114_spill]]  ;;  %s5174_s14 = scalar_lea.vmem %s5484_s30, 4096 }
  0x23   : > { %p5175_p0 = scmp.ne.s32.totalorder %s5484_s30, %s5174_s14  ;;  %p5182_p7 = scmp.lt.s32.totalorder %s5484_s30, %s5484_s30 }
  0x24   : > { %p5183_p8 = scmp.lt.s32.totalorder %s5174_s14, %s5174_s14 }
  0x25   : > { %p5177_p2 = pnand %p5175_p0, %p5493_p6 }
  0x26   : > { %p5184_p9 = por %p5183_p8, %p5182_p7 }
  0x27   : > { %p5178_p4 = pneg %p5177_p2 }
  0x28   : > { %4946 = dma.hbm_to_vmem [thread:$0]  (!%p5480_p5), %s7789_s7, 2048, %s360_s26, [#allocation9], %s7688_s19, %s7688_s19, %s7690_s20  }
  0x29   : > { %p5185_p10 = pnand %p5184_p9, %p5178_p4 }
  0x2b   : > { %5188 = shalt.err (!%p5185_p10)
}
  0x2c   : > { %s5372_s15 = smov 256   ;;  %s5373_s18 = smov 16  }
  0x2d   : > { %s7790_s8 = sld [smem:[#allocation115_spill]]  ;;  %s5189_s29 = scalar_lea.vmem %s5489_s16, 16 }
  0x2e   : > { %p5190_p11 = scmp.ne.s32.totalorder %s5489_s16, %s5189_s29  ;;  %p5197_p0 = scmp.lt.s32.totalorder %s5489_s16, %s5489_s16 }
  0x2f   : > { %p5198_p2 = scmp.lt.s32.totalorder %s5189_s29, %s5189_s29 }
  0x30   : > { %p5192_p12 = pnand %p5190_p11, %p5493_p6 }
  0x31   : > { %p5199_p4 = por %p5198_p2, %p5197_p0 }
  0x32   : > { %p5193_p13 = pneg %p5192_p12 }
  0x33   : > { %4949 = dma.hbm_to_vmem [thread:$0]  (!%p5480_p5), %s7790_s8, 4096, %s5484_s30, [#allocation12], %s5372_s15, %s5372_s15, %s5373_s18  }
  0x34   : > { %p5200_p7 = pnand %p5199_p4, %p5193_p13 }
  0x36   : > { %5203 = shalt.err (!%p5200_p7)
}
  0x37   : > { %s5374_s14 = smov [#allocation4]   ;;  %s5375_s19 = smov [#allocation13]  }
  0x38   : > { %4943 = dma.vmem_to_smem (!%p5480_p5), %s5489_s16, 16, %s5374_s14, [#allocation6]  }
  0x39   : > { %s388_s26 = sshll.u32 %s5375_s19, 4  ;;  %s5376_s30 = smov [#allocation14]   ;;  %s389_s26 = int_to_ptr.vmem [resolvable:$true] %s388_s26 }
  0x3a   : > { %s401_s15 = sshll.u32 %s5376_s30, 4  ;;  %s5215_s18 = scalar_lea.vmem %s389_s26, 384  ;;  %s402_s15 = int_to_ptr.vmem [resolvable:$true] %s401_s15 }
  0x3b   : > { %p5216_p8 = scmp.ne.s32.totalorder %s389_s26, %s5215_s18  ;;  %p5223_p11 = scmp.lt.s32.totalorder %s389_s26, %s389_s26 }
  0x3c   : > { %p5224_p12 = scmp.lt.s32.totalorder %s5215_s18, %s5215_s18 }
  0x3d   : > { %p5218_p9 = pnand %p5216_p8, %p5493_p6 }
  0x3e   : > { %p5225_p13 = por %p5224_p12, %p5223_p11 }
  0x3f   : > { %p5219_p10 = pneg %p5218_p9 }
  0x41   : > { %p5226_p0 = pnand %p5225_p13, %p5219_p10 }
  0x43   : > { %5229 = shalt.err (!%p5226_p0)
}
  0x44   : > { %s7791_s25 = smov 128   ;;  %s7792_s10 = sld [smem:[#allocation116_spill]] }
  0x45   : > { %s5241_s29 = scalar_lea.vmem %s402_s15, 2048  ;;  %p5249_p8 = scmp.lt.s32.totalorder %s402_s15, %s402_s15 }
  0x46   : > { %p5242_p2 = scmp.ne.s32.totalorder %s402_s15, %s5241_s29  ;;  %p5250_p9 = scmp.lt.s32.totalorder %s5241_s29, %s5241_s29 }
  0x48   : > { %p5244_p4 = pnand %p5242_p2, %p5493_p6  ;;  %p5251_p10 = por %p5250_p9, %p5249_p8 }
  0x4a   : > { %4952 = dma.hbm_to_vmem [thread:$0]  (!%p5480_p5), %s7792_s10, 384, %s389_s26, [#allocation12], %s7791_s25, %s7791_s25, %s7690_s20  }
  0x4b   : > { %p5245_p7 = pneg %p5244_p4 }
  0x4d   : > { %p5252_p11 = pnand %p5251_p10, %p5245_p7 }
  0x4f   : > { %5255 = shalt.err (!%p5252_p11)
}
  0x50   : > { %s7793_s11 = sld [smem:[#allocation117_spill]]  ;;  %s5549_s13 = sadd.s32 1, %s5366_s24  }
  0x51   : > { %s56_s17 = ssub.s32 %s5366_s24, %s5549_s13  ;;  %s59_s26 = sadd.s32 1, %s5362_s23 }
  0x52   : > { %p57_p6 = scmp.eq.s32.totalorder %s56_s17, 0  ;;  %p66_p12 = scmp.ne.s32.totalorder %s5362_s23, %s5358_s22 }
  0x53   : > { %p67_p13 = scmp.eq.s32.totalorder %s5366_s24, 0  ;;  %p72_p0 = scmp.ne.s32.totalorder %s5358_s22, %s5354_s21 }
  0x54   : > { %s5560_s18 = scalar_select %p57_p6, %s5362_s23, %s59_s26  }
  0x55   : > { %p68_p2 = por %p67_p13, %p66_p12  ;;  %p5564_p4 = por %p7692_p1, %p72_p0 }
  0x56   : > { %4955 = dma.hbm_to_vmem [thread:$0]  (!%p5480_p5), %s7793_s11, 2048, %s402_s15, [#allocation15], %s7791_s25, %s7791_s25, %s7690_s20  }
  0x57   : > { %7794 = sst [smem:[#allocation22_spill]] %s5560_s18  ;;  %p4968_p7 = scmp.lt.s32.totalorder %s5366_s24, 2 }
  0x58   : > { %s7795_s16 = scalar_select %p5564_p4, 1, 0 }
  0x59   : > { %s415_s19 = sand.u32 1, %s5362_s23   ;;  %s4581_s29 = sshll.u32 %s5366_s24, 10 }
  0x5a   : > { %s4494_s15 = sshll.u32 %s415_s19, 6  ;;  %s5574_s20 = scalar_lea.hbm %s7676_s1, %s4581_s29 }
  0x5b   : > { %s419_s21 = scalar_lea.vmem [#allocation7], %s4494_s15  ;;  %p5578_p5 = pnand %p4968_p7, %p68_p2 }
  0x5c   : > { %s426_s17 = sshll.u32 %s419_s21, 4  ;;  %s5585_s8 = scalar_lea.hbm %s7677_s2, %s4581_s29  ;;  %s5576_s17 = int_to_ptr.vmem [resolvable:$true] %s426_s17 }
  0x5d   : > { %s440_s14 = scalar_lea.vmem [#allocation8], %s4494_s15  ;;  %s5589_s10 = scalar_lea.sflag [#allocation5], %s415_s19 }
  0x5e   : > { %s5587_s30 = sshll.u32 %s440_s14, 4  ;;  %s5256_s11 = scalar_lea.hbm %s5574_s20, 1024  ;;  %s5620_s30 = int_to_ptr.vmem [resolvable:$true] %s5587_s30 }
  0x5f   : > { %p5257_p8 = scmp.ne.s32.totalorder %s5574_s20, %s5256_s11  ;;  %p5258_p9 = pneg %p5578_p5 }
  0x60   : > { %s5261_s0 = scalar_lea.hbm %s7676_s1, 2048  ;;  %p5262_p6 = scmp.lt.s32.totalorder %s5574_s20, %s7676_s1 }
  0x61   : > { %p5259_p10 = pnand %p5258_p9, %p5257_p8  ;;  %p5263_p12 = scmp.lt.s32.totalorder %s5261_s0, %s5256_s11 }
  0x63   : > { %p5260_p11 = pneg %p5259_p10  ;;  %p5264_p13 = por %p5263_p12, %p5262_p6 }
  0x65   : > { %p5265_p0 = pnand %p5264_p13, %p5260_p11 }
  0x67   : > { %5268 = shalt.err (!%p5265_p0)
}
  0x68   : > { %s5269_s19 = scalar_lea.vmem %s5576_s17, 1024  ;;  %s5377_s18 = smov [#allocation7]  }
  0x69   : > { %p5270_p2 = scmp.ne.s32.totalorder %s5576_s17, %s5269_s19  ;;  %s5274_s15 = sshll.u32 %s5377_s18, 4  ;;  %s5275_s15 = int_to_ptr.vmem [resolvable:$false] %s5274_s15 }
  0x6a   : > { %s5276_s14 = scalar_lea.vmem %s5275_s15, 2048  ;;  %p5277_p10 = scmp.lt.s32.totalorder %s5576_s17, %s5275_s15 }
  0x6b   : > { %p5272_p7 = pnand %p5270_p2, %p5258_p9  ;;  %p5278_p1 = scmp.lt.s32.totalorder %s5276_s14, %s5269_s19 }
  0x6d   : > { %p5273_p8 = pneg %p5272_p7  ;;  %p5279_p4 = por %p5278_p1, %p5277_p10 }
  0x6f   : > { %p5280_p6 = pnand %p5279_p4, %p5273_p8 }
  0x71   : > { %5283 = shalt.err (!%p5280_p6)
}
  0x72   : > { %s7797_s11 = smov 8   ;;  %s436_s21 = sand.u32 1, %s5366_s24  }
  0x73   : > { %4959 = dma.hbm_to_vmem [thread:$0]  (!%p5578_p5), %s5574_s20, 1024, %s5576_s17, %s5589_s10, %s7791_s25, %s7791_s25, %s7797_s11  }
  0x74   : > { %s437_s0 = scalar_lea.sflag [#allocation9], %s436_s21  ;;  %s5284_s7 = scalar_lea.hbm %s5585_s8, 1024 }
  0x75   : > { %p5285_p1 = scmp.ne.s32.totalorder %s5585_s8, %s5284_s7  ;;  %s5289_s18 = scalar_lea.hbm %s7677_s2, 2048 }
  0x76   : > { %p5290_p12 = scmp.lt.s32.totalorder %s5585_s8, %s7677_s2  ;;  %p5291_p13 = scmp.lt.s32.totalorder %s5289_s18, %s5284_s7 }
  0x77   : > { %p5287_p4 = pnand %p5285_p1, %p5258_p9 }
  0x78   : > { %p5292_p0 = por %p5291_p13, %p5290_p12 }
  0x79   : > { %p5288_p11 = pneg %p5287_p4 }
  0x7b   : > { %p5293_p2 = pnand %p5292_p0, %p5288_p11 }
  0x7d   : > { %5296 = shalt.err (!%p5293_p2)
}
  0x7e   : > { %s5297_s10 = scalar_lea.vmem %s5620_s30, 1024  ;;  %s5378_s24 = smov [#allocation8]  }
  0x7f   : > { %p5298_p7 = scmp.ne.s32.totalorder %s5620_s30, %s5297_s10  ;;  %s5302_s20 = sshll.u32 %s5378_s24, 4  ;;  %s5303_s20 = int_to_ptr.vmem [resolvable:$false] %s5302_s20 }
  0x80   : > { %s5304_s17 = scalar_lea.vmem %s5303_s20, 2048  ;;  %p5305_p6 = scmp.lt.s32.totalorder %s5620_s30, %s5303_s20 }
  0x81   : > { %p5300_p8 = pnand %p5298_p7, %p5258_p9  ;;  %p5306_p1 = scmp.lt.s32.totalorder %s5304_s17, %s5297_s10 }
  0x83   : > { %p5301_p10 = pneg %p5300_p8  ;;  %p5307_p4 = por %p5306_p1, %p5305_p6 }
  0x85   : > { %p5308_p12 = pnand %p5307_p4, %p5301_p10 }
  0x87   : > { %5311 = shalt.err (!%p5308_p12)
}
  0x88   : > { %4962 = dma.hbm_to_vmem [thread:$0]  (!%p5578_p5), %s5585_s8, 1024, %s5620_s30, %s437_s0, %s7791_s25, %s7791_s25, %s7797_s11  }
  0x89   : > { %459 = sbr.rel (%p5472_p3) target bundleno = 2730 (0xaaa), region = 68 }
  0x8e   : > { %p7798_p9 = scmp.eq.s32.totalorder %s5467_s27, 0 }
  0x90   : > { %5329 = dma.done.wait (%p7798_p9), [#allocation6], 16   ;;  %p7799_p11 = pmov %p7798_p9 }
  0x91   : > { %s465_s21 = sand.u32 1, %s5358_s22   ;;  %p7800_p13 = scmp.ne.s32.totalorder %s7795_s16, 0 }
  0x92   : > { %5331 = vsyncadd (%p7799_p11), [#allocation6], 4294967280  ;;  %s4502_s7 = sshll.u32 %s465_s21, 6  ;;  %s466_s26 = scalar_lea.sflag [#allocation5], %s465_s21 }
  0x93   : > { %s5655_s29 = scalar_lea.vmem [#allocation7], %s4502_s7 }
  0x94   : > { %5333 = dma.done.wait (%p7800_p13), %s466_s26, 1024  }
  0x95   : > { %5335 = vsyncadd (%p7800_p13), %s466_s26, 4294966272  ;;  %s474_s8 = sand.u32 1, %s5467_s27   ;;  %s5662_s25 = scalar_lea.vmem [#allocation8], %s4502_s7 }
  0x96   : > { %s475_s28 = scalar_lea.sflag [#allocation9], %s474_s8 }
  0x97   : > { %5337 = dma.done.wait (%p7800_p13), %s475_s28, 1024  }
  0x98   : > { %5339 = vsyncadd (%p7800_p13), %s475_s28, 4294966272  ;;  %p7801_p3 = pmov %p7798_p9 }
  0x9a   : > { %5341 = dma.done.wait (%p7801_p3), [#allocation9], 2048   ;;  %p7802_p5 = pmov %p7801_p3 }
  0x9b   : > { %p7803_p0 = pmov %p7801_p3 }
  0x9c   : > { %5343 = vsyncadd (%p7802_p5), [#allocation9], 4294965248 }
  0x9d   : > { %5345 = dma.done.wait (%p7803_p0), [#allocation12], 4480   ;;  %p7804_p2 = pmov %p7803_p0 }
  0x9e   : > { %p7805_p7 = pmov %p7803_p0 }
  0x9f   : > { %5347 = vsyncadd (%p7804_p2), [#allocation12], 4294962816 }
  0xa0   : > { %5349 = dma.done.wait (%p7805_p7), [#allocation15], 2048   ;;  %p7806_p8 = pmov %p7803_p0 }
  0xa2   : > { %5351 = vsyncadd (%p7806_p8), [#allocation15], 4294965248 }
  0xa3   : > { %499 = sfence }
  0xa4   : > { %v546_v0 = vld [vmem:[%s5655_s29] sm:$0xff]  ;;  %v548_v1 = vld [vmem:[%s5655_s29 + $0x10] sm:$0xff]  ;;  %v547_v2 = vld [vmem:[%s5655_s29 + $0x8] sm:$0xff]  ;;  %vm1169_vm0 = vcmask 1046528   ;;  %vm1246_vm1 = vcmask 1045504   ;;  %vm3034_vm2 = vcmask 523264  }
  0xa5   : > { %562 = vadd.xlane.f32.xlu0 %v546_v0  ;;  %566 = vadd.xlane.f32.xlu1 %v548_v1  ;;  %v549_v3 = vld [vmem:[%s5655_s29 + $0x18] sm:$0xff]  ;;  %v550_v4 = vld [vmem:[%s5655_s29 + $0x20] sm:$0xff]  ;;  %v551_v5 = vld [vmem:[%s5655_s29 + $0x28] sm:$0xff]  ;;  %vm3654_vm3 = vcmask 1048064   ;;  %s5380_s26 = smov 64   ;;  %s3266_s8 = sld [smem:[#allocation4]] }
  0xa6   : > { %v552_v6 = vld [vmem:[%s5655_s29 + $0x30] sm:$0xff]  ;;  %v553_v7 = vld [vmem:[%s5655_s29 + $0x38] sm:$0xff]  ;;  %v5689_v8 = vld [vmem:[%s5662_s25] sm:$0xff]  ;;  %s4554_s28 = sld [smem:[#allocation4 + $0x1]]  ;;  %p541_p10 = scmp.lt.s32.totalorder %s5467_s27, 1 }
  0xa7   : > { %v5692_v9 = vld [vmem:[%s5662_s25 + $0x8] sm:$0xff]  ;;  %v5697_v10 = vld [vmem:[%s5662_s25 + $0x10] sm:$0xff]  ;;  %v5700_v11 = vld [vmem:[%s5662_s25 + $0x18] sm:$0xff] }
  0xa8   : > { %v5705_v12 = vld [vmem:[%s5662_s25 + $0x20] sm:$0xff]  ;;  %v5708_v13 = vld [vmem:[%s5662_s25 + $0x28] sm:$0xff]  ;;  %v5713_v14 = vld [vmem:[%s5662_s25 + $0x30] sm:$0xff]  ;;  %s8074_s27 = smov (!%p541_p10, %s5467_s27), 1 }
  0xa9   : > { %564 = vadd.xlane.f32.xlu0 %v547_v2  ;;  %568 = vadd.xlane.f32.xlu1 %v549_v3  ;;  %v5716_v15 = vld [vmem:[%s5662_s25 + $0x38] sm:$0xff]  ;;  %v695_v17 = vld [vmem:[#allocation10 + $0x70] sm:$0xff]  ;;  %v694_v50 = vld [vmem:[#allocation10 + $0x68] sm:$0xff]  ;;  %s4583_s25 = sshll.u32 %s8074_s27, 6 }
  0xaa   : > { %v696_v16 = vld [vmem:[#allocation10 + $0x78] sm:$0xff]  ;;  %v693_v54 = vld [vmem:[#allocation10 + $0x60] sm:$0xff]  ;;  %s7638_s11 = scalar_lea.vmem %s7687_s12, %s4583_s25 }
  0xab   : > { %4704 = vmatprep.subr.mxu0 %v696_v16  ;;  %v692_v63 = vld [vmem:[#allocation10 + $0x58] sm:$0xff] }
  0xac   : > { %4705 = vmatpush3.msra.mxu0 %v696_v16  ;;  %v950_v16 = vld [vmem:[#allocation11 + $0xf0] sm:$0xff] }
  0xad   : > { %570 = vadd.xlane.f32.xlu0 %v550_v4  ;;  %572 = vadd.xlane.f32.xlu1 %v551_v5 }
  0xae   : > { %4706 = vmatprep.subr.mxu0 %v695_v17 }
  0xaf   : > { %4707 = vmatpush3.msra.mxu0 %v695_v17 }
  0xb0   : > { %4708 = vmatprep.subr.mxu0 %v694_v50 }
  0xb1   : > { %574 = vadd.xlane.f32.xlu0 %v552_v6  ;;  %576 = vadd.xlane.f32.xlu1 %v553_v7 }
  0xb2   : > { %4709 = vmatpush3.msra.mxu0 %v694_v50  ;;  %v938_v50 = vld [vmem:[#allocation11 + $0x90] sm:$0xff] }
  0xb3   : > { %4710 = vmatprep.subr.mxu0 %v693_v54 }
  0xb4   : > { %4711 = vmatpush3.msra.mxu0 %v693_v54  ;;  %v682_v54 = vld [vmem:[#allocation10 + $0x8] sm:$0xff] }
  0xb5   : > { %802 = vadd.xlane.f32.xlu0 %v5689_v8  ;;  %804 = vadd.xlane.f32.xlu1 %v5692_v9 }
  0xb6   : > { %4712 = vmatprep.subr.mxu0 %v692_v63 }
  0xb7   : > { %4713 = vmatpush3.msra.mxu0 %v692_v63  ;;  %v930_v63 = vld [vmem:[#allocation11 + $0x50] sm:$0xff] }
  0xb9   : > { %806 = vadd.xlane.f32.xlu0 %v5697_v10  ;;  %808 = vadd.xlane.f32.xlu1 %v5700_v11 }
  0xbd   : > { %810 = vadd.xlane.f32.xlu0 %v5705_v12  ;;  %812 = vadd.xlane.f32.xlu1 %v5708_v13 }
  0xc1   : > { %814 = vadd.xlane.f32.xlu0 %v5713_v14  ;;  %816 = vadd.xlane.f32.xlu1 %v5716_v15 }
 0x12e   : > { %v563_v18 = vpop.xlane.xlu0 %562  ;;  %v567_v19 = vpop.xlane.xlu1 %566 }
 0x12f   : > { %v579_v20 = vmul.f32 0.0078125, %v563_v18  ;;  %v581_v21 = vmul.f32 0.0078125, %v567_v19  ;;  %v689_v19 = vld [vmem:[#allocation10 + $0x40] sm:$0xff] }
 0x131   : > { %v5720_v22 = vsub.f32 %v546_v0, %v579_v20  ;;  %v5722_v23 = vsub.f32 %v548_v1, %v581_v21  ;;  %v949_v20 = vld [vmem:[#allocation11 + $0xe8] sm:$0xff] }
 0x132   : > { %v565_v24 = vpop.xlane.xlu0 %564  ;;  %v569_v25 = vpop.xlane.xlu1 %568 }
 0x133   : > { %v580_v26 = vmul.f32 0.0078125, %v565_v24  ;;  %v595_v27 = vmul.f32 %v5720_v22, %v5720_v22  ;;  %v582_v28 = vmul.f32 0.0078125, %v569_v25  ;;  %v597_v31 = vmul.f32 %v5722_v23, %v5722_v23  ;;  %v948_v25 = vld [vmem:[#allocation11 + $0xe0] sm:$0xff] }
 0x135   : > { %v5726_v29 = vsub.f32 %v547_v2, %v580_v26  ;;  %603 = vadd.xlane.f32.xlu0 %v595_v27  ;;  %v5728_v30 = vsub.f32 %v549_v3, %v582_v28  ;;  %v691_v3 = vld [vmem:[#allocation10 + $0x50] sm:$0xff]  ;;  %v947_v28 = vld [vmem:[#allocation11 + $0xd8] sm:$0xff] }
 0x136   : > { %v571_v32 = vpop.xlane.xlu0 %570  ;;  %v573_v33 = vpop.xlane.xlu1 %572  ;;  %4714 = vmatprep.subr.mxu0 %v691_v3 }
 0x137   : > { %v583_v34 = vmul.f32 0.0078125, %v571_v32  ;;  %v596_v35 = vmul.f32 %v5726_v29, %v5726_v29  ;;  %v584_v36 = vmul.f32 0.0078125, %v573_v33  ;;  %v598_v38 = vmul.f32 %v5728_v30, %v5728_v30  ;;  %4715 = vmatpush3.msra.mxu0 %v691_v3  ;;  %v928_v3 = vld [vmem:[#allocation11 + $0x40] sm:$0xff] }
 0x139   : > { %v5734_v37 = vsub.f32 %v550_v4, %v583_v34  ;;  %607 = vadd.xlane.f32.xlu0 %v597_v31  ;;  %605 = vadd.xlane.f32.xlu1 %v596_v35  ;;  %v5738_v39 = vsub.f32 %v551_v5, %v584_v36  ;;  %v946_v31 = vld [vmem:[#allocation11 + $0xd0] sm:$0xff]  ;;  %v945_v35 = vld [vmem:[#allocation11 + $0xc8] sm:$0xff] }
 0x13a   : > { %v575_v40 = vpop.xlane.xlu0 %574  ;;  %v577_v41 = vpop.xlane.xlu1 %576 }
 0x13b   : > { %v585_v42 = vmul.f32 0.0078125, %v575_v40  ;;  %v599_v43 = vmul.f32 %v5734_v37, %v5734_v37  ;;  %v586_v44 = vmul.f32 0.0078125, %v577_v41  ;;  %v600_v46 = vmul.f32 %v5738_v39, %v5738_v39  ;;  %v944_v40 = vld [vmem:[#allocation11 + $0xc0] sm:$0xff]  ;;  %v686_v41 = vld [vmem:[#allocation10 + $0x28] sm:$0xff] }
 0x13d   : > { %v5742_v45 = vsub.f32 %v552_v6, %v585_v42  ;;  %609 = vadd.xlane.f32.xlu1 %v598_v38  ;;  %611 = vadd.xlane.f32.xlu0 %v599_v43  ;;  %v5746_v47 = vsub.f32 %v553_v7, %v586_v44  ;;  %v687_v38 = vld [vmem:[#allocation10 + $0x30] sm:$0xff]  ;;  %v685_v43 = vld [vmem:[#allocation10 + $0x20] sm:$0xff]  ;;  %v941_v44 = vld [vmem:[#allocation11 + $0xa8] sm:$0xff] }
 0x13e   : > { %v803_v48 = vpop.xlane.xlu0 %802  ;;  %v805_v49 = vpop.xlane.xlu1 %804  ;;  %v942_v42 = vld [vmem:[#allocation11 + $0xb0] sm:$0xff] }
 0x13f   : > { %v818_v51 = vmul.f32 0.0078125, %v803_v48  ;;  %v601_v52 = vmul.f32 %v5742_v45, %v5742_v45  ;;  %v819_v53 = vmul.f32 0.0078125, %v805_v49  ;;  %v602_v56 = vmul.f32 %v5746_v47, %v5746_v47  ;;  %v684_v48 = vld [vmem:[#allocation10 + $0x18] sm:$0xff] }
 0x140   : > { %v939_v49 = vld [vmem:[#allocation11 + $0x98] sm:$0xff] }
 0x141   : > { %v5751_v55 = vsub.f32 %v5689_v8, %v818_v51  ;;  %613 = vadd.xlane.f32.xlu1 %v600_v46  ;;  %615 = vadd.xlane.f32.xlu0 %v601_v52  ;;  %v5756_v57 = vsub.f32 %v5692_v9, %v819_v53  ;;  %v690_v9 = vld [vmem:[#allocation10 + $0x48] sm:$0xff]  ;;  %v940_v46 = vld [vmem:[#allocation11 + $0xa0] sm:$0xff]  ;;  %v683_v51 = vld [vmem:[#allocation10 + $0x10] sm:$0xff] }
 0x142   : > { %v807_v58 = vpop.xlane.xlu0 %806  ;;  %v809_v59 = vpop.xlane.xlu1 %808  ;;  %4716 = vmatprep.subr.mxu0 %v690_v9  ;;  %v937_v52 = vld [vmem:[#allocation11 + $0x88] sm:$0xff]  ;;  %v936_v53 = vld [vmem:[#allocation11 + $0x80] sm:$0xff] }
 0x143   : > { %v820_v60 = vmul.f32 0.0078125, %v807_v58  ;;  %v834_v61 = vmul.f32 %v5751_v55, %v5751_v55  ;;  %v821_v62 = vmul.f32 0.0078125, %v809_v59  ;;  %v835_v1 = vmul.f32 %v5756_v57, %v5756_v57  ;;  %4717 = vmatpush3.msra.mxu0 %v690_v9  ;;  %v934_v58 = vld [vmem:[#allocation11 + $0x70] sm:$0xff]  ;;  %v681_v59 = vld [vmem:[#allocation10] sm:$0xff] }
 0x144   : > { %4718 = vmatprep.subr.mxu0 %v689_v19  ;;  %v5379_v9 = vmov 0.0  }
 0x145   : > { %v5761_v0 = vsub.f32 %v5697_v10, %v820_v60  ;;  %617 = vadd.xlane.f32.xlu1 %v602_v56  ;;  %842 = vadd.xlane.f32.xlu0 %v834_v61  ;;  %v5766_v2 = vsub.f32 %v5700_v11, %v821_v62  ;;  %v951_v10 = vld [vmem:[#allocation11 + $0xf8] sm:$0xff]  ;;  %v933_v60 = vld [vmem:[#allocation11 + $0x68] sm:$0xff]  ;;  %v932_v61 = vld [vmem:[#allocation11 + $0x60] sm:$0xff]  ;;  %1068 = vst [vmem:[#allocation2] sm:$0xff] %v5379_v9 }
 0x146   : > { %v811_v4 = vpop.xlane.xlu0 %810  ;;  %v813_v5 = vpop.xlane.xlu1 %812  ;;  %952 = vmatprep.subr.mxu1 %v951_v10  ;;  %4719 = vmatpush3.msra.mxu0 %v689_v19  ;;  %v935_v56 = vld [vmem:[#allocation11 + $0x78] sm:$0xff]  ;;  %1069 = vst [vmem:[#allocation2 + $0x8] sm:$0x3] %v5379_v9  ;;  %1070 = vst [vmem:[#allocation2 + $0x10] sm:$0xff] %v5379_v9  ;;  %v922_v10 = vld [vmem:[#allocation11 + $0x10] sm:$0xff] }
 0x147   : > { %v822_v6 = vmul.f32 0.0078125, %v811_v4  ;;  %v836_v7 = vmul.f32 %v5761_v0, %v5761_v0  ;;  %v823_v8 = vmul.f32 0.0078125, %v813_v5  ;;  %v837_v18 = vmul.f32 %v5766_v2, %v5766_v2  ;;  %953 = vmatpush1.msra.mxu1 %v950_v16  ;;  %v931_v62 = vld [vmem:[#allocation11 + $0x58] sm:$0xff]  ;;  %v926_v5 = vld [vmem:[#allocation11 + $0x30] sm:$0xff]  ;;  %1016 = vmatprep.mubr.f32.mxu1 %v5379_v9  ;;  %1071 = vst [vmem:[#allocation2 + $0x18] sm:$0x3] %v5379_v9 }
 0x148   : > { %954 = vmatprep.subr.mxu1 %v949_v20  ;;  %v927_v4 = vld [vmem:[#allocation11 + $0x38] sm:$0xff]  ;;  %1072 = vst [vmem:[#allocation2 + $0x20] sm:$0xff] %v5379_v9  ;;  %1073 = vst [vmem:[#allocation2 + $0x28] sm:$0x3] %v5379_v9  ;;  %v921_v16 = vld [vmem:[#allocation11 + $0x8] sm:$0xff] }
 0x149   : > { %v5771_v17 = vsub.f32 %v5705_v12, %v822_v6  ;;  %844 = vadd.xlane.f32.xlu1 %v835_v1  ;;  %846 = vadd.xlane.f32.xlu0 %v836_v7  ;;  %v5774_v11 = vsub.f32 %v5708_v13, %v823_v8  ;;  %v688_v13 = vld [vmem:[#allocation10 + $0x38] sm:$0xff]  ;;  %v929_v1 = vld [vmem:[#allocation11 + $0x48] sm:$0xff]  ;;  %v924_v7 = vld [vmem:[#allocation11 + $0x20] sm:$0xff]  ;;  %1074 = vst [vmem:[#allocation2 + $0x30] sm:$0xff] %v5379_v9 }
 0x14a   : > { %v815_v21 = vpop.xlane.xlu0 %814  ;;  %v817_v24 = vpop.xlane.xlu1 %816  ;;  %955 = vmatpush1.msra.mxu1 %v948_v25  ;;  %4720 = vmatprep.subr.mxu0 %v688_v13  ;;  %v925_v6 = vld [vmem:[#allocation11 + $0x28] sm:$0xff]  ;;  %v923_v8 = vld [vmem:[#allocation11 + $0x18] sm:$0xff]  ;;  %1075 = vst [vmem:[#allocation2 + $0x38] sm:$0x3] %v5379_v9  ;;  %1076 = vst [vmem:[#allocation2 + $0x40] sm:$0xff] %v5379_v9 }
 0x14b   : > { %v824_v26 = vmul.f32 0.0078125, %v815_v21  ;;  %v838_v12 = vmul.f32 %v5771_v17, %v5771_v17  ;;  %v825_v27 = vmul.f32 0.0078125, %v817_v24  ;;  %v839_v34 = vmul.f32 %v5774_v11, %v5774_v11  ;;  %956 = vmatprep.subr.mxu1 %v947_v28  ;;  %4721 = vmatpush3.msra.mxu0 %v688_v13  ;;  %1077 = vst [vmem:[#allocation2 + $0x48] sm:$0x3] %v5379_v9 }
 0x14c   : > { %957 = vmatpush1.msra.mxu1 %v946_v31  ;;  %4722 = vmatprep.subr.mxu0 %v687_v38  ;;  %1078 = vst [vmem:[#allocation2 + $0x50] sm:$0xff] %v5379_v9  ;;  %1079 = vst [vmem:[#allocation2 + $0x58] sm:$0x3] %v5379_v9 }
 0x14d   : > { %v5781_v32 = vsub.f32 %v5713_v14, %v824_v26  ;;  %848 = vadd.xlane.f32.xlu1 %v837_v18  ;;  %850 = vadd.xlane.f32.xlu0 %v838_v12  ;;  %v5784_v33 = vsub.f32 %v5716_v15, %v825_v27  ;;  %v943_v14 = vld [vmem:[#allocation11 + $0xb8] sm:$0xff]  ;;  %1080 = vst [vmem:[#allocation2 + $0x60] sm:$0xff] %v5379_v9  ;;  %1081 = vst [vmem:[#allocation2 + $0x68] sm:$0x3] %v5379_v9  ;;  %v920_v18 = vld [vmem:[#allocation11] sm:$0xff] }
 0x14e   : > { %958 = vmatprep.subr.mxu1 %v945_v35  ;;  %4723 = vmatpush3.msra.mxu0 %v687_v38  ;;  %1082 = vst [vmem:[#allocation2 + $0x70] sm:$0xff] %v5379_v9  ;;  %1083 = vst [vmem:[#allocation2 + $0x78] sm:$0x3] %v5379_v9 }
 0x14f   : > { %v840_v36 = vmul.f32 %v5781_v32, %v5781_v32  ;;  %v841_v15 = vmul.f32 %v5784_v33, %v5784_v33  ;;  %959 = vmatpush1.msra.mxu1 %v944_v40  ;;  %4724 = vmatprep.subr.mxu0 %v686_v41  ;;  %1084 = vst [vmem:[#allocation2 + $0x80] sm:$0xff] %v5379_v9  ;;  %1085 = vst [vmem:[#allocation2 + $0x88] sm:$0x3] %v5379_v9 }
 0x150   : > { %960 = vmatprep.subr.mxu1 %v943_v14  ;;  %4725 = vmatpush3.msra.mxu0 %v686_v41  ;;  %1087 = vst [vmem:[#allocation2 + $0x98] sm:$0x3] %v5379_v9  ;;  %1669 = vst [vmem:[#allocation3 + $0x10] sm:$0x3] %v5379_v9 }
 0x151   : > { %852 = vadd.xlane.f32.xlu1 %v839_v34  ;;  %854 = vadd.xlane.f32.xlu0 %v840_v36  ;;  %1670 = vst [vmem:[#allocation3 + $0x48] sm:$0x3] %v5379_v9  ;;  %1671 = vst [vmem:[#allocation3 + $0x120] sm:$0xff] %v5379_v9 }
 0x152   : > { %961 = vmatpush1.msra.mxu1 %v942_v42  ;;  %4726 = vmatprep.subr.mxu0 %v685_v43  ;;  %1672 = vst [vmem:[#allocation3 + $0x38] sm:$0xff] %v5379_v9  ;;  %1673 = vst [vmem:[#allocation3 + $0xf8] sm:$0x3] %v5379_v9 }
 0x153   : > { %962 = vmatprep.subr.mxu1 %v941_v44  ;;  %4727 = vmatpush3.msra.mxu0 %v685_v43  ;;  %1674 = vst [vmem:[#allocation3 + $0x100] sm:$0x3] %v5379_v9  ;;  %1675 = vst [vmem:[#allocation3 + $0x80] sm:$0xff] %v5379_v9 }
 0x154   : > { %963 = vmatpush1.msra.mxu1 %v940_v46  ;;  %4728 = vmatprep.subr.mxu0 %v684_v48  ;;  %1676 = vst [vmem:[#allocation3 + $0x108] sm:$0xff] %v5379_v9  ;;  %1677 = vst [vmem:[#allocation3 + $0x138] sm:$0x3] %v5379_v9 }
 0x155   : > { %856 = vadd.xlane.f32.xlu1 %v841_v15  ;;  %964 = vmatprep.subr.mxu1 %v939_v49  ;;  %1678 = vst [vmem:[#allocation3 + $0xf0] sm:$0x3] %v5379_v9  ;;  %1679 = vst [vmem:[#allocation3 + $0x18] sm:$0xff] %v5379_v9 }
 0x156   : > { %4729 = vmatpush3.msra.mxu0 %v684_v48  ;;  %965 = vmatpush1.msra.mxu1 %v938_v50  ;;  %1680 = vst [vmem:[#allocation3 + $0xc8] sm:$0xff] %v5379_v9  ;;  %1681 = vst [vmem:[#allocation3 + $0x70] sm:$0x3] %v5379_v9 }
 0x157   : > { %4730 = vmatprep.subr.mxu0 %v683_v51  ;;  %966 = vmatprep.subr.mxu1 %v937_v52  ;;  %1682 = vst [vmem:[#allocation3 + $0x20] sm:$0x3] %v5379_v9  ;;  %1683 = vst [vmem:[#allocation3 + $0x128] sm:$0xff] %v5379_v9 }
 0x158   : > { %4731 = vmatpush3.msra.mxu0 %v683_v51  ;;  %967 = vmatpush1.msra.mxu1 %v936_v53  ;;  %1684 = vst [vmem:[#allocation3 + $0x110] sm:$0xff] %v5379_v9  ;;  %1685 = vst [vmem:[#allocation3 + $0x8] sm:$0x3] %v5379_v9  ;;  %v5851_v51 = vld [vmem:[%s7678_s3] ss:$0 sm:$0xff] }
 0x159   : > { %4732 = vmatprep.subr.mxu0 %v682_v54  ;;  %968 = vmatprep.subr.mxu1 %v935_v56  ;;  %1686 = vst [vmem:[#allocation3 + $0x98] sm:$0x3] %v5379_v9  ;;  %1687 = vst [vmem:[#allocation3 + $0xa8] sm:$0xff] %v5379_v9 }
 0x15a   : > { %4733 = vmatpush3.msra.mxu0 %v682_v54  ;;  %969 = vmatpush1.msra.mxu1 %v934_v58  ;;  %1688 = vst [vmem:[#allocation3 + $0x90] sm:$0xff] %v5379_v9  ;;  %1689 = vst [vmem:[#allocation3 + $0xe0] sm:$0x3] %v5379_v9 }
 0x15b   : > { %4734 = vmatprep.subr.mxu0 %v681_v59  ;;  %970 = vmatprep.subr.mxu1 %v933_v60  ;;  %1690 = vst [vmem:[#allocation3 + $0x88] sm:$0x3] %v5379_v9  ;;  %1691 = vst [vmem:[#allocation3 + $0xc0] sm:$0xff] %v5379_v9 }
 0x15c   : > { %4735 = vmatpush3.msra.mxu0 %v681_v59  ;;  %971 = vmatpush1.msra.mxu1 %v932_v61  ;;  %1692 = vst [vmem:[#allocation3 + $0x118] sm:$0xff] %v5379_v9  ;;  %1693 = vst [vmem:[#allocation3 + $0xd8] sm:$0x3] %v5379_v9  ;;  %v5857_v59 = vld [vmem:[%s7679_s4] ss:$0 sm:$0xff] }
 0x15d   : > { %972 = vmatprep.subr.mxu1 %v931_v62  ;;  %1694 = vst [vmem:[#allocation3 + $0xa0] sm:$0x3] %v5379_v9  ;;  %1695 = vst [vmem:[#allocation3 + $0x68] sm:$0xff] %v5379_v9 }
 0x15e   : > { %973 = vmatpush1.msra.mxu1 %v930_v63  ;;  %1696 = vst [vmem:[#allocation3 + $0x130] sm:$0xff] %v5379_v9  ;;  %1697 = vst [vmem:[#allocation3 + $0x50] sm:$0x3] %v5379_v9 }
 0x15f   : > { %974 = vmatprep.subr.mxu1 %v929_v1  ;;  %1698 = vst [vmem:[#allocation3 + $0xe8] sm:$0x3] %v5379_v9  ;;  %1699 = vst [vmem:[#allocation3 + $0x58] sm:$0xff] %v5379_v9 }
 0x160   : > { %975 = vmatpush1.msra.mxu1 %v928_v3  ;;  %1700 = vst [vmem:[#allocation3 + $0x78] sm:$0xff] %v5379_v9  ;;  %1701 = vst [vmem:[#allocation3 + $0x30] sm:$0x3] %v5379_v9 }
 0x161   : > { %976 = vmatprep.subr.mxu1 %v927_v4  ;;  %1702 = vst [vmem:[#allocation3 + $0x40] sm:$0x3] %v5379_v9  ;;  %1705 = vst [vmem:[#allocation3 + $0xb8] sm:$0x3] %v5379_v9 }
 0x162   : > { %977 = vmatpush1.msra.mxu1 %v926_v5  ;;  %1706 = vst [vmem:[#allocation3 + $0x60] sm:$0x3] %v5379_v9 }
 0x163   : > { %978 = vmatprep.subr.mxu1 %v925_v6 }
 0x164   : > { %979 = vmatpush1.msra.mxu1 %v924_v7 }
 0x165   : > { %980 = vmatprep.subr.mxu1 %v923_v8 }
 0x166   : > { %981 = vmatpush1.msra.mxu1 %v922_v10 }
 0x167   : > { %982 = vmatprep.subr.mxu1 %v921_v16 }
 0x168   : > { %983 = vmatpush1.msra.mxu1 %v920_v18 }
 0x1be   : > { %v604_v19 = vpop.xlane.xlu0 %603 }
 0x1bf   : > { %v619_v20 = vmul.f32 0.0078125, %v604_v19 }
 0x1c1   : > { %v627_v21 = vadd.f32 1e-05, %v619_v20 }
 0x1c2   : > { %v606_v24 = vpop.xlane.xlu1 %605  ;;  %v608_v25 = vpop.xlane.xlu0 %607 }
 0x1c3   : > { %5017 = vrsqrt.f32 %v627_v21  ;;  %v620_v26 = vmul.f32 0.0078125, %v606_v24  ;;  %v621_v12 = vmul.f32 0.0078125, %v608_v25 }
 0x1c5   : > { %v628_v27 = vadd.f32 1e-05, %v620_v26  ;;  %v629_v28 = vadd.f32 1e-05, %v621_v12 }
 0x1c6   : > { %v610_v13 = vpop.xlane.xlu1 %609  ;;  %v612_v31 = vpop.xlane.xlu0 %611 }
 0x1c7   : > { %5019 = vrsqrt.f32 %v628_v27  ;;  %v622_v34 = vmul.f32 0.0078125, %v610_v13  ;;  %v623_v35 = vmul.f32 0.0078125, %v612_v31 }
 0x1c8   : > { %5021 = vrsqrt.f32 %v629_v28 }
 0x1c9   : > { %v630_v36 = vadd.f32 1e-05, %v622_v34  ;;  %v631_v38 = vadd.f32 1e-05, %v623_v35 }
 0x1ca   : > { %v614_v40 = vpop.xlane.xlu1 %613  ;;  %v616_v14 = vpop.xlane.xlu0 %615 }
 0x1cb   : > { %5023 = vrsqrt.f32 %v630_v36  ;;  %v624_v15 = vmul.f32 0.0078125, %v614_v40  ;;  %v625_v41 = vmul.f32 0.0078125, %v616_v14 }
 0x1cc   : > { %5025 = vrsqrt.f32 %v631_v38 }
 0x1cd   : > { %v632_v42 = vadd.f32 1e-05, %v624_v15  ;;  %v633_v43 = vadd.f32 1e-05, %v625_v41 }
 0x1ce   : > { %v618_v44 = vpop.xlane.xlu1 %617  ;;  %v843_v46 = vpop.xlane.xlu0 %842 }
 0x1cf   : > { %5027 = vrsqrt.f32 %v632_v42  ;;  %v626_v48 = vmul.f32 0.0078125, %v618_v44  ;;  %v858_v49 = vmul.f32 0.0078125, %v843_v46 }
 0x1d0   : > { %v5018_v50 = vpop.eup %5017  ;;  %5029 = vrsqrt.f32 %v633_v43 }
 0x1d1   : > { %v634_v52 = vadd.f32 1e-05, %v626_v48  ;;  %v866_v53 = vadd.f32 1e-05, %v858_v49  ;;  %v643_v54 = vmul.f32 %v5018_v50, %v5720_v22  ;;  %v4512_v50 = vld [vmem:[%s7680_s5] ss:$0 sm:$0xff] }
 0x1d2   : > { %v845_v56 = vpop.xlane.xlu1 %844  ;;  %v847_v58 = vpop.xlane.xlu0 %846 }
 0x1d3   : > { %5031 = vrsqrt.f32 %v634_v52  ;;  %v859_v60 = vmul.f32 0.0078125, %v845_v56  ;;  %v860_v61 = vmul.f32 0.0078125, %v847_v58  ;;  %v658_v62 = vmul.f32 %v5851_v51, %v643_v54  ;;  %v4513_v56 = vld [vmem:[%s7681_s6] ss:$0 sm:$0xff] }
 0x1d4   : > { %v5020_v63 = vpop.eup %5019  ;;  %5033 = vrsqrt.f32 %v866_v53 }
 0x1d5   : > { %v5022_v1 = vpop.eup %5021  ;;  %v867_v3 = vadd.f32 1e-05, %v859_v60  ;;  %v868_v4 = vadd.f32 1e-05, %v860_v61  ;;  %v673_v5 = vadd.f32 %v5857_v59, %v658_v62  ;;  %v644_v22 = vmul.f32 %v5020_v63, %v5726_v29 }
 0x1d6   : > { %v849_v6 = vpop.xlane.xlu1 %848  ;;  %v851_v7 = vpop.xlane.xlu0 %850  ;;  %v645_v8 = vmul.f32 %v5022_v1, %v5722_v23 }
 0x1d7   : > { %5035 = vrsqrt.f32 %v867_v3  ;;  %v861_v10 = vmul.f32 0.0078125, %v849_v6  ;;  %v862_v16 = vmul.f32 0.0078125, %v851_v7  ;;  %4736 = vmatprep.mubr.f32.mxu0 %v673_v5  ;;  %v659_v18 = vmul.f32 %v5851_v51, %v644_v22 }
 0x1d8   : > { %v5024_v19 = vpop.eup %5023  ;;  %5037 = vrsqrt.f32 %v868_v4  ;;  %v660_v20 = vmul.f32 %v5851_v51, %v645_v8 }
 0x1d9   : > { %v5026_v21 = vpop.eup %5025  ;;  %v869_v24 = vadd.f32 1e-05, %v861_v10  ;;  %v674_v25 = vadd.f32 %v5857_v59, %v659_v18  ;;  %v646_v29 = vmul.f32 %v5024_v19, %v5728_v30  ;;  %v870_v26 = vadd.f32 1e-05, %v862_v16 }
 0x1da   : > { %v853_v12 = vpop.xlane.xlu1 %852  ;;  %v855_v27 = vpop.xlane.xlu0 %854  ;;  %v675_v23 = vadd.f32 %v5857_v59, %v660_v20  ;;  %v647_v28 = vmul.f32 %v5026_v21, %v5734_v37 }
 0x1db   : > { %5039 = vrsqrt.f32 %v869_v24  ;;  %v863_v13 = vmul.f32 0.0078125, %v853_v12  ;;  %4737 = vmatmul.mubr.f32.vlgmr.msra.gmra.mxu0 %v674_v25  ;;  %v661_v31 = vmul.f32 %v5851_v51, %v646_v29  ;;  %v864_v38 = vmul.f32 0.0078125, %v855_v27  ;;  %v1664_v27 = vld [vmem:[#allocation13] sm:$0x77] }
 0x1dc   : > { %v5028_v34 = vpop.eup %5027  ;;  %4739 = vmatprep.mubr.f32.mxu0 %v675_v23  ;;  %v662_v35 = vmul.f32 %v5851_v51, %v647_v28  ;;  %5041 = vrsqrt.f32 %v870_v26  ;;  %v1113_v12 = vlaneseq }
 0x1dd   : > { %v5030_v36 = vpop.eup %5029  ;;  %v676_v30 = vadd.f32 %v5857_v59, %v661_v31  ;;  %v648_v40 = vmul.f32 %v5028_v34, %v5738_v39  ;;  %v871_v14 = vadd.f32 1e-05, %v863_v13  ;;  %v872_v48 = vadd.f32 1e-05, %v864_v38 }
 0x1de   : > { %v677_v15 = vadd.f32 %v5857_v59, %v662_v35  ;;  %v649_v37 = vmul.f32 %v5030_v36, %v5742_v45  ;;  %v857_v41 = vpop.xlane.xlu1 %856  ;;  %v1790_v35 = vld [vmem:[#allocation3 + $0x10] sm:$0x3] }
 0x1df   : > { %4740 = vmatmul.mubr.f32.gmra.mxu0 %v676_v30  ;;  %v663_v42 = vmul.f32 %v5851_v51, %v648_v40  ;;  %5043 = vrsqrt.f32 %v871_v14  ;;  %v865_v45 = vmul.f32 0.0078125, %v857_v41  ;;  %v5917_v30 = vld [vmem:[#allocation13 + $0x8] sm:$0x77] }
 0x1e0   : > { %v5032_v43 = vpop.eup %5031  ;;  %4742 = vmatprep.mubr.f32.mxu0 %v677_v15  ;;  %v664_v44 = vmul.f32 %v5851_v51, %v649_v37  ;;  %5045 = vrsqrt.f32 %v872_v48 }
 0x1e1   : > { %v5034_v46 = vpop.eup %5033  ;;  %v678_v49 = vadd.f32 %v5857_v59, %v663_v42  ;;  %v650_v39 = vmul.f32 %v5032_v43, %v5746_v47  ;;  %v873_v63 = vadd.f32 1e-05, %v865_v45 }
 0x1e2   : > { %v679_v52 = vadd.f32 %v5857_v59, %v664_v44  ;;  %v882_v53 = vmul.f32 %v5034_v46, %v5751_v55 }
 0x1e3   : > { %4743 = vmatmul.mubr.f32.gmra.mxu0 %v678_v49  ;;  %v665_v54 = vmul.f32 %v5851_v51, %v650_v39  ;;  %5047 = vrsqrt.f32 %v873_v63 }
 0x1e4   : > { %v5036_v58 = vpop.eup %5035  ;;  %4745 = vmatprep.mubr.f32.mxu0 %v679_v52  ;;  %v897_v47 = vmul.f32 %v4512_v50, %v882_v53 }
 0x1e5   : > { %v5038_v60 = vpop.eup %5037  ;;  %v680_v61 = vadd.f32 %v5857_v59, %v665_v54  ;;  %v883_v62 = vmul.f32 %v5036_v58, %v5756_v57 }
 0x1e6   : > { %v912_v1 = vadd.f32 %v4513_v56, %v897_v47  ;;  %v884_v55 = vmul.f32 %v5038_v60, %v5761_v0 }
 0x1e7   : > { %4746 = vmatmul.mubr.f32.gmra.mxu0 %v680_v61  ;;  %v898_v3 = vmul.f32 %v4512_v50, %v883_v62 }
 0x1e8   : > { %v5040_v51 = vpop.eup %5039  ;;  %1017 = vmatmul.mubr.f32.vlgmr.msra.gmra.mxu1 %v912_v1  ;;  %v899_v5 = vmul.f32 %v4512_v50, %v884_v55  ;;  %v1065_v55 = vld [vmem:[%s7684_s9] sm:$0x7] }
 0x1e9   : > { %1022 = vmatprep.mubr.f32.mxu1 %v5379_v9  ;;  %v913_v4 = vadd.f32 %v4513_v56, %v898_v3  ;;  %v885_v22 = vmul.f32 %v5040_v51, %v5766_v2  ;;  %v5042_v6 = vpop.eup %5041 }
 0x1ea   : > { %v914_v57 = vadd.f32 %v4513_v56, %v899_v5  ;;  %v886_v7 = vmul.f32 %v5042_v6, %v5771_v17  ;;  %v1098_v6 = vld [vmem:[#allocation2 + $0x8] sm:$0x3] }
 0x1eb   : > { %v900_v59 = vmul.f32 %v4512_v50, %v885_v22  ;;  %v1791_v22 = vld [vmem:[#allocation3 + $0x48] sm:$0x3] }
 0x1ec   : > { %1023 = vmatmul.mubr.f32.gmra.mxu1 %v913_v4  ;;  %v5044_v0 = vpop.eup %5043  ;;  %v901_v10 = vmul.f32 %v4512_v50, %v886_v7 }
 0x1ed   : > { %1028 = vmatprep.mubr.f32.mxu1 %v5379_v9  ;;  %v915_v8 = vadd.f32 %v4513_v56, %v900_v59  ;;  %v887_v16 = vmul.f32 %v5044_v0, %v5774_v11  ;;  %v5046_v18 = vpop.eup %5045 }
 0x1ee   : > { %v916_v2 = vadd.f32 %v4513_v56, %v901_v10  ;;  %v888_v20 = vmul.f32 %v5046_v18, %v5781_v32  ;;  %v1114_v32 = vshrl.u32 %v1113_v12, 7 }
 0x1ef   : > { %v902_v19 = vmul.f32 %v4512_v50, %v887_v16 }
 0x1f0   : > { %1029 = vmatmul.mubr.f32.gmra.mxu1 %v914_v57  ;;  %v5048_v21 = vpop.eup %5047  ;;  %v903_v24 = vmul.f32 %v4512_v50, %v888_v20  ;;  %v5903_v23 = vsub.s32 1, %v1114_v32  ;;  %v5905_v28 = vsub.s32 2, %v1114_v32  ;;  %v5954_v62 = vsub.s32 5, %v1114_v32  ;;  %v1067_v20 = vld [vmem:[%s7684_s9 + $0x8] sm:$0x7] }
 0x1f1   : > { %1034 = vmatprep.mubr.f32.mxu1 %v5379_v9  ;;  %v917_v17 = vadd.f32 %v4513_v56, %v902_v19  ;;  %v889_v25 = vmul.f32 %v5048_v21, %v5784_v33  ;;  %v5908_v33 = vsub.s32 0, %v1114_v32  ;;  %v5957_v1 = vsub.s32 6, %v1114_v32  ;;  %v1066_v19 = vld [vmem:[%s7684_s9 + $0x4] sm:$0x7] }
 0x1f2   : > { %v918_v11 = vadd.f32 %v4513_v56, %v903_v24  ;;  %v1874_v13 = vrot.slane %v1664_v27, %v5903_v23  ;;  %v2036_v34 = vrot.slane %v1664_v27, %v5905_v28  ;;  %v2281_v46 = vrot.slane %v5917_v30, %v5903_v23 }
 0x1f3   : > { %v904_v29 = vmul.f32 %v4512_v50, %v889_v25  ;;  %v2443_v48 = vrot.slane %v5917_v30, %v5905_v28  ;;  %v1878_v63 = vrot.slane %v1664_v27, %v5954_v62  ;;  %v5962_v3 = vsub.s32 4, %v1114_v32 }
 0x1f4   : > { %1035 = vmatmul.mubr.f32.gmra.mxu1 %v915_v8  ;;  %v5911_v31 = vrot.slane %v1874_v13, %v5903_v23  ;;  %v5923_v14 = vrot.slane %v2036_v34, %v5905_v28  ;;  %v5934_v45 = vrot.slane %v2281_v46, %v5903_v23  ;;  %v2040_v4 = vrot.slane %v1664_v27, %v5957_v1  ;;  %v1491_v34 = vld [vmem:[#allocation2 + $0x98] sm:$0x3] }
 0x1f5   : > { %1040 = vmatprep.mubr.f32.mxu1 %v5379_v9  ;;  %v919_v26 = vadd.f32 %v4513_v56, %v904_v29  ;;  %v5938_v53 = vrot.slane %v2443_v48, %v5905_v28  ;;  %v5942_v56 = vld [vmem:[#allocation13 + $0x10] sm:$0x77]  ;;  %v5965_v51 = vrot.slane %v1878_v63, %v5903_v23  ;;  %v5969_v5 = vrot.slane %v1065_v55, %v5903_v23 }
 0x1f6   : > { %v1889_v36 = vmul.f32 0.0, %v5911_v31  ;;  %v1891_v38 = vmul.f32 %v5911_v31, %v1790_v35  ;;  %v2051_v42 = vmul.f32 0.0, %v5923_v14  ;;  %v2053_v43 = vmul.f32 %v5923_v14, %v1790_v35 }
 0x1f7   : > { %7807 = vst [vmem:[#allocation23_spill] sm:$0xff] %v5938_v53  ;;  %v2689_v58 = vrot.slane %v5942_v56, %v5903_v23  ;;  %v2851_v47 = vrot.slane %v5942_v56, %v5905_v28  ;;  %7810 = vst [vmem:[#allocation26_spill] sm:$0xff] %v5965_v51  ;;  %v1828_v57 = vrot.slane %v1664_v27, %v5962_v3  ;;  %v1890_v7 = vmul.f32 0.0, %v5965_v51 }
 0x1f8   : > { %1041 = vmatmul.mubr.f32.gmra.mxu1 %v916_v2  ;;  %v1953_v15 = vrot.slane %v1889_v36, 1  ;;  %v1954_v37 = vrot.slane %v1891_v38, 1  ;;  %v2115_v39 = vrot.slane %v2051_v42, 2  ;;  %v2116_v50 = vrot.slane %v2053_v43, 2 }
 0x1f9   : > { %1046 = vmatprep.mubr.f32.mxu1 %v5379_v9  ;;  %v5949_v60 = vrot.slane %v2689_v58, %v5903_v23  ;;  %v5952_v61 = vrot.slane %v2851_v47, %v5905_v28  ;;  %v5973_v59 = vrot.slane %v2040_v4, %v5905_v28  ;;  %v1892_v0 = vmul.f32 %v5965_v51, %v1791_v22 }
 0x1fa   : > { %v1955_v44 = vsel %vm1169_vm0, %v1953_v15, %v1954_v37  ;;  %v2117_v52 = vsel %vm1246_vm1, %v2115_v39, %v2116_v50  ;;  %v5978_v8 = vrot.slane %v1065_v55, %v5905_v28  ;;  %v1137_v10 = vmul.f32 0.0, %v5969_v5 }
 0x1fb   : > { %7808 = vst [vmem:[#allocation24_spill] sm:$0xff] %v5949_v60  ;;  %7809 = vst [vmem:[#allocation25_spill] sm:$0xff] %v5952_v61  ;;  %v1138_v16 = vmul.f32 %v5969_v5, %v1098_v6  ;;  %v5983_v18 = vrot.slane %v1065_v55, %v5908_v33  ;;  %v5986_v2 = vrot.slane %v1828_v57, %v5908_v33  ;;  %v1956_v21 = vrot.slane %v1890_v7, 1 }
 0x1fc   : > { %1047 = vmatmul.mubr.f32.gmra.mxu1 %v917_v17  ;;  %7811 = vst [vmem:[#allocation27_spill] sm:$0xff] %v5973_v59  ;;  %v1957_v17 = vrot.slane %v1892_v0, 1  ;;  %v2052_v24 = vmul.f32 0.0, %v5973_v59  ;;  %v2054_v25 = vmul.f32 %v5973_v59, %v1791_v22  ;;  %v1215_v12 = vmul.f32 %v5978_v8, %v1098_v6 }
 0x1fd   : > { %1052 = vmatprep.mubr.f32.mxu1 %v5379_v9  ;;  %7812 = vst [vmem:[#allocation28_spill] sm:$0xff] %v5986_v2  ;;  %v1171_v29 = vrot.slane %v1138_v16, 1  ;;  %v5999_v32 = vrot.slane %v1066_v19, %v5903_v23  ;;  %v6005_v13 = vrot.slane %v1067_v20, %v5903_v23  ;;  %v1117_v15 = vmul.f32 0.0, %v5983_v18 }
 0x1fe   : > { %v1958_v36 = vsel %vm1169_vm0, %v1956_v21, %v1957_v17  ;;  %v2118_v38 = vrot.slane %v2052_v24, 2  ;;  %v2119_v37 = vrot.slane %v2054_v25, 2  ;;  %v1248_v43 = vrot.slane %v1215_v12, 2 }
 0x1ff   : > { %7813 = vst [vmem:[#allocation29_spill] sm:$0xff] %v6005_v13  ;;  %v6012_v46 = vrot.slane %v1066_v19, %v5905_v28  ;;  %v2231_v48 = vrot.slane %v5917_v30, %v5908_v33  ;;  %v1531_v39 = vmul.f32 %v6005_v13, %v1491_v34  ;;  %v2285_v50 = vrot.slane %v5917_v30, %v5954_v62 }
 0x200   : > { %1053 = vmatmul.mubr.f32.gmra.mxu1 %v918_v11  ;;  %v1170_v11 = vrot.slane %v1137_v10, 1  ;;  %v2639_v58 = vrot.slane %v5942_v56, %v5908_v33  ;;  %v2693_v47 = vrot.slane %v5942_v56, %v5954_v62  ;;  %v2855_v55 = vrot.slane %v5942_v56, %v5957_v1 }
 0x201   : > { %1058 = vmatprep.mubr.f32.mxu1 %v5379_v9  ;;  %v1824_v9 = vrot.slane %v1664_v27, %v5908_v33  ;;  %v6002_v27 = vrot.slane %v1066_v19, %v5908_v33  ;;  %v2235_v22 = vrot.slane %v5917_v30, %v5962_v3  ;;  %v6031_v57 = vrot.slane %v1067_v20, %v5908_v33 }
 0x202   : > { %v2120_v7 = vsel %vm1246_vm1, %v2118_v38, %v2119_v37  ;;  %v2643_v0 = vrot.slane %v5942_v56, %v5962_v3  ;;  %v6038_v16 = vrot.slane %v1067_v20, %v5905_v28  ;;  %v1570_v19 = vrot.slane %v1531_v39, 1 }
 0x203   : > { %v5920_v40 = vrot.slane %v1824_v9, %v5908_v33  ;;  %v1840_v9 = vmul.f32 0.0, %v5986_v2  ;;  %7814 = vst [vmem:[#allocation30_spill] sm:$0xff] %v6031_v57  ;;  %v6044_v21 = vrot.slane %v2285_v50, %v5903_v23  ;;  %v6050_v56 = vrot.slane %v2639_v58, %v5908_v33 }
 0x204   : > { %1059 = vmatmul.mubr.f32.gmra.mxu1 %v919_v26  ;;  %v1214_v26 = vmul.f32 0.0, %v5978_v8  ;;  %7815 = vst [vmem:[#allocation31_spill] sm:$0xff] %v6038_v16  ;;  %v6053_v3 = vrot.slane %v2693_v47, %v5903_v23  ;;  %v6061_v12 = vrot.slane %v2235_v22, %v5908_v33 }
 0x205   : > { %v1839_v41 = vmul.f32 0.0, %v5920_v40  ;;  %v2018_v4 = vadd.f32 %v1958_v36, %v1840_v9  ;;  %7816 = vst [vmem:[#allocation32_spill] sm:$0xff] %v6044_v21  ;;  %7818 = vst [vmem:[#allocation34_spill] sm:$0xff] %v6050_v56 }
 0x206   : > { %v1247_v42 = vrot.slane %v1214_v26, 2  ;;  %7819 = vst [vmem:[#allocation35_spill] sm:$0xff] %v6053_v3  ;;  %7821 = vst [vmem:[#allocation37_spill] sm:$0xff] %v6061_v12 }
 0x207   : > { %v2017_v49 = vadd.f32 %v1955_v44, %v1839_v41  ;;  %v1172_v41 = vsel %vm1169_vm0, %v1170_v11, %v1171_v29  ;;  %v6056_v29 = vrot.slane %v2855_v55, %v5905_v28  ;;  %v6058_v26 = vadd.f32 %v2120_v7, %v2018_v4 }
 0x208   : > { %v1202_v6 = vadd.f32 %v1172_v41, %v1117_v15  ;;  %v1249_v62 = vsel %vm1246_vm1, %v1247_v42, %v1248_v43  ;;  %v6084_v42 = vmul.f32 0.0, %v6031_v57 }
 0x209   : > { %v5940_v54 = vadd.f32 %v2117_v52, %v2017_v49  ;;  %v1530_v49 = vmul.f32 0.0, %v6005_v13  ;;  %v2447_v52 = vrot.slane %v5917_v30, %v5957_v1  ;;  %v6041_v1 = vrot.slane %v2231_v48, %v5908_v33  ;;  %7820 = vst [vmem:[#allocation36_spill] sm:$0xff] %v6056_v29 }
 0x20a   : > { %v6063_v34 = vadd.f32 %v1249_v62, %v1202_v6  ;;  %7827 = vst [vmem:[#allocation43_spill] sm:$0xff] %v6084_v42 }
 0x20b   : > { %v1569_v30 = vrot.slane %v1530_v49, 1  ;;  %v6047_v17 = vrot.slane %v2447_v52, %v5905_v28  ;;  %v6075_v28 = vrot.slane %v2643_v0, %v5908_v33 }
 0x20c   : > { %7822 = vst [vmem:[#allocation38_spill] sm:$0xff] %v6063_v34 }
 0x20d   : > { %7817 = vst [vmem:[#allocation33_spill] sm:$0xff] %v6047_v17  ;;  %7824 = vst [vmem:[#allocation40_spill] sm:$0xff] %v6075_v28  ;;  %v6087_v43 = vsel %vm1169_vm0, %v1569_v30, %v1570_v19 }
 0x20e   : > { %7828 = vst [vmem:[#allocation44_spill] sm:$0xff] %v6087_v43 }
 0x29b   : > { %v4738_v35 = vpop.f32.mrf.mxu0 }
 0x29c   : > { %1090 = vst [vmem:[#allocation2 + $0x21] sm:$0xff] %v4738_v35 }
 0x29d   : > { %v763_v44 = vpop.f32.mrf.mxu0 }
 0x29e   : > { %1089 = vst [vmem:[#allocation2 + $0x11] sm:$0xff] %v763_v44 }
 0x29f   : > { %v4741_v63 = vpop.f32.mrf.mxu0 }
 0x2a0   : > { %1092 = vst [vmem:[#allocation2 + $0x41] sm:$0xff] %v4741_v63 }
 0x2a1   : > { %v773_v10 = vpop.f32.mrf.mxu0 }
 0x2a2   : > { %1091 = vst [vmem:[#allocation2 + $0x31] sm:$0xff] %v773_v10 }
 0x2a3   : > { %v1101_v20 = vld [vmem:[#allocation2 + $0x20] sm:$0xff]  ;;  %v1102_v24 = vld [vmem:[#allocation2 + $0x28] sm:$0x3]  ;;  %v4744_v11 = vpop.f32.mrf.mxu0 }
 0x2a4   : > { %v1290_v25 = vld [vmem:[#allocation2 + $0x28] sm:$0x3]  ;;  %v6066_v35 = vmul.f32 %v5969_v5, %v1101_v20  ;;  %v6069_v23 = vmul.f32 %v5969_v5, %v1102_v24  ;;  %v6072_v9 = vmul.f32 %v5978_v8, %v1101_v20  ;;  %1094 = vst [vmem:[#allocation2 + $0x61] sm:$0xff] %v4744_v11  ;;  %v6078_v36 = vmul.f32 %v5983_v18, %v1101_v20 }
 0x2a5   : > { %v6081_v38 = vmul.f32 %v5978_v8, %v1102_v24  ;;  %v1099_v15 = vld [vmem:[#allocation2 + $0x10] sm:$0xff]  ;;  %v1100_v37 = vld [vmem:[#allocation2 + $0x18] sm:$0x3]  ;;  %v783_v41 = vpop.f32.mrf.mxu0  ;;  %v6091_v33 = vmul.f32 %v5999_v32, %v1290_v25  ;;  %v6094_v48 = vmul.f32 %v6002_v27, %v1101_v20  ;;  %v6097_v49 = vmul.f32 %v5999_v32, %v1101_v20 }
 0x2a6   : > { %7823 = vst [vmem:[#allocation39_spill] sm:$0xff] %v6072_v9  ;;  %7825 = vst [vmem:[#allocation41_spill] sm:$0xff] %v6078_v36  ;;  %v6102_v52 = vmul.f32 %v5969_v5, %v1099_v15  ;;  %v6105_v58 = vmul.f32 %v5969_v5, %v1100_v37  ;;  %v6108_v4 = vmul.f32 %v5983_v18, %v1099_v15 }
 0x2a7   : > { %7826 = vst [vmem:[#allocation42_spill] sm:$0xff] %v6081_v38  ;;  %7829 = vst [vmem:[#allocation45_spill] sm:$0xff] %v6091_v33  ;;  %v1105_v47 = vld [vmem:[#allocation2 + $0x40] sm:$0xff]  ;;  %v1106_v63 = vld [vmem:[#allocation2 + $0x48] sm:$0x3]  ;;  %v4747_v55 = vpop.f32.mrf.mxu0  ;;  %v6111_v22 = vmul.f32 %v5978_v8, %v1099_v15  ;;  %v6117_v10 = vmul.f32 %v5978_v8, %v1100_v37 }
 0x2a8   : > { %1093 = vst [vmem:[#allocation2 + $0x51] sm:$0xff] %v783_v41  ;;  %7830 = vst [vmem:[#allocation46_spill] sm:$0xff] %v6094_v48  ;;  %v1145_v6 = vmul.f32 %v5969_v5, %v1105_v47  ;;  %v1146_v7 = vmul.f32 %v5969_v5, %v1106_v63  ;;  %v1294_v0 = vld [vmem:[#allocation2 + $0x48] sm:$0x3]  ;;  %v1121_v30 = vmul.f32 %v5983_v18, %v1105_v47 }
 0x2a9   : > { %7831 = vst [vmem:[#allocation47_spill] sm:$0xff] %v6097_v49  ;;  %1096 = vst [vmem:[#allocation2 + $0x81] sm:$0xff] %v4747_v55  ;;  %v1222_v19 = vmul.f32 %v5978_v8, %v1105_v47  ;;  %v793_v20 = vpop.f32.mrf.mxu0  ;;  %v1223_v15 = vmul.f32 %v5978_v8, %v1106_v63  ;;  %v6125_v50 = vmul.f32 %v5999_v32, %v1105_v47  ;;  %v6130_v62 = vld [vmem:[#allocation2 + $0x30] sm:$0xff]  ;;  %v1104_v44 = vld [vmem:[#allocation2 + $0x38] sm:$0x3] }
 0x2aa   : > { %v1182_v25 = vrot.slane %v1145_v6, 1  ;;  %v1183_v11 = vrot.slane %v1146_v7, 1  ;;  %1095 = vst [vmem:[#allocation2 + $0x71] sm:$0xff] %v793_v20  ;;  %v6128_v37 = vmul.f32 %v5999_v32, %v1294_v0  ;;  %7834 = vst [vmem:[#allocation50_spill] sm:$0xff] %v6130_v62  ;;  %v6135_v63 = vmul.f32 %v6012_v46, %v1294_v0  ;;  %v6163_v20 = vpop.f32.mrf.mxu1 }
 0x2ab   : > { %v1259_v55 = vrot.slane %v1222_v19, 2  ;;  %7832 = vst [vmem:[#allocation48_spill] sm:$0xff] %v6125_v50  ;;  %v1260_v7 = vrot.slane %v1223_v15, 2  ;;  %v6141_v24 = vmul.f32 %v6002_v27, %v1105_v47  ;;  %v6144_v41 = vmul.f32 %v6012_v46, %v1105_v47  ;;  %v1109_v15 = vld [vmem:[#allocation2 + $0x60] sm:$0xff]  ;;  %v1110_v39 = vld [vmem:[#allocation2 + $0x68] sm:$0x3] }
 0x2ac   : > { %7833 = vst [vmem:[#allocation49_spill] sm:$0xff] %v6128_v37  ;;  %v1184_v6 = vsel %vm1169_vm0, %v1182_v25, %v1183_v11  ;;  %7835 = vst [vmem:[#allocation51_spill] sm:$0xff] %v6135_v63  ;;  %v1143_v25 = vmul.f32 %v5969_v5, %v6130_v62  ;;  %v1144_v0 = vmul.f32 %v5969_v5, %v1104_v44  ;;  %v1292_v11 = vld [vmem:[#allocation2 + $0x38] sm:$0x3]  ;;  %v1298_v50 = vld [vmem:[#allocation2 + $0x68] sm:$0x3]  ;;  %v6187_v49 = vpop.f32.mrf.mxu1 }
 0x2ad   : > { %v6138_v19 = vadd.f32 %v1184_v6, %v1121_v30  ;;  %7837 = vst [vmem:[#allocation53_spill] sm:$0xff] %v6141_v24  ;;  %7838 = vst [vmem:[#allocation54_spill] sm:$0xff] %v6144_v41  ;;  %v6152_v30 = vsel %vm1246_vm1, %v1259_v55, %v1260_v7  ;;  %v1120_v6 = vmul.f32 %v5983_v18, %v6130_v62 }
 0x2ae   : > { %7839 = vst [vmem:[#allocation55_spill] sm:$0xff] %v6152_v30  ;;  %v6158_v47 = vmul.f32 %v5978_v8, %v6130_v62  ;;  %v6161_v2 = vmul.f32 %v5978_v8, %v1104_v44  ;;  %v1179_v51 = vrot.slane %v1143_v25, 1  ;;  %v1180_v43 = vrot.slane %v1144_v0, 1 }
 0x2af   : > { %7836 = vst [vmem:[#allocation52_spill] sm:$0xff] %v6138_v19  ;;  %v6168_v55 = vmul.f32 %v5999_v32, %v6130_v62  ;;  %v6171_v7 = vmul.f32 %v5999_v32, %v1292_v11  ;;  %v6174_v42 = vmul.f32 %v6012_v46, %v1292_v11  ;;  %v1123_v44 = vmul.f32 %v5983_v18, %v1109_v15  ;;  %v1107_v48 = vld [vmem:[#allocation2 + $0x50] sm:$0xff] }
 0x2b0   : > { %7840 = vst [vmem:[#allocation56_spill] sm:$0xff] %v6158_v47  ;;  %7841 = vst [vmem:[#allocation57_spill] sm:$0xff] %v6161_v2  ;;  %v1149_v41 = vmul.f32 %v5969_v5, %v1109_v15  ;;  %v1181_v37 = vsel %vm1169_vm0, %v1179_v51, %v1180_v43  ;;  %v1150_v25 = vmul.f32 %v5969_v5, %v1110_v39  ;;  %v1489_v2 = vld [vmem:[#allocation2 + $0x88] sm:$0x3] }
 0x2b1   : > { %7842 = vst [vmem:[#allocation58_spill] sm:$0xff] %v6168_v55  ;;  %7843 = vst [vmem:[#allocation59_spill] sm:$0xff] %v6171_v7  ;;  %v1226_v0 = vmul.f32 %v5978_v8, %v1109_v15  ;;  %v1227_v59 = vmul.f32 %v5978_v8, %v1110_v39  ;;  %v6185_v11 = vmul.f32 %v5999_v32, %v1109_v15  ;;  %v1108_v55 = vld [vmem:[#allocation2 + $0x58] sm:$0x3]  ;;  %v1301_v39 = vld [vmem:[#allocation2 + $0x80] sm:$0xff] }
 0x2b2   : > { %7844 = vst [vmem:[#allocation60_spill] sm:$0xff] %v6174_v42  ;;  %v1188_v33 = vrot.slane %v1149_v41, 1  ;;  %v1485_v42 = vld [vmem:[#allocation2 + $0x68] sm:$0x3]  ;;  %v1189_v24 = vrot.slane %v1150_v25, 1  ;;  %v6190_v43 = vmul.f32 %v5999_v32, %v1298_v50  ;;  %v6192_v62 = vadd.f32 %v1181_v37, %v1120_v6 }
 0x2b3   : > { %7845 = vst [vmem:[#allocation61_spill] sm:$0xff] %v6185_v11  ;;  %v1265_v34 = vrot.slane %v1226_v0, 2  ;;  %v1266_v51 = vrot.slane %v1227_v59, 2  ;;  %v6196_v63 = vmul.f32 %v6002_v27, %v1109_v15  ;;  %v6201_v25 = vmul.f32 %v6012_v46, %v1109_v15  ;;  %v1296_v37 = vld [vmem:[#allocation2 + $0x58] sm:$0x3]  ;;  %v6213_v11 = vpop.f32.mrf.mxu1 }
 0x2b4   : > { %7846 = vst [vmem:[#allocation62_spill] sm:$0xff] %v6190_v43  ;;  %7847 = vst [vmem:[#allocation63_spill] sm:$0xff] %v6192_v62  ;;  %v1190_v30 = vsel %vm1169_vm0, %v1188_v33, %v1189_v24  ;;  %v6204_v59 = vmul.f32 %v6012_v46, %v1298_v50  ;;  %v6207_v0 = vmul.f32 %v6005_v13, %v1485_v42  ;;  %v6259_v43 = vld [vmem:[#allocation2 + $0x70] sm:$0xff] }
 0x2b5   : > { %7848 = vst [vmem:[#allocation64_spill] sm:$0xff] %v6196_v63  ;;  %7849 = vst [vmem:[#allocation65_spill] sm:$0xff] %v6201_v25  ;;  %v1267_v6 = vsel %vm1246_vm1, %v1265_v34, %v1266_v51  ;;  %v1122_v7 = vmul.f32 %v5983_v18, %v1107_v48  ;;  %v1147_v41 = vmul.f32 %v5969_v5, %v1107_v48  ;;  %v6236_v9 = vpop.f32.mrf.mxu1 }
 0x2b6   : > { %7850 = vst [vmem:[#allocation66_spill] sm:$0xff] %v6204_v59  ;;  %7851 = vst [vmem:[#allocation67_spill] sm:$0xff] %v6207_v0  ;;  %v1208_v33 = vadd.f32 %v1190_v30, %v1123_v44  ;;  %v1148_v24 = vmul.f32 %v5969_v5, %v1108_v55  ;;  %v1224_v50 = vmul.f32 %v5978_v8, %v1107_v48 }
 0x2b7   : > { %v1225_v15 = vmul.f32 %v5978_v8, %v1108_v55  ;;  %v1185_v42 = vrot.slane %v1147_v41, 1  ;;  %v6219_v0 = vmul.f32 %v5999_v32, %v1107_v48  ;;  %v6222_v34 = vmul.f32 %v5999_v32, %v1296_v37  ;;  %v1302_v55 = vld [vmem:[#allocation2 + $0x88] sm:$0x3]  ;;  %7859 = vst [vmem:[#allocation75_spill] sm:$0xff] %v6259_v43 }
 0x2b8   : > { %v6225_v51 = vmul.f32 %v6012_v46, %v1107_v48  ;;  %v1186_v44 = vrot.slane %v1148_v24, 1  ;;  %v6230_v63 = vmul.f32 %v6002_v27, %v1107_v48  ;;  %v1262_v41 = vrot.slane %v1224_v50, 2 }
 0x2b9   : > { %7852 = vst [vmem:[#allocation68_spill] sm:$0xff] %v6219_v0  ;;  %7853 = vst [vmem:[#allocation69_spill] sm:$0xff] %v6222_v34  ;;  %v1263_v62 = vrot.slane %v1225_v15, 2  ;;  %v6234_v47 = vmul.f32 %v6012_v46, %v1296_v37  ;;  %v1341_v48 = vmul.f32 %v5999_v32, %v1301_v39  ;;  %v1342_v50 = vmul.f32 %v5999_v32, %v1302_v55 }
 0x2ba   : > { %7854 = vst [vmem:[#allocation70_spill] sm:$0xff] %v6225_v51  ;;  %7855 = vst [vmem:[#allocation71_spill] sm:$0xff] %v6230_v63  ;;  %v1187_v38 = vsel %vm1169_vm0, %v1185_v42, %v1186_v44  ;;  %v1417_v15 = vmul.f32 %v6012_v46, %v1301_v39  ;;  %v1418_v19 = vmul.f32 %v6012_v46, %v1302_v55  ;;  %v1112_v55 = vld [vmem:[#allocation2 + $0x78] sm:$0x3]  ;;  %v6261_v51 = vpop.f32.mrf.mxu1 }
 0x2bb   : > { %v1207_v30 = vadd.f32 %v1187_v38, %v1122_v7  ;;  %v6246_v37 = vmul.f32 %v6002_v27, %v1301_v39  ;;  %v1380_v25 = vrot.slane %v1341_v48, 1  ;;  %v6249_v59 = vmul.f32 %v6005_v13, %v1301_v39  ;;  %v1300_v38 = vld [vmem:[#allocation2 + $0x78] sm:$0x3] }
 0x2bc   : > { %v6252_v42 = vmul.f32 %v6005_v13, %v1489_v2  ;;  %v1264_v44 = vsel %vm1246_vm1, %v1262_v41, %v1263_v62  ;;  %v1381_v7 = vrot.slane %v1342_v50, 1  ;;  %v6257_v24 = vmul.f32 %v6031_v57, %v1301_v39 }
 0x2bd   : > { %7856 = vst [vmem:[#allocation72_spill] sm:$0xff] %v6249_v59  ;;  %v6263_v48 = vadd.f32 %v1264_v44, %v1207_v30  ;;  %v1456_v0 = vrot.slane %v1417_v15, 2  ;;  %v1457_v34 = vrot.slane %v1418_v19, 2  ;;  %v6268_v62 = vmul.f32 %v6038_v16, %v1301_v39  ;;  %v6287_v44 = vpop.f32.mrf.mxu1 }
 0x2be   : > { %7857 = vst [vmem:[#allocation73_spill] sm:$0xff] %v6252_v42  ;;  %7858 = vst [vmem:[#allocation74_spill] sm:$0xff] %v6257_v24  ;;  %v6271_v41 = vmul.f32 %v6038_v16, %v1489_v2  ;;  %v1723_v50 = vrot.slane %v6163_v20, 7  ;;  %v6275_v24 = vsel %vm1169_vm0, %v1380_v25, %v1381_v7  ;;  %v1151_v30 = vmul.f32 %v5969_v5, %v6259_v43 }
 0x2bf   : > { %7860 = vst [vmem:[#allocation76_spill] sm:$0xff] %v6268_v62  ;;  %v1152_v19 = vmul.f32 %v5969_v5, %v1112_v55  ;;  %v1228_v15 = vmul.f32 %v5978_v8, %v6259_v43  ;;  %v1229_v39 = vmul.f32 %v5978_v8, %v1112_v55  ;;  %v1285_v2 = vadd.f32 %v1267_v6, %v1208_v33  ;;  %v1487_v62 = vld [vmem:[#allocation2 + $0x78] sm:$0x3] }
 0x2c0   : > { %7861 = vst [vmem:[#allocation77_spill] sm:$0xff] %v6271_v41  ;;  %1756 = vst [vmem:[#allocation3 + $0x120] sm:$0xfe] %v1723_v50  ;;  %v1313_v20 = vmul.f32 %v6002_v27, %v6259_v43  ;;  %v1339_v25 = vmul.f32 %v5999_v32, %v6259_v43  ;;  %v1191_v7 = vrot.slane %v1151_v30, 1  ;;  %v1340_v5 = vmul.f32 %v5999_v32, %v1300_v38 }
 0x2c1   : > { %1758 = vst [vmem:[#allocation3 + $0xf8] sm:$0x1] %v1723_v50  ;;  %v1192_v63 = vrot.slane %v1152_v19, 1  ;;  %v1268_v36 = vrot.slane %v1228_v15, 2  ;;  %v6291_v59 = vsel %vm1246_vm1, %v1456_v0, %v1457_v34  ;;  %v1124_v8 = vmul.f32 %v5983_v18, %v6259_v43  ;;  %v6309_v18 = vpop.f32.mrf.mxu1 }
 0x2c2   : > { %v1269_v6 = vrot.slane %v1229_v39, 2  ;;  %v6297_v33 = vmul.f32 %v6012_v46, %v6259_v43  ;;  %v1377_v50 = vrot.slane %v1339_v25, 1  ;;  %v1378_v30 = vrot.slane %v1340_v5, 1 }
 0x2c3   : > { %v1193_v55 = vsel %vm1169_vm0, %v1191_v7, %v1192_v63  ;;  %v6301_v19 = vmul.f32 %v6012_v46, %v1300_v38  ;;  %v6304_v0 = vadd.f32 %v1313_v20, %v1285_v2  ;;  %v6307_v34 = vmul.f32 %v6005_v13, %v1487_v62 }
 0x2c4   : > { %v1209_v42 = vadd.f32 %v1193_v55, %v1124_v8  ;;  %v1270_v39 = vsel %vm1246_vm1, %v1268_v36, %v1269_v6  ;;  %v6315_v63 = vmul.f32 %v6005_v13, %v6259_v43  ;;  %v1724_v38 = vrot.slane %v6187_v49, 7 }
 0x2c5   : > { %7862 = vst [vmem:[#allocation78_spill] sm:$0xff] %v6307_v34  ;;  %v1725_v20 = vrot.slane %v6213_v11, 7  ;;  %v1726_v7 = vrot.slane %v6236_v9, 7  ;;  %v6323_v6 = vsel %vm1169_vm0, %v1377_v50, %v1378_v30  ;;  %v6326_v15 = vmul.f32 %v6038_v16, %v1487_v62 }
 0x2c6   : > { %7863 = vst [vmem:[#allocation79_spill] sm:$0xff] %v6315_v63  ;;  %v1286_v36 = vadd.f32 %v1270_v39, %v1209_v42  ;;  %1757 = vst [vmem:[#allocation3 + $0x38] sm:$0xfe] %v1724_v38  ;;  %v1727_v49 = vrot.slane %v6261_v51, 7  ;;  %v1038_v42 = vpop.f32.mrf.mxu1  ;;  %v7865_v43 = vrot.slane %v6105_v58, 1 }
 0x2c7   : > { %v1792_v5 = vld [vmem:[#allocation3 + $0x120] sm:$0xff]  ;;  %7864 = vst [vmem:[#allocation80_spill] sm:$0xff] %v6326_v15  ;;  %1759 = vst [vmem:[#allocation3 + $0x100] sm:$0x1] %v1724_v38 }
 0x2c8   : > { %v1794_v8 = vld [vmem:[#allocation3 + $0xf8] sm:$0x3]  ;;  %v1841_v2 = vmul.f32 %v5920_v40, %v1792_v5  ;;  %v1893_v11 = vmul.f32 %v5911_v31, %v1792_v5  ;;  %v2055_v57 = vmul.f32 %v5923_v14, %v1792_v5  ;;  %1760 = vst [vmem:[#allocation3 + $0x80] sm:$0xfe] %v1725_v20  ;;  %1762 = vst [vmem:[#allocation3 + $0x138] sm:$0x1] %v1725_v20  ;;  %v1042_v13 = vpop.f32.mrf.mxu1 }
 0x2c9   : > { %v2197_v55 = vld [vmem:[#allocation3 + $0xf8] sm:$0x3]  ;;  %v1895_v9 = vmul.f32 %v5911_v31, %v1794_v8  ;;  %1761 = vst [vmem:[#allocation3 + $0x108] sm:$0xfe] %v1726_v7  ;;  %1763 = vst [vmem:[#allocation3 + $0xf0] sm:$0x1] %v1726_v7  ;;  %v2057_v62 = vmul.f32 %v5923_v14, %v1794_v8  ;;  %v2246_v50 = vmul.f32 %v6041_v1, %v1792_v5 }
 0x2ca   : > { %v2296_v30 = vmul.f32 %v5934_v45, %v1792_v5  ;;  %v2298_v51 = vmul.f32 %v5934_v45, %v2197_v55  ;;  %1764 = vst [vmem:[#allocation3 + $0x18] sm:$0xfe] %v1727_v49  ;;  %1766 = vst [vmem:[#allocation3 + $0x70] sm:$0x1] %v1727_v49  ;;  %v1959_v39 = vrot.slane %v1893_v11, 1  ;;  %v2121_v25 = vrot.slane %v2055_v57, 2 }
 0x2cb   : > { %v1960_v38 = vrot.slane %v1895_v9, 1  ;;  %v2458_v41 = vmul.f32 %v5938_v53, %v1792_v5  ;;  %v2122_v15 = vrot.slane %v2057_v62, 2  ;;  %v2262_v20 = vadd.f32 %v2246_v50, %v5940_v54 }
 0x2cc   : > { %v2360_v7 = vrot.slane %v2296_v30, 1  ;;  %v2361_v16 = vrot.slane %v2298_v51, 1  ;;  %v2460_v34 = vmul.f32 %v5938_v53, %v2197_v55  ;;  %v7866_v49 = vrot.slane %v6102_v52, 1 }
 0x2cd   : > { %v1961_v8 = vsel %vm1169_vm0, %v1959_v39, %v1960_v38  ;;  %v2522_v63 = vrot.slane %v2458_v41, 2  ;;  %v2123_v5 = vsel %vm1246_vm1, %v2121_v25, %v2122_v15  ;;  %v1728_v9 = vrot.slane %v6287_v44, 7 }
 0x2ce   : > { %v6346_v11 = vsel %vm1169_vm0, %v7866_v49, %v7865_v43  ;;  %v2019_v57 = vadd.f32 %v1961_v8, %v1841_v2  ;;  %v2362_v54 = vsel %vm1169_vm0, %v2360_v7, %v2361_v16  ;;  %v2523_v50 = vrot.slane %v2460_v34, 2 }
 0x2cf   : > { %v2424_v62 = vadd.f32 %v2362_v54, %v2262_v20  ;;  %v1729_v55 = vrot.slane %v6309_v18, 7  ;;  %v1730_v41 = vrot.slane %v1038_v42, 7  ;;  %v1796_v30 = vld [vmem:[#allocation3 + $0x80] sm:$0xff]  ;;  %v1798_v51 = vld [vmem:[#allocation3 + $0x138] sm:$0x3]  ;;  %v1731_v52 = vrot.slane %v1042_v13, 7 }
 0x2d0   : > { %v2181_v58 = vadd.f32 %v2123_v5, %v2019_v57  ;;  %v2201_v39 = vld [vmem:[#allocation3 + $0x138] sm:$0x3]  ;;  %1765 = vst [vmem:[#allocation3 + $0xc8] sm:$0xfe] %v1728_v9  ;;  %1767 = vst [vmem:[#allocation3 + $0x20] sm:$0x1] %v1728_v9  ;;  %v2524_v25 = vsel %vm1246_vm1, %v2522_v63, %v2523_v50  ;;  %v6368_v2 = vadd.f32 %v6246_v37, %v1286_v36 }
 0x2d1   : > { %v7867_v43 = vrot.slane %v6069_v23, 1  ;;  %v7868_v15 = vrot.slane %v6066_v35, 1  ;;  %v7869_v44 = vrot.slane %v6117_v10, 2  ;;  %v7870_v34 = vrot.slane %v6111_v22, 2  ;;  %1768 = vst [vmem:[#allocation3 + $0x128] sm:$0xfe] %v1729_v55 }
 0x2d2   : > { %v1897_v13 = vmul.f32 %v5911_v31, %v1796_v30  ;;  %v1899_v23 = vmul.f32 %v5911_v31, %v1798_v51  ;;  %1770 = vst [vmem:[#allocation3 + $0x8] sm:$0x1] %v1729_v55  ;;  %1769 = vst [vmem:[#allocation3 + $0x110] sm:$0xfe] %v1730_v41  ;;  %v1843_v35 = vmul.f32 %v5920_v40, %v1796_v30  ;;  %v2605_v50 = vld [vmem:[#allocation3 + $0x138] sm:$0x3] }
 0x2d3   : > { %v6357_v16 = vsel %vm1169_vm0, %v7868_v15, %v7867_v43  ;;  %v6364_v18 = vsel %vm1246_vm1, %v7870_v34, %v7869_v44  ;;  %1771 = vst [vmem:[#allocation3 + $0x98] sm:$0x1] %v1730_v41  ;;  %v2059_v22 = vmul.f32 %v5923_v14, %v1796_v30  ;;  %v2061_v10 = vmul.f32 %v5923_v14, %v1798_v51  ;;  %v1800_v43 = vld [vmem:[#allocation3 + $0x18] sm:$0xff] }
 0x2d4   : > { %v2248_v42 = vmul.f32 %v6041_v1, %v1796_v30  ;;  %1772 = vst [vmem:[#allocation3 + $0xa8] sm:$0xfe] %v1731_v52  ;;  %1774 = vst [vmem:[#allocation3 + $0xe0] sm:$0x1] %v1731_v52  ;;  %v1965_v37 = vrot.slane %v1897_v13, 1  ;;  %v1966_v63 = vrot.slane %v1899_v23, 1  ;;  %v2300_v36 = vmul.f32 %v5934_v45, %v1796_v30 }
 0x2d5   : > { %v2302_v38 = vmul.f32 %v5934_v45, %v2201_v39  ;;  %v2127_v20 = vrot.slane %v2059_v22, 2  ;;  %v2128_v7 = vrot.slane %v2061_v10, 2  ;;  %v2462_v49 = vmul.f32 %v5938_v53, %v1796_v30 }
 0x2d6   : > { %v2264_v8 = vadd.f32 %v2248_v42, %v2181_v58  ;;  %v1967_v57 = vsel %vm1169_vm0, %v1965_v37, %v1966_v63  ;;  %v2366_v5 = vrot.slane %v2300_v36, 1  ;;  %v2464_v9 = vmul.f32 %v5938_v53, %v2201_v39  ;;  %v2205_v37 = vld [vmem:[#allocation3 + $0x70] sm:$0x3] }
 0x2d7   : > { %v2367_v54 = vrot.slane %v2302_v38, 1  ;;  %v2021_v55 = vadd.f32 %v1967_v57, %v1843_v35  ;;  %v2129_v41 = vsel %vm1246_vm1, %v2127_v20, %v2128_v7  ;;  %v2528_v51 = vrot.slane %v2462_v49, 2 }
 0x2d8   : > { %v2586_v52 = vadd.f32 %v2524_v25, %v2424_v62  ;;  %v2529_v44 = vrot.slane %v2464_v9, 2  ;;  %v2654_v58 = vmul.f32 %v6050_v56, %v1796_v30  ;;  %v6385_v34 = vmul.f32 %v5949_v60, %v1796_v30  ;;  %v1802_v62 = vld [vmem:[#allocation3 + $0x70] sm:$0x3] }
 0x2d9   : > { %v2368_v15 = vsel %vm1169_vm0, %v2366_v5, %v2367_v54  ;;  %v6388_v23 = vmul.f32 %v5949_v60, %v2605_v50  ;;  %v6391_v39 = vmul.f32 %v5952_v61, %v1796_v30  ;;  %v6394_v35 = vmul.f32 %v5952_v61, %v2605_v50 }
 0x2da   : > { %7871 = vst [vmem:[#allocation81_spill] sm:$0xff] %v6385_v34  ;;  %v2426_v13 = vadd.f32 %v2368_v15, %v2264_v8  ;;  %v2530_v25 = vsel %vm1246_vm1, %v2528_v51, %v2529_v44  ;;  %v6397_v22 = vadd.f32 %v2654_v58, %v2586_v52  ;;  %v1845_v42 = vmul.f32 %v5920_v40, %v1800_v43  ;;  %v6414_v44 = vpop.f32.mrf.mxu1 }
 0x2db   : > { %7872 = vst [vmem:[#allocation82_spill] sm:$0xff] %v6388_v23  ;;  %7873 = vst [vmem:[#allocation83_spill] sm:$0xff] %v6391_v39  ;;  %v1901_v38 = vmul.f32 %v5911_v31, %v1800_v43  ;;  %v1903_v20 = vmul.f32 %v5911_v31, %v1802_v62  ;;  %v2063_v7 = vmul.f32 %v5923_v14, %v1800_v43 }
 0x2dc   : > { %7874 = vst [vmem:[#allocation84_spill] sm:$0xff] %v6394_v35  ;;  %7875 = vst [vmem:[#allocation85_spill] sm:$0xff] %v6397_v22  ;;  %v2065_v8 = vmul.f32 %v5923_v14, %v1802_v62  ;;  %v2183_v49 = vadd.f32 %v2129_v41, %v2021_v55  ;;  %v2250_v5 = vmul.f32 %v6041_v1, %v1800_v43  ;;  %v2609_v41 = vld [vmem:[#allocation3 + $0x70] sm:$0x3] }
 0x2dd   : > { %v1971_v57 = vrot.slane %v1901_v38, 1  ;;  %v2304_v54 = vmul.f32 %v5934_v45, %v1800_v43  ;;  %v2306_v9 = vmul.f32 %v5934_v45, %v2205_v37  ;;  %v1972_v50 = vrot.slane %v1903_v20, 1 }
 0x2de   : > { %v2133_v51 = vrot.slane %v2063_v7, 2  ;;  %v2134_v52 = vrot.slane %v2065_v8, 2  ;;  %v6412_v15 = vmul.f32 %v5938_v53, %v1800_v43  ;;  %v2266_v58 = vadd.f32 %v2250_v5, %v2183_v49  ;;  %v1804_v8 = vld [vmem:[#allocation3 + $0x128] sm:$0xff] }
 0x2df   : > { %v2372_v36 = vrot.slane %v2304_v54, 1  ;;  %v2373_v30 = vrot.slane %v2306_v9, 1  ;;  %v6417_v55 = vmul.f32 %v5938_v53, %v2205_v37  ;;  %v1973_v62 = vsel %vm1169_vm0, %v1971_v57, %v1972_v50  ;;  %v1806_v5 = vld [vmem:[#allocation3 + $0x8] sm:$0x3] }
 0x2e0   : > { %7876 = vst [vmem:[#allocation86_spill] sm:$0xff] %v6412_v15  ;;  %v2135_v38 = vsel %vm1246_vm1, %v2133_v51, %v2134_v52  ;;  %v2588_v7 = vadd.f32 %v2530_v25, %v2426_v13  ;;  %v2023_v10 = vadd.f32 %v1973_v62, %v1845_v42  ;;  %v2656_v49 = vmul.f32 %v6050_v56, %v1800_v43  ;;  %v6436_v13 = vpop.f32.mrf.mxu1  ;;  %v2209_v52 = vld [vmem:[#allocation3 + $0x8] sm:$0x3]  ;;  %v2198_v15 = vld [vmem:[#allocation3 + $0x100] sm:$0x3] }
 0x2e1   : > { %7877 = vst [vmem:[#allocation87_spill] sm:$0xff] %v6417_v55  ;;  %v2374_v63 = vsel %vm1169_vm0, %v2372_v36, %v2373_v30  ;;  %v6428_v37 = vmul.f32 %v5949_v60, %v1800_v43  ;;  %v6431_v57 = vmul.f32 %v5949_v60, %v2609_v41  ;;  %v6434_v9 = vmul.f32 %v5952_v61, %v1800_v43  ;;  %v7923_v55 = vld [vmem:[#allocation46_spill] sm:$0xff] }
 0x2e2   : > { %v6425_v54 = vadd.f32 %v2374_v63, %v2266_v58  ;;  %v6438_v25 = vadd.f32 %v2656_v49, %v2588_v7  ;;  %v6441_v42 = vmul.f32 %v5952_v61, %v2609_v41  ;;  %v1847_v36 = vmul.f32 %v5920_v40, %v1804_v8  ;;  %v6456_v50 = vpop.f32.mrf.mxu1  ;;  %v2613_v58 = vld [vmem:[#allocation3 + $0x8] sm:$0x3] }
 0x2e3   : > { %7879 = vst [vmem:[#allocation89_spill] sm:$0xff] %v6428_v37  ;;  %7880 = vst [vmem:[#allocation90_spill] sm:$0xff] %v6431_v57  ;;  %v1905_v63 = vmul.f32 %v5911_v31, %v1804_v8  ;;  %v1907_v43 = vmul.f32 %v5911_v31, %v1806_v5  ;;  %v2067_v7 = vmul.f32 %v5923_v14, %v1804_v8  ;;  %v1810_v37 = vld [vmem:[#allocation3 + $0xe0] sm:$0x3] }
 0x2e4   : > { %7878 = vst [vmem:[#allocation88_spill] sm:$0xff] %v6425_v54  ;;  %7881 = vst [vmem:[#allocation91_spill] sm:$0xff] %v6434_v9  ;;  %v2069_v41 = vmul.f32 %v5923_v14, %v1806_v5  ;;  %v2185_v20 = vadd.f32 %v2135_v38, %v2023_v10  ;;  %v2252_v39 = vmul.f32 %v6041_v1, %v1804_v8 }
 0x2e5   : > { %7882 = vst [vmem:[#allocation92_spill] sm:$0xff] %v6438_v25  ;;  %7883 = vst [vmem:[#allocation93_spill] sm:$0xff] %v6441_v42  ;;  %v1977_v62 = vrot.slane %v1905_v63, 1  ;;  %v1978_v49 = vrot.slane %v1907_v43, 1  ;;  %v6454_v30 = vmul.f32 %v5934_v45, %v1804_v8  ;;  %v2139_v51 = vrot.slane %v2067_v7, 2  ;;  %v1808_v42 = vld [vmem:[#allocation3 + $0xa8] sm:$0xff] }
 0x2e6   : > { %v2140_v9 = vrot.slane %v2069_v41, 2  ;;  %v6459_v35 = vmul.f32 %v5934_v45, %v2209_v52  ;;  %v6462_v63 = vmul.f32 %v5938_v53, %v1804_v8  ;;  %v6465_v43 = vadd.f32 %v2252_v39, %v2185_v20  ;;  %v2213_v41 = vld [vmem:[#allocation3 + $0xe0] sm:$0x3] }
 0x2e7   : > { %v1979_v5 = vsel %vm1169_vm0, %v1977_v62, %v1978_v49  ;;  %v6469_v38 = vmul.f32 %v5938_v53, %v2209_v52  ;;  %v6476_v62 = vmul.f32 %v6050_v56, %v1804_v8  ;;  %v6479_v39 = vmul.f32 %v5949_v60, %v1804_v8  ;;  %v1054_v52 = vpop.f32.mrf.mxu1 }
 0x2e8   : > { %7884 = vst [vmem:[#allocation94_spill] sm:$0xff] %v6462_v63  ;;  %7885 = vst [vmem:[#allocation95_spill] sm:$0xff] %v6465_v43  ;;  %v2025_v25 = vadd.f32 %v1979_v5, %v1847_v36  ;;  %v2141_v7 = vsel %vm1246_vm1, %v2139_v51, %v2140_v9  ;;  %v6482_v20 = vmul.f32 %v5949_v60, %v2613_v58 }
 0x2e9   : > { %7886 = vst [vmem:[#allocation96_spill] sm:$0xff] %v6469_v38  ;;  %7887 = vst [vmem:[#allocation97_spill] sm:$0xff] %v6476_v62  ;;  %v6485_v36 = vmul.f32 %v5952_v61, %v1804_v8  ;;  %v6488_v9 = vmul.f32 %v5952_v61, %v2613_v58  ;;  %v1849_v51 = vmul.f32 %v5920_v40, %v1808_v42  ;;  %v1793_v38 = vld [vmem:[#allocation3 + $0x38] sm:$0xff] }
 0x2ea   : > { %7888 = vst [vmem:[#allocation98_spill] sm:$0xff] %v6479_v39  ;;  %7889 = vst [vmem:[#allocation99_spill] sm:$0xff] %v6482_v20  ;;  %v1909_v49 = vmul.f32 %v5911_v31, %v1808_v42  ;;  %v1911_v57 = vmul.f32 %v5911_v31, %v1810_v37  ;;  %v6496_v10 = vmul.f32 %v5923_v14, %v1808_v42  ;;  %v1056_v39 = vpop.f32.mrf.mxu1  ;;  %v2604_v20 = vld [vmem:[#allocation3 + $0x108] sm:$0xff] }
 0x2eb   : > { %7890 = vst [vmem:[#allocation100_spill] sm:$0xff] %v6485_v36  ;;  %7891 = vst [vmem:[#allocation101_spill] sm:$0xff] %v6488_v9  ;;  %v6501_v23 = vmul.f32 %v5923_v14, %v1810_v37  ;;  %v2187_v5 = vadd.f32 %v2141_v7, %v2025_v25  ;;  %v2254_v22 = vmul.f32 %v6041_v1, %v1808_v42  ;;  %v2617_v37 = vld [vmem:[#allocation3 + $0xe0] sm:$0x3]  ;;  %v1734_v9 = vrot.slane %v6456_v50, 7 }
 0x2ec   : > { %v1983_v58 = vrot.slane %v1909_v49, 1  ;;  %v1984_v62 = vrot.slane %v1911_v57, 1  ;;  %v6507_v63 = vmul.f32 %v5934_v45, %v1808_v42  ;;  %v6510_v8 = vmul.f32 %v5934_v45, %v2213_v41 }
 0x2ed   : > { %v6513_v49 = vmul.f32 %v5938_v53, %v1808_v42  ;;  %v6516_v34 = vadd.f32 %v2254_v22, %v2187_v5  ;;  %v6519_v25 = vmul.f32 %v5938_v53, %v2213_v41  ;;  %v6522_v7 = vmul.f32 %v6050_v56, %v1808_v42  ;;  %1777 = vst [vmem:[#allocation3 + $0x118] sm:$0xfe] %v1734_v9 }
 0x2ee   : > { %v1985_v57 = vsel %vm1169_vm0, %v1983_v58, %v1984_v62  ;;  %v6531_v22 = vmul.f32 %v5949_v60, %v1808_v42  ;;  %v6534_v41 = vmul.f32 %v5949_v60, %v2617_v37  ;;  %v6537_v62 = vmul.f32 %v5952_v61, %v1808_v42  ;;  %v2606_v42 = vld [vmem:[#allocation3 + $0xf0] sm:$0x3]  ;;  %1779 = vst [vmem:[#allocation3 + $0xa0] sm:$0x1] %v1734_v9 }
 0x2ef   : > { %7892 = vst [vmem:[#allocation102_spill] sm:$0xff] %v6513_v49  ;;  %7893 = vst [vmem:[#allocation103_spill] sm:$0xff] %v6516_v34  ;;  %v6524_v54 = vadd.f32 %v1985_v57, %v1849_v51  ;;  %v1060_v51 = vpop.f32.mrf.mxu1  ;;  %v6540_v5 = vmul.f32 %v5952_v61, %v2617_v37  ;;  %v1732_v58 = vrot.slane %v6414_v44, 7  ;;  %v1733_v57 = vrot.slane %v6436_v13, 7  ;;  %v7929_v34 = vld [vmem:[#allocation45_spill] sm:$0xff] }
 0x2f0   : > { %7894 = vst [vmem:[#allocation104_spill] sm:$0xff] %v6519_v25  ;;  %7895 = vst [vmem:[#allocation105_spill] sm:$0xff] %v6522_v7  ;;  %v1735_v56 = vrot.slane %v1054_v52, 7  ;;  %v1736_v49 = vrot.slane %v1056_v39, 7  ;;  %v1737_v44 = vrot.slane %v1060_v51, 7  ;;  %v2247_v13 = vmul.f32 %v6061_v12, %v1793_v38 }
 0x2f1   : > { %7896 = vst [vmem:[#allocation106_spill] sm:$0xff] %v6531_v22  ;;  %7897 = vst [vmem:[#allocation107_spill] sm:$0xff] %v6534_v41  ;;  %v2297_v50 = vmul.f32 %v6044_v21, %v1793_v38  ;;  %v2299_v39 = vmul.f32 %v6044_v21, %v2198_v15  ;;  %v2459_v52 = vmul.f32 %v6047_v17, %v1793_v38 }
 0x2f2   : > { %7898 = vst [vmem:[#allocation108_spill] sm:$0xff] %v6537_v62  ;;  %7899 = vst [vmem:[#allocation109_spill] sm:$0xff] %v6540_v5  ;;  %v2461_v37 = vmul.f32 %v6047_v17, %v2198_v15  ;;  %v2263_v9 = vadd.f32 %v2247_v13, %v6058_v26  ;;  %v2705_v62 = vmul.f32 %v6053_v3, %v2604_v20 }
 0x2f3   : > { %1773 = vst [vmem:[#allocation3 + $0x90] sm:$0xfe] %v1732_v58  ;;  %1775 = vst [vmem:[#allocation3 + $0x88] sm:$0x1] %v1732_v58  ;;  %v6554_v58 = vmul.f32 %v6075_v28, %v2604_v20  ;;  %v2363_v51 = vrot.slane %v2297_v50, 1  ;;  %v2525_v36 = vrot.slane %v2459_v52, 2  ;;  %v2867_v38 = vmul.f32 %v6056_v29, %v2604_v20 }
 0x2f4   : > { %1776 = vst [vmem:[#allocation3 + $0xc0] sm:$0xfe] %v1733_v57  ;;  %1778 = vst [vmem:[#allocation3 + $0xd8] sm:$0x1] %v1733_v57  ;;  %v1062_v57 = vpop.f32.mrf.mxu1  ;;  %v2526_v7 = vrot.slane %v2461_v37, 2  ;;  %v2771_v12 = vrot.slane %v2705_v62, 1  ;;  %v2869_v28 = vmul.f32 %v6056_v29, %v2606_v42  ;;  %v1203_v13 = vadd.f32 %v6346_v11, %v6108_v4 }
 0x2f5   : > { %1780 = vst [vmem:[#allocation3 + $0x68] sm:$0xfe] %v1735_v56  ;;  %1782 = vst [vmem:[#allocation3 + $0x50] sm:$0x1] %v1735_v56  ;;  %v2707_v56 = vmul.f32 %v6053_v3, %v2606_v42  ;;  %v1738_v17 = vrot.slane %v1062_v57, 7  ;;  %v2933_v26 = vrot.slane %v2867_v38, 2 }
 0x2f6   : > { %1781 = vst [vmem:[#allocation3 + $0x130] sm:$0xfe] %v1736_v49  ;;  %1783 = vst [vmem:[#allocation3 + $0xe8] sm:$0x1] %v1736_v49  ;;  %v2364_v49 = vrot.slane %v2299_v39, 1  ;;  %v2934_v52 = vrot.slane %v2869_v28, 2 }
 0x2f7   : > { %1784 = vst [vmem:[#allocation3 + $0x58] sm:$0xfe] %v1737_v44  ;;  %1786 = vst [vmem:[#allocation3 + $0x30] sm:$0x1] %v1737_v44  ;;  %v2772_v15 = vrot.slane %v2707_v56, 1  ;;  %v2527_v44 = vsel %vm1246_vm1, %v2525_v36, %v2526_v7  ;;  %v7900_v20 = vld [vmem:[#allocation41_spill] sm:$0xff] }
 0x2f8   : > { %v2365_v21 = vsel %vm1169_vm0, %v2363_v51, %v2364_v49  ;;  %1785 = vst [vmem:[#allocation3 + $0x78] sm:$0xfe] %v1738_v17  ;;  %1787 = vst [vmem:[#allocation3 + $0x40] sm:$0x1] %v1738_v17  ;;  %v1204_v62 = vadd.f32 %v6357_v16, %v7900_v20  ;;  %v7902_v51 = vld [vmem:[#allocation42_spill] sm:$0xff]  ;;  %v7904_v36 = vld [vmem:[#allocation39_spill] sm:$0xff]  ;;  %v1280_v17 = vadd.f32 %v6364_v18, %v1203_v13 }
 0x2f9   : > { %v2425_v50 = vadd.f32 %v2365_v21, %v2263_v9  ;;  %v2773_v39 = vsel %vm1169_vm0, %v2771_v12, %v2772_v15  ;;  %v7903_v56 = vrot.slane %v7902_v51, 2  ;;  %v7905_v7 = vrot.slane %v7904_v36, 2  ;;  %v7906_v4 = vld [vmem:[#allocation57_spill] sm:$0xff]  ;;  %v7908_v11 = vld [vmem:[#allocation56_spill] sm:$0xff]  ;;  %v7911_v16 = vld [vmem:[#allocation55_spill] sm:$0xff] }
 0x2fa   : > { %v7907_v21 = vrot.slane %v7906_v4, 2  ;;  %v7909_v12 = vrot.slane %v7908_v11, 2  ;;  %v7910_v9 = vld [vmem:[#allocation52_spill] sm:$0xff]  ;;  %v1316_v29 = vadd.f32 %v7923_v55, %v1280_v17  ;;  %v1363_v55 = vrot.slane %v7929_v34, 1  ;;  %v7930_v17 = vld [vmem:[#allocation58_spill] sm:$0xff]  ;;  %v7942_v34 = vld [vmem:[#allocation61_spill] sm:$0xff] }
 0x2fb   : > { %v6568_v37 = vld [vmem:[#allocation3 + $0xc0] sm:$0xff]  ;;  %v1814_v42 = vld [vmem:[#allocation3 + $0xd8] sm:$0x3]  ;;  %v1255_v49 = vsel %vm1246_vm1, %v7905_v7, %v7903_v56  ;;  %v1283_v38 = vadd.f32 %v7911_v16, %v7910_v9  ;;  %v7943_v43 = vrot.slane %v7942_v34, 1 }
 0x2fc   : > { %7901 = vst [vmem:[#allocation41_spill] sm:$0xff] %v6568_v37  ;;  %v2217_v57 = vld [vmem:[#allocation3 + $0xd8] sm:$0x3]  ;;  %v1258_v28 = vsel %vm1246_vm1, %v7909_v12, %v7907_v21  ;;  %v1851_v15 = vmul.f32 %v5920_v40, %v6568_v37  ;;  %v1913_v20 = vmul.f32 %v5911_v31, %v6568_v37  ;;  %v1915_v51 = vmul.f32 %v5911_v31, %v1814_v42  ;;  %v6613_v9 = vld [vmem:[#allocation3 + $0x68] sm:$0xff]  ;;  %v2221_v61 = vld [vmem:[#allocation3 + $0x50] sm:$0x3] }
 0x2fd   : > { %v6590_v56 = vmul.f32 %v5923_v14, %v6568_v37  ;;  %v6593_v36 = vmul.f32 %v5923_v14, %v1814_v42  ;;  %v6597_v18 = vmul.f32 %v6041_v1, %v6568_v37  ;;  %v6601_v13 = vmul.f32 %v5934_v45, %v6568_v37  ;;  %v6606_v4 = vld [vmem:[#allocation3 + $0xd8] sm:$0x3] }
 0x2fe   : > { %v6604_v7 = vmul.f32 %v5934_v45, %v2217_v57  ;;  %7912 = vst [vmem:[#allocation42_spill] sm:$0xff] %v6606_v4  ;;  %v1989_v21 = vrot.slane %v1913_v20, 1  ;;  %v1990_v11 = vrot.slane %v1915_v51, 1  ;;  %v6611_v42 = vmul.f32 %v5938_v53, %v6568_v37  ;;  %v7927_v51 = vld [vmem:[#allocation64_spill] sm:$0xff] }
 0x2ff   : > { %v6619_v5 = vmul.f32 %v5938_v53, %v2217_v57  ;;  %v6625_v12 = vmul.f32 %v5949_v60, %v6568_v37  ;;  %v6629_v22 = vmul.f32 %v5949_v60, %v6606_v4  ;;  %v6636_v57 = vmul.f32 %v6041_v1, %v6613_v9 }
 0x300   : > { %7913 = vst [vmem:[#allocation39_spill] sm:$0xff] %v6611_v42  ;;  %v1991_v20 = vsel %vm1169_vm0, %v1989_v21, %v1990_v11  ;;  %v6640_v21 = vmul.f32 %v5934_v45, %v6613_v9  ;;  %v1287_v11 = vld [vmem:[#allocation2 + $0x10] sm:$0xff]  ;;  %v6644_v3 = vmul.f32 %v5934_v45, %v2221_v61  ;;  %v2587_v4 = vadd.f32 %v2527_v44, %v2425_v50  ;;  %v1288_v42 = vld [vmem:[#allocation2 + $0x18] sm:$0x3] }
 0x301   : > { %7914 = vst [vmem:[#allocation57_spill] sm:$0xff] %v6619_v5  ;;  %7915 = vst [vmem:[#allocation56_spill] sm:$0xff] %v6625_v12  ;;  %v6631_v16 = vadd.f32 %v1991_v20, %v1851_v15  ;;  %v6648_v15 = vmul.f32 %v5938_v53, %v6613_v9  ;;  %v6651_v20 = vmul.f32 %v5938_v53, %v2221_v61  ;;  %v7922_v61 = vld [vmem:[#allocation50_spill] sm:$0xff]  ;;  %v7924_v44 = vld [vmem:[#allocation71_spill] sm:$0xff] }
 0x302   : > { %7916 = vst [vmem:[#allocation52_spill] sm:$0xff] %v6629_v22  ;;  %7917 = vst [vmem:[#allocation55_spill] sm:$0xff] %v6640_v21  ;;  %v2935_v12 = vsel %vm1246_vm1, %v2933_v26, %v2934_v52  ;;  %v1281_v41 = vadd.f32 %v1255_v49, %v1204_v62  ;;  %v7921_v22 = vld [vmem:[#allocation63_spill] sm:$0xff]  ;;  %v1307_v5 = vmul.f32 %v6002_v27, %v1287_v11  ;;  %v7925_v26 = vld [vmem:[#allocation38_spill] sm:$0xff] }
 0x303   : > { %7918 = vst [vmem:[#allocation110_spill] sm:$0xff] %v6644_v3  ;;  %7919 = vst [vmem:[#allocation111_spill] sm:$0xff] %v6648_v15  ;;  %v1282_v37 = vadd.f32 %v1258_v28, %v7921_v22  ;;  %v2671_v15 = vadd.f32 %v6554_v58, %v2587_v4  ;;  %v1309_v25 = vmul.f32 %v6002_v27, %v7922_v61  ;;  %v7926_v62 = vld [vmem:[#allocation53_spill] sm:$0xff]  ;;  %v7928_v4 = vld [vmem:[#allocation47_spill] sm:$0xff] }
 0x304   : > { %7920 = vst [vmem:[#allocation112_spill] sm:$0xff] %v6651_v20  ;;  %v1319_v50 = vadd.f32 %v7924_v44, %v1283_v38  ;;  %v1315_v52 = vadd.f32 %v1307_v5, %v7925_v26  ;;  %v1320_v60 = vadd.f32 %v7927_v51, %v6263_v48  ;;  %v1327_v22 = vmul.f32 %v5999_v32, %v1287_v11  ;;  %v7931_v44 = vld [vmem:[#allocation49_spill] sm:$0xff]  ;;  %v7933_v26 = vld [vmem:[#allocation48_spill] sm:$0xff] }
 0x305   : > { %v1318_v49 = vadd.f32 %v7926_v62, %v1282_v37  ;;  %v2833_v28 = vadd.f32 %v2773_v39, %v2671_v15  ;;  %v1317_v20 = vadd.f32 %v1309_v25, %v1281_v41  ;;  %v1328_v58 = vmul.f32 %v5999_v32, %v1288_v42  ;;  %v7936_v39 = vld [vmem:[#allocation69_spill] sm:$0xff]  ;;  %v7938_v41 = vld [vmem:[#allocation68_spill] sm:$0xff] }
 0x306   : > { %v1362_v53 = vrot.slane %v7928_v4, 1  ;;  %v1359_v27 = vrot.slane %v1327_v22, 1  ;;  %v1365_v38 = vrot.slane %v7930_v17, 1  ;;  %v7932_v5 = vrot.slane %v7931_v44, 1  ;;  %v7940_v22 = vld [vmem:[#allocation62_spill] sm:$0xff] }
 0x307   : > { %v7934_v37 = vrot.slane %v7933_v26, 1  ;;  %v6678_v48 = vadd.f32 %v2935_v12, %v2833_v28  ;;  %v1360_v51 = vrot.slane %v1328_v58, 1  ;;  %v7937_v25 = vrot.slane %v7936_v39, 1  ;;  %v7944_v26 = vld [vmem:[#allocation59_spill] sm:$0xff] }
 0x308   : > { %v7939_v32 = vrot.slane %v7938_v41, 1  ;;  %v7941_v4 = vrot.slane %v7940_v22, 1  ;;  %v1364_v44 = vsel %vm1169_vm0, %v1362_v53, %v1363_v55  ;;  %v7945_v21 = vrot.slane %v7944_v26, 1  ;;  %v7951_v22 = vld [vmem:[#allocation51_spill] sm:$0xff] }
 0x309   : > { %v1370_v62 = vsel %vm1169_vm0, %v7934_v37, %v7932_v5  ;;  %7935 = vst [vmem:[#allocation63_spill] sm:$0xff] %v6678_v48  ;;  %4792 = vmatprep.mubr.msk.f32.mxu1 %vm3034_vm2, %v6678_v48  ;;  %v1361_v5 = vsel %vm1169_vm0, %v1359_v27, %v1360_v51  ;;  %v1392_v37 = vadd.f32 %v1364_v44, %v1316_v29  ;;  %v7965_v48 = vld [vmem:[#allocation79_spill] sm:$0xff] }
 0x30a   : > { %v1373_v15 = vsel %vm1169_vm0, %v7939_v32, %v7937_v25  ;;  %v1376_v17 = vsel %vm1169_vm0, %v7943_v43, %v7941_v4  ;;  %v1367_v12 = vsel %vm1169_vm0, %v1365_v38, %v7945_v21  ;;  %v1394_v28 = vadd.f32 %v1370_v62, %v1318_v49  ;;  %v5122_v38 = vld [vmem:[#allocation2 + $0x28] sm:$0x3] }
 0x30b   : > { %v1395_v58 = vadd.f32 %v1373_v15, %v1319_v50  ;;  %v1393_v39 = vadd.f32 %v1367_v12, %v1317_v20  ;;  %v1396_v25 = vadd.f32 %v1376_v17, %v1320_v60  ;;  %v1391_v41 = vadd.f32 %v1361_v5, %v1315_v52  ;;  %v5121_v50 = vld [vmem:[#allocation2 + $0x20] sm:$0xff]  ;;  %v7955_v17 = vld [vmem:[#allocation65_spill] sm:$0xff] }
 0x30c   : > { %v1397_v43 = vadd.f32 %v6323_v6, %v6304_v0  ;;  %v1398_v53 = vadd.f32 %v6275_v24, %v6368_v2  ;;  %v1403_v55 = vmul.f32 %v6012_v46, %v1287_v11  ;;  %v1404_v21 = vmul.f32 %v6012_v46, %v1288_v42  ;;  %v7946_v20 = vld [vmem:[#allocation60_spill] sm:$0xff]  ;;  %v7947_v0 = vld [vmem:[#allocation54_spill] sm:$0xff] }
 0x30d   : > { %v1405_v49 = vmul.f32 %v5121_v50, %v6012_v46  ;;  %v1406_v27 = vmul.f32 %v5122_v38, %v6012_v46  ;;  %v1407_v60 = vmul.f32 %v6012_v46, %v7922_v61  ;;  %v1442_v52 = vrot.slane %v7946_v20, 2  ;;  %v7949_v2 = vld [vmem:[#allocation70_spill] sm:$0xff]  ;;  %v6734_v20 = vld [vmem:[#allocation2 + $0x40] sm:$0xff] }
 0x30e   : > { %v1435_v29 = vrot.slane %v1403_v55, 2  ;;  %v1444_v6 = vrot.slane %v7947_v0, 2  ;;  %v7948_v24 = vrot.slane %v6234_v47, 2  ;;  %v7950_v11 = vrot.slane %v7949_v2, 2  ;;  %v7953_v46 = vld [vmem:[#allocation66_spill] sm:$0xff] }
 0x30f   : > { %v1436_v62 = vrot.slane %v1404_v21, 2  ;;  %v1438_v51 = vrot.slane %v1405_v49, 2  ;;  %v1439_v32 = vrot.slane %v1406_v27, 2  ;;  %v1441_v15 = vrot.slane %v1407_v60, 2  ;;  %v6727_v21 = vld [vmem:[#allocation2 + $0x20] sm:$0xff]  ;;  %v6729_v50 = vld [vmem:[#allocation2 + $0x30] sm:$0xff] }
 0x310   : > { %v1449_v42 = vsel %vm1246_vm1, %v7950_v11, %v7948_v24  ;;  %v7952_v4 = vrot.slane %v7951_v22, 2  ;;  %v7954_v61 = vrot.slane %v7953_v46, 2  ;;  %v7956_v44 = vrot.slane %v7955_v17, 2  ;;  %v6736_v0 = vld [vmem:[#allocation2 + $0x50] sm:$0xff] }
 0x311   : > { %v7957_v47 = vrot.slane %v6301_v19, 2  ;;  %v7958_v12 = vrot.slane %v6297_v33, 2  ;;  %v1471_v55 = vadd.f32 %v1449_v42, %v1395_v58  ;;  %v1437_v49 = vsel %vm1246_vm1, %v1435_v29, %v1436_v62  ;;  %v7959_v11 = vld [vmem:[#allocation30_spill] sm:$0xff]  ;;  %v1477_v62 = vld [vmem:[#allocation2 + $0x28] sm:$0x3] }
 0x312   : > { %v1446_v34 = vsel %vm1246_vm1, %v1444_v6, %v7952_v4  ;;  %v1452_v26 = vsel %vm1246_vm1, %v7956_v44, %v7954_v61  ;;  %v1440_v38 = vsel %vm1246_vm1, %v1438_v51, %v1439_v32  ;;  %v1443_v27 = vsel %vm1246_vm1, %v1441_v15, %v1442_v52  ;;  %v1479_v52 = vld [vmem:[#allocation2 + $0x38] sm:$0x3]  ;;  %v7961_v15 = vld [vmem:[#allocation74_spill] sm:$0xff] }
 0x313   : > { %v1455_v5 = vsel %vm1246_vm1, %v7958_v12, %v7957_v47  ;;  %v1470_v60 = vadd.f32 %v1446_v34, %v1394_v28  ;;  %v1467_v19 = vadd.f32 %v1437_v49, %v1391_v41  ;;  %v1468_v33 = vadd.f32 %v1440_v38, %v1392_v37  ;;  %v5123_v37 = vld [vmem:[#allocation2 + $0x60] sm:$0xff]  ;;  %v7962_v4 = vld [vmem:[#allocation43_spill] sm:$0xff] }
 0x314   : > { %v1469_v6 = vadd.f32 %v1443_v27, %v1393_v39  ;;  %v1472_v24 = vadd.f32 %v1452_v26, %v1396_v25  ;;  %v1473_v58 = vadd.f32 %v1455_v5, %v1397_v43  ;;  %v1474_v2 = vadd.f32 %v6291_v59, %v1398_v53  ;;  %v7960_v25 = vld [vmem:[#allocation75_spill] sm:$0xff]  ;;  %v1481_v43 = vld [vmem:[#allocation2 + $0x48] sm:$0x3] }
 0x315   : > { %v1496_v42 = vmul.f32 %v7959_v11, %v6727_v21  ;;  %v1497_v29 = vmul.f32 %v7959_v11, %v6729_v50  ;;  %v1498_v28 = vmul.f32 %v7959_v11, %v6734_v20  ;;  %v1499_v41 = vmul.f32 %v7959_v11, %v6736_v0  ;;  %v1483_v53 = vld [vmem:[#allocation2 + $0x58] sm:$0x3]  ;;  %v7963_v26 = vld [vmem:[#allocation29_spill] sm:$0xff] }
 0x316   : > { %v1500_v39 = vmul.f32 %v5123_v37, %v7959_v11  ;;  %v1501_v59 = vmul.f32 %v7959_v11, %v7960_v25  ;;  %v1510_v22 = vadd.f32 %v7961_v15, %v1473_v58  ;;  %v1511_v34 = vadd.f32 %v7962_v4, %v1474_v2 }
 0x317   : > { %v1504_v51 = vadd.f32 %v1496_v42, %v1467_v19  ;;  %v1505_v32 = vadd.f32 %v1497_v29, %v1468_v33  ;;  %v1506_v46 = vadd.f32 %v1498_v28, %v1469_v6  ;;  %v1507_v61 = vadd.f32 %v1499_v41, %v1470_v60 }
 0x318   : > { %v1508_v17 = vadd.f32 %v1500_v39, %v1471_v55  ;;  %v1509_v44 = vadd.f32 %v1501_v59, %v1472_v24  ;;  %v1516_v47 = vmul.f32 %v7963_v26, %v6727_v21  ;;  %v1517_v12 = vmul.f32 %v7963_v26, %v1477_v62  ;;  %v7964_v39 = vld [vmem:[#allocation67_spill] sm:$0xff] }
 0x319   : > { %v1518_v5 = vmul.f32 %v7963_v26, %v6729_v50  ;;  %v1519_v49 = vmul.f32 %v7963_v26, %v1479_v52  ;;  %v1520_v38 = vmul.f32 %v7963_v26, %v6734_v20  ;;  %v1521_v27 = vmul.f32 %v7963_v26, %v1481_v43 }
 0x31a   : > { %v1522_v60 = vmul.f32 %v7963_v26, %v6736_v0  ;;  %v1523_v55 = vmul.f32 %v7963_v26, %v1483_v53  ;;  %v1524_v19 = vmul.f32 %v5123_v37, %v7963_v26  ;;  %v1548_v33 = vrot.slane %v1516_v47, 1  ;;  %v7966_v26 = vld [vmem:[#allocation73_spill] sm:$0xff] }
 0x31b   : > { %v1549_v6 = vrot.slane %v1517_v12, 1  ;;  %v1551_v24 = vrot.slane %v1518_v5, 1  ;;  %v1552_v58 = vrot.slane %v1519_v49, 1  ;;  %v1554_v2 = vrot.slane %v1520_v38, 1  ;;  %v7968_v12 = vld [vmem:[#allocation72_spill] sm:$0xff] }
 0x31c   : > { %v1555_v11 = vrot.slane %v1521_v27, 1  ;;  %v1557_v42 = vrot.slane %v1522_v60, 1  ;;  %v1558_v28 = vrot.slane %v1523_v55, 1  ;;  %v1560_v41 = vrot.slane %v1524_v19, 1  ;;  %v7970_v19 = vld [vmem:[#allocation78_spill] sm:$0xff] }
 0x31d   : > { %v1550_v29 = vsel %vm1169_vm0, %v1548_v33, %v1549_v6  ;;  %v1561_v59 = vrot.slane %v7964_v39, 1  ;;  %v1553_v15 = vsel %vm1169_vm0, %v1551_v24, %v1552_v58  ;;  %v1563_v3 = vrot.slane %v7965_v48, 1  ;;  %v7972_v39 = vld [vmem:[#allocation44_spill] sm:$0xff] }
 0x31e   : > { %v1556_v4 = vsel %vm1169_vm0, %v1554_v2, %v1555_v11  ;;  %v7967_v47 = vrot.slane %v7966_v26, 1  ;;  %v7969_v5 = vrot.slane %v7968_v12, 1  ;;  %v1559_v38 = vsel %vm1169_vm0, %v1557_v42, %v1558_v28  ;;  %v7973_v12 = vld [vmem:[#allocation31_spill] sm:$0xff] }
 0x31f   : > { %v1562_v27 = vsel %vm1169_vm0, %v1560_v41, %v1561_v59  ;;  %v1580_v60 = vadd.f32 %v1550_v29, %v1504_v51  ;;  %v1581_v55 = vadd.f32 %v1553_v15, %v1505_v32  ;;  %v7971_v33 = vrot.slane %v7970_v19, 1  ;;  %v7974_v19 = vld [vmem:[#allocation80_spill] sm:$0xff] }
 0x320   : > { %v1568_v49 = vsel %vm1169_vm0, %v7969_v5, %v7967_v47  ;;  %v1582_v24 = vadd.f32 %v1556_v4, %v1506_v46  ;;  %v1583_v58 = vadd.f32 %v1559_v38, %v1507_v61  ;;  %v1584_v2 = vadd.f32 %v1562_v27, %v1508_v17  ;;  %v6797_v17 = vld [vmem:[#allocation2] sm:$0xff] }
 0x321   : > { %v1565_v6 = vsel %vm1169_vm0, %v1563_v3, %v7971_v33  ;;  %v1586_v11 = vadd.f32 %v1568_v49, %v1510_v22  ;;  %v1587_v26 = vadd.f32 %v7972_v39, %v1511_v34  ;;  %v1592_v47 = vmul.f32 %v7973_v12, %v6727_v21  ;;  %v5124_v21 = vld [vmem:[#allocation2 + $0x68] sm:$0x3]  ;;  %v7975_v39 = vld [vmem:[#allocation76_spill] sm:$0xff] }
 0x322   : > { %v1585_v48 = vadd.f32 %v1565_v6, %v1509_v44  ;;  %v1593_v42 = vmul.f32 %v7973_v12, %v1477_v62  ;;  %v1594_v51 = vmul.f32 %v7973_v12, %v6729_v50  ;;  %v1595_v32 = vmul.f32 %v7973_v12, %v1479_v52  ;;  %v5126_v52 = vld [vmem:[#allocation2 + $0x98] sm:$0x3] }
 0x323   : > { %v1596_v3 = vmul.f32 %v7973_v12, %v6734_v20  ;;  %v1597_v46 = vmul.f32 %v7973_v12, %v1481_v43  ;;  %v1598_v22 = vmul.f32 %v7973_v12, %v6736_v0  ;;  %v1599_v34 = vmul.f32 %v7973_v12, %v1483_v53 }
 0x324   : > { %v1600_v61 = vmul.f32 %v5123_v37, %v7973_v12  ;;  %v1601_v62 = vmul.f32 %v5124_v21, %v7973_v12  ;;  %v1602_v50 = vmul.f32 %v7973_v12, %v7960_v25  ;;  %v1606_v20 = vmul.f32 %v6797_v17, %v7973_v12 }
 0x325   : > { %v1607_v43 = vmul.f32 %v5126_v52, %v7973_v12  ;;  %v1624_v44 = vrot.slane %v1592_v47, 2  ;;  %v1625_v0 = vrot.slane %v1593_v42, 2  ;;  %v1627_v29 = vrot.slane %v1594_v51, 2 }
 0x326   : > { %v1628_v53 = vrot.slane %v1595_v32, 2  ;;  %v1630_v28 = vrot.slane %v1596_v3, 2  ;;  %v1631_v37 = vrot.slane %v1597_v46, 2  ;;  %v1633_v41 = vrot.slane %v1598_v22, 2  ;;  %v7976_v22 = vld [vmem:[#allocation77_spill] sm:$0xff] }
 0x327   : > { %v1634_v59 = vrot.slane %v1599_v34, 2  ;;  %v1626_v15 = vsel %vm1246_vm1, %v1624_v44, %v1625_v0  ;;  %v1636_v4 = vrot.slane %v1600_v61, 2  ;;  %v1637_v5 = vrot.slane %v1601_v62, 2  ;;  %v1818_v0 = vld [vmem:[#allocation3 + $0x50] sm:$0x3] }
 0x328   : > { %v1629_v25 = vsel %vm1246_vm1, %v1627_v29, %v1628_v53  ;;  %v1632_v49 = vsel %vm1246_vm1, %v1630_v28, %v1631_v37  ;;  %v1639_v27 = vrot.slane %v1602_v50, 2  ;;  %v1640_v33 = vrot.slane %v7974_v19, 2 }
 0x329   : > { %v1635_v38 = vsel %vm1246_vm1, %v1633_v41, %v1634_v59  ;;  %v1638_v6 = vsel %vm1246_vm1, %v1636_v4, %v1637_v5  ;;  %v1642_v12 = vrot.slane %v7975_v39, 2  ;;  %v1645_v47 = vrot.slane %v1606_v20, 2 }
 0x32a   : > { %v1646_v42 = vrot.slane %v1607_v43, 2  ;;  %v1641_v51 = vsel %vm1246_vm1, %v1639_v27, %v1640_v33  ;;  %v6810_v32 = vadd.f32 %v1626_v15, %v1580_v60  ;;  %v6812_v3 = vadd.f32 %v1629_v25, %v1581_v55 }
 0x32b   : > { %v6814_v46 = vadd.f32 %v1632_v49, %v1582_v24  ;;  %v7977_v34 = vrot.slane %v7976_v22, 2  ;;  %v6820_v62 = vadd.f32 %v1635_v38, %v1583_v58  ;;  %v6822_v50 = vadd.f32 %v1638_v6, %v1584_v2 }
 0x32c   : > { %v1647_v21 = vsel %vm1246_vm1, %v1645_v47, %v1646_v42  ;;  %v6824_v20 = vadd.f32 %v1641_v51, %v1585_v48  ;;  %v3026_v55 = vmul.f32 %v6810_v32, %v6810_v32  ;;  %v3027_v24 = vmul.f32 %v6812_v3, %v6812_v3 }
 0x32d   : > { %v1644_v61 = vsel %vm1246_vm1, %v1642_v12, %v7977_v34  ;;  %v6828_v60 = vadd.f32 %v1647_v21, %v1587_v26  ;;  %v3028_v43 = vmul.f32 %v6814_v46, %v6814_v46  ;;  %v3029_v58 = vmul.f32 %v6820_v62, %v6820_v62 }
 0x32e   : > { %v6826_v52 = vadd.f32 %v1644_v61, %v1586_v11  ;;  %v3030_v2 = vmul.f32 %v6822_v50, %v6822_v50  ;;  %v3031_v48 = vmul.f32 %v6824_v20, %v6824_v20  ;;  %v3035_v44 = vsel %vm3034_vm2, %v3026_v55, 0.0 }
 0x32f   : > { %v3033_v26 = vmul.f32 %v6828_v60, %v6828_v60  ;;  %v3036_v29 = vsel %vm3034_vm2, %v3027_v24, 0.0  ;;  %v3038_v53 = vsel %vm3034_vm2, %v3028_v43, 0.0  ;;  %v3040_v28 = vsel %vm3034_vm2, %v3029_v58, 0.0 }
 0x330   : > { %v3032_v11 = vmul.f32 %v6826_v52, %v6826_v52  ;;  %v3042_v37 = vsel %vm3034_vm2, %v3030_v2, 0.0  ;;  %v3037_v41 = vadd.f32 %v3036_v29, %v3035_v44  ;;  %v3044_v59 = vsel %vm3034_vm2, %v3031_v48, 0.0  ;;  %v2225_v44 = vld [vmem:[#allocation3 + $0x30] sm:$0x3] }
 0x331   : > { %v3048_v25 = vsel %vm3034_vm2, %v3033_v26, 0.0  ;;  %v1853_v4 = vmul.f32 %v6613_v9, %v5920_v40  ;;  %v1917_v5 = vmul.f32 %v6613_v9, %v5911_v31  ;;  %v1919_v49 = vmul.f32 %v5911_v31, %v1818_v0  ;;  %v6865_v40 = vld [vmem:[#allocation3 + $0x58] sm:$0xff] }
 0x332   : > { %v3046_v15 = vsel %vm3034_vm2, %v3032_v11, 0.0  ;;  %v3039_v38 = vadd.f32 %v3038_v53, %v3037_v41  ;;  %v3655_v27 = vsel %vm3654_vm3, %v3026_v55, 0.0  ;;  %v3656_v19 = vsel %vm3654_vm3, %v3027_v24, 0.0 }
 0x333   : > { %v3658_v33 = vsel %vm3654_vm3, %v3028_v43, 0.0  ;;  %v3657_v6 = vadd.f32 %v3656_v19, %v3655_v27  ;;  %v3660_v39 = vsel %vm3654_vm3, %v3029_v58, 0.0  ;;  %v3662_v12 = vsel %vm3654_vm3, %v3030_v2, 0.0 }
 0x334   : > { %v3664_v47 = vsel %vm3654_vm3, %v3031_v48, 0.0  ;;  %v3041_v42 = vadd.f32 %v3040_v28, %v3039_v38  ;;  %v3666_v51 = vsel %vm3654_vm3, %v3032_v11, 0.0  ;;  %v3668_v31 = vsel %vm3654_vm3, %v3033_v26, 0.0 }
 0x335   : > { %v1995_v22 = vrot.slane %v1917_v5, 1  ;;  %v3659_v34 = vadd.f32 %v3658_v33, %v3657_v6  ;;  %v1996_v61 = vrot.slane %v1919_v49, 1  ;;  %v2079_v21 = vmul.f32 %v6613_v9, %v5923_v14 }
 0x336   : > { %v2081_v55 = vmul.f32 %v5923_v14, %v1818_v0  ;;  %v3043_v24 = vadd.f32 %v3042_v37, %v3041_v42  ;;  %v7978_v43 = vrot.slane %v6501_v23, 2  ;;  %v7979_v58 = vrot.slane %v6496_v10, 2  ;;  %v7990_v42 = vld [vmem:[#allocation55_spill] sm:$0xff] }
 0x337   : > { %v7980_v48 = vrot.slane %v6593_v36, 2  ;;  %v7981_v11 = vrot.slane %v6590_v56, 2  ;;  %v2260_v29 = vmul.f32 %v6041_v1, %v6865_v40  ;;  %v3661_v53 = vadd.f32 %v3660_v39, %v3659_v34 }
 0x338   : > { %v2147_v2 = vsel %vm1246_vm1, %v7979_v58, %v7978_v43  ;;  %v1997_v14 = vsel %vm1169_vm0, %v1995_v22, %v1996_v61  ;;  %v2157_v0 = vrot.slane %v2079_v21, 2  ;;  %v2158_v28 = vrot.slane %v2081_v55, 2  ;;  %v7993_v55 = vld [vmem:[#allocation103_spill] sm:$0xff] }
 0x339   : > { %v2153_v26 = vsel %vm1246_vm1, %v7981_v11, %v7980_v48  ;;  %v3045_v23 = vadd.f32 %v3044_v59, %v3043_v24  ;;  %v2031_v37 = vadd.f32 %v1997_v14, %v1853_v4  ;;  %v2189_v10 = vadd.f32 %v2147_v2, %v6524_v54  ;;  %v7994_v58 = vld [vmem:[#allocation23_spill] sm:$0xff] }
 0x33a   : > { %v2191_v41 = vadd.f32 %v2153_v26, %v6631_v16  ;;  %v3663_v36 = vadd.f32 %v3662_v12, %v3661_v53  ;;  %v2159_v56 = vsel %vm1246_vm1, %v2157_v0, %v2158_v28  ;;  %v2324_v5 = vmul.f32 %v5934_v45, %v6865_v40  ;;  %v7995_v26 = vld [vmem:[#allocation87_spill] sm:$0xff]  ;;  %v7997_v53 = vld [vmem:[#allocation86_spill] sm:$0xff] }
 0x33b   : > { %v2326_v49 = vmul.f32 %v5934_v45, %v2225_v44  ;;  %v3047_v1 = vadd.f32 %v3046_v15, %v3045_v23  ;;  %v2193_v38 = vadd.f32 %v2159_v56, %v2031_v37  ;;  %v2272_v27 = vadd.f32 %v6597_v18, %v2189_v10  ;;  %v7999_v23 = vld [vmem:[#allocation96_spill] sm:$0xff]  ;;  %v8001_v10 = vld [vmem:[#allocation94_spill] sm:$0xff] }
 0x33c   : > { %v2274_v19 = vadd.f32 %v6636_v57, %v2191_v41  ;;  %v3665_v59 = vadd.f32 %v3664_v47, %v3663_v36  ;;  %v7982_v4 = vrot.slane %v6459_v35, 1  ;;  %v7983_v54 = vrot.slane %v6454_v30, 1  ;;  %v7988_v47 = vld [vmem:[#allocation110_spill] sm:$0xff]  ;;  %v8003_v56 = vld [vmem:[#allocation104_spill] sm:$0xff] }
 0x33d   : > { %v7984_v33 = vrot.slane %v6510_v8, 1  ;;  %v7985_v6 = vrot.slane %v6507_v63, 1  ;;  %v7986_v45 = vrot.slane %v6604_v7, 1  ;;  %v7987_v15 = vrot.slane %v6601_v13, 1  ;;  %v7992_v63 = vld [vmem:[#allocation95_spill] sm:$0xff] }
 0x33e   : > { %v2380_v16 = vsel %vm1169_vm0, %v7983_v54, %v7982_v4  ;;  %v3049_v57 = vadd.f32 %v3048_v25, %v3047_v1  ;;  %v2276_v12 = vadd.f32 %v2260_v29, %v2193_v38  ;;  %v7989_v35 = vrot.slane %v7988_v47, 1  ;;  %v8007_v38 = vld [vmem:[#allocation57_spill] sm:$0xff]  ;;  %v8011_v54 = vld [vmem:[#allocation111_spill] sm:$0xff] }
 0x33f   : > { %v2386_v39 = vsel %vm1169_vm0, %v7985_v6, %v7984_v33  ;;  %v2392_v18 = vsel %vm1169_vm0, %v7987_v15, %v7986_v45  ;;  %v7991_v30 = vrot.slane %v7990_v42, 1  ;;  %v2402_v34 = vrot.slane %v2324_v5, 1  ;;  %v8005_v5 = vld [vmem:[#allocation102_spill] sm:$0xff]  ;;  %v8012_v45 = vld [vmem:[#allocation88_spill] sm:$0xff] }
 0x340   : > { %v3667_v8 = vadd.f32 %v3666_v51, %v3665_v59  ;;  %v2403_v61 = vrot.slane %v2326_v49, 1  ;;  %v2430_v21 = vadd.f32 %v2380_v16, %v7992_v63  ;;  %v2432_v24 = vadd.f32 %v2386_v39, %v7993_v55  ;;  %v8016_v63 = vld [vmem:[#allocation34_spill] sm:$0xff] }
 0x341   : > { %v2398_v22 = vsel %vm1169_vm0, %v7991_v30, %v7989_v35  ;;  %v3050_v7 = vrot.slane %v3049_v57, 4  ;;  %v2434_v43 = vadd.f32 %v2392_v18, %v2272_v27  ;;  %v2486_v25 = vmul.f32 %v7994_v58, %v6865_v40 }
 0x342   : > { %v2436_v13 = vadd.f32 %v2398_v22, %v2274_v19  ;;  %v3669_v2 = vadd.f32 %v3668_v31, %v3667_v8  ;;  %v2404_v48 = vsel %vm1169_vm0, %v2402_v34, %v2403_v61  ;;  %v2488_v11 = vmul.f32 %v7994_v58, %v2225_v44  ;;  %v8009_v19 = vld [vmem:[#allocation39_spill] sm:$0xff]  ;;  %v8015_v61 = vld [vmem:[#allocation41_spill] sm:$0xff] }
 0x343   : > { %v7996_v29 = vrot.slane %v7995_v26, 2  ;;  %v7998_v51 = vrot.slane %v7997_v53, 2  ;;  %v3051_v0 = vadd.f32 %v3050_v7, %v3049_v57  ;;  %v2438_v28 = vadd.f32 %v2404_v48, %v2276_v12  ;;  %v8013_v12 = vld [vmem:[#allocation112_spill] sm:$0xff] }
 0x344   : > { %v8000_v37 = vrot.slane %v7999_v23, 2  ;;  %v8002_v41 = vrot.slane %v8001_v10, 2  ;;  %v8004_v31 = vrot.slane %v8003_v56, 2  ;;  %v8006_v49 = vrot.slane %v8005_v5, 2  ;;  %v8019_v10 = vld [vmem:[#allocation24_spill] sm:$0xff] }
 0x345   : > { %v2536_v14 = vsel %vm1246_vm1, %v7998_v51, %v7996_v29  ;;  %v3670_v1 = vrot.slane %v3669_v2, 4  ;;  %v8008_v27 = vrot.slane %v8007_v38, 2  ;;  %v8010_v59 = vrot.slane %v8009_v19, 2  ;;  %v2633_v51 = vld [vmem:[#allocation3 + $0xb8] sm:$0x3]  ;;  %v8020_v38 = vld [vmem:[#allocation82_spill] sm:$0xff] }
 0x346   : > { %v2542_v36 = vsel %vm1246_vm1, %v8002_v41, %v8000_v37  ;;  %v2548_v44 = vsel %vm1246_vm1, %v8006_v49, %v8004_v31  ;;  %v2558_v16 = vrot.slane %v8011_v54, 2  ;;  %v2564_v33 = vrot.slane %v2486_v25, 2  ;;  %v2625_v25 = vld [vmem:[#allocation3 + $0x50] sm:$0x3]  ;;  %v8022_v19 = vld [vmem:[#allocation81_spill] sm:$0xff] }
 0x347   : > { %v2554_v4 = vsel %vm1246_vm1, %v8010_v59, %v8008_v27  ;;  %v3052_v6 = vrot.slane %v3051_v0, 2  ;;  %v2565_v39 = vrot.slane %v2488_v11, 2  ;;  %v2590_v15 = vadd.f32 %v2536_v14, %v8012_v45  ;;  %v2629_v11 = vld [vmem:[#allocation3 + $0x30] sm:$0x3] }
 0x348   : > { %v2592_v18 = vadd.f32 %v2542_v36, %v2430_v21  ;;  %v3671_v57 = vadd.f32 %v3670_v1, %v3669_v2  ;;  %v8014_v47 = vrot.slane %v8013_v12, 2  ;;  %v2594_v42 = vadd.f32 %v2548_v44, %v2432_v24  ;;  %v8024_v54 = vld [vmem:[#allocation90_spill] sm:$0xff] }
 0x349   : > { %v2596_v30 = vadd.f32 %v2554_v4, %v2434_v43  ;;  %v3053_v22 = vadd.f32 %v3052_v6, %v3051_v0  ;;  %v2566_v34 = vsel %vm1246_vm1, %v2564_v33, %v2565_v39  ;;  %v2662_v55 = vmul.f32 %v8016_v63, %v8015_v61  ;;  %v8017_v43 = vld [vmem:[#allocation97_spill] sm:$0xff] }
 0x34a   : > { %v2560_v35 = vsel %vm1246_vm1, %v2558_v16, %v8014_v47  ;;  %v3672_v7 = vrot.slane %v3671_v57, 2  ;;  %v2600_v58 = vadd.f32 %v2566_v34, %v2438_v28  ;;  %v2664_v21 = vmul.f32 %v8016_v63, %v6613_v9  ;;  %v8026_v33 = vld [vmem:[#allocation89_spill] sm:$0xff] }
 0x34b   : > { %v2598_v8 = vadd.f32 %v2560_v35, %v2436_v13  ;;  %v2666_v2 = vmul.f32 %v8016_v63, %v6865_v40  ;;  %v3054_v48 = vrot.slane %v3053_v22, 1  ;;  %v2668_v24 = vmul.f32 %v6797_v17, %v8016_v63  ;;  %v8018_v13 = vld [vmem:[#allocation105_spill] sm:$0xff]  ;;  %v8032_v35 = vld [vmem:[#allocation107_spill] sm:$0xff] }
 0x34c   : > { %v2674_v26 = vadd.f32 %v8017_v43, %v2590_v15  ;;  %v2676_v29 = vadd.f32 %v8018_v13, %v2592_v18  ;;  %v3673_v53 = vadd.f32 %v3672_v7, %v3671_v57  ;;  %v2678_v14 = vadd.f32 %v2662_v55, %v2594_v42  ;;  %v8028_v15 = vld [vmem:[#allocation99_spill] sm:$0xff]  ;;  %v8030_v57 = vld [vmem:[#allocation98_spill] sm:$0xff] }
 0x34d   : > { %v2680_v0 = vadd.f32 %v2664_v21, %v2596_v30  ;;  %v2682_v28 = vadd.f32 %v2666_v2, %v2598_v8  ;;  %v3055_v23 = vadd.f32 %v3054_v48, %v3053_v22  ;;  %v2684_v37 = vadd.f32 %v2668_v24, %v2600_v58  ;;  %v8034_v30 = vld [vmem:[#allocation106_spill] sm:$0xff]  ;;  %v8036_v8 = vld [vmem:[#allocation56_spill] sm:$0xff] }
 0x34e   : > { %v2724_v41 = vmul.f32 %v8019_v10, %v6613_v9  ;;  %v2726_v36 = vmul.f32 %v8019_v10, %v2625_v25  ;;  %v3674_v56 = vrot.slane %v3673_v53, 1  ;;  %v2728_v31 = vmul.f32 %v8019_v10, %v6865_v40  ;;  %v8037_v2 = vld [vmem:[#allocation52_spill] sm:$0xff] }
 0x34f   : > { %v2730_v5 = vmul.f32 %v8019_v10, %v2629_v11  ;;  %v2732_v49 = vmul.f32 %v6797_v17, %v8019_v10  ;;  %v3056_v44 = vmax.f32 %v3055_v23, 1e-24  ;;  %v2734_v1 = vmul.f32 %v8019_v10, %v2633_v51  ;;  %v8039_v10 = vld [vmem:[#allocation85_spill] sm:$0xff] }
 0x350   : > { %v8021_v27 = vrot.slane %v8020_v38, 1  ;;  %v8023_v59 = vrot.slane %v8022_v19, 1  ;;  %v8025_v16 = vrot.slane %v8024_v54, 1  ;;  %v8027_v6 = vrot.slane %v8026_v33, 1  ;;  %v8040_v38 = vld [vmem:[#allocation92_spill] sm:$0xff]  ;;  %v8042_v33 = vld [vmem:[#allocation42_spill] sm:$0xff] }
 0x351   : > { %v3675_v45 = vadd.f32 %v3674_v56, %v3673_v53  ;;  %v8029_v18 = vrot.slane %v8028_v15, 1  ;;  %v8031_v12 = vrot.slane %v8030_v57, 1  ;;  %v8033_v42 = vrot.slane %v8032_v35, 1  ;;  %v8047_v15 = vld [vmem:[#allocation93_spill] sm:$0xff]  ;;  %v8055_v35 = vld [vmem:[#allocation108_spill] sm:$0xff] }
 0x352   : > { %v2770_v4 = vsel %vm1169_vm0, %v8023_v59, %v8021_v27  ;;  %v2776_v39 = vsel %vm1169_vm0, %v8027_v6, %v8025_v16  ;;  %v8035_v22 = vrot.slane %v8034_v30, 1  ;;  %v2792_v63 = vrot.slane %v8036_v8, 1 }
 0x353   : > { %v2782_v47 = vsel %vm1169_vm0, %v8031_v12, %v8029_v18  ;;  %5049 = vrsqrt.f32 %v3056_v44  ;;  %v2798_v55 = vrot.slane %v2724_v41, 1  ;;  %v2799_v7 = vrot.slane %v2726_v36, 1  ;;  %v8049_v18 = vld [vmem:[#allocation91_spill] sm:$0xff] }
 0x354   : > { %v2788_v34 = vsel %vm1169_vm0, %v8035_v22, %v8033_v42  ;;  %v2804_v58 = vrot.slane %v2728_v31, 1  ;;  %v3676_v21 = vmax.f32 %v3675_v45, 1e-24  ;;  %v8038_v48 = vrot.slane %v8037_v2, 1 }
 0x355   : > { %v2805_v43 = vrot.slane %v2730_v5, 1  ;;  %v2810_v13 = vrot.slane %v2732_v49, 1  ;;  %v2800_v53 = vsel %vm1169_vm0, %v2798_v55, %v2799_v7  ;;  %v2811_v23 = vrot.slane %v2734_v1, 1  ;;  %v8041_v5 = vld [vmem:[#allocation25_spill] sm:$0xff] }
 0x356   : > { %v2794_v24 = vsel %vm1169_vm0, %v2792_v63, %v8038_v48  ;;  %v2832_v56 = vadd.f32 %v2770_v4, %v8039_v10  ;;  %v2834_v27 = vadd.f32 %v2776_v39, %v8040_v38  ;;  %5051 = vrsqrt.f32 %v3676_v21  ;;  %v8056_v7 = vld [vmem:[#allocation109_spill] sm:$0xff] }
 0x357   : > { %v2806_v44 = vsel %vm1169_vm0, %v2804_v58, %v2805_v43  ;;  %v2836_v41 = vadd.f32 %v2782_v47, %v2674_v26  ;;  %v2838_v36 = vadd.f32 %v2788_v34, %v2676_v29  ;;  %v2812_v31 = vsel %vm1169_vm0, %v2810_v13, %v2811_v23 }
 0x358   : > { %v2840_v19 = vadd.f32 %v2794_v24, %v2678_v14  ;;  %v2842_v59 = vadd.f32 %v2800_v53, %v2680_v0  ;;  %v2844_v54 = vadd.f32 %v2806_v44, %v2682_v28  ;;  %v2846_v16 = vadd.f32 %v2812_v31, %v2684_v37  ;;  %v8043_v28 = vld [vmem:[#allocation84_spill] sm:$0xff]  ;;  %v8045_v37 = vld [vmem:[#allocation83_spill] sm:$0xff] }
 0x359   : > { %v2882_v49 = vmul.f32 %v8041_v5, %v8015_v61  ;;  %v2884_v1 = vmul.f32 %v8041_v5, %v8042_v33  ;;  %v2886_v4 = vmul.f32 %v8041_v5, %v6613_v9  ;;  %v2888_v6 = vmul.f32 %v8041_v5, %v2625_v25 }
 0x35a   : > { %v2890_v26 = vmul.f32 %v8041_v5, %v6865_v40  ;;  %v2892_v29 = vmul.f32 %v8041_v5, %v2629_v11  ;;  %v2894_v14 = vmul.f32 %v6797_v17, %v8041_v5  ;;  %v2896_v0 = vmul.f32 %v8041_v5, %v2633_v51  ;;  %v8051_v40 = vld [vmem:[#allocation101_spill] sm:$0xff]  ;;  %v8053_v11 = vld [vmem:[#allocation100_spill] sm:$0xff] }
 0x35b   : > { %v8044_v61 = vrot.slane %v8043_v28, 2  ;;  %v8046_v39 = vrot.slane %v8045_v37, 2  ;;  %v8048_v9 = vrot.slane %v8047_v15, 2  ;;  %v8050_v25 = vrot.slane %v8049_v18, 2 }
 0x35c   : > { %v8052_v12 = vrot.slane %v8051_v40, 2  ;;  %v8054_v47 = vrot.slane %v8053_v11, 2  ;;  %v2948_v51 = vrot.slane %v8055_v35, 2  ;;  %v2954_v42 = vrot.slane %v2882_v49, 2 }
 0x35d   : > { %v2932_v45 = vsel %vm1246_vm1, %v8046_v39, %v8044_v61  ;;  %v2938_v57 = vsel %vm1246_vm1, %v8050_v25, %v8048_v9  ;;  %v2955_v30 = vrot.slane %v2884_v1, 2  ;;  %v2960_v22 = vrot.slane %v2886_v4, 2 }
 0x35e   : > { %v2944_v17 = vsel %vm1246_vm1, %v8054_v47, %v8052_v12  ;;  %v2961_v34 = vrot.slane %v2888_v6, 2  ;;  %v2966_v8 = vrot.slane %v2890_v26, 2  ;;  %v2967_v63 = vrot.slane %v2892_v29, 2 }
 0x35f   : > { %v2972_v55 = vrot.slane %v2894_v14, 2  ;;  %v8057_v58 = vrot.slane %v8056_v7, 2  ;;  %v2956_v2 = vsel %vm1246_vm1, %v2954_v42, %v2955_v30  ;;  %v2973_v48 = vrot.slane %v2896_v0, 2 }
 0x360   : > { %v7026_v24 = vadd.f32 %v2932_v45, %v2832_v56  ;;  %v2962_v43 = vsel %vm1246_vm1, %v2960_v22, %v2961_v34  ;;  %v2968_v13 = vsel %vm1246_vm1, %v2966_v8, %v2967_v63  ;;  %v7030_v53 = vadd.f32 %v2938_v57, %v2834_v27  ;;  %v7041_v5 = vpop.eup %5049 }
 0x361   : > { %v2950_v21 = vsel %vm1246_vm1, %v2948_v51, %v8057_v58  ;;  %v7032_v23 = vadd.f32 %v2944_v17, %v2836_v41  ;;  %v2974_v10 = vsel %vm1246_vm1, %v2972_v55, %v2973_v48  ;;  %v7037_v44 = vadd.f32 %v2956_v2, %v2840_v19 }
 0x362   : > { %v7035_v38 = vadd.f32 %v2950_v21, %v2838_v36  ;;  %v7039_v31 = vadd.f32 %v2962_v43, %v2842_v59  ;;  %v7043_v56 = vadd.f32 %v2968_v13, %v2844_v54  ;;  %v7045_v49 = vadd.f32 %v2974_v10, %v2846_v16 }
 0x363   : > { %v3066_v27 = vmul.f32 %v7026_v24, %v7026_v24  ;;  %v3067_v41 = vmul.f32 %v7030_v53, %v7030_v53  ;;  %v3058_v36 = vmul.f32 %v7041_v5, %v6810_v32  ;;  %v3068_v19 = vmul.f32 %v7032_v23, %v7032_v23  ;;  %v5052_v59 = vpop.eup %5051 }
 0x364   : > { %v3069_v54 = vmul.f32 %v7035_v38, %v7035_v38  ;;  %v3070_v16 = vmul.f32 %v7037_v44, %v7037_v44  ;;  %v3071_v33 = vmul.f32 %v7039_v31, %v7039_v31  ;;  %v3059_v26 = vmul.f32 %v7041_v5, %v6812_v3 }
 0x365   : > { %3105 = vxpose.xlu0.b32.start [1/8] (short) (narrow) %v3058_v36, 64  ;;  %v3074_v1 = vsel %vm3034_vm2, %v3066_v27, 0.0  ;;  %v3075_v4 = vsel %vm3034_vm2, %v3067_v41, 0.0  ;;  %v3077_v6 = vsel %vm3034_vm2, %v3068_v19, 0.0  ;;  %v3060_v14 = vmul.f32 %v7041_v5, %v6814_v46 }
 0x366   : > { %v3076_v29 = vadd.f32 %v3075_v4, %v3074_v1  ;;  %v3079_v0 = vsel %vm3034_vm2, %v3069_v54, 0.0  ;;  %v3686_v28 = vsel %vm3654_vm3, %v3066_v27, 0.0  ;;  %v3687_v61 = vsel %vm3654_vm3, %v3067_v41, 0.0 }
 0x367   : > { %v3072_v37 = vmul.f32 %v7043_v56, %v7043_v56  ;;  %v3688_v45 = vadd.f32 %v3687_v61, %v3686_v28  ;;  %v3689_v15 = vsel %vm3654_vm3, %v3068_v19, 0.0  ;;  %v3073_v9 = vmul.f32 %v7045_v49, %v7045_v49 }
 0x368   : > { %v3078_v39 = vadd.f32 %v3077_v6, %v3076_v29  ;;  %v3081_v18 = vsel %vm3034_vm2, %v3070_v16, 0.0  ;;  %v3083_v25 = vsel %vm3034_vm2, %v3071_v33, 0.0  ;;  %v3691_v57 = vsel %vm3654_vm3, %v3069_v54, 0.0 }
 0x369   : > { %3106 = vxpose.xlu0.b32.cont [2/8] (short) (narrow) %v3059_v26, 64  ;;  %v3690_v12 = vadd.f32 %v3689_v15, %v3688_v45  ;;  %v3693_v11 = vsel %vm3654_vm3, %v3070_v16, 0.0  ;;  %v7081_v47 = vmul.f32 %v5052_v59, %v6812_v3  ;;  %v7084_v17 = vmul.f32 %v5052_v59, %v6810_v32 }
 0x36a   : > { %v3080_v40 = vadd.f32 %v3079_v0, %v3078_v39  ;;  %v7087_v35 = vmul.f32 %v5052_v59, %v6814_v46  ;;  %v7090_v51 = vmul.f32 %v5052_v59, %v6820_v62  ;;  %v7093_v42 = vmul.f32 %v5052_v59, %v6822_v50 }
 0x36b   : > { %v3692_v22 = vadd.f32 %v3691_v57, %v3690_v12  ;;  %v7096_v34 = vmul.f32 %v5052_v59, %v6824_v20  ;;  %v7099_v3 = vmul.f32 %v5052_v59, %v6826_v52  ;;  %v3085_v32 = vsel %vm3034_vm2, %v3072_v37, 0.0 }
 0x36c   : > { %v3082_v30 = vadd.f32 %v3081_v18, %v3080_v40  ;;  %v3695_v46 = vsel %vm3654_vm3, %v3071_v33, 0.0  ;;  %v7104_v8 = vmul.f32 %v5052_v59, %v6828_v60  ;;  %v3061_v63 = vmul.f32 %v7041_v5, %v6820_v62 }
 0x36d   : > { %3107 = vxpose.xlu0.b32.cont [3/8] (short) (narrow) %v3060_v14, 64  ;;  %v3694_v7 = vadd.f32 %v3693_v11, %v3692_v22  ;;  %v3087_v58 = vsel %vm3034_vm2, %v3073_v9, 0.0  ;;  %v3697_v21 = vsel %vm3654_vm3, %v3072_v37, 0.0  ;;  %v3699_v43 = vsel %vm3654_vm3, %v3073_v9, 0.0 }
 0x36e   : > { %v3084_v55 = vadd.f32 %v3083_v25, %v3082_v30  ;;  %v3062_v13 = vmul.f32 %v7041_v5, %v6822_v50  ;;  %v3063_v62 = vmul.f32 %v7041_v5, %v6824_v20  ;;  %v3064_v33 = vmul.f32 %v7041_v5, %v6826_v52 }
 0x36f   : > { %v3696_v48 = vadd.f32 %v3695_v46, %v3694_v7  ;;  %v3065_v14 = vmul.f32 %v7041_v5, %v6828_v60 }
 0x370   : > { %v3086_v2 = vadd.f32 %v3085_v32, %v3084_v55 }
 0x371   : > { %3108 = vxpose.xlu0.b32.cont [4/8] (short) (narrow) %v3061_v63, 64  ;;  %v3698_v27 = vadd.f32 %v3697_v21, %v3696_v48  ;;  %v3267_v21 = vstv %s3266_s8 }
 0x372   : > { %v3088_v10 = vadd.f32 %v3087_v58, %v3086_v2 }
 0x373   : > { %v3700_v36 = vadd.f32 %v3699_v43, %v3698_v27 }
 0x374   : > { %v3089_v41 = vrot.slane %v3088_v10, 4 }
 0x375   : > { %3109 = vxpose.xlu0.b32.cont [5/8] (short) (narrow) %v3062_v13, 64  ;;  %v3701_v59 = vrot.slane %v3700_v36, 4 }
 0x376   : > { %v3090_v19 = vadd.f32 %v3089_v41, %v3088_v10 }
 0x377   : > { %v3702_v16 = vadd.f32 %v3701_v59, %v3700_v36 }
 0x378   : > { %v3091_v54 = vrot.slane %v3090_v19, 2 }
 0x379   : > { %3110 = vxpose.xlu0.b32.cont [6/8] (short) (narrow) %v3063_v62, 64  ;;  %v3703_v4 = vrot.slane %v3702_v16, 2 }
 0x37a   : > { %v3092_v1 = vadd.f32 %v3091_v54, %v3090_v19 }
 0x37b   : > { %v3704_v6 = vadd.f32 %v3703_v4, %v3702_v16 }
 0x37c   : > { %v3093_v50 = vrot.slane %v3092_v1, 1 }
 0x37d   : > { %3111 = vxpose.xlu0.b32.cont [7/8] (short) (narrow) %v3064_v33, 64  ;;  %v3705_v29 = vrot.slane %v3704_v6, 1 }
 0x37e   : > { %v3094_v26 = vadd.f32 %v3093_v50, %v3092_v1 }
 0x37f   : > { %v3706_v20 = vadd.f32 %v3705_v29, %v3704_v6 }
 0x380   : > { %v3095_v0 = vmax.f32 %v3094_v26, 1e-24 }
 0x381   : > { %3112 = vxpose.xlu0.b32.end [8/8] (short) (narrow) %v3065_v14, 64  ;;  %v3707_v28 = vmax.f32 %v3706_v20, 1e-24 }
 0x382   : > { %5053 = vrsqrt.f32 %v3095_v0 }
 0x383   : > { %5055 = vrsqrt.f32 %v3707_v28 }
 0x38f   : > { %v5054_v61 = vpop.eup %5053 }
 0x390   : > { %v3104_v37 = vmul.f32 %v5054_v61, %v7045_v49  ;;  %v3103_v52 = vmul.f32 %v5054_v61, %v7043_v56  ;;  %v3102_v39 = vmul.f32 %v5054_v61, %v7039_v31  ;;  %v3101_v45 = vmul.f32 %v5054_v61, %v7037_v44  ;;  %v5056_v15 = vpop.eup %5055 }
 0x391   : > { %v3100_v9 = vmul.f32 %v5054_v61, %v7035_v38  ;;  %v3099_v60 = vmul.f32 %v5054_v61, %v7032_v23  ;;  %v3098_v5 = vmul.f32 %v5054_v61, %v7030_v53  ;;  %v3097_v18 = vmul.f32 %v5054_v61, %v7026_v24 }
 0x392   : > { %4748 = vmatprep.subr.mxu0 %v3104_v37  ;;  %v3713_v25 = vmul.f32 %v5056_v15, %v7037_v44  ;;  %v3711_v57 = vmul.f32 %v5056_v15, %v7032_v23  ;;  %v3709_v40 = vmul.f32 %v5056_v15, %v7026_v24  ;;  %v7131_v12 = vmul.f32 %v5056_v15, %v7045_v49 }
 0x393   : > { %4749 = vmatpush3.msra.mxu0 %v3104_v37  ;;  %v7134_v11 = vmul.f32 %v5056_v15, %v7043_v56  ;;  %v7137_v30 = vmul.f32 %v5056_v15, %v7039_v31  ;;  %v7140_v22 = vmul.f32 %v5056_v15, %v7035_v38  ;;  %v7143_v32 = vmul.f32 %v5056_v15, %v7030_v53 }
 0x394   : > { %4750 = vmatprep.subr.mxu0 %v3103_v52 }
 0x395   : > { %4751 = vmatpush3.msra.mxu0 %v3103_v52 }
 0x396   : > { %4752 = vmatprep.subr.mxu0 %v3102_v39 }
 0x397   : > { %4753 = vmatpush3.msra.mxu0 %v3102_v39 }
 0x398   : > { %4754 = vmatprep.subr.mxu0 %v3101_v45 }
 0x399   : > { %4755 = vmatpush3.msra.mxu0 %v3101_v45 }
 0x39a   : > { %4756 = vmatprep.subr.mxu0 %v3100_v9 }
 0x39b   : > { %4757 = vmatpush3.msra.mxu0 %v3100_v9 }
 0x39c   : > { %4758 = vmatprep.subr.mxu0 %v3099_v60 }
 0x39d   : > { %4759 = vmatpush3.msra.mxu0 %v3099_v60 }
 0x39e   : > { %4760 = vmatprep.subr.mxu0 %v3098_v5 }
 0x39f   : > { %4761 = vmatpush3.msra.mxu0 %v3098_v5 }
 0x3a0   : > { %4762 = vmatprep.subr.mxu0 %v3097_v18 }
 0x3a1   : > { %4763 = vmatpush3.msra.mxu0 %v3097_v18 }
 0x3aa   : > { %3727 = vrot.lane.b32.xlu0 %v7081_v47, %s5380_s26 }
 0x3ae   : > { %3797 = vrot.lane.b32.xlu0 %v3713_v25, %s5380_s26 }
 0x3b2   : > { %3793 = vrot.lane.b32.xlu0 %v3711_v57, %s5380_s26 }
 0x3b6   : > { %3789 = vrot.lane.b32.xlu0 %v3709_v40, %s5380_s26 }
 0x3e1   : > { %v3121_v24 = vpop.trf.xlu0 }
 0x3e2   : > { %4764 = vmatprep.mubr.msk.f32.mxu0 %vm3034_vm2, %v3121_v24 }
 0x3e5   : > { %v3122_v53 = vpop.trf.xlu0 }
 0x3e6   : > { %4765 = vmatmul.mubr.msk.f32.vlgmr.msra.gmra.mxu0 %vm3034_vm2, %v3122_v53 }
 0x3e9   : > { %v3123_v23 = vpop.trf.xlu0 }
 0x3ea   : > { %4767 = vmatprep.mubr.msk.f32.mxu0 %vm3034_vm2, %v3123_v23 }
 0x3ed   : > { %v3124_v38 = vpop.trf.xlu0 }
 0x3ee   : > { %4768 = vmatmul.mubr.msk.f32.gmra.mxu0 %vm3034_vm2, %v3124_v38 }
 0x3f1   : > { %v3125_v44 = vpop.trf.xlu0 }
 0x3f2   : > { %4770 = vmatprep.mubr.msk.f32.mxu0 %vm3034_vm2, %v3125_v44 }
 0x3f5   : > { %v3126_v31 = vpop.trf.xlu0 }
 0x3f6   : > { %4771 = vmatmul.mubr.msk.f32.gmra.mxu0 %vm3034_vm2, %v3126_v31 }
 0x3f9   : > { %v3127_v56 = vpop.trf.xlu0 }
 0x3fa   : > { %4773 = vmatprep.mubr.msk.f32.mxu0 %vm3034_vm2, %v3127_v56 }
 0x3fd   : > { %v3128_v49 = vpop.trf.xlu0 }
 0x3fe   : > { %4774 = vmatmul.mubr.msk.f32.gmra.mxu0 %vm3034_vm2, %v3128_v49 }
 0x4a6   : > { %v4766_v47 = vpop.f32.mrf.mxu0 }
 0x4a7   : > { %v3269_v33 = vmul.f32 %v4766_v47, %v3267_v21 }
 0x4a8   : > { %v3227_v46 = vpop.f32.mrf.mxu0 }
 0x4a9   : > { %v3268_v4 = vmul.f32 %v3267_v21, %v3227_v46  ;;  %v3279_v50 = vsel %vm3034_vm2, %v3269_v33, -inf }
 0x4ab   : > { %v3276_v6 = vsel %vm3034_vm2, %v3268_v4, -inf }
 0x4ae   : > { %v4769_v63 = vpop.f32.mrf.mxu0 }
 0x4af   : > { %v3271_v19 = vmul.f32 %v4769_v63, %v3267_v21 }
 0x4b0   : > { %v3237_v55 = vpop.f32.mrf.mxu0 }
 0x4b1   : > { %v3270_v54 = vmul.f32 %v3267_v21, %v3237_v55  ;;  %v3285_v16 = vsel %vm3034_vm2, %v3271_v19, -inf }
 0x4b3   : > { %v3282_v1 = vsel %vm3034_vm2, %v3270_v54, -inf }
 0x4b6   : > { %v4772_v7 = vpop.f32.mrf.mxu0 }
 0x4b7   : > { %v3273_v27 = vmul.f32 %v4772_v7, %v3267_v21 }
 0x4b8   : > { %v3247_v58 = vpop.f32.mrf.mxu0 }
 0x4b9   : > { %v3272_v36 = vmul.f32 %v3267_v21, %v3247_v58  ;;  %v3291_v62 = vsel %vm3034_vm2, %v3273_v27, -inf }
 0x4bb   : > { %v3288_v59 = vsel %vm3034_vm2, %v3272_v36, -inf }
 0x4be   : > { %v4775_v2 = vpop.f32.mrf.mxu0 }
 0x4bf   : > { %v3275_v48 = vmul.f32 %v4775_v2, %v3267_v21 }
 0x4c0   : > { %v3257_v43 = vpop.f32.mrf.mxu0 }
 0x4c1   : > { %v3274_v13 = vmul.f32 %v3267_v21, %v3257_v43  ;;  %v3297_v10 = vsel %vm3034_vm2, %v3275_v48, -inf }
 0x4c2   : > { %3298 = vmax.xlane.f32.xlu1 %v3297_v10 }
 0x4c3   : > { %v3294_v41 = vsel %vm3034_vm2, %v3274_v13, -inf }
 0x4c6   : > { %3295 = vmax.xlane.f32.xlu1 %v3294_v41  ;;  %v3017_v41 = vld [vmem:[#allocation14 + $0x38] sm:$0xff] }
 0x4c7   : > { %4804 = vmatprep.subr.mxu0 %v3017_v41 }
 0x4c8   : > { %4805 = vmatpush3.msra.mxu0 %v3017_v41 }
 0x4ca   : > { %3292 = vmax.xlane.f32.xlu1 %v3291_v62  ;;  %v3015_v62 = vld [vmem:[#allocation14 + $0x28] sm:$0xff] }
 0x4ce   : > { %3289 = vmax.xlane.f32.xlu1 %v3288_v59 }
 0x4d2   : > { %3286 = vmax.xlane.f32.xlu1 %v3285_v16 }
 0x4d6   : > { %3283 = vmax.xlane.f32.xlu1 %v3282_v1  ;;  %v1799_v1 = vld [vmem:[#allocation3 + $0xf0] sm:$0x3] }
 0x4da   : > { %3280 = vmax.xlane.f32.xlu1 %v3279_v50 }
 0x4de   : > { %3277 = vmax.xlane.f32.xlu1 %v3276_v6  ;;  %v8060_v6 = vld [vmem:[#allocation28_spill] sm:$0xff] }
 0x54b   : > { %v3299_v26 = vpop.xlane.xlu1 %3298 }
 0x54c   : > { %v3307_v29 = vsub.f32 %v3275_v48, %v3299_v26 }
 0x54e   : > { %v3322_v14 = vmul.f32 1.442695, %v3307_v29 }
 0x54f   : > { %v3296_v0 = vpop.xlane.xlu1 %3295 }
 0x550   : > { %5057 = vpow2.f32 %v3322_v14  ;;  %v3306_v20 = vsub.f32 %v3274_v13, %v3296_v0 }
 0x552   : > { %v3320_v28 = vmul.f32 1.442695, %v3306_v20  ;;  %v2202_v20 = vld [vmem:[#allocation3 + $0xf0] sm:$0x3] }
 0x553   : > { %v3293_v61 = vpop.xlane.xlu1 %3292 }
 0x554   : > { %5059 = vpow2.f32 %v3320_v28  ;;  %v3305_v37 = vsub.f32 %v3273_v27, %v3293_v61 }
 0x556   : > { %v3318_v52 = vmul.f32 1.442695, %v3305_v37  ;;  %v2608_v37 = vld [vmem:[#allocation3 + $0xc8] sm:$0xff] }
 0x557   : > { %v3290_v39 = vpop.xlane.xlu1 %3289 }
 0x558   : > { %5061 = vpow2.f32 %v3318_v52  ;;  %v3304_v45 = vsub.f32 %v3272_v36, %v3290_v39  ;;  %v3016_v36 = vld [vmem:[#allocation14 + $0x30] sm:$0xff]  ;;  %v1803_v52 = vld [vmem:[#allocation3 + $0x20] sm:$0x3] }
 0x559   : > { %4806 = vmatprep.subr.mxu0 %v3016_v36  ;;  %v8061_v39 = vld [vmem:[#allocation32_spill] sm:$0xff] }
 0x55a   : > { %v3316_v15 = vmul.f32 1.442695, %v3304_v45  ;;  %4807 = vmatpush3.msra.mxu0 %v3016_v36 }
 0x55b   : > { %v3287_v9 = vpop.xlane.xlu1 %3286  ;;  %4808 = vmatprep.subr.mxu0 %v3015_v62 }
 0x55c   : > { %5063 = vpow2.f32 %v3316_v15  ;;  %v3303_v60 = vsub.f32 %v3271_v19, %v3287_v9  ;;  %v3014_v19 = vld [vmem:[#allocation14 + $0x20] sm:$0xff]  ;;  %4809 = vmatpush3.msra.mxu0 %v3015_v62  ;;  %v2305_v62 = vmul.f32 %v2608_v37, %v8061_v39 }
 0x55d   : > { %v7166_v5 = vpop.eup %5057  ;;  %4810 = vmatprep.subr.mxu0 %v3014_v19 }
 0x55e   : > { %v3314_v18 = vmul.f32 1.442695, %v3303_v60  ;;  %v3345_v25 = vsel %vm3034_vm2, %v7166_v5, 0.0  ;;  %4811 = vmatpush3.msra.mxu0 %v3014_v19 }
 0x55f   : > { %3346 = vadd.xlane.f32.xlu1 %v3345_v25  ;;  %v3284_v57 = vpop.xlane.xlu1 %3283 }
 0x560   : > { %5065 = vpow2.f32 %v3314_v18  ;;  %v3302_v40 = vsub.f32 %v3270_v54, %v3284_v57  ;;  %v2303_v18 = vmul.f32 %v8061_v39, %v2202_v20 }
 0x561   : > { %v7170_v24 = vpop.eup %5059 }
 0x562   : > { %v3312_v53 = vmul.f32 1.442695, %v3302_v40  ;;  %v3342_v23 = vsel %vm3034_vm2, %v7170_v24, 0.0 }
 0x563   : > { %3343 = vadd.xlane.f32.xlu1 %v3342_v23  ;;  %v3281_v38 = vpop.xlane.xlu1 %3280 }
 0x564   : > { %5067 = vpow2.f32 %v3312_v53  ;;  %v3301_v44 = vsub.f32 %v3269_v33, %v3281_v38  ;;  %v2200_v33 = vld [vmem:[#allocation3 + $0x108] sm:$0xff] }
 0x565   : > { %v7174_v31 = vpop.eup %5061  ;;  %v2301_v45 = vmul.f32 %v8061_v39, %v2200_v33  ;;  %v1844_v23 = vmul.f32 %v2200_v33, %v8060_v6  ;;  %v8062_v38 = vld [vmem:[#allocation37_spill] sm:$0xff] }
 0x566   : > { %v3310_v56 = vmul.f32 1.442695, %v3301_v44  ;;  %v3339_v49 = vsel %vm3034_vm2, %v7174_v31, 0.0  ;;  %v2249_v44 = vmul.f32 %v8062_v38, %v2200_v33 }
 0x567   : > { %3340 = vadd.xlane.f32.xlu1 %v3339_v49  ;;  %v3278_v47 = vpop.xlane.xlu1 %3277 }
 0x568   : > { %5069 = vpow2.f32 %v3310_v56  ;;  %v3300_v46 = vsub.f32 %v3268_v4, %v3278_v47  ;;  %v2369_v56 = vrot.slane %v2301_v45, 1 }
 0x569   : > { %v7178_v63 = vpop.eup %5063 }
 0x56a   : > { %v3308_v55 = vmul.f32 1.442695, %v3300_v46  ;;  %v3336_v7 = vsel %vm3034_vm2, %v7178_v63, 0.0  ;;  %v2206_v46 = vld [vmem:[#allocation3 + $0x20] sm:$0x3] }
 0x56b   : > { %3337 = vadd.xlane.f32.xlu1 %v3336_v7  ;;  %v8063_v7 = vld [vmem:[#allocation33_spill] sm:$0xff]  ;;  %v2307_v19 = vmul.f32 %v8061_v39, %v2206_v46 }
 0x56c   : > { %5071 = vpow2.f32 %v3308_v55  ;;  %v2370_v55 = vrot.slane %v2303_v18, 1 }
 0x56d   : > { %v7182_v58 = vpop.eup %5065 }
 0x56e   : > { %v3333_v21 = vsel %vm3034_vm2, %v7182_v58, 0.0 }
 0x56f   : > { %3334 = vadd.xlane.f32.xlu1 %v3333_v21  ;;  %v2463_v21 = vmul.f32 %v8063_v7, %v2200_v33 }
 0x571   : > { %v7186_v2 = vpop.eup %5067 }
 0x572   : > { %v3330_v48 = vsel %vm3034_vm2, %v7186_v2, 0.0 }
 0x573   : > { %3331 = vadd.xlane.f32.xlu1 %v3330_v48  ;;  %v2465_v48 = vmul.f32 %v8063_v7, %v2202_v20 }
 0x575   : > { %v7190_v43 = vpop.eup %5069 }
 0x576   : > { %v3327_v13 = vsel %vm3034_vm2, %v7190_v43, 0.0 }
 0x577   : > { %3328 = vadd.xlane.f32.xlu1 %v3327_v13 }
 0x579   : > { %v7194_v10 = vpop.eup %5071 }
 0x57a   : > { %v3324_v27 = vsel %vm3034_vm2, %v7194_v10, 0.0 }
 0x57b   : > { %3325 = vadd.xlane.f32.xlu1 %v3324_v27 }
 0x58c   : > { %3725 = vrot.lane.b32.xlu1 %v7084_v17, %s5380_s26  ;;  %v3013_v17 = vld [vmem:[#allocation14 + $0x18] sm:$0xff] }
 0x58d   : > { %4812 = vmatprep.subr.mxu0 %v3013_v17 }
 0x58e   : > { %4813 = vmatpush3.msra.mxu0 %v3013_v17 }
 0x590   : > { %3729 = vrot.lane.b32.xlu1 %v7087_v35, %s5380_s26  ;;  %v3012_v35 = vld [vmem:[#allocation14 + $0x10] sm:$0xff] }
 0x591   : > { %4814 = vmatprep.subr.mxu0 %v3012_v35 }
 0x592   : > { %4815 = vmatpush3.msra.mxu0 %v3012_v35 }
 0x594   : > { %3731 = vrot.lane.b32.xlu1 %v7090_v51, %s5380_s26  ;;  %v3011_v51 = vld [vmem:[#allocation14 + $0x8] sm:$0xff] }
 0x595   : > { %4816 = vmatprep.subr.mxu0 %v3011_v51 }
 0x596   : > { %4817 = vmatpush3.msra.mxu0 %v3011_v51 }
 0x598   : > { %3733 = vrot.lane.b32.xlu1 %v7093_v42, %s5380_s26  ;;  %v3010_v42 = vld [vmem:[#allocation14] sm:$0xff] }
 0x599   : > { %4818 = vmatprep.subr.mxu0 %v3010_v42 }
 0x59a   : > { %4819 = vmatpush3.msra.mxu0 %v3010_v42  ;;  %v2371_v42 = vsel %vm1169_vm0, %v2369_v56, %v2370_v55 }
 0x59c   : > { %3735 = vrot.lane.b32.xlu1 %v7096_v34, %s5380_s26  ;;  %v1795_v34 = vld [vmem:[#allocation3 + $0x100] sm:$0x3] }
 0x5a0   : > { %3737 = vrot.lane.b32.xlu1 %v7099_v3, %s5380_s26  ;;  %v5127_v3 = vld [vmem:[#allocation3 + $0x38] sm:$0xff] }
 0x5a1   : > { %v1842_v26 = vmul.f32 %v5127_v3, %v8060_v6 }
 0x5a4   : > { %3739 = vrot.lane.b32.xlu1 %v7104_v8, %s5380_s26  ;;  %v8058_v8 = vld [vmem:[#allocation26_spill] sm:$0xff] }
 0x5a5   : > { %v1894_v59 = vmul.f32 %v5127_v3, %v8058_v8  ;;  %v1896_v54 = vmul.f32 %v8058_v8, %v1795_v34  ;;  %v1898_v50 = vmul.f32 %v2200_v33, %v8058_v8  ;;  %v1902_v40 = vmul.f32 %v2608_v37, %v8058_v8 }
 0x5a6   : > { %v1904_v53 = vmul.f32 %v8058_v8, %v1803_v52 }
 0x5a7   : > { %v1963_v16 = vrot.slane %v1896_v54, 1  ;;  %v1968_v28 = vrot.slane %v1898_v50, 1  ;;  %v1974_v41 = vrot.slane %v1902_v40, 1  ;;  %v2376_v50 = vrot.slane %v2307_v19, 1 }
 0x5a8   : > { %3803 = vrot.lane.b32.xlu1 %v7131_v12, %s5380_s26  ;;  %v1962_v12 = vrot.slane %v1894_v59, 1  ;;  %v1975_v36 = vrot.slane %v1904_v53, 1 }
 0x5ac   : > { %3801 = vrot.lane.b32.xlu1 %v7134_v11, %s5380_s26  ;;  %v8059_v11 = vld [vmem:[#allocation27_spill] sm:$0xff] }
 0x5ad   : > { %v2056_v4 = vmul.f32 %v5127_v3, %v8059_v11  ;;  %v2060_v15 = vmul.f32 %v2200_v33, %v8059_v11  ;;  %v2062_v9 = vmul.f32 %v8059_v11, %v1799_v1  ;;  %v2064_v35 = vmul.f32 %v2608_v37, %v8059_v11 }
 0x5ae   : > { %v2066_v51 = vmul.f32 %v8059_v11, %v1803_v52  ;;  %v2532_v3 = vrot.slane %v2465_v48, 2  ;;  %v2210_v52 = vld [vmem:[#allocation3 + $0x98] sm:$0x3] }
 0x5af   : > { %v2124_v29 = vrot.slane %v2056_v4, 2  ;;  %v2130_v49 = vrot.slane %v2060_v15, 2  ;;  %v2131_v47 = vrot.slane %v2062_v9, 2  ;;  %v1976_v4 = vsel %vm1169_vm0, %v1974_v41, %v1975_v36  ;;  %v8065_v15 = vld [vmem:[#allocation40_spill] sm:$0xff] }
 0x5b0   : > { %3799 = vrot.lane.b32.xlu1 %v7137_v30, %s5380_s26  ;;  %v2058_v30 = vmul.f32 %v8059_v11, %v1795_v34  ;;  %v2531_v34 = vrot.slane %v2463_v21, 2  ;;  %v2657_v9 = vmul.f32 %v8065_v15, %v2608_v37 }
 0x5b1   : > { %v2132_v17 = vsel %vm1246_vm1, %v2130_v49, %v2131_v47 }
 0x5b2   : > { %v2125_v14 = vrot.slane %v2058_v30, 2  ;;  %v2375_v30 = vrot.slane %v2305_v62, 1  ;;  %v2533_v45 = vsel %vm1246_vm1, %v2531_v34, %v2532_v3 }
 0x5b4   : > { %3795 = vrot.lane.b32.xlu1 %v7140_v22, %s5380_s26  ;;  %v1900_v22 = vmul.f32 %v8058_v8, %v1799_v1  ;;  %v2126_v60 = vsel %vm1246_vm1, %v2124_v29, %v2125_v14  ;;  %v2251_v1 = vmul.f32 %v2608_v37, %v8062_v38  ;;  %v2136_v29 = vrot.slane %v2064_v35, 2 }
 0x5b5   : > { %v2137_v14 = vrot.slane %v2066_v51, 2  ;;  %v2377_v53 = vsel %vm1169_vm0, %v2375_v30, %v2376_v50  ;;  %v2473_v35 = vmul.f32 %v8063_v7, %v2210_v52 }
 0x5b6   : > { %v1969_v61 = vrot.slane %v1900_v22, 1  ;;  %v2467_v22 = vmul.f32 %v2608_v37, %v8063_v7 }
 0x5b7   : > { %v2138_v49 = vsel %vm1246_vm1, %v2136_v29, %v2137_v14  ;;  %v2544_v14 = vrot.slane %v2473_v35, 2 }
 0x5b8   : > { %3791 = vrot.lane.b32.xlu1 %v7143_v32, %s5380_s26  ;;  %v1964_v32 = vsel %vm1169_vm0, %v1962_v12, %v1963_v16  ;;  %v1970_v57 = vsel %vm1169_vm0, %v1968_v28, %v1969_v61  ;;  %v2610_v16 = vld [vmem:[#allocation3 + $0x20] sm:$0x3]  ;;  %v8064_v12 = vld [vmem:[#allocation35_spill] sm:$0xff]  ;;  %v7255_v28 = vld [vmem:[#allocation3 + $0x110] sm:$0xff] }
 0x5b9   : > { %v2020_v0 = vadd.f32 %v1964_v32, %v1842_v26  ;;  %v2022_v13 = vadd.f32 %v1970_v57, %v1844_v23  ;;  %v2709_v33 = vmul.f32 %v8064_v12, %v2608_v37  ;;  %v1846_v32 = vmul.f32 %v2608_v37, %v8060_v6 }
 0x5ba   : > { %v2469_v26 = vmul.f32 %v8063_v7, %v2206_v46  ;;  %v2537_v23 = vrot.slane %v2467_v22, 2  ;;  %v2309_v47 = vmul.f32 %v7255_v28, %v8061_v39  ;;  %v2311_v46 = vmul.f32 %v8061_v39, %v2210_v52 }
 0x5bb   : > { %v2182_v25 = vadd.f32 %v2126_v60, %v2020_v0  ;;  %v2184_v59 = vadd.f32 %v2132_v17, %v2022_v13  ;;  %v2711_v0 = vmul.f32 %v8064_v12, %v2610_v16  ;;  %v2024_v61 = vadd.f32 %v1976_v4, %v1846_v32  ;;  %v8066_v60 = vld [vmem:[#allocation36_spill] sm:$0xff]  ;;  %v7280_v32 = vld [vmem:[#allocation3 + $0x90] sm:$0xff] }
 0x5bc   : > { %v2871_v18 = vmul.f32 %v8066_v60, %v2608_v37  ;;  %v2777_v40 = vrot.slane %v2709_v33, 1  ;;  %v2538_v56 = vrot.slane %v2469_v26, 2  ;;  %v2713_v37 = vmul.f32 %v8064_v12, %v7255_v28  ;;  %v2618_v26 = vld [vmem:[#allocation3 + $0x88] sm:$0x3] }
 0x5bd   : > { %v2265_v27 = vadd.f32 %v2249_v44, %v2182_v25  ;;  %v2267_v20 = vadd.f32 %v2251_v1, %v2184_v59  ;;  %v2873_v25 = vmul.f32 %v8066_v60, %v2610_v16  ;;  %v2614_v44 = vld [vmem:[#allocation3 + $0x98] sm:$0x3]  ;;  %v2778_v55 = vrot.slane %v2711_v0, 1 }
 0x5be   : > { %v2186_v48 = vadd.f32 %v2138_v49, %v2024_v61  ;;  %v2939_v13 = vrot.slane %v2871_v18, 2  ;;  %v2875_v41 = vmul.f32 %v8066_v60, %v7255_v28  ;;  %v2877_v36 = vmul.f32 %v8066_v60, %v2614_v44  ;;  %v1807_v59 = vld [vmem:[#allocation3 + $0x98] sm:$0x3] }
 0x5bf   : > { %v2427_v54 = vadd.f32 %v2371_v42, %v2265_v27  ;;  %v2429_v21 = vadd.f32 %v2377_v53, %v2267_v20  ;;  %v2715_v27 = vmul.f32 %v8064_v12, %v2614_v44  ;;  %v2940_v62 = vrot.slane %v2873_v25, 2 }
 0x5c0   : > { %v2253_v19 = vmul.f32 %v7255_v28, %v8062_v38  ;;  %v2471_v17 = vmul.f32 %v7255_v28, %v8063_v7  ;;  %v2539_v42 = vsel %vm1246_vm1, %v2537_v23, %v2538_v56  ;;  %v2381_v34 = vrot.slane %v2309_v47, 1 }
 0x5c1   : > { %v2589_v57 = vadd.f32 %v2533_v45, %v2427_v54  ;;  %v2382_v3 = vrot.slane %v2311_v46, 1  ;;  %v2591_v16 = vadd.f32 %v2539_v42, %v2429_v21  ;;  %v2659_v33 = vmul.f32 %v8065_v15, %v7255_v28 }
 0x5c2   : > { %v2783_v1 = vrot.slane %v2713_v37, 1  ;;  %v2269_v4 = vadd.f32 %v2253_v19, %v2186_v48  ;;  %v2784_v30 = vrot.slane %v2715_v27, 1  ;;  %v2945_v50 = vrot.slane %v2875_v41, 2  ;;  %v2214_v48 = vld [vmem:[#allocation3 + $0x88] sm:$0x3] }
 0x5c3   : > { %v2673_v51 = vadd.f32 %v2657_v9, %v2589_v57  ;;  %v2946_v22 = vrot.slane %v2877_v36, 2  ;;  %v2543_v29 = vrot.slane %v2471_v17, 2  ;;  %v1906_v0 = vmul.f32 %v7255_v28, %v8058_v8 }
 0x5c4   : > { %v1908_v20 = vmul.f32 %v8058_v8, %v1807_v59  ;;  %v2779_v61 = vsel %vm1169_vm0, %v2777_v40, %v2778_v55  ;;  %v2383_v52 = vsel %vm1169_vm0, %v2381_v34, %v2382_v3  ;;  %v2675_v9 = vadd.f32 %v2659_v33, %v2591_v16 }
 0x5c5   : > { %v2431_v18 = vadd.f32 %v2383_v52, %v2269_v4  ;;  %v2717_v25 = vmul.f32 %v8064_v12, %v7280_v32  ;;  %v2719_v57 = vmul.f32 %v8064_v12, %v2618_v26  ;;  %v2835_v53 = vadd.f32 %v2779_v61, %v2673_v51 }
 0x5c6   : > { %v2941_v23 = vsel %vm1246_vm1, %v2939_v13, %v2940_v62  ;;  %v2785_v44 = vsel %vm1169_vm0, %v2783_v1, %v2784_v30  ;;  %v2947_v56 = vsel %vm1246_vm1, %v2945_v50, %v2946_v22  ;;  %v2545_v40 = vsel %vm1246_vm1, %v2543_v29, %v2544_v14  ;;  %v7316_v29 = vld [vmem:[#allocation3 + $0x118] sm:$0xff] }
 0x5c7   : > { %v1980_v49 = vrot.slane %v1906_v0, 1  ;;  %v1981_v47 = vrot.slane %v1908_v20, 1  ;;  %v2879_v46 = vmul.f32 %v8066_v60, %v7280_v32  ;;  %v2881_v55 = vmul.f32 %v8066_v60, %v2618_v26  ;;  %v1815_v20 = vld [vmem:[#allocation3 + $0xa0] sm:$0x3] }
 0x5c8   : > { %v2068_v21 = vmul.f32 %v7255_v28, %v8059_v11  ;;  %v2070_v37 = vmul.f32 %v8059_v11, %v1807_v59  ;;  %v2837_v27 = vadd.f32 %v2785_v44, %v2675_v9  ;;  %v2593_v41 = vadd.f32 %v2545_v40, %v2431_v18  ;;  %v1811_v59 = vld [vmem:[#allocation3 + $0x88] sm:$0x3]  ;;  %v2622_v44 = vld [vmem:[#allocation3 + $0xa0] sm:$0x3] }
 0x5c9   : > { %v2789_v36 = vrot.slane %v2717_v25, 1  ;;  %v2790_v62 = vrot.slane %v2719_v57, 1  ;;  %v2661_v19 = vmul.f32 %v8065_v15, %v7280_v32  ;;  %v1848_v17 = vmul.f32 %v7255_v28, %v8060_v6 }
 0x5ca   : > { %v2313_v35 = vmul.f32 %v7280_v32, %v8061_v39  ;;  %v1982_v51 = vsel %vm1169_vm0, %v1980_v49, %v1981_v47  ;;  %v2315_v42 = vmul.f32 %v8061_v39, %v2214_v48  ;;  %v2475_v34 = vmul.f32 %v7280_v32, %v8063_v7 }
 0x5cb   : > { %v2477_v3 = vmul.f32 %v8063_v7, %v2214_v48  ;;  %v2952_v16 = vrot.slane %v2881_v55, 2  ;;  %v2142_v33 = vrot.slane %v2068_v21, 2  ;;  %v2143_v1 = vrot.slane %v2070_v37, 2  ;;  %v7338_v37 = vld [vmem:[#allocation3 + $0x130] sm:$0xff]  ;;  %v1819_v48 = vld [vmem:[#allocation3 + $0xe8] sm:$0x3] }
 0x5cc   : > { %v7311_v30 = vadd.f32 %v2941_v23, %v2835_v53  ;;  %v7313_v28 = vadd.f32 %v2947_v56, %v2837_v27  ;;  %v2677_v50 = vadd.f32 %v2661_v19, %v2593_v41  ;;  %v2791_v22 = vsel %vm1169_vm0, %v2789_v36, %v2790_v62 }
 0x5cd   : > { %v2026_v26 = vadd.f32 %v1982_v51, %v1848_v17  ;;  %v1910_v14 = vmul.f32 %v7280_v32, %v8058_v8  ;;  %v1912_v0 = vmul.f32 %v8058_v8, %v1811_v59  ;;  %v2387_v52 = vrot.slane %v2313_v35, 1 }
 0x5ce   : > { %v2549_v9 = vrot.slane %v2475_v34, 2  ;;  %v2550_v18 = vrot.slane %v2477_v3, 2  ;;  %v2144_v53 = vsel %vm1246_vm1, %v2142_v33, %v2143_v1  ;;  %v2255_v23 = vmul.f32 %v7280_v32, %v8062_v38 }
 0x5cf   : > { %v7328_v40 = vadd.f32 %v2791_v22, %v2677_v50  ;;  %v7332_v49 = vmul.f32 %v8065_v15, %v7316_v29  ;;  %v1914_v47 = vmul.f32 %v7316_v29, %v8058_v8  ;;  %v1986_v55 = vrot.slane %v1910_v14, 1 }
 0x5d0   : > { %v1987_v21 = vrot.slane %v1912_v0, 1  ;;  %v7343_v41 = vsel %vm1246_vm1, %v2549_v9, %v2550_v18  ;;  %v7347_v36 = vmul.f32 %v8064_v12, %v7316_v29  ;;  %v7350_v62 = vmul.f32 %v8064_v12, %v2622_v44  ;;  %v2218_v9 = vld [vmem:[#allocation3 + $0xa0] sm:$0x3] }
 0x5d1   : > { %v7355_v17 = vmul.f32 %v8066_v60, %v7316_v29  ;;  %v2072_v35 = vmul.f32 %v7280_v32, %v8059_v11  ;;  %v2074_v51 = vmul.f32 %v8059_v11, %v1811_v59  ;;  %v1992_v34 = vrot.slane %v1914_v47, 1  ;;  %v2222_v47 = vld [vmem:[#allocation3 + $0xe8] sm:$0x3] }
 0x5d2   : > { %v7365_v33 = vmul.f32 %v8066_v60, %v2622_v44  ;;  %v1988_v1 = vsel %vm1169_vm0, %v1986_v55, %v1987_v21  ;;  %v2795_v59 = vrot.slane %v7347_v36, 1  ;;  %v1850_v50 = vmul.f32 %v7280_v32, %v8060_v6  ;;  %v2630_v36 = vld [vmem:[#allocation3 + $0x40] sm:$0x3] }
 0x5d3   : > { %v2078_v22 = vmul.f32 %v8059_v11, %v1815_v20  ;;  %v2796_v14 = vrot.slane %v7350_v62, 1  ;;  %v2148_v0 = vrot.slane %v2072_v35, 2  ;;  %v2957_v32 = vrot.slane %v7355_v17, 2 }
 0x5e8   : > { %v3347_v54 = vpop.xlane.xlu1 %3346 }
 0x5e9   : > { %5073 = vrcp.f32 %v3347_v54  ;;  %v2951_v54 = vrot.slane %v2879_v46, 2  ;;  %v2188_v46 = vadd.f32 %v2144_v53, %v2026_v26 }
 0x5eb   : > { %v7323_v57 = vsel %vm1246_vm1, %v2951_v54, %v2952_v16  ;;  %v1918_v54 = vmul.f32 %v7338_v37, %v8058_v8  ;;  %v1920_v16 = vmul.f32 %v8058_v8, %v1819_v48 }
 0x5ec   : > { %v3344_v45 = vpop.xlane.xlu1 %3343 }
 0x5ed   : > { %5075 = vrcp.f32 %v3344_v45  ;;  %v2388_v45 = vrot.slane %v2315_v42, 1  ;;  %v1999_v53 = vrot.slane %v1920_v16, 1 }
 0x5ef   : > { %v2389_v27 = vsel %vm1169_vm0, %v2387_v52, %v2388_v45  ;;  %v2028_v45 = vadd.f32 %v1988_v1, %v1850_v50 }
 0x5f0   : > { %v3341_v13 = vpop.xlane.xlu1 %3340 }
 0x5f1   : > { %5077 = vrcp.f32 %v3341_v13 }
 0x5f4   : > { %v3338_v4 = vpop.xlane.xlu1 %3337 }
 0x5f5   : > { %5079 = vrcp.f32 %v3338_v4 }
 0x5f6   : > { %v5074_v61 = vpop.eup %5073 }
 0x5f7   : > { %v3363_v25 = vmul.f32 %v5074_v61, %v7166_v5  ;;  %v1916_v5 = vmul.f32 %v8058_v8, %v1815_v20  ;;  %v2076_v8 = vmul.f32 %v7316_v29, %v8059_v11  ;;  %v2149_v61 = vrot.slane %v2074_v51, 2 }
 0x5f8   : > { %v3335_v56 = vpop.xlane.xlu1 %3334  ;;  %v2317_v20 = vmul.f32 %v7316_v29, %v8061_v39 }
 0x5f9   : > { %5081 = vrcp.f32 %v3335_v56  ;;  %4776 = vmatprep.subr.msk.mxu1 %vm3034_vm2, %v3363_v25  ;;  %v1993_v3 = vrot.slane %v1916_v5, 1  ;;  %v2154_v44 = vrot.slane %v2076_v8, 2  ;;  %v2155_v56 = vrot.slane %v2078_v22, 2  ;;  %v7403_v22 = vld [vmem:[#allocation3 + $0x78] sm:$0xff] }
 0x5fa   : > { %v5076_v13 = vpop.eup %5075  ;;  %4777 = vmatpush3.xpose.msk.msra.mxu1 %vm3034_vm2, %v3363_v25  ;;  %v1998_v25 = vrot.slane %v1918_v54, 1  ;;  %v2080_v5 = vmul.f32 %v7338_v37, %v8059_v11  ;;  %v2150_v21 = vsel %vm1246_vm1, %v2148_v0, %v2149_v61  ;;  %v2226_v0 = vld [vmem:[#allocation3 + $0x40] sm:$0x3] }
 0x5fb   : > { %v3362_v19 = vmul.f32 %v5076_v13, %v7170_v24  ;;  %v2271_v24 = vadd.f32 %v2255_v23, %v2188_v46  ;;  %v1994_v18 = vsel %vm1169_vm0, %v1992_v34, %v1993_v3  ;;  %v2082_v46 = vmul.f32 %v8059_v11, %v1819_v48 }
 0x5fc   : > { %v3332_v42 = vpop.xlane.xlu1 %3331  ;;  %v2319_v13 = vmul.f32 %v8061_v39, %v2218_v9  ;;  %v2257_v34 = vmul.f32 %v7316_v29, %v8062_v38  ;;  %v2000_v3 = vsel %vm1169_vm0, %v1998_v25, %v1999_v53  ;;  %v2321_v11 = vmul.f32 %v7338_v37, %v8061_v39 }
 0x5fd   : > { %5083 = vrcp.f32 %v3332_v42  ;;  %4778 = vmatprep.subr.msk.mxu1 %vm3034_vm2, %v3362_v19  ;;  %v2433_v51 = vadd.f32 %v2389_v27, %v2271_v24  ;;  %v2190_v42 = vadd.f32 %v2150_v21, %v2028_v45  ;;  %v1854_v48 = vmul.f32 %v7338_v37, %v8060_v6  ;;  %v3728_v21 = vpop.permute.xlu0 %3727 }
 0x5fe   : > { %v5078_v4 = vpop.eup %5077  ;;  %4779 = vmatpush3.xpose.msk.msra.mxu1 %vm3034_vm2, %v3362_v19  ;;  %v2393_v27 = vrot.slane %v2317_v20, 1  ;;  %v2156_v16 = vsel %vm1246_vm1, %v2154_v44, %v2155_v56  ;;  %v2160_v24 = vrot.slane %v2080_v5, 2  ;;  %v2161_v1 = vrot.slane %v2082_v46, 2 }
 0x5ff   : > { %v3361_v26 = vmul.f32 %v5078_v4, %v7174_v31  ;;  %v1852_v31 = vmul.f32 %v7316_v29, %v8060_v6  ;;  %v2394_v50 = vrot.slane %v2319_v13, 1  ;;  %v2479_v6 = vmul.f32 %v7316_v29, %v8063_v7 }
 0x600   : > { %v3329_v52 = vpop.xlane.xlu1 %3328  ;;  %v2481_v45 = vmul.f32 %v8063_v7, %v2218_v9  ;;  %v2483_v53 = vmul.f32 %v7338_v37, %v8063_v7  ;;  %v2485_v20 = vmul.f32 %v8063_v7, %v2222_v47  ;;  %v2595_v29 = vadd.f32 %v7343_v41, %v2433_v51 }
 0x601   : > { %5085 = vrcp.f32 %v3329_v52  ;;  %4780 = vmatprep.subr.msk.mxu1 %vm3034_vm2, %v3361_v26  ;;  %v2030_v19 = vadd.f32 %v1994_v18, %v1852_v31  ;;  %v2273_v52 = vadd.f32 %v2257_v34, %v2190_v42  ;;  %v2259_v18 = vmul.f32 %v7338_v37, %v8062_v38 }
 0x602   : > { %v5080_v23 = vpop.eup %5079  ;;  %4781 = vmatpush3.xpose.msk.msra.mxu1 %vm3034_vm2, %v3361_v26  ;;  %v2032_v26 = vadd.f32 %v2000_v3, %v1854_v48  ;;  %v2162_v9 = vsel %vm1246_vm1, %v2160_v24, %v2161_v1  ;;  %v2327_v44 = vmul.f32 %v8061_v39, %v2226_v0  ;;  %v2395_v5 = vsel %vm1169_vm0, %v2393_v27, %v2394_v50 }
 0x603   : > { %v3360_v55 = vmul.f32 %v5080_v23, %v7178_v63  ;;  %v2323_v63 = vmul.f32 %v8061_v39, %v2222_v47  ;;  %v2192_v8 = vadd.f32 %v2156_v16, %v2030_v19  ;;  %v2325_v23 = vmul.f32 %v7403_v22, %v8061_v39  ;;  %v2626_v39 = vld [vmem:[#allocation3 + $0xe8] sm:$0x3] }
 0x604   : > { %v3326_v35 = vpop.xlane.xlu1 %3325  ;;  %v2797_v41 = vsel %vm1169_vm0, %v2795_v59, %v2796_v14  ;;  %v2435_v13 = vadd.f32 %v2395_v5, %v2273_v52  ;;  %v2555_v19 = vrot.slane %v2479_v6, 2  ;;  %v2561_v51 = vrot.slane %v2483_v53, 2 }
 0x605   : > { %5087 = vrcp.f32 %v3326_v35  ;;  %4782 = vmatprep.subr.msk.mxu1 %vm3034_vm2, %v3360_v55  ;;  %v2400_v25 = vrot.slane %v2323_v63, 1  ;;  %v2275_v46 = vadd.f32 %v2259_v18, %v2192_v8  ;;  %v2556_v35 = vrot.slane %v2481_v45, 2  ;;  %v2634_v8 = vld [vmem:[#allocation3 + $0x60] sm:$0x3] }
 0x606   : > { %v5082_v54 = vpop.eup %5081  ;;  %4783 = vmatpush3.xpose.msk.msra.mxu1 %vm3034_vm2, %v3360_v55  ;;  %v2194_v55 = vadd.f32 %v2162_v9, %v2032_v26  ;;  %v2562_v42 = vrot.slane %v2485_v20, 2  ;;  %v2261_v34 = vmul.f32 %v7403_v22, %v8062_v38  ;;  %v2405_v62 = vrot.slane %v2325_v23, 1 }
 0x607   : > { %v3359_v4 = vmul.f32 %v5082_v54, %v7182_v58  ;;  %v2399_v58 = vrot.slane %v2321_v11, 1  ;;  %v2406_v59 = vrot.slane %v2327_v44, 1  ;;  %v2487_v14 = vmul.f32 %v7403_v22, %v8063_v7 }
 0x608   : > { %v3726_v61 = vpop.permute.xlu1 %3725  ;;  %v2489_v11 = vmul.f32 %v8063_v7, %v2226_v0  ;;  %v2679_v48 = vadd.f32 %v7332_v49, %v2595_v29  ;;  %v2277_v27 = vadd.f32 %v2261_v34, %v2194_v55  ;;  %v2557_v38 = vsel %vm1246_vm1, %v2555_v19, %v2556_v35 }
 0x609   : > { %4784 = vmatprep.subr.msk.mxu1 %vm3034_vm2, %v3359_v4  ;;  %3749 = vxpose.xlu1.b32.start [1/8] (short) (narrow) %v3726_v61, 64  ;;  %v2665_v24 = vmul.f32 %v8065_v15, %v7338_v37  ;;  %v2725_v1 = vmul.f32 %v8064_v12, %v7338_v37  ;;  %v2597_v7 = vadd.f32 %v2557_v38, %v2435_v13  ;;  %v2567_v52 = vrot.slane %v2487_v14, 2 }
 0x60a   : > { %v5084_v31 = vpop.eup %5083  ;;  %4785 = vmatpush3.xpose.msk.msra.mxu1 %vm3034_vm2, %v3359_v4  ;;  %v2727_v4 = vmul.f32 %v8064_v12, %v2626_v39  ;;  %v2729_v49 = vmul.f32 %v8064_v12, %v7403_v22  ;;  %v2731_v50 = vmul.f32 %v8064_v12, %v2630_v36  ;;  %v2563_v0 = vsel %vm1246_vm1, %v2561_v51, %v2562_v42 }
 0x60b   : > { %v3358_v56 = vmul.f32 %v5084_v31, %v7186_v2  ;;  %v2401_v2 = vsel %vm1169_vm0, %v2399_v58, %v2400_v25  ;;  %v2407_v61 = vsel %vm1169_vm0, %v2405_v62, %v2406_v59  ;;  %v2568_v6 = vrot.slane %v2489_v11, 2  ;;  %v5128_v31 = vld [vmem:[#allocation2] sm:$0xff] }
 0x60c   : > { %v3730_v47 = vpop.permute.xlu1 %3729  ;;  %v2437_v54 = vadd.f32 %v2401_v2, %v2275_v46  ;;  %v2841_v18 = vadd.f32 %v2797_v41, %v2679_v48  ;;  %v2439_v58 = vadd.f32 %v2407_v61, %v2277_v27  ;;  %v2887_v53 = vmul.f32 %v8066_v60, %v7338_v37 }
 0x60d   : > { %4786 = vmatprep.subr.msk.mxu1 %vm3034_vm2, %v3358_v56  ;;  %3750 = vxpose.xlu1.b32.cont [2/8] (short) (narrow) %v3728_v21, 64  ;;  %v2889_v20 = vmul.f32 %v8066_v60, %v2626_v39  ;;  %v2733_v29 = vmul.f32 %v5128_v31, %v8064_v12  ;;  %v2735_v9 = vmul.f32 %v8064_v12, %v2634_v8  ;;  %v2801_v44 = vrot.slane %v2725_v1, 1 }
 0x60e   : > { %v5086_v3 = vpop.eup %5085  ;;  %4787 = vmatpush3.xpose.msk.msra.mxu1 %vm3034_vm2, %v3358_v56  ;;  %v2681_v23 = vadd.f32 %v2665_v24, %v2597_v7  ;;  %v2667_v56 = vmul.f32 %v8065_v15, %v7403_v22  ;;  %v2807_v5 = vrot.slane %v2729_v49, 1  ;;  %v2808_v37 = vrot.slane %v2731_v50, 1 }
 0x60f   : > { %v3357_v63 = vmul.f32 %v5086_v3, %v7190_v43  ;;  %v2958_v43 = vrot.slane %v7365_v33, 2  ;;  %v2599_v33 = vadd.f32 %v2563_v0, %v2437_v54  ;;  %v2891_v46 = vmul.f32 %v8066_v60, %v7403_v22 }
 0x610   : > { %v3732_v16 = vpop.permute.xlu1 %3731  ;;  %v2569_v55 = vsel %vm1246_vm1, %v2567_v52, %v2568_v6  ;;  %v2893_v12 = vmul.f32 %v8066_v60, %v2630_v36  ;;  %v2669_v41 = vmul.f32 %v5128_v31, %v8065_v15  ;;  %v2813_v19 = vrot.slane %v2733_v29, 1 }
 0x611   : > { %4788 = vmatprep.subr.msk.mxu1 %vm3034_vm2, %v3357_v63  ;;  %3751 = vxpose.xlu1.b32.cont [3/8] (short) (narrow) %v3730_v47, 64  ;;  %v2683_v21 = vadd.f32 %v2667_v56, %v2599_v33  ;;  %v2601_v47 = vadd.f32 %v2569_v55, %v2439_v58  ;;  %v2814_v35 = vrot.slane %v2735_v9, 1  ;;  %v2895_v39 = vmul.f32 %v5128_v31, %v8066_v60 }
 0x612   : > { %v5088_v26 = vpop.eup %5087  ;;  %4789 = vmatpush3.xpose.msk.msra.mxu1 %vm3034_vm2, %v3357_v63  ;;  %v2897_v2 = vmul.f32 %v8066_v60, %v2634_v8  ;;  %v7472_v22 = vadd.f32 %v7323_v57, %v7328_v40  ;;  %v2959_v51 = vsel %vm1246_vm1, %v2957_v32, %v2958_v43  ;;  %v2963_v34 = vrot.slane %v2887_v53, 2 }
 0x613   : > { %v3356_v45 = vmul.f32 %v5088_v26, %v7194_v10  ;;  %v2802_v10 = vrot.slane %v2727_v4, 1  ;;  %v7480_v42 = vadd.f32 %v2959_v51, %v2841_v18  ;;  %v2964_v3 = vrot.slane %v2889_v20, 2 }
 0x614   : > { %v3734_v25 = vpop.permute.xlu1 %3733  ;;  %v2809_v36 = vsel %vm1169_vm0, %v2807_v5, %v2808_v37  ;;  %v2969_v62 = vrot.slane %v2891_v46, 2  ;;  %v2970_v59 = vrot.slane %v2893_v12, 2  ;;  %v2685_v57 = vadd.f32 %v2669_v41, %v2601_v47 }
 0x615   : > { %4790 = vmatprep.subr.msk.mxu1 %vm3034_vm2, %v3356_v45  ;;  %3752 = vxpose.xlu1.b32.cont [4/8] (short) (narrow) %v3732_v16, 64  ;;  %v2803_v15 = vsel %vm1169_vm0, %v2801_v44, %v2802_v10  ;;  %v2845_v14 = vadd.f32 %v2809_v36, %v2683_v21  ;;  %v2815_v17 = vsel %vm1169_vm0, %v2813_v19, %v2814_v35  ;;  %v2975_v32 = vrot.slane %v2895_v39, 2 }
 0x616   : > { %4791 = vmatpush3.xpose.msk.msra.mxu1 %vm3034_vm2, %v3356_v45  ;;  %v2843_v60 = vadd.f32 %v2803_v15, %v2681_v23  ;;  %v2976_v11 = vrot.slane %v2897_v2, 2  ;;  %v2965_v63 = vsel %vm1246_vm1, %v2963_v34, %v2964_v3  ;;  %v2971_v54 = vsel %vm1246_vm1, %v2969_v62, %v2970_v59  ;;  %v3798_v45 = vpop.permute.xlu0 %3797 }
 0x617   : > { %v2847_v27 = vadd.f32 %v2815_v17, %v2685_v57  ;;  %v7492_v38 = vadd.f32 %v2971_v54, %v2845_v14  ;;  %v3943_v51 = vstv %s4554_s28 }
 0x618   : > { %v3736_v13 = vpop.permute.xlu1 %3735  ;;  %v7489_v48 = vadd.f32 %v2965_v63, %v2843_v60  ;;  %v2977_v24 = vsel %vm1246_vm1, %v2975_v32, %v2976_v11 }
 0x619   : > { %4793 = vmatmul.mubr.msk.f32.vlgmr.msra.gmra.mxu1 %vm3034_vm2, %v7311_v30  ;;  %3753 = vxpose.xlu1.b32.cont [5/8] (short) (narrow) %v3734_v25, 64  ;;  %v7499_v1 = vadd.f32 %v2977_v24, %v2847_v27 }
 0x61a   : > { %4795 = vmatprep.mubr.msk.f32.mxu1 %vm3034_vm2, %v7313_v28  ;;  %v3794_v53 = vpop.permute.xlu0 %3793 }
 0x61c   : > { %v3738_v40 = vpop.permute.xlu1 %3737 }
 0x61d   : > { %4796 = vmatmul.mubr.msk.f32.gmra.mxu1 %vm3034_vm2, %v7472_v22  ;;  %3754 = vxpose.xlu1.b32.cont [6/8] (short) (narrow) %v3736_v13, 64 }
 0x61e   : > { %4798 = vmatprep.mubr.msk.f32.mxu1 %vm3034_vm2, %v7480_v42  ;;  %v3790_v9 = vpop.permute.xlu0 %3789 }
 0x620   : > { %v3740_v16 = vpop.permute.xlu1 %3739 }
 0x621   : > { %4799 = vmatmul.mubr.msk.f32.gmra.mxu1 %vm3034_vm2, %v7489_v48  ;;  %3755 = vxpose.xlu1.b32.cont [7/8] (short) (narrow) %v3738_v40, 64 }
 0x622   : > { %4801 = vmatprep.mubr.msk.f32.mxu1 %vm3034_vm2, %v7492_v38 }
 0x624   : > { %v3804_v4 = vpop.permute.xlu1 %3803 }
 0x625   : > { %4802 = vmatmul.mubr.msk.f32.gmra.mxu1 %vm3034_vm2, %v7499_v1  ;;  %4832 = vmatprep.subr.mxu0 %v3804_v4 }
 0x626   : > { %3756 = vxpose.xlu1.b32.end [8/8] (short) (narrow) %v3740_v16, 64 }
 0x628   : > { %v3802_v43 = vpop.permute.xlu1 %3801 }
 0x62c   : > { %v3800_v7 = vpop.permute.xlu1 %3799 }
 0x630   : > { %v3796_v49 = vpop.permute.xlu1 %3795 }
 0x634   : > { %v3792_v50 = vpop.permute.xlu1 %3791 }
 0x686   : > { %v3765_v8 = vpop.trf.xlu1 }
 0x68a   : > { %v3766_v26 = vpop.trf.xlu1 }
 0x68e   : > { %v3767_v0 = vpop.trf.xlu1 }
 0x692   : > { %v3768_v18 = vpop.trf.xlu1 }
 0x696   : > { %v3769_v20 = vpop.trf.xlu1 }
 0x69a   : > { %v3770_v23 = vpop.trf.xlu1 }
 0x69e   : > { %v3771_v44 = vpop.trf.xlu1 }
 0x6a2   : > { %v3772_v10 = vpop.trf.xlu1 }
 0x6d9   : > { %v4794_v61 = vpop.f32.mrf.mxu1 }
 0x6db   : > { %v3478_v52 = vpop.f32.mrf.mxu1 }
 0x6dc   : > { %4820 = vmatprep.mubr.msk.f32.mxu0 %vm3034_vm2, %v3478_v52 }
 0x6dd   : > { %v4797_v6 = vpop.f32.mrf.mxu1  ;;  %4821 = vmatmul.mubr.msk.f32.vlgmr.msra.gmra.mxu0 %vm3034_vm2, %v4794_v61 }
 0x6de   : > { %4833 = vmatpush3.msra.mxu0 %v3804_v4 }
 0x6df   : > { %4834 = vmatprep.subr.mxu0 %v3802_v43  ;;  %v3488_v33 = vpop.f32.mrf.mxu1 }
 0x6e0   : > { %4835 = vmatpush3.msra.mxu0 %v3802_v43  ;;  %4823 = vmatprep.mubr.msk.f32.mxu0 %vm3034_vm2, %v3488_v33 }
 0x6e1   : > { %4836 = vmatprep.subr.mxu0 %v3800_v7  ;;  %v4800_v58 = vpop.f32.mrf.mxu1  ;;  %4824 = vmatmul.mubr.msk.f32.gmra.mxu0 %vm3034_vm2, %v4797_v6 }
 0x6e2   : > { %4837 = vmatpush3.msra.mxu0 %v3800_v7 }
 0x6e3   : > { %4838 = vmatprep.subr.mxu0 %v3798_v45  ;;  %v3498_v25 = vpop.f32.mrf.mxu1 }
 0x6e4   : > { %4839 = vmatpush3.msra.mxu0 %v3798_v45  ;;  %4826 = vmatprep.mubr.msk.f32.mxu0 %vm3034_vm2, %v3498_v25 }
 0x6e5   : > { %4840 = vmatprep.subr.mxu0 %v3796_v49  ;;  %v4803_v31 = vpop.f32.mrf.mxu1  ;;  %4827 = vmatmul.mubr.msk.f32.gmra.mxu0 %vm3034_vm2, %v4800_v58 }
 0x6e6   : > { %4841 = vmatpush3.msra.mxu0 %v3796_v49 }
 0x6e7   : > { %4842 = vmatprep.subr.mxu0 %v3794_v53  ;;  %v3508_v29 = vpop.f32.mrf.mxu1 }
 0x6e8   : > { %4843 = vmatpush3.msra.mxu0 %v3794_v53  ;;  %4829 = vmatprep.mubr.msk.f32.mxu0 %vm3034_vm2, %v3508_v29 }
 0x6e9   : > { %4844 = vmatprep.subr.mxu0 %v3792_v50  ;;  %4830 = vmatmul.mubr.msk.f32.gmra.mxu0 %vm3034_vm2, %v4803_v31 }
 0x6ea   : > { %4845 = vmatpush3.msra.mxu0 %v3792_v50  ;;  %4848 = vmatprep.mubr.msk.f32.mxu0 %vm3034_vm2, %v3765_v8 }
 0x6eb   : > { %4846 = vmatprep.subr.mxu0 %v3790_v9 }
 0x6ec   : > { %4847 = vmatpush3.msra.mxu0 %v3790_v9 }
 0x6ed   : > { %4849 = vmatmul.mubr.msk.f32.vlgmr.msra.gmra.mxu0 %vm3034_vm2, %v3766_v26 }
 0x6ee   : > { %4851 = vmatprep.mubr.msk.f32.mxu0 %vm3034_vm2, %v3767_v0 }
 0x6f1   : > { %4852 = vmatmul.mubr.msk.f32.gmra.mxu0 %vm3034_vm2, %v3768_v18 }
 0x6f2   : > { %4854 = vmatprep.mubr.msk.f32.mxu0 %vm3034_vm2, %v3769_v20 }
 0x6f5   : > { %4855 = vmatmul.mubr.msk.f32.gmra.mxu0 %vm3034_vm2, %v3770_v23 }
 0x6f6   : > { %4857 = vmatprep.mubr.msk.f32.mxu0 %vm3034_vm2, %v3771_v44 }
 0x6f9   : > { %4858 = vmatmul.mubr.msk.f32.gmra.mxu0 %vm3034_vm2, %v3772_v10 }
 0x79d   : > { %v7519_v56 = vpop.f32.mrf.mxu0 }
 0x79f   : > { %v7521_v5 = vpop.f32.mrf.mxu0 }
 0x7a1   : > { %v7523_v37 = vpop.f32.mrf.mxu0 }
 0x7a3   : > { %v7525_v46 = vpop.f32.mrf.mxu0 }
 0x7a5   : > { %v7527_v55 = vpop.f32.mrf.mxu0 }
 0x7a7   : > { %v7529_v21 = vpop.f32.mrf.mxu0 }
 0x7a9   : > { %v7531_v12 = vpop.f32.mrf.mxu0 }
 0x7ab   : > { %v7533_v47 = vpop.f32.mrf.mxu0 }
 0x7ad   : > { %v4850_v41 = vpop.f32.mrf.mxu0 }
 0x7ae   : > { %v3945_v63 = vmul.f32 %v4850_v41, %v3943_v51 }
 0x7af   : > { %v3903_v13 = vpop.f32.mrf.mxu0 }
 0x7b0   : > { %v3944_v27 = vmul.f32 %v3943_v51, %v3903_v13  ;;  %v3955_v16 = vsel %vm3034_vm2, %v3945_v63, -inf }
 0x7b1   : > { %v4853_v19 = vpop.f32.mrf.mxu0 }
 0x7b2   : > { %v3947_v14 = vmul.f32 %v4853_v19, %v3943_v51  ;;  %v3952_v24 = vsel %vm3034_vm2, %v3944_v27, -inf }
 0x7b3   : > { %v3913_v35 = vpop.f32.mrf.mxu0 }
 0x7b4   : > { %v3946_v32 = vmul.f32 %v3943_v51, %v3913_v35  ;;  %v3961_v11 = vsel %vm3034_vm2, %v3947_v14, -inf }
 0x7b5   : > { %v4856_v39 = vpop.f32.mrf.mxu0 }
 0x7b6   : > { %v3949_v62 = vmul.f32 %v4856_v39, %v3943_v51  ;;  %v3958_v54 = vsel %vm3034_vm2, %v3946_v32, -inf }
 0x7b7   : > { %v3923_v2 = vpop.f32.mrf.mxu0 }
 0x7b8   : > { %v3948_v57 = vmul.f32 %v3943_v51, %v3923_v2  ;;  %v3967_v40 = vsel %vm3034_vm2, %v3949_v62, -inf }
 0x7b9   : > { %v4859_v15 = vpop.f32.mrf.mxu0 }
 0x7ba   : > { %v3951_v60 = vmul.f32 %v4859_v15, %v3943_v51  ;;  %v3964_v17 = vsel %vm3034_vm2, %v3948_v57, -inf }
 0x7bb   : > { %v3933_v34 = vpop.f32.mrf.mxu0 }
 0x7bc   : > { %v3950_v3 = vmul.f32 %v3943_v51, %v3933_v34  ;;  %v3973_v36 = vsel %vm3034_vm2, %v3951_v60, -inf }
 0x7bd   : > { %3974 = vmax.xlane.f32.xlu0 %v3973_v36 }
 0x7be   : > { %v3970_v59 = vsel %vm3034_vm2, %v3950_v3, -inf }
 0x7c1   : > { %3971 = vmax.xlane.f32.xlu0 %v3970_v59 }
 0x7c5   : > { %3968 = vmax.xlane.f32.xlu0 %v3967_v40 }
 0x7c9   : > { %3965 = vmax.xlane.f32.xlu0 %v3964_v17  ;;  %v3023_v17 = vld [vmem:[#allocation14 + $0x68] sm:$0xff] }
 0x7cd   : > { %3962 = vmax.xlane.f32.xlu0 %v3961_v11 }
 0x7d1   : > { %3959 = vmax.xlane.f32.xlu0 %v3958_v54 }
 0x7d5   : > { %3956 = vmax.xlane.f32.xlu0 %v3955_v16 }
 0x7d9   : > { %3953 = vmax.xlane.f32.xlu0 %v3952_v24 }
 0x846   : > { %v3975_v4 = vpop.xlane.xlu0 %3974 }
 0x847   : > { %v3983_v43 = vsub.f32 %v3951_v60, %v3975_v4 }
 0x849   : > { %v3998_v7 = vmul.f32 1.442695, %v3983_v43 }
 0x84a   : > { %v3972_v49 = vpop.xlane.xlu0 %3971 }
 0x84b   : > { %5089 = vpow2.f32 %v3998_v7  ;;  %v3982_v50 = vsub.f32 %v3950_v3, %v3972_v49 }
 0x84d   : > { %v3996_v8 = vmul.f32 1.442695, %v3982_v50 }
 0x84e   : > { %v3969_v26 = vpop.xlane.xlu0 %3968 }
 0x84f   : > { %5091 = vpow2.f32 %v3996_v8  ;;  %v3981_v0 = vsub.f32 %v3949_v62, %v3969_v26 }
 0x851   : > { %v3994_v61 = vmul.f32 1.442695, %v3981_v0 }
 0x852   : > { %v3966_v52 = vpop.xlane.xlu0 %3965 }
 0x853   : > { %5093 = vpow2.f32 %v3994_v61  ;;  %v3980_v6 = vsub.f32 %v3948_v57, %v3966_v52 }
 0x855   : > { %v3992_v45 = vmul.f32 1.442695, %v3980_v6 }
 0x856   : > { %v3963_v18 = vpop.xlane.xlu0 %3962 }
 0x857   : > { %5095 = vpow2.f32 %v3992_v45  ;;  %v3979_v33 = vsub.f32 %v3947_v14, %v3963_v18  ;;  %v8067_v14 = vld [vmem:[#allocation63_spill] sm:$0xff] }
 0x858   : > { %v7543_v58 = vpop.eup %5089 }
 0x859   : > { %v3990_v25 = vmul.f32 1.442695, %v3979_v33  ;;  %v4021_v53 = vsel %vm3034_vm2, %v7543_v58, 0.0 }
 0x85a   : > { %4022 = vadd.xlane.f32.xlu0 %v4021_v53  ;;  %v3960_v20 = vpop.xlane.xlu0 %3959 }
 0x85b   : > { %5097 = vpow2.f32 %v3990_v25  ;;  %v3978_v31 = vsub.f32 %v3946_v32, %v3960_v20 }
 0x85c   : > { %v7547_v29 = vpop.eup %5091 }
 0x85d   : > { %v3988_v9 = vmul.f32 1.442695, %v3978_v31  ;;  %v4018_v23 = vsel %vm3034_vm2, %v7547_v29, 0.0 }
 0x85e   : > { %4019 = vadd.xlane.f32.xlu0 %v4018_v23  ;;  %v3957_v44 = vpop.xlane.xlu0 %3956 }
 0x85f   : > { %5099 = vpow2.f32 %v3988_v9  ;;  %v3977_v10 = vsub.f32 %v3945_v63, %v3957_v44 }
 0x860   : > { %v7551_v41 = vpop.eup %5093 }
 0x861   : > { %v3986_v13 = vmul.f32 1.442695, %v3977_v10  ;;  %v4015_v19 = vsel %vm3034_vm2, %v7551_v41, 0.0  ;;  %v3019_v10 = vld [vmem:[#allocation14 + $0x48] sm:$0xff] }
 0x862   : > { %4016 = vadd.xlane.f32.xlu0 %v4015_v19  ;;  %v3954_v35 = vpop.xlane.xlu0 %3953 }
 0x863   : > { %5101 = vpow2.f32 %v3986_v13  ;;  %v3976_v39 = vsub.f32 %v3944_v27, %v3954_v35 }
 0x864   : > { %v7555_v2 = vpop.eup %5095 }
 0x865   : > { %v3984_v51 = vmul.f32 1.442695, %v3976_v39  ;;  %v4012_v15 = vsel %vm3034_vm2, %v7555_v2, 0.0 }
 0x866   : > { %4013 = vadd.xlane.f32.xlu1 %v4012_v15 }
 0x867   : > { %5103 = vpow2.f32 %v3984_v51 }
 0x868   : > { %v7559_v60 = vpop.eup %5097 }
 0x869   : > { %v4009_v34 = vsel %vm3034_vm2, %v7559_v60, 0.0 }
 0x86a   : > { %4010 = vadd.xlane.f32.xlu0 %v4009_v34  ;;  %v5129_v34 = vld [vmem:[%s5655_s29 + $0x8] sm:$0xff] }
 0x86c   : > { %v7563_v3 = vpop.eup %5099 }
 0x86d   : > { %v4006_v36 = vsel %vm3034_vm2, %v7563_v3, 0.0 }
 0x86e   : > { %4007 = vadd.xlane.f32.xlu0 %v4006_v36 }
 0x870   : > { %v7567_v62 = vpop.eup %5101 }
 0x871   : > { %v4003_v59 = vsel %vm3034_vm2, %v7567_v62, 0.0 }
 0x872   : > { %4004 = vadd.xlane.f32.xlu0 %v4003_v59 }
 0x874   : > { %v7571_v57 = vpop.eup %5103 }
 0x875   : > { %v4000_v40 = vsel %vm3034_vm2, %v7571_v57, 0.0 }
 0x876   : > { %4001 = vadd.xlane.f32.xlu0 %v4000_v40 }
 0x877   : > { %4042 = vrot.lane.b32.xlu1 %v7311_v30, %s5380_s26  ;;  %v3025_v30 = vld [vmem:[#allocation14 + $0x78] sm:$0xff] }
 0x878   : > { %4888 = vmatprep.subr.mxu0 %v3025_v30 }
 0x879   : > { %4889 = vmatpush3.msra.mxu0 %v3025_v30 }
 0x87b   : > { %4052 = vrot.lane.b32.xlu1 %v7492_v38, %s5380_s26  ;;  %v3024_v38 = vld [vmem:[#allocation14 + $0x70] sm:$0xff] }
 0x87c   : > { %4890 = vmatprep.subr.mxu0 %v3024_v38 }
 0x87d   : > { %4891 = vmatpush3.msra.mxu0 %v3024_v38 }
 0x87e   : > { %4892 = vmatprep.subr.mxu0 %v3023_v17 }
 0x87f   : > { %4893 = vmatpush3.msra.mxu0 %v3023_v17  ;;  %v5132_v17 = vld [vmem:[%s5655_s29 + $0x10] sm:$0xff] }
 0x88c   : > { %4040 = vrot.lane.b32.xlu0 %v8067_v14, %s5380_s26  ;;  %v5131_v14 = vld [vmem:[%s5655_s29 + $0x18] sm:$0xff] }
 0x88d   : > { %v3649_v30 = vadd.f32 %v5131_v14, %v7523_v37 }
 0x890   : > { %4044 = vrot.lane.b32.xlu0 %v7313_v28, %s5380_s26  ;;  %v3022_v28 = vld [vmem:[#allocation14 + $0x60] sm:$0xff] }
 0x891   : > { %4894 = vmatprep.subr.mxu0 %v3022_v28 }
 0x892   : > { %4895 = vmatpush3.msra.mxu0 %v3022_v28  ;;  %v3648_v28 = vadd.f32 %v5132_v17, %v7525_v46 }
 0x894   : > { %4046 = vrot.lane.b32.xlu0 %v7472_v22, %s5380_s26  ;;  %v3021_v22 = vld [vmem:[#allocation14 + $0x58] sm:$0xff] }
 0x895   : > { %4896 = vmatprep.subr.mxu0 %v3021_v22 }
 0x896   : > { %4897 = vmatpush3.msra.mxu0 %v3021_v22 }
 0x898   : > { %4048 = vrot.lane.b32.xlu0 %v7480_v42, %s5380_s26  ;;  %v3020_v42 = vld [vmem:[#allocation14 + $0x50] sm:$0xff] }
 0x899   : > { %4898 = vmatprep.subr.mxu0 %v3020_v42 }
 0x89a   : > { %4899 = vmatpush3.msra.mxu0 %v3020_v42 }
 0x89b   : > { %4900 = vmatprep.subr.mxu0 %v3019_v10 }
 0x89c   : > { %4050 = vrot.lane.b32.xlu0 %v7489_v48, %s5380_s26  ;;  %4901 = vmatpush3.msra.mxu0 %v3019_v10 }
 0x8a0   : > { %4054 = vrot.lane.b32.xlu0 %v7499_v1, %s5380_s26 }
 0x8e3   : > { %v4023_v48 = vpop.xlane.xlu0 %4022 }
 0x8e4   : > { %5105 = vrcp.f32 %v4023_v48 }
 0x8e7   : > { %v4020_v1 = vpop.xlane.xlu0 %4019 }
 0x8e8   : > { %5107 = vrcp.f32 %v4020_v1 }
 0x8eb   : > { %v4017_v32 = vpop.xlane.xlu0 %4016 }
 0x8ec   : > { %5109 = vrcp.f32 %v4017_v32  ;;  %v5134_v32 = vld [vmem:[%s5655_s29 + $0x20] sm:$0xff] }
 0x8ef   : > { %v4014_v11 = vpop.xlane.xlu1 %4013 }
 0x8f0   : > { %5111 = vrcp.f32 %v4014_v11  ;;  %v3650_v11 = vadd.f32 %v5134_v32, %v7529_v21 }
 0x8f1   : > { %v5106_v63 = vpop.eup %5105 }
 0x8f2   : > { %v4039_v54 = vmul.f32 %v5106_v63, %v7543_v58 }
 0x8f3   : > { %v4011_v27 = vpop.xlane.xlu0 %4010  ;;  %v4043_v31 = vpop.permute.xlu1 %4042 }
 0x8f4   : > { %5113 = vrcp.f32 %v4011_v27  ;;  %4860 = vmatprep.subr.msk.mxu1 %vm3034_vm2, %v4039_v54 }
 0x8f5   : > { %v5108_v16 = vpop.eup %5107  ;;  %4861 = vmatpush3.xpose.msk.msra.mxu1 %vm3034_vm2, %v4039_v54  ;;  %v5135_v54 = vld [vmem:[%s5655_s29 + $0x38] sm:$0xff] }
 0x8f6   : > { %v4038_v24 = vmul.f32 %v5108_v16, %v7547_v29  ;;  %v3653_v27 = vadd.f32 %v5135_v54, %v7531_v12 }
 0x8f7   : > { %v4008_v4 = vpop.xlane.xlu0 %4007  ;;  %v4053_v23 = vpop.permute.xlu1 %4052 }
 0x8f8   : > { %5115 = vrcp.f32 %v4008_v4  ;;  %4862 = vmatprep.subr.msk.mxu1 %vm3034_vm2, %v4038_v24  ;;  %v5136_v4 = vld [vmem:[%s5655_s29 + $0x30] sm:$0xff] }
 0x8f9   : > { %v5110_v43 = vpop.eup %5109  ;;  %4863 = vmatpush3.xpose.msk.msra.mxu1 %vm3034_vm2, %v4038_v24 }
 0x8fa   : > { %v4037_v7 = vmul.f32 %v5110_v43, %v7551_v41  ;;  %v3018_v41 = vld [vmem:[#allocation14 + $0x40] sm:$0xff] }
 0x8fb   : > { %v4005_v49 = vpop.xlane.xlu0 %4004  ;;  %4902 = vmatprep.subr.mxu0 %v3018_v41 }
 0x8fc   : > { %5117 = vrcp.f32 %v4005_v49  ;;  %4864 = vmatprep.subr.msk.mxu1 %vm3034_vm2, %v4037_v7  ;;  %4903 = vmatpush3.msra.mxu0 %v3018_v41 }
 0x8fd   : > { %v5112_v50 = vpop.eup %5111  ;;  %4865 = vmatpush3.xpose.msk.msra.mxu1 %vm3034_vm2, %v4037_v7 }
 0x8fe   : > { %v4036_v8 = vmul.f32 %v5112_v50, %v7555_v2 }
 0x8ff   : > { %v4002_v26 = vpop.xlane.xlu0 %4001 }
 0x900   : > { %5119 = vrcp.f32 %v4002_v26  ;;  %4866 = vmatprep.subr.msk.mxu1 %vm3034_vm2, %v4036_v8 }
 0x901   : > { %v5114_v0 = vpop.eup %5113  ;;  %4867 = vmatpush3.xpose.msk.msra.mxu1 %vm3034_vm2, %v4036_v8 }
 0x902   : > { %v4035_v61 = vmul.f32 %v5114_v0, %v7559_v60 }
 0x903   : > { %v4041_v52 = vpop.permute.xlu0 %4040 }
 0x904   : > { %4868 = vmatprep.subr.msk.mxu1 %vm3034_vm2, %v4035_v61  ;;  %4876 = vmatprep.mubr.msk.f32.mxu1 %vm3034_vm2, %v4041_v52 }
 0x905   : > { %v5116_v6 = vpop.eup %5115  ;;  %4869 = vmatpush3.xpose.msk.msra.mxu1 %vm3034_vm2, %v4035_v61 }
 0x906   : > { %v4034_v45 = vmul.f32 %v5116_v6, %v7563_v3  ;;  %v3647_v3 = vadd.f32 %v5129_v34, %v7519_v56 }
 0x907   : > { %v4045_v18 = vpop.permute.xlu0 %4044 }
 0x908   : > { %4870 = vmatprep.subr.msk.mxu1 %vm3034_vm2, %v4034_v45 }
 0x909   : > { %v5118_v33 = vpop.eup %5117  ;;  %4871 = vmatpush3.xpose.msk.msra.mxu1 %vm3034_vm2, %v4034_v45 }
 0x90a   : > { %v4033_v58 = vmul.f32 %v5118_v33, %v7567_v62  ;;  %v5130_v62 = vld [vmem:[%s5655_s29] sm:$0xff] }
 0x90b   : > { %v4047_v53 = vpop.permute.xlu0 %4046  ;;  %v3646_v59 = vadd.f32 %v5130_v62, %v7521_v5  ;;  %v5133_v5 = vld [vmem:[%s5655_s29 + $0x28] sm:$0xff] }
 0x90c   : > { %4872 = vmatprep.subr.msk.mxu1 %vm3034_vm2, %v4033_v58  ;;  %v3651_v48 = vadd.f32 %v5133_v5, %v7527_v55  ;;  %v3652_v55 = vadd.f32 %v5136_v4, %v7533_v47 }
 0x90d   : > { %v5120_v25 = vpop.eup %5119  ;;  %4873 = vmatpush3.xpose.msk.msra.mxu1 %vm3034_vm2, %v4033_v58 }
 0x90e   : > { %v4032_v20 = vmul.f32 %v5120_v25, %v7571_v57 }
 0x90f   : > { %v4049_v29 = vpop.permute.xlu0 %4048 }
 0x910   : > { %4874 = vmatprep.subr.msk.mxu1 %vm3034_vm2, %v4032_v20 }
 0x911   : > { %4875 = vmatpush3.xpose.msk.msra.mxu1 %vm3034_vm2, %v4032_v20 }
 0x913   : > { %v4051_v9 = vpop.permute.xlu0 %4050 }
 0x914   : > { %4877 = vmatmul.mubr.msk.f32.vlgmr.msra.gmra.mxu1 %vm3034_vm2, %v4043_v31 }
 0x915   : > { %4879 = vmatprep.mubr.msk.f32.mxu1 %vm3034_vm2, %v4045_v18 }
 0x917   : > { %v4055_v44 = vpop.permute.xlu0 %4054 }
 0x918   : > { %4880 = vmatmul.mubr.msk.f32.gmra.mxu1 %vm3034_vm2, %v4047_v53 }
 0x919   : > { %4882 = vmatprep.mubr.msk.f32.mxu1 %vm3034_vm2, %v4049_v29 }
 0x91c   : > { %4883 = vmatmul.mubr.msk.f32.gmra.mxu1 %vm3034_vm2, %v4051_v9 }
 0x91d   : > { %4885 = vmatprep.mubr.msk.f32.mxu1 %vm3034_vm2, %v4053_v23 }
 0x920   : > { %4886 = vmatmul.mubr.msk.f32.gmra.mxu1 %vm3034_vm2, %v4055_v44 }
 0x9d4   : > { %v4878_v13 = vpop.f32.mrf.mxu1 }
 0x9d6   : > { %v4162_v19 = vpop.f32.mrf.mxu1 }
 0x9d7   : > { %4904 = vmatprep.mubr.msk.f32.mxu0 %vm3034_vm2, %v4162_v19 }
 0x9d8   : > { %v4881_v35 = vpop.f32.mrf.mxu1  ;;  %4905 = vmatmul.mubr.msk.f32.vlgmr.msra.gmra.mxu0 %vm3034_vm2, %v4878_v13 }
 0x9da   : > { %v4172_v39 = vpop.f32.mrf.mxu1 }
 0x9db   : > { %4907 = vmatprep.mubr.msk.f32.mxu0 %vm3034_vm2, %v4172_v39 }
 0x9dc   : > { %v4884_v2 = vpop.f32.mrf.mxu1  ;;  %4908 = vmatmul.mubr.msk.f32.gmra.mxu0 %vm3034_vm2, %v4881_v35 }
 0x9de   : > { %v4182_v51 = vpop.f32.mrf.mxu1 }
 0x9df   : > { %4910 = vmatprep.mubr.msk.f32.mxu0 %vm3034_vm2, %v4182_v51 }
 0x9e0   : > { %v4887_v15 = vpop.f32.mrf.mxu1  ;;  %4911 = vmatmul.mubr.msk.f32.gmra.mxu0 %vm3034_vm2, %v4884_v2 }
 0x9e2   : > { %v4192_v60 = vpop.f32.mrf.mxu1 }
 0x9e3   : > { %4913 = vmatprep.mubr.msk.f32.mxu0 %vm3034_vm2, %v4192_v60 }
 0x9e4   : > { %4914 = vmatmul.mubr.msk.f32.gmra.mxu0 %vm3034_vm2, %v4887_v15 }
 0xa98   : > { %v4906_v36 = vpop.f32.mrf.mxu0 }
 0xa99   : > { %v4331_v57 = vadd.f32 %v4906_v36, %v3647_v3 }
 0xa9a   : > { %v4291_v40 = vpop.f32.mrf.mxu0 }
 0xa9b   : > { %4339 = vst [vmem:[%s7638_s11 + $0x8] sm:$0xff] %v4331_v57  ;;  %v4330_v56 = vadd.f32 %v4291_v40, %v3646_v59 }
 0xa9c   : > { %v4909_v38 = vpop.f32.mrf.mxu0 }
 0xa9d   : > { %4338 = vst [vmem:[%s7638_s11] sm:$0xff] %v4330_v56  ;;  %v4333_v22 = vadd.f32 %v4909_v38, %v3649_v30 }
 0xa9e   : > { %v4301_v42 = vpop.f32.mrf.mxu0 }
 0xa9f   : > { %4341 = vst [vmem:[%s7638_s11 + $0x18] sm:$0xff] %v4333_v22  ;;  %v4332_v1 = vadd.f32 %v4301_v42, %v3648_v28 }
 0xaa0   : > { %v4912_v37 = vpop.f32.mrf.mxu0 }
 0xaa1   : > { %4340 = vst [vmem:[%s7638_s11 + $0x10] sm:$0xff] %v4332_v1  ;;  %v4335_v63 = vadd.f32 %v4912_v37, %v3651_v48 }
 0xaa2   : > { %v4311_v46 = vpop.f32.mrf.mxu0 }
 0xaa3   : > { %4343 = vst [vmem:[%s7638_s11 + $0x28] sm:$0xff] %v4335_v63  ;;  %v4334_v16 = vadd.f32 %v4311_v46, %v3650_v11 }
 0xaa4   : > { %v4915_v24 = vpop.f32.mrf.mxu0 }
 0xaa5   : > { %4342 = vst [vmem:[%s7638_s11 + $0x20] sm:$0xff] %v4334_v16  ;;  %v4337_v43 = vadd.f32 %v4915_v24, %v3653_v27 }
 0xaa6   : > { %v4321_v7 = vpop.f32.mrf.mxu0 }
 0xaa7   : > { %4345 = vst [vmem:[%s7638_s11 + $0x38] sm:$0xff] %v4337_v43  ;;  %v4336_v49 = vadd.f32 %v4321_v7, %v3652_v55 }
 0xaa9   : > { %4344 = vst [vmem:[%s7638_s11 + $0x30] sm:$0xff] %v4336_v49 }
 0xaaa PF: > { %s8068_s27 = sld [smem:[#allocation22_spill]]  ;;  %p28_p6 = scmp.ge.s32.totalorder %s5549_s13, 4  }
 0xaab   : > { %s8069_s21 = smov %s5358_s22  ;;  %s8070_s22 = smov %s5362_s23 }
 0xaac   : > { %s8072_s24 = smov %s5549_s13  ;;  %30 = sbr.rel (!%p28_p6) target bundleno = 14 (0xe), region = 146 }
 0xab0   : > { %s8071_s23 = smov %s8068_s27 }
 0xab1   :  { %4367 = vsyncpa [#allocation5], 1 }
 0xab2   :  { %4369 = vsyncpa [#allocation5 + $0x1], 1 }
 0xab3   :  { %4370 = vsyncpa [#allocation9], 1 }
 0xab4   :  { %4372 = vsyncpa [#allocation9 + $0x1], 1 }
 0xab5   :  { %4373 = vsyncpa [#allocation12], 1 }
 0xab6   :  { %4374 = vsyncpa [#allocation15], 1 }
 0xab7   :  { %4375 = vsyncpa [#allocation6], 1 }
 0xab8   :  { %4377 = vsyncpa [#allocation6 + $0x1], 1 }

// kernel: injector_forward.3
= control target key start
LH: loop header
LB: loop body
LE: loop exit
PB: predicated region body
PF: predicated region fallthrough
CT: control target
= control target key end

     0   :  { %11 = vsyncpa [#allocation4], 0  ;;  %s8605_s0 = inlined_call_operand.vmem [shape: f32[2,64,128], index: 0, kind: input, shape index: {}]   ;;  %s8606_s1 = inlined_call_operand.vmem [shape: f32[1,128], index: 1, kind: input, shape index: {}]   ;;  %s8607_s2 = inlined_call_operand.vmem [shape: f32[1,128], index: 2, kind: input, shape index: {}]   ;;  %s8608_s3 = inlined_call_operand.vmem [shape: f32[128,768], index: 3, kind: input, shape index: {}]   ;;  %s8609_s4 = inlined_call_operand.vmem [shape: f32[3,3,768], index: 4, kind: input, shape index: {}]   ;;  %s8610_s5 = inlined_call_operand.hbm [shape: f32[384,128], index: 5, kind: input, shape index: {}]   ;;  %s8611_s6 = inlined_call_operand.hbm [shape: f32[2,64,128], index: 6, kind: output, shape index: {}]  }
   0x1   :  { %12 = vsyncpa [#allocation5], 0 }
   0x2   :  { %14 = vsyncpa [#allocation5 + $0x1], 0  ;;  %s5824_s21 = smov 0   ;;  %s5826_s22 = smov 0  }
   0x3   :  { %s5828_s23 = smov 0   ;;  %s5830_s24 = smov 0  }
   0x4 LB: > { %s5845_s25 = sadd.s32 4294967295, %s5780_s24   ;;  %s5369_s26 = sadd.s32 4294967294, %s5780_s24   ;;  %s5780_s24 = sphi %s5830_s24, %s8973_s24   ;;  %s5776_s23 = sphi %s5828_s23, %s8972_s23   ;;  %s5772_s22 = sphi %s5826_s22, %s8971_s22   ;;  %s5768_s21 = sphi %s5824_s21, %s8970_s21  }
   0x5   : > { %s5849_s27 = sadd.s32 1, %s5780_s24   ;;  %s158_s28 = sadd.s32 1, %s5776_s23 }
   0x6   : > { %s155_s29 = ssub.s32 %s5780_s24, %s5849_s27  ;;  %p168_p0 = scmp.ne.s32.totalorder %s5776_s23, %s5772_s22 }
   0x7   : > { %p156_p1 = scmp.eq.s32.totalorder %s155_s29, 0  ;;  %p169_p2 = scmp.eq.s32.totalorder %s5845_s25, 1 }
   0x8   : > { %p174_p3 = scmp.ne.s32.totalorder %s5772_s22, %s5768_s21  ;;  %p175_p4 = scmp.eq.s32.totalorder %s5369_s26, 1 }
   0x9   : > { %s5860_s30 = scalar_select %p156_p1, %s5776_s23, %s158_s28  }
   0xa   : > { %p5862_p5 = por %p169_p2, %p168_p0  ;;  %p5866_p6 = por %p175_p4, %p174_p3 }
   0xb   : > { %p5370_p7 = scmp.ge.s32.totalorder %s5780_s24, 1  ;;  %p182_p8 = scmp.lt.s32.totalorder %s5780_s24, 3 }
   0xc   : > { %s8769_s8 = scalar_select %p5866_p6, 1, 0 }
   0xd   : > { %p5557_p9 = scmp.eq.s32.totalorder %s5845_s25, 0  ;;  %p5873_p10 = pnand %p5370_p7, %p182_p8 }
   0xe   : > { %s5782_s10 = smov [#allocation3]  }
   0xf   : > { %s206_s11 = sshll.u32 %s5782_s10, 4  ;;  %p5549_p11 = pneg %p5873_p10  ;;  %s207_s11 = int_to_ptr.vmem [resolvable:$true] %s206_s11 }
  0x10   : > { %s5701_s12 = scalar_lea.vmem %s207_s11, 6144  ;;  %p5709_p3 = scmp.lt.s32.totalorder %s207_s11, %s207_s11 }
  0x11   : > { %p5550_p12 = pnand %p5557_p9, %p5549_p11  ;;  %p5702_p0 = scmp.ne.s32.totalorder %s207_s11, %s5701_s12 }
  0x12   : > { %p5710_p4 = scmp.lt.s32.totalorder %s5701_s12, %s5701_s12 }
  0x13   : > { %p5692_p13 = pneg %p5550_p12 }
  0x14   : > { %p5711_p6 = por %p5710_p4, %p5709_p3 }
  0x15   : > { %p5704_p1 = pnand %p5702_p0, %p5692_p13 }
  0x17   : > { %p5705_p2 = pneg %p5704_p1 }
  0x19   : > { %p5712_p7 = pnand %p5711_p6, %p5705_p2 }
  0x1b   : > { %5715 = shalt.err (!%p5712_p7)
}
  0x1c   : > { %s5783_s13 = smov 128   ;;  %s5784_s14 = smov 8  }
  0x1d   : > { %5552 = dma.hbm_to_vmem [thread:$0]  (!%p5550_p12), %s8610_s5, 6144, %s207_s11, [#allocation4], %s5783_s13, %s5783_s13, %s5784_s14  }
  0x1e   : > { %230 = sbr.rel (%p5873_p10) target bundleno = 1307 (0x51b), region = 44 }
  0x23   : > { %5759 = dma.done.wait (%p5557_p9), [#allocation4], 6144  }
  0x24   : > { %5761 = vsyncadd (%p5557_p9), [#allocation4], 4294961152  ;;  %p260_p8 = scmp.lt.s32.totalorder %s5845_s25, 1  ;;  %v483_v8 = vld [vmem:[%s8608_s3 + $0x2d8] sm:$0xff]  ;;  %v482_v9 = vld [vmem:[%s8608_s3 + $0x2d0] sm:$0xff]  ;;  %vm1692_vm0 = vcmask 1046528  }
  0x25   : > { %v485_v10 = vld [vmem:[%s8608_s3 + $0x2e8] sm:$0xff]  ;;  %488 = vmatprep.subr.mxu0 %v483_v8  ;;  %v484_v12 = vld [vmem:[%s8608_s3 + $0x2e0] sm:$0xff]  ;;  %v479_v14 = vld [vmem:[%s8608_s3 + $0x2b8] sm:$0xff]  ;;  %vm2179_vm1 = vcmask 1045504   ;;  %s257_s11 = sand.u32 1, %s5772_s22   ;;  %s5386_s14 = sshll.u32 %s5845_s25, 10 }
  0x26   : > { %s261_s17 = scalar_select %p260_p8, %s5845_s25, 1  ;;  %601 = vmatprep.subr.mxu1 %v485_v10  ;;  %v477_v11 = vld [vmem:[%s8608_s3 + $0x2a8] sm:$0xff]  ;;  %v476_v13 = vld [vmem:[%s8608_s3 + $0x2a0] sm:$0xff]  ;;  %489 = vmatpush1.msra.mxu0 %v482_v9  ;;  %v471_v15 = vld [vmem:[%s8608_s3 + $0x278] sm:$0xff] }
  0x27   : > { %602 = vmatpush1.msra.mxu1 %v484_v12  ;;  %v478_v16 = vld [vmem:[%s8608_s3 + $0x2b0] sm:$0xff]  ;;  %490 = vmatprep.subr.mxu0 %v477_v11  ;;  %v473_v18 = vld [vmem:[%s8608_s3 + $0x288] sm:$0xff]  ;;  %v472_v20 = vld [vmem:[%s8608_s3 + $0x280] sm:$0xff]  ;;  %s8519_s12 = sshll.u32 %s257_s11, 6  ;;  %s8565_s25 = scalar_lea.sflag [#allocation5], %s257_s11 }
  0x28   : > { %s5385_s18 = sshll.u32 %s261_s17, 6  ;;  %603 = vmatprep.subr.mxu1 %v479_v14  ;;  %v470_v17 = vld [vmem:[%s8608_s3 + $0x270] sm:$0xff]  ;;  %491 = vmatpush1.msra.mxu0 %v476_v13  ;;  %v465_v19 = vld [vmem:[%s8608_s3 + $0x248] sm:$0xff]  ;;  %v467_v21 = vld [vmem:[%s8608_s3 + $0x258] sm:$0xff]  ;;  %s8534_s13 = scalar_lea.vmem [#allocation6], %s8519_s12 }
  0x29   : > { %s5895_s26 = scalar_lea.vmem %s8605_s0, %s5385_s18  ;;  %604 = vmatpush1.msra.mxu1 %v478_v16  ;;  %492 = vmatprep.subr.mxu0 %v471_v15  ;;  %v464_v22 = vld [vmem:[%s8608_s3 + $0x240] sm:$0xff]  ;;  %v466_v23 = vld [vmem:[%s8608_s3 + $0x250] sm:$0xff]  ;;  %v459_v24 = vld [vmem:[%s8608_s3 + $0x218] sm:$0xff]  ;;  %s5295_s15 = sshll.u32 %s8534_s13, 4  ;;  %s8558_s15 = int_to_ptr.vmem [resolvable:$true] %s5295_s15 }
  0x2a   : > { %v265_v0 = vld [vmem:[%s5895_s26] sm:$0xff]  ;;  %v267_v1 = vld [vmem:[%s5895_s26 + $0x10] sm:$0xff]  ;;  %v266_v2 = vld [vmem:[%s5895_s26 + $0x8] sm:$0xff]  ;;  %605 = vmatprep.subr.mxu1 %v473_v18  ;;  %493 = vmatpush1.msra.mxu0 %v470_v17  ;;  %s8556_s18 = scalar_lea.hbm %s8611_s6, %s5386_s14  ;;  %s5716_s19 = scalar_lea.vmem %s8558_s15, 1024 }
  0x2b   : > { %273 = vadd.xlane.f32.xlu0 %v265_v0  ;;  %277 = vadd.xlane.f32.xlu1 %v267_v1  ;;  %v268_v3 = vld [vmem:[%s5895_s26 + $0x18] sm:$0xff]  ;;  %v269_v4 = vld [vmem:[%s5895_s26 + $0x20] sm:$0xff]  ;;  %v5903_v5 = vld [vmem:[%s5895_s26 + $0x28] sm:$0xff]  ;;  %p5717_p6 = scmp.ne.s32.totalorder %s8558_s15, %s5716_s19  ;;  %s5786_s20 = smov [#allocation6]  }
  0x2c   : > { %v5907_v6 = vld [vmem:[%s5895_s26 + $0x30] sm:$0xff]  ;;  %v5910_v7 = vld [vmem:[%s5895_s26 + $0x38] sm:$0xff]  ;;  %606 = vmatpush1.msra.mxu1 %v472_v20  ;;  %494 = vmatprep.subr.mxu0 %v465_v19  ;;  %v461_v55 = vld [vmem:[%s8608_s3 + $0x228] sm:$0xff]  ;;  %s5720_s28 = sshll.u32 %s5786_s20, 4  ;;  %s5721_s28 = int_to_ptr.vmem [resolvable:$false] %s5720_s28 }
  0x2d   : > { %607 = vmatprep.subr.mxu1 %v467_v21  ;;  %495 = vmatpush1.msra.mxu0 %v464_v22  ;;  %v458_v57 = vld [vmem:[%s8608_s3 + $0x210] sm:$0xff]  ;;  %v460_v58 = vld [vmem:[%s8608_s3 + $0x220] sm:$0xff]  ;;  %v453_v59 = vld [vmem:[%s8608_s3 + $0x1e8] sm:$0xff]  ;;  %p5718_p9 = pnand %p5717_p6, %p5862_p5  ;;  %s5722_s29 = scalar_lea.vmem %s5721_s28, 2048 }
  0x2e   : > { %608 = vmatpush1.msra.mxu1 %v466_v23  ;;  %496 = vmatprep.subr.mxu0 %v459_v24  ;;  %v455_v60 = vld [vmem:[%s8608_s3 + $0x1f8] sm:$0xff]  ;;  %v452_v62 = vld [vmem:[%s8608_s3 + $0x1e0] sm:$0xff]  ;;  %v454_v63 = vld [vmem:[%s8608_s3 + $0x1f0] sm:$0xff]  ;;  %p5723_p11 = scmp.lt.s32.totalorder %s8558_s15, %s5721_s28  ;;  %p5724_p12 = scmp.lt.s32.totalorder %s5722_s29, %s5716_s19 }
  0x2f   : > { %275 = vadd.xlane.f32.xlu0 %v266_v2  ;;  %279 = vadd.xlane.f32.xlu1 %v268_v3  ;;  %v435_v8 = vld [vmem:[%s8608_s3 + $0x158] sm:$0xff]  ;;  %v437_v9 = vld [vmem:[%s8608_s3 + $0x168] sm:$0xff]  ;;  %v434_v10 = vld [vmem:[%s8608_s3 + $0x150] sm:$0xff]  ;;  %p5719_p10 = pneg %p5718_p9 }
  0x30   : > { %609 = vmatprep.subr.mxu1 %v461_v55  ;;  %497 = vmatpush1.msra.mxu0 %v458_v57  ;;  %v436_v11 = vld [vmem:[%s8608_s3 + $0x160] sm:$0xff]  ;;  %v429_v12 = vld [vmem:[%s8608_s3 + $0x128] sm:$0xff]  ;;  %v431_v13 = vld [vmem:[%s8608_s3 + $0x138] sm:$0xff]  ;;  %p5725_p13 = por %p5724_p12, %p5723_p11 }
  0x31   : > { %610 = vmatpush1.msra.mxu1 %v460_v58  ;;  %498 = vmatprep.subr.mxu0 %v453_v59  ;;  %v428_v14 = vld [vmem:[%s8608_s3 + $0x120] sm:$0xff]  ;;  %v430_v15 = vld [vmem:[%s8608_s3 + $0x130] sm:$0xff]  ;;  %v423_v16 = vld [vmem:[%s8608_s3 + $0xf8] sm:$0xff] }
  0x32   : > { %611 = vmatprep.subr.mxu1 %v455_v60  ;;  %499 = vmatpush1.msra.mxu0 %v452_v62  ;;  %v425_v17 = vld [vmem:[%s8608_s3 + $0x108] sm:$0xff]  ;;  %v422_v18 = vld [vmem:[%s8608_s3 + $0xf0] sm:$0xff]  ;;  %v424_v19 = vld [vmem:[%s8608_s3 + $0x100] sm:$0xff]  ;;  %p5726_p0 = pnand %p5725_p13, %p5719_p10 }
  0x33   : > { %281 = vadd.xlane.f32.xlu0 %v269_v4  ;;  %283 = vadd.xlane.f32.xlu1 %v5903_v5  ;;  %v417_v20 = vld [vmem:[%s8608_s3 + $0xc8] sm:$0xff]  ;;  %v419_v21 = vld [vmem:[%s8608_s3 + $0xd8] sm:$0xff]  ;;  %v416_v22 = vld [vmem:[%s8608_s3 + $0xc0] sm:$0xff] }
  0x34   : > { %612 = vmatpush1.msra.mxu1 %v454_v63  ;;  %v418_v23 = vld [vmem:[%s8608_s3 + $0xd0] sm:$0xff]  ;;  %v411_v24 = vld [vmem:[%s8608_s3 + $0x98] sm:$0xff] }
  0x37   : > { %285 = vadd.xlane.f32.xlu0 %v5907_v6  ;;  %287 = vadd.xlane.f32.xlu1 %v5910_v7 }
  0xb4   : > { %v274_v25 = vpop.xlane.xlu0 %273  ;;  %v278_v26 = vpop.xlane.xlu1 %277 }
  0xb5   : > { %v290_v27 = vmul.f32 0.0078125, %v274_v25  ;;  %v292_v28 = vmul.f32 0.0078125, %v278_v26  ;;  %v413_v25 = vld [vmem:[%s8608_s3 + $0xa8] sm:$0xff]  ;;  %v410_v26 = vld [vmem:[%s8608_s3 + $0x90] sm:$0xff] }
  0xb7   : > { %v5965_v29 = vsub.f32 %v265_v0, %v290_v27  ;;  %v5967_v30 = vsub.f32 %v267_v1, %v292_v28  ;;  %v447_v0 = vld [vmem:[%s8608_s3 + $0x1b8] sm:$0xff]  ;;  %v449_v1 = vld [vmem:[%s8608_s3 + $0x1c8] sm:$0xff]  ;;  %v412_v27 = vld [vmem:[%s8608_s3 + $0xa0] sm:$0xff] }
  0xb8   : > { %v276_v31 = vpop.xlane.xlu0 %275  ;;  %v280_v32 = vpop.xlane.xlu1 %279  ;;  %500 = vmatprep.subr.mxu0 %v447_v0  ;;  %613 = vmatprep.subr.mxu1 %v449_v1  ;;  %v405_v28 = vld [vmem:[%s8608_s3 + $0x68] sm:$0xff] }
  0xb9   : > { %v291_v33 = vmul.f32 0.0078125, %v276_v31  ;;  %v306_v34 = vmul.f32 %v5965_v29, %v5965_v29  ;;  %v293_v35 = vmul.f32 0.0078125, %v280_v32  ;;  %v308_v38 = vmul.f32 %v5967_v30, %v5967_v30  ;;  %v407_v31 = vld [vmem:[%s8608_s3 + $0x78] sm:$0xff]  ;;  %v404_v32 = vld [vmem:[%s8608_s3 + $0x60] sm:$0xff] }
  0xbb   : > { %v5971_v36 = vsub.f32 %v266_v2, %v291_v33  ;;  %314 = vadd.xlane.f32.xlu0 %v306_v34  ;;  %v5973_v37 = vsub.f32 %v268_v3, %v293_v35  ;;  %v446_v2 = vld [vmem:[%s8608_s3 + $0x1b0] sm:$0xff]  ;;  %v448_v3 = vld [vmem:[%s8608_s3 + $0x1c0] sm:$0xff]  ;;  %v399_v34 = vld [vmem:[%s8608_s3 + $0x38] sm:$0xff] }
  0xbc   : > { %v282_v39 = vpop.xlane.xlu0 %281  ;;  %v284_v40 = vpop.xlane.xlu1 %283  ;;  %501 = vmatpush1.msra.mxu0 %v446_v2  ;;  %614 = vmatpush1.msra.mxu1 %v448_v3  ;;  %v406_v33 = vld [vmem:[%s8608_s3 + $0x70] sm:$0xff] }
  0xbd   : > { %v294_v41 = vmul.f32 0.0078125, %v282_v39  ;;  %v307_v42 = vmul.f32 %v5971_v36, %v5971_v36  ;;  %v295_v43 = vmul.f32 0.0078125, %v284_v40  ;;  %v309_v46 = vmul.f32 %v5973_v37, %v5973_v37  ;;  %v6123_v35 = vld [vmem:[%s8608_s3 + $0x30] sm:$0xff]  ;;  %v6133_v39 = vld [vmem:[%s8608_s3 + $0x8] sm:$0xff]  ;;  %v6138_v40 = vld [vmem:[%s8608_s3 + $0x40] sm:$0xff] }
  0xbf   : > { %v5979_v44 = vsub.f32 %v269_v4, %v294_v41  ;;  %318 = vadd.xlane.f32.xlu0 %v308_v38  ;;  %316 = vadd.xlane.f32.xlu1 %v307_v42  ;;  %v5982_v45 = vsub.f32 %v5903_v5, %v295_v43  ;;  %v441_v4 = vld [vmem:[%s8608_s3 + $0x188] sm:$0xff]  ;;  %v443_v5 = vld [vmem:[%s8608_s3 + $0x198] sm:$0xff]  ;;  %v6143_v41 = vld [vmem:[%s8608_s3] sm:$0xff]  ;;  %v5785_v42 = vmov 0.0  }
  0xc0   : > { %v286_v47 = vpop.xlane.xlu0 %285  ;;  %v288_v48 = vpop.xlane.xlu1 %287  ;;  %502 = vmatprep.subr.mxu0 %v441_v4  ;;  %615 = vmatprep.subr.mxu1 %v443_v5  ;;  %v6128_v38 = vld [vmem:[%s8608_s3 + $0x48] sm:$0xff]  ;;  %836 = vst [vmem:[#allocation2 + $0x2b0] sm:$0xff] %v5785_v42  ;;  %842 = vst [vmem:[#allocation2 + $0x330] sm:$0x3] %v5785_v42  ;;  %v395_v43 = vld [vmem:[%s8608_s3 + $0x18] sm:$0xff] }
  0xc1   : > { %v296_v49 = vmul.f32 0.0078125, %v286_v47  ;;  %v310_v50 = vmul.f32 %v5979_v44, %v5979_v44  ;;  %v297_v51 = vmul.f32 0.0078125, %v288_v48  ;;  %v311_v54 = vmul.f32 %v5982_v45, %v5982_v45  ;;  %843 = vst [vmem:[#allocation2 + $0x48] sm:$0x3] %v5785_v42  ;;  %844 = vst [vmem:[#allocation2 + $0x380] sm:$0x3] %v5785_v42  ;;  %552 = vmatprep.mubr.f32.mxu0 %v5785_v42 }
  0xc2   : > { %845 = vst [vmem:[#allocation2 + $0x110] sm:$0x3] %v5785_v42  ;;  %846 = vst [vmem:[#allocation2 + $0x118] sm:$0x3] %v5785_v42  ;;  %v487_v47 = vld [vmem:[%s8608_s3 + $0x2f8] sm:$0xff]  ;;  %665 = vmatprep.mubr.f32.mxu1 %v5785_v42 }
  0xc3   : > { %v5989_v52 = vsub.f32 %v5907_v6, %v296_v49  ;;  %320 = vadd.xlane.f32.xlu1 %v309_v46  ;;  %322 = vadd.xlane.f32.xlu0 %v310_v50  ;;  %v5992_v53 = vsub.f32 %v5910_v7, %v297_v51  ;;  %v440_v6 = vld [vmem:[%s8608_s3 + $0x180] sm:$0xff]  ;;  %v442_v7 = vld [vmem:[%s8608_s3 + $0x190] sm:$0xff]  ;;  %847 = vst [vmem:[#allocation2 + $0x98] sm:$0x3] %v5785_v42  ;;  %848 = vst [vmem:[#allocation2 + $0x320] sm:$0xff] %v5785_v42 }
  0xc4   : > { %503 = vmatpush1.msra.mxu0 %v440_v6  ;;  %616 = vmatpush1.msra.mxu1 %v442_v7  ;;  %849 = vst [vmem:[#allocation2 + $0x150] sm:$0xff] %v5785_v42  ;;  %850 = vst [vmem:[#allocation2 + $0x108] sm:$0xff] %v5785_v42  ;;  %v394_v46 = vld [vmem:[%s8608_s3 + $0x10] sm:$0xff] }
  0xc5   : > { %v312_v56 = vmul.f32 %v5989_v52, %v5989_v52  ;;  %v313_v61 = vmul.f32 %v5992_v53, %v5992_v53  ;;  %504 = vmatprep.subr.mxu0 %v435_v8  ;;  %617 = vmatprep.subr.mxu1 %v437_v9  ;;  %851 = vst [vmem:[#allocation2 + $0x60] sm:$0xff] %v5785_v42  ;;  %852 = vst [vmem:[#allocation2 + $0x2e0] sm:$0xff] %v5785_v42  ;;  %v6273_v8 = vld [vmem:[%s8606_s1] ss:$0 sm:$0xff] }
  0xc6   : > { %505 = vmatpush1.msra.mxu0 %v434_v10  ;;  %618 = vmatpush1.msra.mxu1 %v436_v11  ;;  %853 = vst [vmem:[#allocation2 + $0x388] sm:$0xff] %v5785_v42  ;;  %854 = vst [vmem:[#allocation2 + $0x338] sm:$0x3] %v5785_v42 }
  0xc7   : > { %324 = vadd.xlane.f32.xlu1 %v311_v54  ;;  %326 = vadd.xlane.f32.xlu0 %v312_v56  ;;  %855 = vst [vmem:[#allocation2 + $0x340] sm:$0x3] %v5785_v42  ;;  %856 = vst [vmem:[#allocation2 + $0x80] sm:$0x3] %v5785_v42 }
  0xc8   : > { %506 = vmatprep.subr.mxu0 %v429_v12  ;;  %619 = vmatprep.subr.mxu1 %v431_v13  ;;  %857 = vst [vmem:[#allocation2 + $0x1a8] sm:$0x3] %v5785_v42  ;;  %858 = vst [vmem:[#allocation2 + $0x1b8] sm:$0x3] %v5785_v42  ;;  %v6279_v12 = vld [vmem:[%s8607_s2] ss:$0 sm:$0xff] }
  0xc9   : > { %507 = vmatpush1.msra.mxu0 %v428_v14  ;;  %620 = vmatpush1.msra.mxu1 %v430_v15  ;;  %859 = vst [vmem:[#allocation2 + $0x168] sm:$0x3] %v5785_v42  ;;  %860 = vst [vmem:[#allocation2 + $0x2f0] sm:$0xff] %v5785_v42 }
  0xca   : > { %508 = vmatprep.subr.mxu0 %v423_v16  ;;  %621 = vmatprep.subr.mxu1 %v425_v17  ;;  %861 = vst [vmem:[#allocation2 + $0x288] sm:$0xff] %v5785_v42  ;;  %862 = vst [vmem:[#allocation2 + $0x360] sm:$0xff] %v5785_v42 }
  0xcb   : > { %328 = vadd.xlane.f32.xlu1 %v313_v61  ;;  %509 = vmatpush1.msra.mxu0 %v422_v18  ;;  %863 = vst [vmem:[#allocation2 + $0x130] sm:$0xff] %v5785_v42  ;;  %864 = vst [vmem:[#allocation2 + $0x1b0] sm:$0xff] %v5785_v42  ;;  %v486_v18 = vld [vmem:[%s8608_s3 + $0x2f0] sm:$0xff] }
  0xcc   : > { %510 = vmatprep.subr.mxu0 %v417_v20  ;;  %622 = vmatpush1.msra.mxu1 %v424_v19  ;;  %865 = vst [vmem:[#allocation2 + $0x270] sm:$0xff] %v5785_v42  ;;  %866 = vst [vmem:[#allocation2 + $0xf0] sm:$0x3] %v5785_v42  ;;  %v481_v19 = vld [vmem:[%s8608_s3 + $0x2c8] sm:$0xff] }
  0xcd   : > { %511 = vmatpush1.msra.mxu0 %v416_v22  ;;  %623 = vmatprep.subr.mxu1 %v419_v21  ;;  %867 = vst [vmem:[#allocation2 + $0x8] sm:$0x3] %v5785_v42  ;;  %868 = vst [vmem:[#allocation2 + $0x148] sm:$0x3] %v5785_v42  ;;  %v480_v21 = vld [vmem:[%s8608_s3 + $0x2c0] sm:$0xff] }
  0xce   : > { %512 = vmatprep.subr.mxu0 %v411_v24  ;;  %624 = vmatpush1.msra.mxu1 %v418_v23  ;;  %869 = vst [vmem:[#allocation2 + $0x200] sm:$0x3] %v5785_v42  ;;  %870 = vst [vmem:[#allocation2 + $0x390] sm:$0x3] %v5785_v42  ;;  %v474_v24 = vld [vmem:[%s8608_s3 + $0x290] sm:$0xff] }
  0xcf   : > { %513 = vmatpush1.msra.mxu0 %v410_v26  ;;  %625 = vmatprep.subr.mxu1 %v413_v25  ;;  %871 = vst [vmem:[#allocation2 + $0x278] sm:$0x3] %v5785_v42  ;;  %872 = vst [vmem:[#allocation2] sm:$0xff] %v5785_v42 }
  0xd0   : > { %514 = vmatprep.subr.mxu0 %v405_v28  ;;  %626 = vmatpush1.msra.mxu1 %v412_v27  ;;  %873 = vst [vmem:[#allocation2 + $0x290] sm:$0xff] %v5785_v42  ;;  %874 = vst [vmem:[#allocation2 + $0x188] sm:$0xff] %v5785_v42  ;;  %v469_v28 = vld [vmem:[%s8608_s3 + $0x268] sm:$0xff] }
  0xd1   : > { %515 = vmatpush1.msra.mxu0 %v404_v32  ;;  %627 = vmatprep.subr.mxu1 %v407_v31  ;;  %875 = vst [vmem:[#allocation2 + $0xe0] sm:$0xff] %v5785_v42  ;;  %876 = vst [vmem:[#allocation2 + $0x1c0] sm:$0xff] %v5785_v42  ;;  %v468_v31 = vld [vmem:[%s8608_s3 + $0x260] sm:$0xff] }
  0xd2   : > { %516 = vmatprep.subr.mxu0 %v399_v34  ;;  %628 = vmatpush1.msra.mxu1 %v406_v33  ;;  %877 = vst [vmem:[#allocation2 + $0x90] sm:$0xff] %v5785_v42  ;;  %878 = vst [vmem:[#allocation2 + $0x70] sm:$0x3] %v5785_v42  ;;  %v462_v33 = vld [vmem:[%s8608_s3 + $0x230] sm:$0xff] }
  0xd3   : > { %879 = vst [vmem:[#allocation2 + $0x210] sm:$0x3] %v5785_v42  ;;  %880 = vst [vmem:[#allocation2 + $0x308] sm:$0x3] %v5785_v42  ;;  %517 = vmatpush1.msra.mxu0 %v6123_v35  ;;  %629 = vmatprep.subr.mxu1 %v6128_v38 }
  0xd4   : > { %881 = vst [vmem:[#allocation2 + $0x370] sm:$0x3] %v5785_v42  ;;  %882 = vst [vmem:[#allocation2 + $0x1d8] sm:$0x3] %v5785_v42  ;;  %518 = vmatprep.subr.mxu0 %v6133_v39  ;;  %630 = vmatpush1.msra.mxu1 %v6138_v40  ;;  %v457_v39 = vld [vmem:[%s8608_s3 + $0x208] sm:$0xff]  ;;  %v456_v40 = vld [vmem:[%s8608_s3 + $0x200] sm:$0xff] }
  0xd5   : > { %883 = vst [vmem:[#allocation2 + $0x260] sm:$0x3] %v5785_v42  ;;  %884 = vst [vmem:[#allocation2 + $0x358] sm:$0xff] %v5785_v42  ;;  %519 = vmatpush1.msra.mxu0 %v6143_v41  ;;  %631 = vmatprep.subr.mxu1 %v395_v43  ;;  %v450_v43 = vld [vmem:[%s8608_s3 + $0x1d0] sm:$0xff] }
  0xd6   : > { %885 = vst [vmem:[#allocation2 + $0x2c0] sm:$0xff] %v5785_v42  ;;  %886 = vst [vmem:[#allocation2 + $0x328] sm:$0xff] %v5785_v42  ;;  %632 = vmatpush1.msra.mxu1 %v394_v46  ;;  %714 = vmatprep.subr.mxu0 %v487_v47 }
  0xd7   : > { %887 = vst [vmem:[#allocation2 + $0x238] sm:$0xff] %v5785_v42  ;;  %888 = vst [vmem:[#allocation2 + $0x78] sm:$0xff] %v5785_v42 }
  0xd8   : > { %889 = vst [vmem:[#allocation2 + $0x158] sm:$0xff] %v5785_v42  ;;  %890 = vst [vmem:[#allocation2 + $0xa8] sm:$0x3] %v5785_v42 }
  0xd9   : > { %891 = vst [vmem:[#allocation2 + $0x300] sm:$0x3] %v5785_v42  ;;  %892 = vst [vmem:[#allocation2 + $0xe8] sm:$0x3] %v5785_v42 }
  0xda   : > { %893 = vst [vmem:[#allocation2 + $0x20] sm:$0x3] %v5785_v42  ;;  %894 = vst [vmem:[#allocation2 + $0x40] sm:$0x3] %v5785_v42 }
  0xdb   : > { %895 = vst [vmem:[#allocation2 + $0x1d0] sm:$0x3] %v5785_v42  ;;  %896 = vst [vmem:[#allocation2 + $0x2e8] sm:$0xff] %v5785_v42 }
  0xdc   : > { %897 = vst [vmem:[#allocation2 + $0x1f0] sm:$0xff] %v5785_v42  ;;  %898 = vst [vmem:[#allocation2 + $0x38] sm:$0xff] %v5785_v42 }
  0xdd   : > { %899 = vst [vmem:[#allocation2 + $0x2d0] sm:$0xff] %v5785_v42  ;;  %900 = vst [vmem:[#allocation2 + $0x30] sm:$0xff] %v5785_v42 }
  0xde   : > { %901 = vst [vmem:[#allocation2 + $0xc0] sm:$0xff] %v5785_v42  ;;  %902 = vst [vmem:[#allocation2 + $0x228] sm:$0x3] %v5785_v42 }
  0xdf   : > { %903 = vst [vmem:[#allocation2 + $0x170] sm:$0x3] %v5785_v42  ;;  %904 = vst [vmem:[#allocation2 + $0x280] sm:$0x3] %v5785_v42 }
  0xe0   : > { %905 = vst [vmem:[#allocation2 + $0x138] sm:$0x3] %v5785_v42  ;;  %906 = vst [vmem:[#allocation2 + $0x348] sm:$0x3] %v5785_v42 }
  0xe1   : > { %907 = vst [vmem:[#allocation2 + $0x3a8] sm:$0x3] %v5785_v42  ;;  %908 = vst [vmem:[#allocation2 + $0xf8] sm:$0xff] %v5785_v42 }
  0xe2   : > { %909 = vst [vmem:[#allocation2 + $0x250] sm:$0xff] %v5785_v42  ;;  %910 = vst [vmem:[#allocation2 + $0xb8] sm:$0xff] %v5785_v42 }
  0xe3   : > { %911 = vst [vmem:[#allocation2 + $0x1e8] sm:$0xff] %v5785_v42  ;;  %912 = vst [vmem:[#allocation2 + $0x2b8] sm:$0xff] %v5785_v42 }
  0xe4   : > { %913 = vst [vmem:[#allocation2 + $0x128] sm:$0xff] %v5785_v42  ;;  %914 = vst [vmem:[#allocation2 + $0xa0] sm:$0x3] %v5785_v42 }
  0xe5   : > { %915 = vst [vmem:[#allocation2 + $0x3a0] sm:$0x3] %v5785_v42  ;;  %916 = vst [vmem:[#allocation2 + $0x2f8] sm:$0x3] %v5785_v42 }
  0xe6   : > { %917 = vst [vmem:[#allocation2 + $0x350] sm:$0x3] %v5785_v42  ;;  %918 = vst [vmem:[#allocation2 + $0x230] sm:$0x3] %v5785_v42 }
  0xe7   : > { %919 = vst [vmem:[#allocation2 + $0x298] sm:$0x3] %v5785_v42  ;;  %920 = vst [vmem:[#allocation2 + $0x318] sm:$0xff] %v5785_v42 }
  0xe8   : > { %921 = vst [vmem:[#allocation2 + $0x160] sm:$0xff] %v5785_v42  ;;  %922 = vst [vmem:[#allocation2 + $0x88] sm:$0xff] %v5785_v42 }
  0xe9   : > { %923 = vst [vmem:[#allocation2 + $0x28] sm:$0xff] %v5785_v42  ;;  %924 = vst [vmem:[#allocation2 + $0x120] sm:$0xff] %v5785_v42 }
  0xea   : > { %925 = vst [vmem:[#allocation2 + $0x140] sm:$0xff] %v5785_v42  ;;  %926 = vst [vmem:[#allocation2 + $0x68] sm:$0x3] %v5785_v42 }
  0xeb   : > { %927 = vst [vmem:[#allocation2 + $0xd0] sm:$0x3] %v5785_v42  ;;  %928 = vst [vmem:[#allocation2 + $0x180] sm:$0x3] %v5785_v42 }
  0xec   : > { %929 = vst [vmem:[#allocation2 + $0x378] sm:$0x3] %v5785_v42  ;;  %930 = vst [vmem:[#allocation2 + $0x258] sm:$0x3] %v5785_v42 }
  0xed   : > { %931 = vst [vmem:[#allocation2 + $0x220] sm:$0x3] %v5785_v42  ;;  %932 = vst [vmem:[#allocation2 + $0x2a0] sm:$0xff] %v5785_v42 }
  0xee   : > { %933 = vst [vmem:[#allocation2 + $0x1a0] sm:$0xff] %v5785_v42  ;;  %934 = vst [vmem:[#allocation2 + $0x58] sm:$0xff] %v5785_v42 }
  0xef   : > { %935 = vst [vmem:[#allocation2 + $0x208] sm:$0xff] %v5785_v42  ;;  %936 = vst [vmem:[#allocation2 + $0x1e0] sm:$0xff] %v5785_v42 }
  0xf0   : > { %937 = vst [vmem:[#allocation2 + $0x100] sm:$0xff] %v5785_v42  ;;  %938 = vst [vmem:[#allocation2 + $0x10] sm:$0x3] %v5785_v42 }
  0xf1   : > { %939 = vst [vmem:[#allocation2 + $0x268] sm:$0x3] %v5785_v42  ;;  %940 = vst [vmem:[#allocation2 + $0x248] sm:$0x3] %v5785_v42 }
  0xf2   : > { %941 = vst [vmem:[#allocation2 + $0x190] sm:$0x3] %v5785_v42  ;;  %942 = vst [vmem:[#allocation2 + $0x1f8] sm:$0x3] %v5785_v42 }
  0xf3   : > { %943 = vst [vmem:[#allocation2 + $0x218] sm:$0x3] %v5785_v42  ;;  %950 = vst [vmem:[#allocation2 + $0xb0] sm:$0x3] %v5785_v42 }
  0xf4   : > { %951 = vst [vmem:[#allocation2 + $0x398] sm:$0x3] %v5785_v42  ;;  %952 = vst [vmem:[#allocation2 + $0x2d8] sm:$0x3] %v5785_v42 }
  0xf5   : > { %953 = vst [vmem:[#allocation2 + $0x1c8] sm:$0x3] %v5785_v42  ;;  %954 = vst [vmem:[#allocation2 + $0x2c8] sm:$0x3] %v5785_v42 }
  0xf6   : > { %955 = vst [vmem:[#allocation2 + $0x310] sm:$0x3] %v5785_v42 }
 0x144   : > { %v315_v48 = vpop.xlane.xlu0 %314 }
 0x145   : > { %v330_v49 = vmul.f32 0.0078125, %v315_v48 }
 0x147   : > { %v338_v50 = vadd.f32 1e-05, %v330_v49  ;;  %v445_v49 = vld [vmem:[%s8608_s3 + $0x1a8] sm:$0xff] }
 0x148   : > { %v317_v51 = vpop.xlane.xlu1 %316  ;;  %v319_v54 = vpop.xlane.xlu0 %318 }
 0x149   : > { %5598 = vrsqrt.f32 %v338_v50  ;;  %v331_v55 = vmul.f32 0.0078125, %v317_v51  ;;  %v332_v56 = vmul.f32 0.0078125, %v319_v54  ;;  %v444_v50 = vld [vmem:[%s8608_s3 + $0x1a0] sm:$0xff]  ;;  %v438_v54 = vld [vmem:[%s8608_s3 + $0x170] sm:$0xff] }
 0x14b   : > { %v339_v57 = vadd.f32 1e-05, %v331_v55  ;;  %v340_v58 = vadd.f32 1e-05, %v332_v56 }
 0x14c   : > { %v321_v59 = vpop.xlane.xlu1 %320  ;;  %v323_v60 = vpop.xlane.xlu0 %322 }
 0x14d   : > { %5600 = vrsqrt.f32 %v339_v57  ;;  %v333_v61 = vmul.f32 0.0078125, %v321_v59  ;;  %v334_v62 = vmul.f32 0.0078125, %v323_v60  ;;  %v432_v59 = vld [vmem:[%s8608_s3 + $0x140] sm:$0xff] }
 0x14e   : > { %5602 = vrsqrt.f32 %v340_v58  ;;  %v433_v58 = vld [vmem:[%s8608_s3 + $0x148] sm:$0xff] }
 0x14f   : > { %v341_v63 = vadd.f32 1e-05, %v333_v61  ;;  %v342_v0 = vadd.f32 1e-05, %v334_v62  ;;  %v426_v61 = vld [vmem:[%s8608_s3 + $0x110] sm:$0xff] }
 0x150   : > { %v325_v1 = vpop.xlane.xlu1 %324  ;;  %v327_v2 = vpop.xlane.xlu0 %326 }
 0x151   : > { %5604 = vrsqrt.f32 %v341_v63  ;;  %v335_v3 = vmul.f32 0.0078125, %v325_v1  ;;  %v336_v5 = vmul.f32 0.0078125, %v327_v2  ;;  %v420_v1 = vld [vmem:[%s8608_s3 + $0xe0] sm:$0xff]  ;;  %v415_v2 = vld [vmem:[%s8608_s3 + $0xb8] sm:$0xff] }
 0x152   : > { %5606 = vrsqrt.f32 %v342_v0  ;;  %v421_v0 = vld [vmem:[%s8608_s3 + $0xe8] sm:$0xff] }
 0x153   : > { %v343_v4 = vadd.f32 1e-05, %v335_v3  ;;  %v344_v9 = vadd.f32 1e-05, %v336_v5  ;;  %v414_v3 = vld [vmem:[%s8608_s3 + $0xb0] sm:$0xff]  ;;  %v409_v5 = vld [vmem:[%s8608_s3 + $0x88] sm:$0xff] }
 0x154   : > { %v329_v6 = vpop.xlane.xlu1 %328 }
 0x155   : > { %5608 = vrsqrt.f32 %v343_v4  ;;  %v337_v10 = vmul.f32 0.0078125, %v329_v6  ;;  %v408_v6 = vld [vmem:[%s8608_s3 + $0x80] sm:$0xff] }
 0x156   : > { %v5599_v7 = vpop.eup %5598  ;;  %5610 = vrsqrt.f32 %v344_v9  ;;  %v402_v9 = vld [vmem:[%s8608_s3 + $0x50] sm:$0xff] }
 0x157   : > { %v354_v11 = vmul.f32 %v5599_v7, %v5965_v29  ;;  %v345_v16 = vadd.f32 1e-05, %v337_v10  ;;  %v403_v7 = vld [vmem:[%s8608_s3 + $0x58] sm:$0xff]  ;;  %v397_v10 = vld [vmem:[%s8608_s3 + $0x28] sm:$0xff] }
 0x159   : > { %v369_v13 = vmul.f32 %v6273_v8, %v354_v11  ;;  %5612 = vrsqrt.f32 %v345_v16  ;;  %v396_v11 = vld [vmem:[%s8608_s3 + $0x20] sm:$0xff]  ;;  %v5036_v16 = vld [vmem:[#allocation3 + $0xe8] sm:$0xff] }
 0x15a   : > { %v5601_v14 = vpop.eup %5600 }
 0x15b   : > { %v5603_v15 = vpop.eup %5602  ;;  %v6283_v17 = vadd.f32 %v6279_v12, %v369_v13  ;;  %v355_v29 = vmul.f32 %v5601_v14, %v5971_v36  ;;  %v475_v36 = vld [vmem:[%s8608_s3 + $0x298] sm:$0xff]  ;;  %v5037_v14 = vld [vmem:[#allocation3 + $0xf0] sm:$0xff] }
 0x15c   : > { %v356_v20 = vmul.f32 %v5603_v15, %v5967_v30  ;;  %v5022_v13 = vld [vmem:[#allocation3 + $0x78] sm:$0xff]  ;;  %v5021_v15 = vld [vmem:[#allocation3 + $0x70] sm:$0xff] }
 0x15d   : > { %553 = vmatmul.mubr.f32.vlgmr.msra.gmra.mxu0 %v6283_v17  ;;  %666 = vmatmul.mubr.f32.vlgmr.msra.gmra.mxu1 %v6283_v17  ;;  %v370_v22 = vmul.f32 %v6273_v8, %v355_v29  ;;  %v5019_v29 = vld [vmem:[#allocation3 + $0x60] sm:$0xff] }
 0x15e   : > { %v5605_v23 = vpop.eup %5604  ;;  %715 = vmatpush1.msra.mxu0 %v486_v18  ;;  %558 = vmatprep.mubr.f32.mxu0 %v5785_v42  ;;  %v371_v25 = vmul.f32 %v6273_v8, %v356_v20  ;;  %v5035_v18 = vld [vmem:[#allocation3 + $0xe0] sm:$0xff]  ;;  %v5018_v20 = vld [vmem:[#allocation3 + $0x58] sm:$0xff] }
 0x15f   : > { %716 = vmatprep.subr.mxu0 %v481_v19  ;;  %671 = vmatprep.mubr.f32.mxu1 %v5785_v42  ;;  %v6305_v30 = vadd.f32 %v6279_v12, %v370_v22  ;;  %v357_v26 = vmul.f32 %v5605_v23, %v5973_v37  ;;  %v5607_v27 = vpop.eup %5606  ;;  %v463_v37 = vld [vmem:[%s8608_s3 + $0x238] sm:$0xff]  ;;  %v5033_v22 = vld [vmem:[#allocation3 + $0xd0] sm:$0xff] }
 0x160   : > { %717 = vmatpush1.msra.mxu0 %v480_v21  ;;  %v6325_v32 = vadd.f32 %v6279_v12, %v371_v25  ;;  %v358_v35 = vmul.f32 %v5607_v27, %v5979_v44  ;;  %v451_v44 = vld [vmem:[%s8608_s3 + $0x1d8] sm:$0xff]  ;;  %v5053_v21 = vld [vmem:[#allocation3 + $0x170] sm:$0xff]  ;;  %v5051_v25 = vld [vmem:[#allocation3 + $0x160] sm:$0xff] }
 0x161   : > { %718 = vmatprep.subr.mxu0 %v475_v36  ;;  %559 = vmatmul.mubr.f32.gmra.mxu0 %v6305_v30  ;;  %v372_v34 = vmul.f32 %v6273_v8, %v357_v26  ;;  %v6444_v19 = vld [vmem:[#allocation3 + $0x178] sm:$0xff]  ;;  %v5017_v23 = vld [vmem:[#allocation3 + $0x50] sm:$0xff]  ;;  %v5052_v36 = vld [vmem:[#allocation3 + $0x168] sm:$0xff] }
 0x162   : > { %672 = vmatmul.mubr.f32.gmra.mxu1 %v6305_v30  ;;  %719 = vmatpush1.msra.mxu0 %v474_v24  ;;  %v5609_v38 = vpop.eup %5608  ;;  %v373_v46 = vmul.f32 %v6273_v8, %v358_v35  ;;  %v5016_v24 = vld [vmem:[#allocation3 + $0x48] sm:$0xff]  ;;  %v5031_v26 = vld [vmem:[#allocation3 + $0xc0] sm:$0xff] }
 0x163   : > { %720 = vmatprep.subr.mxu0 %v469_v28  ;;  %564 = vmatprep.mubr.f32.mxu0 %v5785_v42  ;;  %v6346_v41 = vadd.f32 %v6279_v12, %v372_v34  ;;  %v359_v47 = vmul.f32 %v5609_v38, %v5982_v45  ;;  %v5611_v48 = vpop.eup %5610  ;;  %v439_v45 = vld [vmem:[%s8608_s3 + $0x178] sm:$0xff]  ;;  %v5015_v27 = vld [vmem:[#allocation3 + $0x40] sm:$0xff]  ;;  %v5013_v34 = vld [vmem:[#allocation3 + $0x30] sm:$0xff] }
 0x164   : > { %721 = vmatpush1.msra.mxu0 %v468_v31  ;;  %677 = vmatprep.mubr.f32.mxu1 %v5785_v42  ;;  %v6367_v51 = vadd.f32 %v6279_v12, %v373_v46  ;;  %v360_v56 = vmul.f32 %v5611_v48, %v5989_v52  ;;  %v427_v52 = vld [vmem:[%s8608_s3 + $0x118] sm:$0xff]  ;;  %v5048_v35 = vld [vmem:[#allocation3 + $0x148] sm:$0xff]  ;;  %v5045_v48 = vld [vmem:[#allocation3 + $0x130] sm:$0xff] }
 0x165   : > { %722 = vmatprep.subr.mxu0 %v463_v37  ;;  %565 = vmatmul.mubr.f32.gmra.mxu0 %v6325_v32  ;;  %v374_v55 = vmul.f32 %v6273_v8, %v359_v47  ;;  %v5050_v28 = vld [vmem:[#allocation3 + $0x158] sm:$0xff]  ;;  %v5028_v38 = vld [vmem:[#allocation3 + $0xa8] sm:$0xff] }
 0x166   : > { %678 = vmatmul.mubr.f32.gmra.mxu1 %v6325_v32  ;;  %723 = vmatpush1.msra.mxu0 %v462_v33  ;;  %v5613_v57 = vpop.eup %5612  ;;  %v375_v62 = vmul.f32 %v6273_v8, %v360_v56  ;;  %v5030_v31 = vld [vmem:[#allocation3 + $0xb8] sm:$0xff]  ;;  %v5029_v33 = vld [vmem:[#allocation3 + $0xb0] sm:$0xff]  ;;  %v5023_v56 = vld [vmem:[#allocation3 + $0x80] sm:$0xff] }
 0x167   : > { %724 = vmatprep.subr.mxu0 %v457_v39  ;;  %570 = vmatprep.mubr.f32.mxu0 %v5785_v42  ;;  %v389_v60 = vadd.f32 %v6279_v12, %v374_v55  ;;  %v361_v63 = vmul.f32 %v5613_v57, %v5992_v53  ;;  %v5014_v37 = vld [vmem:[#allocation3 + $0x38] sm:$0xff]  ;;  %v5012_v39 = vld [vmem:[#allocation3 + $0x28] sm:$0xff]  ;;  %v5043_v55 = vld [vmem:[#allocation3 + $0x120] sm:$0xff] }
 0x168   : > { %725 = vmatpush1.msra.mxu0 %v456_v40  ;;  %683 = vmatprep.mubr.f32.mxu1 %v5785_v42  ;;  %v390_v53 = vadd.f32 %v6279_v12, %v375_v62  ;;  %v5047_v40 = vld [vmem:[#allocation3 + $0x140] sm:$0xff]  ;;  %v5026_v46 = vld [vmem:[#allocation3 + $0x98] sm:$0xff] }
 0x169   : > { %726 = vmatprep.subr.mxu0 %v451_v44  ;;  %571 = vmatmul.mubr.f32.gmra.mxu0 %v6346_v41  ;;  %v376_v4 = vmul.f32 %v6273_v8, %v361_v63  ;;  %v5027_v44 = vld [vmem:[#allocation3 + $0xa0] sm:$0xff]  ;;  %v5010_v47 = vld [vmem:[#allocation3 + $0x18] sm:$0xff] }
 0x16a   : > { %684 = vmatmul.mubr.f32.gmra.mxu1 %v6346_v41  ;;  %727 = vmatpush1.msra.mxu0 %v450_v43  ;;  %v5046_v43 = vld [vmem:[#allocation3 + $0x138] sm:$0xff]  ;;  %v5007_v57 = vld [vmem:[#allocation3] sm:$0xff] }
 0x16b   : > { %728 = vmatprep.subr.mxu0 %v445_v49  ;;  %576 = vmatprep.mubr.f32.mxu0 %v5785_v42  ;;  %v391_v8 = vadd.f32 %v6279_v12, %v376_v4  ;;  %v5038_v12 = vld [vmem:[#allocation3 + $0xf8] sm:$0xff]  ;;  %v5025_v49 = vld [vmem:[#allocation3 + $0x90] sm:$0xff]  ;;  %v827_v62 = vld [vmem:[%s8609_s4] sm:$0x77] }
 0x16c   : > { %729 = vmatpush1.msra.mxu0 %v444_v50  ;;  %689 = vmatprep.mubr.f32.mxu1 %v5785_v42  ;;  %v5009_v50 = vld [vmem:[#allocation3 + $0x10] sm:$0xff]  ;;  %v1204_v4 = vld [vmem:[#allocation2 + $0x48] sm:$0x3] }
 0x16d   : > { %730 = vmatprep.subr.mxu0 %v439_v45  ;;  %577 = vmatmul.mubr.f32.gmra.mxu0 %v6367_v51  ;;  %v5044_v45 = vld [vmem:[#allocation3 + $0x128] sm:$0xff] }
 0x16e   : > { %690 = vmatmul.mubr.f32.gmra.mxu1 %v6367_v51  ;;  %731 = vmatpush1.msra.mxu0 %v438_v54  ;;  %v5008_v54 = vld [vmem:[#allocation3 + $0x8] sm:$0xff] }
 0x16f   : > { %732 = vmatprep.subr.mxu0 %v433_v58  ;;  %582 = vmatprep.mubr.f32.mxu0 %v5785_v42  ;;  %v5042_v58 = vld [vmem:[#allocation3 + $0x118] sm:$0xff] }
 0x170   : > { %733 = vmatpush1.msra.mxu0 %v432_v59  ;;  %695 = vmatprep.mubr.f32.mxu1 %v5785_v42  ;;  %v5041_v59 = vld [vmem:[#allocation3 + $0x110] sm:$0xff] }
 0x171   : > { %734 = vmatprep.subr.mxu0 %v427_v52  ;;  %583 = vmatmul.mubr.f32.gmra.mxu0 %v389_v60  ;;  %v1296_v52 = vlaneseq }
 0x172   : > { %696 = vmatmul.mubr.f32.gmra.mxu1 %v389_v60  ;;  %735 = vmatpush1.msra.mxu0 %v426_v61 }
 0x173   : > { %736 = vmatprep.subr.mxu0 %v421_v0  ;;  %588 = vmatprep.mubr.f32.mxu0 %v5785_v42 }
 0x174   : > { %737 = vmatpush1.msra.mxu0 %v420_v1  ;;  %701 = vmatprep.mubr.f32.mxu1 %v5785_v42 }
 0x175   : > { %738 = vmatprep.subr.mxu0 %v415_v2  ;;  %589 = vmatmul.mubr.f32.gmra.mxu0 %v390_v53 }
 0x176   : > { %702 = vmatmul.mubr.f32.gmra.mxu1 %v390_v53  ;;  %739 = vmatpush1.msra.mxu0 %v414_v3 }
 0x177   : > { %740 = vmatprep.subr.mxu0 %v409_v5  ;;  %594 = vmatprep.mubr.f32.mxu0 %v5785_v42 }
 0x178   : > { %741 = vmatpush1.msra.mxu0 %v408_v6  ;;  %707 = vmatprep.mubr.f32.mxu1 %v5785_v42 }
 0x179   : > { %742 = vmatprep.subr.mxu0 %v403_v7  ;;  %595 = vmatmul.mubr.f32.gmra.mxu0 %v391_v8  ;;  %v6471_v7 = vld [vmem:[%s8609_s4 + $0x8] sm:$0x77] }
 0x17a   : > { %708 = vmatmul.mubr.f32.gmra.mxu1 %v391_v8  ;;  %743 = vmatpush1.msra.mxu0 %v402_v9 }
 0x17b   : > { %744 = vmatprep.subr.mxu0 %v397_v10  ;;  %778 = vmatprep.mubr.f32.mxu0 %v5785_v42 }
 0x17c   : > { %745 = vmatpush1.msra.mxu0 %v396_v11  ;;  %5387 = vmatprep.subr.mxu1 %v5038_v12 }
 0x17d   : > { %779 = vmatmul.mubr.f32.vlgmr.msra.gmra.mxu0 %v6283_v17  ;;  %5388 = vmatpush3.msra.mxu1 %v5022_v13  ;;  %v5020_v17 = vld [vmem:[#allocation3 + $0x68] sm:$0xff] }
 0x17e   : > { %784 = vmatprep.mubr.f32.mxu0 %v5785_v42  ;;  %5389 = vmatprep.subr.mxu1 %v5037_v14 }
 0x17f   : > { %5390 = vmatpush3.msra.mxu1 %v5021_v15  ;;  %5467 = vmatprep.subr.mxu0 %v6444_v19  ;;  %v5040_v15 = vld [vmem:[#allocation3 + $0x108] sm:$0xff] }
 0x180   : > { %5391 = vmatprep.subr.mxu1 %v5036_v16  ;;  %5468 = vmatpush3.msra.mxu0 %v6444_v19  ;;  %v6489_v16 = vld [vmem:[%s8609_s4 + $0x18] sm:$0x77] }
 0x181   : > { %785 = vmatmul.mubr.f32.gmra.mxu0 %v6305_v30  ;;  %5392 = vmatpush3.msra.mxu1 %v5020_v17  ;;  %v5032_v30 = vld [vmem:[#allocation3 + $0xc8] sm:$0xff] }
 0x182   : > { %790 = vmatprep.mubr.f32.mxu0 %v5785_v42  ;;  %5393 = vmatprep.subr.mxu1 %v5035_v18 }
 0x183   : > { %5394 = vmatpush3.msra.mxu1 %v5019_v29  ;;  %5469 = vmatprep.subr.mxu0 %v5053_v21 }
 0x184   : > { %5470 = vmatpush3.msra.mxu0 %v5053_v21 }
 0x185   : > { %791 = vmatmul.mubr.f32.gmra.mxu0 %v6325_v32  ;;  %5471 = vmatprep.subr.mxu0 %v5052_v36  ;;  %v5049_v32 = vld [vmem:[#allocation3 + $0x150] sm:$0xff] }
 0x186   : > { %796 = vmatprep.mubr.f32.mxu0 %v5785_v42  ;;  %5472 = vmatpush3.msra.mxu0 %v5052_v36 }
 0x187   : > { %5473 = vmatprep.subr.mxu0 %v5051_v25 }
 0x188   : > { %5474 = vmatpush3.msra.mxu0 %v5051_v25 }
 0x189   : > { %797 = vmatmul.mubr.f32.gmra.mxu0 %v6346_v41  ;;  %5475 = vmatprep.subr.mxu0 %v5050_v28  ;;  %v5011_v41 = vld [vmem:[#allocation3 + $0x20] sm:$0xff] }
 0x18a   : > { %802 = vmatprep.mubr.f32.mxu0 %v5785_v42  ;;  %5476 = vmatpush3.msra.mxu0 %v5050_v28 }
 0x18b   : > { %5477 = vmatprep.subr.mxu0 %v5049_v32 }
 0x18c   : > { %5478 = vmatpush3.msra.mxu0 %v5049_v32 }
 0x18d   : > { %803 = vmatmul.mubr.f32.gmra.mxu0 %v6367_v51  ;;  %5479 = vmatprep.subr.mxu0 %v5048_v35  ;;  %v5024_v51 = vld [vmem:[#allocation3 + $0x88] sm:$0xff] }
 0x18e   : > { %808 = vmatprep.mubr.f32.mxu0 %v5785_v42  ;;  %5480 = vmatpush3.msra.mxu0 %v5048_v35 }
 0x18f   : > { %5481 = vmatprep.subr.mxu0 %v5047_v40 }
 0x190   : > { %5482 = vmatpush3.msra.mxu0 %v5047_v40 }
 0x191   : > { %809 = vmatmul.mubr.f32.gmra.mxu0 %v389_v60  ;;  %5483 = vmatprep.subr.mxu0 %v5046_v43  ;;  %v1297_v60 = vshrl.u32 %v1296_v52, 7 }
 0x192   : > { %814 = vmatprep.mubr.f32.mxu0 %v5785_v42  ;;  %5484 = vmatpush3.msra.mxu0 %v5046_v43 }
 0x193   : > { %5485 = vmatprep.subr.mxu0 %v5045_v48  ;;  %v6449_v61 = vsub.s32 5, %v1297_v60  ;;  %v6455_v0 = vsub.s32 6, %v1297_v60  ;;  %v6457_v1 = vsub.s32 1, %v1297_v60  ;;  %v6459_v2 = vsub.s32 4, %v1297_v60 }
 0x194   : > { %5486 = vmatpush3.msra.mxu0 %v5045_v48  ;;  %v6465_v5 = vsub.s32 2, %v1297_v60  ;;  %v6478_v11 = vsub.s32 0, %v1297_v60 }
 0x195   : > { %815 = vmatmul.mubr.f32.gmra.mxu0 %v390_v53  ;;  %5487 = vmatprep.subr.mxu0 %v5044_v45  ;;  %v1453_v63 = vrot.slane %v827_v62, %v6449_v61  ;;  %v1940_v3 = vrot.slane %v827_v62, %v6455_v0  ;;  %v1303_v6 = vrot.slane %v827_v62, %v6459_v2 }
 0x196   : > { %820 = vmatprep.mubr.f32.mxu0 %v5785_v42  ;;  %v5034_v42 = vld [vmem:[#allocation3 + $0xd8] sm:$0xff]  ;;  %5488 = vmatpush3.msra.mxu0 %v5044_v45  ;;  %v1449_v12 = vrot.slane %v827_v62, %v6457_v1  ;;  %v1457_v13 = vrot.slane %v6471_v7, %v6457_v1  ;;  %v1936_v21 = vrot.slane %v827_v62, %v6465_v5 }
 0x197   : > { %5395 = vmatprep.subr.mxu1 %v5034_v42  ;;  %5489 = vmatprep.subr.mxu0 %v5043_v55  ;;  %v6462_v53 = vrot.slane %v1453_v63, %v6457_v1  ;;  %v6476_v10 = vrot.slane %v1940_v3, %v6465_v5  ;;  %v6484_v14 = vrot.slane %v1303_v6, %v6478_v11 }
 0x198   : > { %5396 = vmatpush3.msra.mxu1 %v5018_v20  ;;  %5490 = vmatpush3.msra.mxu0 %v5043_v55  ;;  %v6494_v42 = vrot.slane %v1449_v12, %v6457_v1  ;;  %v1461_v20 = vrot.slane %v6471_v7, %v6449_v61  ;;  %v2526_v28 = vrot.slane %v6489_v16, %v6459_v2 }
 0x199   : > { %821 = vmatmul.mubr.f32.gmra.mxu0 %v391_v8  ;;  %5397 = vmatprep.subr.mxu1 %v5033_v22  ;;  %8771 = vst [vmem:[#allocation9_spill] sm:$0xff] %v6462_v53  ;;  %v1501_v8 = vmul.f32 0.0, %v6462_v53  ;;  %v1507_v9 = vmul.f32 %v6462_v53, %v1204_v4  ;;  %8772 = vst [vmem:[#allocation10_spill] sm:$0xff] %v6476_v10  ;;  %v1988_v29 = vmul.f32 0.0, %v6476_v10  ;;  %v1203_v22 = vld [vmem:[#allocation2 + $0x330] sm:$0x3] }
 0x19a   : > { %5398 = vmatpush3.msra.mxu1 %v5017_v23  ;;  %5491 = vmatprep.subr.mxu0 %v5042_v58  ;;  %8773 = vst [vmem:[#allocation11_spill] sm:$0xff] %v6484_v14  ;;  %8774 = vst [vmem:[#allocation12_spill] sm:$0xff] %v6494_v42  ;;  %v6500_v23 = vrot.slane %v1457_v13, %v6457_v1  ;;  %v1351_v36 = vmul.f32 0.0, %v6484_v14  ;;  %v1506_v32 = vmul.f32 %v6494_v42, %v1203_v22 }
 0x19b   : > { %5399 = vmatprep.subr.mxu1 %v5032_v30  ;;  %5492 = vmatpush3.msra.mxu0 %v5042_v58  ;;  %v1696_v17 = vrot.slane %v1501_v8, 1  ;;  %v1697_v18 = vrot.slane %v1507_v9, 1  ;;  %v2672_v30 = vrot.slane %v6489_v16, %v6457_v1  ;;  %v2676_v35 = vrot.slane %v6489_v16, %v6449_v61 }
 0x19c   : > { %5400 = vmatpush3.msra.mxu1 %v5016_v24  ;;  %5493 = vmatprep.subr.mxu0 %v5041_v59  ;;  %8775 = vst [vmem:[#allocation13_spill] sm:$0xff] %v6500_v23  ;;  %v1299_v24 = vrot.slane %v827_v62, %v6478_v11  ;;  %v1948_v40 = vrot.slane %v6471_v7, %v6455_v0  ;;  %v1694_v55 = vrot.slane %v1506_v32, 1 }
 0x19d   : > { %5401 = vmatprep.subr.mxu1 %v5031_v26  ;;  %5494 = vmatpush3.msra.mxu0 %v5041_v59  ;;  %v1698_v25 = vsel %vm1692_vm0, %v1696_v17, %v1697_v18  ;;  %v2183_v26 = vrot.slane %v1988_v29, 2  ;;  %v3158_v43 = vrot.slane %v6489_v16, %v6465_v5  ;;  %v6537_v48 = vrot.slane %v2526_v28, %v6478_v11  ;;  %v6578_v17 = vld [vmem:[%s8609_s4 + $0x10] sm:$0x77]  ;;  %v6583_v18 = vld [vmem:[%s8609_s4 + $0x20] sm:$0x77] }
 0x19e   : > { %5402 = vmatpush3.msra.mxu1 %v5015_v27  ;;  %5495 = vmatprep.subr.mxu0 %v5040_v15  ;;  %v2534_v28 = vrot.slane %v6583_v18, %v6459_v2 }
 0x19f   : > { %5403 = vmatprep.subr.mxu1 %v5030_v31  ;;  %5496 = vmatpush3.msra.mxu0 %v5040_v15  ;;  %v6510_v31 = vrot.slane %v1461_v20, %v6457_v1  ;;  %8779 = vst [vmem:[#allocation17_spill] sm:$0xff] %v6537_v48  ;;  %v6555_v52 = vrot.slane %v3158_v43, %v6465_v5 }
 0x1a0   : > { %5404 = vmatpush3.msra.mxu1 %v5014_v37  ;;  %v1500_v37 = vmul.f32 0.0, %v6494_v42  ;;  %v2684_v43 = vrot.slane %v6583_v18, %v6449_v61 }
 0x1a1   : > { %5405 = vmatprep.subr.mxu1 %v5029_v33  ;;  %8776 = vst [vmem:[#allocation14_spill] sm:$0xff] %v6510_v31  ;;  %v1944_v33 = vrot.slane %v6471_v7, %v6465_v5  ;;  %v1503_v45 = vmul.f32 0.0, %v6510_v31  ;;  %8783 = vst [vmem:[#allocation21_spill] sm:$0xff] %v6555_v52 }
 0x1a2   : > { %5406 = vmatpush3.msra.mxu1 %v5013_v34  ;;  %v6517_v34 = vrot.slane %v1936_v21, %v6465_v5 }
 0x1a3   : > { %5407 = vmatprep.subr.mxu1 %v5028_v38  ;;  %v1206_v38 = vld [vmem:[#allocation2 + $0x110] sm:$0x3]  ;;  %v1702_v13 = vrot.slane %v1503_v45, 1  ;;  %v3166_v45 = vrot.slane %v6583_v18, %v6465_v5 }
 0x1a4   : > { %5408 = vmatpush3.msra.mxu1 %v5012_v39  ;;  %8777 = vst [vmem:[#allocation15_spill] sm:$0xff] %v6517_v34  ;;  %v1311_v39 = vrot.slane %v6471_v7, %v6459_v2  ;;  %v1987_v58 = vmul.f32 0.0, %v6517_v34  ;;  %v1993_v59 = vmul.f32 %v6517_v34, %v1203_v22 }
 0x1a5   : > { %5409 = vmatprep.subr.mxu1 %v5027_v44  ;;  %v1886_v44 = vadd.f32 %v1698_v25, %v1351_v36 }
 0x1a6   : > { %5410 = vmatpush3.msra.mxu1 %v5011_v41  ;;  %v6526_v41 = vrot.slane %v2672_v30, %v6457_v1  ;;  %v6571_v8 = vrot.slane %v1311_v39, %v6478_v11  ;;  %v2180_v20 = vrot.slane %v1987_v58, 2  ;;  %v2181_v21 = vrot.slane %v1993_v59, 2 }
 0x1a7   : > { %5411 = vmatprep.subr.mxu1 %v5026_v46  ;;  %v6533_v46 = vld [vmem:[%s8609_s4 + $0x30] sm:$0x77]  ;;  %v6633_v59 = vrot.slane %v2534_v28, %v6478_v11 }
 0x1a8   : > { %5412 = vmatpush3.msra.mxu1 %v5010_v47  ;;  %8778 = vst [vmem:[#allocation16_spill] sm:$0xff] %v6526_v41  ;;  %v3748_v60 = vrot.slane %v6533_v46, %v6459_v2  ;;  %v3894_v62 = vrot.slane %v6533_v46, %v6457_v1  ;;  %v4380_v63 = vrot.slane %v6533_v46, %v6465_v5  ;;  %8785 = vst [vmem:[#allocation23_spill] sm:$0xff] %v6571_v8 }
 0x1a9   : > { %5413 = vmatprep.subr.mxu1 %v5025_v49  ;;  %v3162_v49 = vrot.slane %v6489_v16, %v6455_v0  ;;  %v3898_v6 = vrot.slane %v6533_v46, %v6449_v61  ;;  %v4384_v30 = vrot.slane %v6533_v46, %v6455_v0  ;;  %v2182_v39 = vsel %vm2179_vm1, %v2180_v20, %v2181_v21 }
 0x1aa   : > { %5414 = vmatpush3.msra.mxu1 %v5009_v50  ;;  %v6542_v50 = vrot.slane %v1299_v24, %v6478_v11  ;;  %v6588_v22 = vrot.slane %v3748_v60, %v6478_v11  ;;  %v6591_v36 = vrot.slane %v3894_v62, %v6457_v1  ;;  %v6596_v24 = vrot.slane %v4380_v63, %v6465_v5 }
 0x1ab   : > { %5415 = vmatprep.subr.mxu1 %v5024_v51  ;;  %v1509_v51 = vmul.f32 %v6510_v31, %v1206_v38  ;;  %v6599_v25 = vrot.slane %v3898_v6, %v6457_v1  ;;  %8792 = vst [vmem:[#allocation30_spill] sm:$0xff] %v6633_v59  ;;  %v1469_v20 = vrot.slane %v6578_v17, %v6449_v61 }
 0x1ac   : > { %5416 = vmatpush3.msra.mxu1 %v5008_v54  ;;  %8780 = vst [vmem:[#allocation18_spill] sm:$0xff] %v6542_v50  ;;  %v1693_v54 = vrot.slane %v1500_v37, 1  ;;  %v1350_v9 = vmul.f32 0.0, %v6542_v50  ;;  %8786 = vst [vmem:[#allocation24_spill] sm:$0xff] %v6588_v22  ;;  %v1465_v37 = vrot.slane %v6578_v17, %v6457_v1  ;;  %v6659_v21 = vrot.slane %v3166_v45, %v6465_v5 }
 0x1ad   : > { %5417 = vmatprep.subr.mxu1 %v5023_v56  ;;  %v6547_v56 = vrot.slane %v2676_v35, %v6457_v1  ;;  %v1703_v15 = vrot.slane %v1509_v51, 1  ;;  %8787 = vst [vmem:[#allocation25_spill] sm:$0xff] %v6596_v24  ;;  %8788 = vst [vmem:[#allocation26_spill] sm:$0xff] %v6599_v25  ;;  %v1307_v51 = vrot.slane %v6471_v7, %v6478_v11 }
 0x1ae   : > { %5418 = vmatpush3.msra.mxu1 %v5007_v57  ;;  %v6550_v57 = vrot.slane %v1948_v40, %v6465_v5  ;;  %v1695_v12 = vsel %vm1692_vm0, %v1693_v54, %v1694_v55  ;;  %v6627_v54 = vld [vmem:[%s8609_s4 + $0x38] sm:$0x77]  ;;  %v6640_v62 = vrot.slane %v1465_v37, %v6457_v1  ;;  %8796 = vst [vmem:[#allocation34_spill] sm:$0xff] %v6659_v21 }
 0x1af   : > { %5511 = vmatprep.subr.mxu1 %v6444_v19  ;;  %v1994_v19 = vmul.f32 %v6476_v10, %v1204_v4  ;;  %8781 = vst [vmem:[#allocation19_spill] sm:$0xff] %v6547_v56  ;;  %v6566_v4 = vrot.slane %v3162_v49, %v6465_v5  ;;  %v1704_v32 = vsel %vm1692_vm0, %v1702_v13, %v1703_v15 }
 0x1b0   : > { %8782 = vst [vmem:[#allocation20_spill] sm:$0xff] %v6550_v57  ;;  %v1990_v29 = vmul.f32 0.0, %v6550_v57  ;;  %v1885_v35 = vadd.f32 %v1695_v12, %v1350_v9  ;;  %v6618_v49 = vrot.slane %v1944_v33, %v6465_v5  ;;  %v6635_v33 = vld [vmem:[#allocation2 + $0x2b0] sm:$0xff]  ;;  %8793 = vst [vmem:[#allocation31_spill] sm:$0xff] %v6640_v62  ;;  %v5039_v9 = vld [vmem:[#allocation3 + $0x100] sm:$0xff]  ;;  %v6650_v15 = vrot.slane %v2684_v43, %v6457_v1 }
 0x1b1   : > { %v2184_v27 = vrot.slane %v1994_v19, 2  ;;  %8784 = vst [vmem:[#allocation22_spill] sm:$0xff] %v6566_v4  ;;  %v1996_v19 = vmul.f32 %v6550_v57, %v1206_v38  ;;  %v2680_v38 = vrot.slane %v6583_v18, %v6457_v1  ;;  %v1502_v60 = vmul.f32 %v6635_v33, %v6500_v23  ;;  %v1207_v12 = vld [vmem:[#allocation2 + $0x118] sm:$0x3]  ;;  %5497 = vmatprep.subr.mxu0 %v5039_v9 }
 0x1b2   : > { %v2189_v40 = vrot.slane %v1990_v29, 2  ;;  %8790 = vst [vmem:[#allocation28_spill] sm:$0xff] %v6618_v49  ;;  %v6642_v7 = vadd.f32 %v2182_v39, %v1885_v35  ;;  %8795 = vst [vmem:[#allocation33_spill] sm:$0xff] %v6650_v15  ;;  %v3170_v29 = vrot.slane %v6583_v18, %v6455_v0  ;;  %5498 = vmatpush3.msra.mxu0 %v5039_v9 }
 0x1b3   : > { %v2185_v47 = vsel %vm2179_vm1, %v2183_v26, %v2184_v27  ;;  %v1353_v26 = vmul.f32 0.0, %v6571_v8  ;;  %v2522_v27 = vrot.slane %v6489_v16, %v6478_v11  ;;  %v1205_v16 = vld [vmem:[#allocation2 + $0x380] sm:$0x3]  ;;  %v6645_v63 = vrot.slane %v2680_v38, %v6457_v1 }
 0x1b4   : > { %v6563_v3 = vadd.f32 %v2185_v47, %v1886_v44  ;;  %v2190_v44 = vrot.slane %v1996_v19, 2  ;;  %v6615_v47 = vrot.slane %v4384_v30, %v6465_v5  ;;  %v1508_v6 = vmul.f32 %v6500_v23, %v1205_v16 }
 0x1b5   : > { %v1888_v55 = vadd.f32 %v1704_v32, %v1353_v26  ;;  %v6630_v58 = vrot.slane %v2522_v27, %v6478_v11  ;;  %8794 = vst [vmem:[#allocation32_spill] sm:$0xff] %v6645_v63  ;;  %v3744_v19 = vrot.slane %v6533_v46, %v6478_v11  ;;  %v3902_v30 = vrot.slane %v6627_v54, %v6457_v1 }
 0x1b6   : > { %8789 = vst [vmem:[#allocation27_spill] sm:$0xff] %v6615_v47  ;;  %v2191_v13 = vsel %vm2179_vm1, %v2189_v40, %v2190_v44  ;;  %v6664_v26 = vrot.slane %v1307_v51, %v6478_v11  ;;  %v1315_v27 = vrot.slane %v6578_v17, %v6478_v11  ;;  %v1699_v28 = vrot.slane %v1502_v60, 1 }
 0x1b7   : > { %8791 = vst [vmem:[#allocation29_spill] sm:$0xff] %v6630_v58  ;;  %v1989_v46 = vmul.f32 %v6635_v33, %v6618_v49  ;;  %v1995_v37 = vmul.f32 %v6618_v49, %v1205_v16  ;;  %v1504_v32 = vmul.f32 %v6635_v33, %v6640_v62  ;;  %v1510_v35 = vmul.f32 %v6640_v62, %v1207_v12 }
 0x1b8   : > { %8797 = vst [vmem:[#allocation35_spill] sm:$0xff] %v6664_v26  ;;  %v1952_v38 = vrot.slane %v6578_v17, %v6465_v5  ;;  %v1700_v39 = vrot.slane %v1508_v6, 1  ;;  %v6676_v40 = vadd.f32 %v2191_v13, %v1888_v55  ;;  %v6679_v44 = vrot.slane %v3170_v29, %v6465_v5  ;;  %v1208_v13 = vld [vmem:[#allocation2 + $0x98] sm:$0x3] }
 0x1b9   : > { %v3756_v43 = vrot.slane %v6627_v54, %v6459_v2  ;;  %v6684_v45 = vrot.slane %v3744_v19, %v6478_v11  ;;  %v6687_v16 = vrot.slane %v1469_v20, %v6457_v1  ;;  %v3906_v51 = vrot.slane %v6627_v54, %v6449_v61 }
 0x1ba   : > { %8798 = vst [vmem:[#allocation36_spill] sm:$0xff] %v6679_v44  ;;  %v6692_v60 = vrot.slane %v3902_v30, %v6457_v1  ;;  %v1352_v55 = vmul.f32 %v6635_v33, %v6664_v26  ;;  %v6697_v6 = vrot.slane %v1315_v27, %v6478_v11  ;;  %v1956_v9 = vrot.slane %v6578_v17, %v6455_v0  ;;  %v6708_v26 = vld [vmem:[%s8609_s4 + $0x28] sm:$0x77] }
 0x1bb   : > { %8799 = vst [vmem:[#allocation37_spill] sm:$0xff] %v6684_v45  ;;  %8800 = vst [vmem:[#allocation38_spill] sm:$0xff] %v6687_v16  ;;  %v2186_v29 = vrot.slane %v1989_v46, 2  ;;  %v2187_v19 = vrot.slane %v1995_v37, 2  ;;  %v1705_v20 = vrot.slane %v1504_v32, 1  ;;  %v1706_v49 = vrot.slane %v1510_v35, 1 }
 0x1bc   : > { %8801 = vst [vmem:[#allocation39_spill] sm:$0xff] %v6692_v60  ;;  %8802 = vst [vmem:[#allocation40_spill] sm:$0xff] %v6697_v6  ;;  %v6702_v23 = vrot.slane %v1952_v38, %v6465_v5  ;;  %v1701_v30 = vsel %vm1692_vm0, %v1699_v28, %v1700_v39  ;;  %v6711_v27 = vrot.slane %v3756_v43, %v6478_v11 }
 0x1bd   : > { %v4388_v57 = vrot.slane %v6627_v54, %v6465_v5  ;;  %v4392_v46 = vrot.slane %v6627_v54, %v6455_v0  ;;  %v2530_v37 = vrot.slane %v6583_v18, %v6478_v11  ;;  %v6720_v32 = vrot.slane %v3906_v51, %v6457_v1 }
 0x1be   : > { %8803 = vst [vmem:[#allocation41_spill] sm:$0xff] %v6702_v23  ;;  %8804 = vst [vmem:[#allocation42_spill] sm:$0xff] %v6711_v27  ;;  %v1319_v28 = vrot.slane %v6578_v17, %v6459_v2  ;;  %v1505_v35 = vmul.f32 %v6635_v33, %v6687_v16  ;;  %v1511_v38 = vmul.f32 %v6687_v16, %v1208_v13 }
 0x1bf   : > { %8805 = vst [vmem:[#allocation43_spill] sm:$0xff] %v6720_v32  ;;  %v1354_v39 = vmul.f32 %v6635_v33, %v6697_v6  ;;  %v6730_v43 = vrot.slane %v1956_v9, %v6465_v5  ;;  %v1887_v34 = vadd.f32 %v1701_v30, %v1352_v55  ;;  %v2188_v18 = vsel %vm2179_vm1, %v2186_v29, %v2187_v19 }
 0x1c0   : > { %v1707_v51 = vsel %vm1692_vm0, %v1705_v20, %v1706_v49  ;;  %v1991_v8 = vmul.f32 %v6635_v33, %v6702_v23  ;;  %v1997_v17 = vmul.f32 %v6702_v23, %v1207_v12  ;;  %v2538_v31 = vrot.slane %v6708_v26, %v6478_v11  ;;  %v6758_v20 = vld [vmem:[%s8609_s4 + $0x40] sm:$0x77] }
 0x1c1   : > { %8806 = vst [vmem:[#allocation44_spill] sm:$0xff] %v6730_v43  ;;  %v2688_v16 = vrot.slane %v6708_v26, %v6457_v1  ;;  %v6742_v50 = vrot.slane %v4388_v57, %v6465_v5  ;;  %v6745_v55 = vrot.slane %v4392_v46, %v6465_v5  ;;  %v6748_v9 = vrot.slane %v2530_v37, %v6478_v11 }
 0x1c2   : > { %v2692_v49 = vrot.slane %v6708_v26, %v6449_v61  ;;  %v6753_v12 = vrot.slane %v1319_v28, %v6478_v11  ;;  %v1708_v29 = vrot.slane %v1505_v35, 1  ;;  %v1709_v19 = vrot.slane %v1511_v38, 1 }
 0x1c3   : > { %8807 = vst [vmem:[#allocation45_spill] sm:$0xff] %v6742_v50  ;;  %8808 = vst [vmem:[#allocation46_spill] sm:$0xff] %v6745_v55  ;;  %v1889_v57 = vadd.f32 %v1707_v51, %v1354_v39  ;;  %v1992_v30 = vmul.f32 %v6635_v33, %v6730_v43  ;;  %v1998_v46 = vmul.f32 %v6730_v43, %v1208_v13  ;;  %v2192_v6 = vrot.slane %v1991_v8, 2 }
 0x1c4   : > { %8809 = vst [vmem:[#allocation47_spill] sm:$0xff] %v6748_v9  ;;  %8810 = vst [vmem:[#allocation48_spill] sm:$0xff] %v6753_v12  ;;  %v6763_v37 = vadd.f32 %v2188_v18, %v1887_v34  ;;  %v2193_v28 = vrot.slane %v1997_v17, 2  ;;  %v6766_v35 = vrot.slane %v2538_v31, %v6478_v11  ;;  %v3174_v38 = vrot.slane %v6708_v26, %v6465_v5 }
 0x1c5   : > { %v6771_v39 = vrot.slane %v2688_v16, %v6457_v1  ;;  %v3178_v13 = vrot.slane %v6708_v26, %v6455_v0  ;;  %v6776_v51 = vrot.slane %v2692_v49, %v6457_v1  ;;  %v3760_v31 = vrot.slane %v6758_v20, %v6478_v11 }
 0x1c6   : > { %8811 = vst [vmem:[#allocation49_spill] sm:$0xff] %v6766_v35  ;;  %v1355_v8 = vmul.f32 %v6635_v33, %v6753_v12  ;;  %v2195_v17 = vrot.slane %v1992_v30, 2  ;;  %v2196_v43 = vrot.slane %v1998_v46, 2  ;;  %v2194_v49 = vsel %vm2179_vm1, %v2192_v6, %v2193_v28 }
 0x1c7   : > { %8812 = vst [vmem:[#allocation50_spill] sm:$0xff] %v6776_v51  ;;  %v6785_v53 = vrot.slane %v3174_v38, %v6465_v5  ;;  %v3910_v50 = vrot.slane %v6758_v20, %v6457_v1  ;;  %v3914_v33 = vrot.slane %v6758_v20, %v6449_v61  ;;  %v4400_v6 = vrot.slane %v6758_v20, %v6455_v0 }
 0x1c8   : > { %v2542_v61 = vrot.slane %v6708_v26, %v6459_v2  ;;  %v3764_v38 = vrot.slane %v6758_v20, %v6459_v2  ;;  %v6804_v0 = vrot.slane %v3178_v13, %v6465_v5  ;;  %v6808_v26 = vrot.slane %v3760_v31, %v6478_v11 }
 0x1c9   : > { %8813 = vst [vmem:[#allocation51_spill] sm:$0xff] %v6785_v53  ;;  %v6811_v2 = vrot.slane %v3910_v50, %v6457_v1 }
 0x1ca   : > { %8814 = vst [vmem:[#allocation52_spill] sm:$0xff] %v6804_v0  ;;  %8815 = vst [vmem:[#allocation53_spill] sm:$0xff] %v6808_v26 }
 0x1cb   : > { %8816 = vst [vmem:[#allocation54_spill] sm:$0xff] %v6811_v2 }
 0x21d   : > { %v554_v42 = vpop.f32.mrf.mxu0  ;;  %v667_v23 = vpop.f32.mrf.mxu1 }
 0x21e   : > { %v1004_v10 = vrot.slane %v554_v42, 7  ;;  %v1006_v14 = vrot.slane %v667_v23, 7  ;;  %v1710_v42 = vsel %vm1692_vm0, %v1708_v29, %v1709_v19  ;;  %v4396_v29 = vrot.slane %v6758_v20, %v6465_v5 }
 0x21f   : > { %v556_v34 = vpop.f32.mrf.mxu0  ;;  %v669_v18 = vpop.f32.mrf.mxu1  ;;  %v3752_v19 = vrot.slane %v6627_v54, %v6478_v11  ;;  %v1890_v28 = vadd.f32 %v1710_v42, %v1355_v8  ;;  %v2197_v54 = vsel %vm2179_vm1, %v2195_v17, %v2196_v43  ;;  %v6814_v20 = vrot.slane %v3914_v33, %v6457_v1 }
 0x220   : > { %1101 = vst [vmem:[#allocation2 + $0x320] sm:$0xfe] %v1004_v10  ;;  %1107 = vst [vmem:[#allocation2 + $0x338] sm:$0x1] %v1004_v10  ;;  %v1005_v23 = vrot.slane %v556_v34, 7  ;;  %v1007_v16 = vrot.slane %v669_v18, 7  ;;  %v6801_v18 = vadd.f32 %v2194_v49, %v1889_v57  ;;  %v6820_v43 = vrot.slane %v4400_v6, %v6465_v5 }
 0x221   : > { %1103 = vst [vmem:[#allocation2 + $0x108] sm:$0xfe] %v1006_v14  ;;  %1109 = vst [vmem:[#allocation2 + $0x80] sm:$0x1] %v1006_v14  ;;  %v560_v62 = vpop.f32.mrf.mxu0  ;;  %v6827_v49 = vadd.f32 %v2197_v54, %v1890_v28 }
 0x222   : > { %1102 = vst [vmem:[#allocation2 + $0x150] sm:$0xfe] %v1005_v23  ;;  %1108 = vst [vmem:[#allocation2 + $0x340] sm:$0x1] %v1005_v23  ;;  %v1010_v10 = vrot.slane %v560_v62, 7  ;;  %v673_v14 = vpop.f32.mrf.mxu1  ;;  %v6817_v23 = vrot.slane %v4396_v29, %v6465_v5  ;;  %v6835_v5 = vrot.slane %v3764_v38, %v6478_v11 }
 0x223   : > { %1104 = vst [vmem:[#allocation2 + $0x60] sm:$0xfe] %v1007_v16  ;;  %1110 = vst [vmem:[#allocation2 + $0x1a8] sm:$0x1] %v1007_v16  ;;  %v1012_v30 = vrot.slane %v673_v14, 7  ;;  %v562_v46 = vpop.f32.mrf.mxu0  ;;  %v6823_v16 = vrot.slane %v3752_v19, %v6478_v11 }
 0x224   : > { %1113 = vst [vmem:[#allocation2 + $0x2f0] sm:$0xfe] %v1010_v10  ;;  %1119 = vst [vmem:[#allocation2 + $0xf0] sm:$0x1] %v1010_v10  ;;  %v1011_v62 = vrot.slane %v562_v46, 7  ;;  %v675_v34 = vpop.f32.mrf.mxu1  ;;  %v6832_v10 = vrot.slane %v2542_v61, %v6478_v11 }
 0x225   : > { %1115 = vst [vmem:[#allocation2 + $0x360] sm:$0xfe] %v1012_v30  ;;  %1121 = vst [vmem:[#allocation2 + $0x148] sm:$0x1] %v1012_v30  ;;  %v1013_v8 = vrot.slane %v675_v34, 7  ;;  %v566_v42 = vpop.f32.mrf.mxu0 }
 0x226   : > { %8817 = vst [vmem:[#allocation55_spill] sm:$0xff] %v6814_v20  ;;  %1114 = vst [vmem:[#allocation2 + $0x288] sm:$0xfe] %v1011_v62  ;;  %v1016_v57 = vrot.slane %v566_v42, 7  ;;  %v679_v13 = vpop.f32.mrf.mxu1 }
 0x227   : > { %1120 = vst [vmem:[#allocation2 + $0x8] sm:$0x1] %v1011_v62  ;;  %8818 = vst [vmem:[#allocation56_spill] sm:$0xff] %v6817_v23  ;;  %v1018_v50 = vrot.slane %v679_v13, 7  ;;  %v568_v31 = vpop.f32.mrf.mxu0  ;;  %v6825_v17 = vld [vmem:[#allocation2 + $0x320] sm:$0xff] }
 0x228   : > { %8819 = vst [vmem:[#allocation57_spill] sm:$0xff] %v6820_v43  ;;  %8820 = vst [vmem:[#allocation58_spill] sm:$0xff] %v6823_v16  ;;  %v2426_v1 = vld [vmem:[#allocation2 + $0x338] sm:$0x3]  ;;  %v6829_v33 = vld [vmem:[#allocation2 + $0x108] sm:$0xff]  ;;  %v1017_v14 = vrot.slane %v568_v31, 7  ;;  %v681_v29 = vpop.f32.mrf.mxu1  ;;  %v2573_v6 = vmul.f32 %v6630_v58, %v6825_v17  ;;  %v6841_v19 = vmul.f32 %v6526_v41, %v6825_v17  ;;  %v6852_v62 = vmul.f32 %v6555_v52, %v6825_v17 }
 0x229   : > { %1116 = vst [vmem:[#allocation2 + $0x130] sm:$0xfe] %v1013_v8  ;;  %1122 = vst [vmem:[#allocation2 + $0x200] sm:$0x1] %v1013_v8  ;;  %v6844_v30 = vmul.f32 %v6526_v41, %v2426_v1  ;;  %v1019_v46 = vrot.slane %v681_v29, 7  ;;  %v572_v28 = vpop.f32.mrf.mxu0  ;;  %v6846_v11 = vld [vmem:[#allocation2 + $0x150] sm:$0xff]  ;;  %v6855_v34 = vmul.f32 %v6555_v52, %v2426_v1  ;;  %v6859_v54 = vmul.f32 %v6748_v9, %v6829_v33 }
 0x22a   : > { %8821 = vst [vmem:[#allocation59_spill] sm:$0xff] %v6825_v17  ;;  %8822 = vst [vmem:[#allocation60_spill] sm:$0xff] %v6832_v10  ;;  %v2427_v61 = vld [vmem:[#allocation2 + $0x340] sm:$0x3]  ;;  %v1022_v8 = vrot.slane %v572_v28, 7  ;;  %v685_v42 = vpop.f32.mrf.mxu1  ;;  %v2724_v13 = vmul.f32 %v6547_v56, %v6846_v11  ;;  %v3210_v29 = vmul.f32 %v6566_v4, %v6846_v11 }
 0x22b   : > { %8823 = vst [vmem:[#allocation61_spill] sm:$0xff] %v6835_v5  ;;  %1125 = vst [vmem:[#allocation2] sm:$0xfe] %v1016_v57  ;;  %v6848_v38 = vld [vmem:[#allocation2 + $0x60] sm:$0xff]  ;;  %v1024_v31 = vrot.slane %v685_v42, 7  ;;  %v574_v1 = vpop.f32.mrf.mxu0  ;;  %v3216_v9 = vmul.f32 %v6566_v4, %v2427_v61  ;;  %v6875_v4 = vadd.f32 %v2573_v6, %v6642_v7 }
 0x22c   : > { %1131 = vst [vmem:[#allocation2 + $0x70] sm:$0x1] %v1016_v57  ;;  %1127 = vst [vmem:[#allocation2 + $0x188] sm:$0xfe] %v1018_v50  ;;  %v2574_v57 = vmul.f32 %v6537_v48, %v6846_v11  ;;  %v1023_v28 = vrot.slane %v574_v1, 7  ;;  %v687_v12 = vpop.f32.mrf.mxu1  ;;  %v2918_v41 = vrot.slane %v2724_v13, 1 }
 0x22d   : > { %1133 = vst [vmem:[#allocation2 + $0x308] sm:$0x1] %v1018_v50  ;;  %1126 = vst [vmem:[#allocation2 + $0x290] sm:$0xfe] %v1017_v14  ;;  %v2730_v50 = vmul.f32 %v6547_v56, %v2427_v61  ;;  %v578_v42 = vpop.f32.mrf.mxu0  ;;  %v3404_v17 = vrot.slane %v3210_v29, 2  ;;  %v3405_v56 = vrot.slane %v3216_v9, 2 }
 0x22e   : > { %1132 = vst [vmem:[#allocation2 + $0x210] sm:$0x1] %v1017_v14  ;;  %1128 = vst [vmem:[#allocation2 + $0xe0] sm:$0xfe] %v1019_v46  ;;  %v2576_v14 = vmul.f32 %v6633_v59, %v6848_v38  ;;  %v2622_v52 = vadd.f32 %v2574_v57, %v6563_v3  ;;  %v6872_v48 = vld [vmem:[#allocation2 + $0x288] sm:$0xff]  ;;  %v691_v1 = vpop.f32.mrf.mxu1  ;;  %v2726_v59 = vmul.f32 %v6650_v15, %v6848_v38 }
 0x22f   : > { %1134 = vst [vmem:[#allocation2 + $0x370] sm:$0x1] %v1019_v46  ;;  %1137 = vst [vmem:[#allocation2 + $0x358] sm:$0xfe] %v1022_v8  ;;  %v2919_v58 = vrot.slane %v2730_v50, 1  ;;  %v1025_v46 = vrot.slane %v687_v12, 7  ;;  %v3796_v57 = vmul.f32 %v6588_v22, %v6872_v48  ;;  %v3946_v12 = vmul.f32 %v6599_v25, %v6872_v48  ;;  %v580_v13 = vpop.f32.mrf.mxu0 }
 0x230   : > { %1143 = vst [vmem:[#allocation2 + $0xa8] sm:$0x1] %v1022_v8  ;;  %1139 = vst [vmem:[#allocation2 + $0x328] sm:$0xfe] %v1024_v31  ;;  %v3649_v61 = vld [vmem:[#allocation2 + $0x8] sm:$0x3]  ;;  %v3406_v7 = vsel %vm2179_vm1, %v3404_v17, %v3405_v56  ;;  %v693_v29 = vpop.f32.mrf.mxu1  ;;  %v2624_v56 = vadd.f32 %v2576_v14, %v6676_v40 }
 0x231   : > { %1145 = vst [vmem:[#allocation2 + $0xe8] sm:$0x1] %v1024_v31  ;;  %1138 = vst [vmem:[#allocation2 + $0x2c0] sm:$0xfe] %v1023_v28  ;;  %v1028_v8 = vrot.slane %v578_v42, 7  ;;  %v2920_v3 = vsel %vm1692_vm0, %v2918_v41, %v2919_v58  ;;  %v1030_v9 = vrot.slane %v691_v1, 7  ;;  %v3952_v6 = vmul.f32 %v6599_v25, %v3649_v61  ;;  %v584_v1 = vpop.f32.mrf.mxu0 }
 0x232   : > { %1144 = vst [vmem:[#allocation2 + $0x300] sm:$0x1] %v1023_v28  ;;  %1140 = vst [vmem:[#allocation2 + $0x238] sm:$0xfe] %v1025_v46  ;;  %v3108_v50 = vadd.f32 %v2920_v3, %v2622_v52  ;;  %v1029_v31 = vrot.slane %v580_v13, 7  ;;  %v4140_v41 = vrot.slane %v3946_v12, 1  ;;  %v4432_v58 = vmul.f32 %v6615_v47, %v6872_v48 }
 0x233   : > { %1146 = vst [vmem:[#allocation2 + $0x20] sm:$0x1] %v1025_v46  ;;  %1149 = vst [vmem:[#allocation2 + $0x2e8] sm:$0xfe] %v1028_v8  ;;  %v4438_v28 = vmul.f32 %v6615_v47, %v3649_v61  ;;  %v2429_v42 = vld [vmem:[#allocation2 + $0x1a8] sm:$0x3]  ;;  %v586_v47 = vpop.f32.mrf.mxu0 }
 0x234   : > { %1155 = vst [vmem:[#allocation2 + $0x228] sm:$0x1] %v1028_v8  ;;  %1151 = vst [vmem:[#allocation2 + $0x38] sm:$0xfe] %v1030_v9  ;;  %v1031_v46 = vrot.slane %v693_v29, 7  ;;  %v3594_v52 = vadd.f32 %v3406_v7, %v3108_v50  ;;  %v4141_v3 = vrot.slane %v3952_v6, 1  ;;  %v697_v8 = vpop.f32.mrf.mxu1  ;;  %v2732_v50 = vmul.f32 %v6650_v15, %v2429_v42 }
 0x235   : > { %1157 = vst [vmem:[#allocation2 + $0x280] sm:$0x1] %v1030_v9  ;;  %1150 = vst [vmem:[#allocation2 + $0x1f0] sm:$0xfe] %v1029_v31  ;;  %v1034_v17 = vrot.slane %v584_v1, 7  ;;  %v4626_v13 = vrot.slane %v4432_v58, 2 }
 0x236   : > { %1156 = vst [vmem:[#allocation2 + $0x170] sm:$0x1] %v1029_v31  ;;  %v4627_v12 = vrot.slane %v4438_v28, 2  ;;  %1152 = vst [vmem:[#allocation2 + $0x2d0] sm:$0xfe] %v1031_v46  ;;  %v1036_v61 = vrot.slane %v697_v8, 7  ;;  %v3844_v9 = vadd.f32 %v3796_v57, %v3594_v52  ;;  %v4142_v29 = vsel %vm1692_vm0, %v4140_v41, %v4141_v3  ;;  %v699_v14 = vpop.f32.mrf.mxu1  ;;  %v590_v28 = vpop.f32.mrf.mxu0 }
 0x237   : > { %1158 = vst [vmem:[#allocation2 + $0x138] sm:$0x1] %v1031_v46  ;;  %1161 = vst [vmem:[#allocation2 + $0xf8] sm:$0xfe] %v1034_v17  ;;  %v1035_v40 = vrot.slane %v586_v47, 7  ;;  %v2915_v6 = vrot.slane %v6841_v19, 1  ;;  %v3212_v3 = vmul.f32 %v6679_v44, %v6848_v38  ;;  %v3218_v19 = vmul.f32 %v6679_v44, %v2429_v42 }
 0x238   : > { %1167 = vst [vmem:[#allocation2 + $0xa0] sm:$0x1] %v1034_v17  ;;  %v4628_v7 = vsel %vm2179_vm1, %v4626_v13, %v4627_v12  ;;  %v2916_v31 = vrot.slane %v6844_v30, 1  ;;  %1163 = vst [vmem:[#allocation2 + $0xb8] sm:$0xfe] %v1036_v61  ;;  %v1037_v58 = vrot.slane %v699_v14, 7  ;;  %v4330_v46 = vadd.f32 %v4142_v29, %v3844_v9  ;;  %v703_v52 = vpop.f32.mrf.mxu1  ;;  %v592_v17 = vpop.f32.mrf.mxu0 }
 0x239   : > { %1169 = vst [vmem:[#allocation2 + $0x2f8] sm:$0x1] %v1036_v61  ;;  %v2924_v57 = vrot.slane %v2726_v59, 1  ;;  %v2925_v1 = vrot.slane %v2732_v50, 1  ;;  %1162 = vst [vmem:[#allocation2 + $0x250] sm:$0xfe] %v1035_v40 }
 0x23a   : > { %1168 = vst [vmem:[#allocation2 + $0x3a0] sm:$0x1] %v1035_v40  ;;  %v1040_v41 = vrot.slane %v590_v28, 7  ;;  %v2917_v47 = vsel %vm1692_vm0, %v2915_v6, %v2916_v31  ;;  %1164 = vst [vmem:[#allocation2 + $0x1e8] sm:$0xfe] %v1037_v58  ;;  %v1042_v30 = vrot.slane %v703_v52, 7  ;;  %v4816_v8 = vadd.f32 %v4628_v7, %v4330_v46  ;;  %v705_v9 = vpop.f32.mrf.mxu1  ;;  %v596_v7 = vpop.f32.mrf.mxu0 }
 0x23b   : > { %1170 = vst [vmem:[#allocation2 + $0x350] sm:$0x1] %v1037_v58  ;;  %v2926_v13 = vsel %vm1692_vm0, %v2924_v57, %v2925_v1  ;;  %v3107_v59 = vadd.f32 %v2917_v47, %v6875_v4  ;;  %v6901_v12 = vld [vmem:[#allocation2 + $0x2f0] sm:$0xff]  ;;  %v1041_v61 = vrot.slane %v592_v17, 7  ;;  %v3401_v50 = vrot.slane %v6852_v62, 2 }
 0x23c   : > { %1173 = vst [vmem:[#allocation2 + $0x318] sm:$0xfe] %v1040_v41  ;;  %1179 = vst [vmem:[#allocation2 + $0x68] sm:$0x1] %v1040_v41  ;;  %v3110_v29 = vadd.f32 %v2926_v13, %v2624_v56  ;;  %v3402_v42 = vrot.slane %v6855_v34, 2  ;;  %v6905_v40 = vld [vmem:[#allocation2 + $0x130] sm:$0xff]  ;;  %v709_v28 = vpop.f32.mrf.mxu1  ;;  %v3795_v34 = vmul.f32 %v6684_v45, %v6901_v12  ;;  %v598_v1 = vpop.f32.mrf.mxu0  ;;  %v3945_v17 = vmul.f32 %v6591_v36, %v6901_v12 }
 0x23d   : > { %1175 = vst [vmem:[#allocation2 + $0x88] sm:$0xfe] %v1042_v30  ;;  %1181 = vst [vmem:[#allocation2 + $0x180] sm:$0x1] %v1042_v30  ;;  %v1043_v14 = vrot.slane %v705_v9, 7  ;;  %v6907_v6 = vmul.f32 0.5, %v4816_v8  ;;  %v3798_v47 = vmul.f32 %v6711_v27, %v6905_v40 }
 0x23e   : > { %v4888_v4 = vmul.f32 0.70710677, %v4816_v8  ;;  %v3410_v31 = vrot.slane %v3212_v3, 2  ;;  %1174 = vst [vmem:[#allocation2 + $0x160] sm:$0xfe] %v1041_v61  ;;  %v1046_v58 = vrot.slane %v596_v7, 7  ;;  %v3403_v56 = vsel %vm2179_vm1, %v3401_v50, %v3402_v42  ;;  %v711_v30 = vpop.f32.mrf.mxu1 }
 0x23f   : > { %1180 = vst [vmem:[#allocation2 + $0xd0] sm:$0x1] %v1041_v61  ;;  %v3411_v46 = vrot.slane %v3218_v19, 2  ;;  %v3648_v62 = vld [vmem:[#allocation2 + $0xf0] sm:$0x3]  ;;  %v1048_v57 = vrot.slane %v709_v28, 7  ;;  %v3593_v41 = vadd.f32 %v3403_v56, %v3107_v59  ;;  %v3948_v8 = vmul.f32 %v6720_v32, %v6905_v40  ;;  %v780_v59 = vpop.f32.mrf.mxu0 }
 0x240   : > { %1176 = vst [vmem:[#allocation2 + $0x28] sm:$0xfe] %v1043_v14  ;;  %1182 = vst [vmem:[#allocation2 + $0x378] sm:$0x1] %v1043_v14  ;;  %5614 = verf.f32 %v4888_v4  ;;  %v3651_v52 = vld [vmem:[#allocation2 + $0x200] sm:$0x3]  ;;  %v3951_v50 = vmul.f32 %v6591_v36, %v3648_v62  ;;  %v4431_v56 = vmul.f32 %v6596_v24, %v6901_v12 }
 0x241   : > { %1185 = vst [vmem:[#allocation2 + $0x2a0] sm:$0xfe] %v1046_v58  ;;  %1191 = vst [vmem:[#allocation2 + $0x10] sm:$0x1] %v1046_v58  ;;  %v1047_v3 = vrot.slane %v598_v1, 7  ;;  %v3412_v19 = vsel %vm2179_vm1, %v3410_v31, %v3411_v46  ;;  %v1049_v13 = vrot.slane %v711_v30, 7  ;;  %v3843_v9 = vadd.f32 %v3795_v34, %v3593_v41  ;;  %v782_v31 = vpop.f32.mrf.mxu0 }
 0x242   : > { %1187 = vst [vmem:[#allocation2 + $0x58] sm:$0xfe] %v1048_v57  ;;  %1193 = vst [vmem:[#allocation2 + $0x248] sm:$0x1] %v1048_v57  ;;  %v3596_v61 = vadd.f32 %v3412_v19, %v3110_v29  ;;  %v1008_v42 = vrot.slane %v780_v59, 7  ;;  %v3954_v14 = vmul.f32 %v6720_v32, %v3651_v52  ;;  %v4137_v7 = vrot.slane %v3945_v17, 1 }
 0x243   : > { %1186 = vst [vmem:[#allocation2 + $0x1a0] sm:$0xfe] %v1047_v3  ;;  %1192 = vst [vmem:[#allocation2 + $0x268] sm:$0x1] %v1047_v3  ;;  %v4146_v4 = vrot.slane %v3948_v8, 1  ;;  %v4138_v28 = vrot.slane %v3951_v50, 1  ;;  %v4434_v29 = vmul.f32 %v6745_v55, %v6905_v40  ;;  %v4437_v57 = vmul.f32 %v6596_v24, %v3648_v62  ;;  %v786_v3 = vpop.f32.mrf.mxu0 }
 0x244   : > { %1188 = vst [vmem:[#allocation2 + $0x208] sm:$0xfe] %v1049_v13  ;;  %1194 = vst [vmem:[#allocation2 + $0x190] sm:$0x1] %v1049_v13  ;;  %v3846_v58 = vadd.f32 %v3798_v47, %v3596_v61  ;;  %v1009_v46 = vrot.slane %v782_v31, 7  ;;  %v4147_v34 = vrot.slane %v3954_v14, 1  ;;  %v4440_v1 = vmul.f32 %v6745_v55, %v3651_v52 }
 0x245   : > { %1105 = vst [vmem:[#allocation2 + $0x2e0] sm:$0xfe] %v1008_v42  ;;  %1111 = vst [vmem:[#allocation2 + $0x1b8] sm:$0x1] %v1008_v42  ;;  %v2428_v41 = vld [vmem:[#allocation2 + $0x80] sm:$0x3]  ;;  %v4139_v30 = vsel %vm1692_vm0, %v4137_v7, %v4138_v28  ;;  %v6930_v17 = vadd.f32 %v6859_v54, %v6763_v37  ;;  %v788_v62 = vpop.f32.mrf.mxu0  ;;  %v2725_v42 = vmul.f32 %v6645_v63, %v6829_v33 }
 0x246   : > { %v4623_v47 = vrot.slane %v4431_v56, 2  ;;  %v4632_v19 = vrot.slane %v4434_v29, 2  ;;  %1106 = vst [vmem:[#allocation2 + $0x388] sm:$0xfe] %v1009_v46  ;;  %1112 = vst [vmem:[#allocation2 + $0x168] sm:$0x1] %v1009_v46  ;;  %v4148_v13 = vsel %vm1692_vm0, %v4146_v4, %v4147_v34  ;;  %v4329_v59 = vadd.f32 %v4139_v30, %v3843_v9 }
 0x247   : > { %v1014_v8 = vrot.slane %v786_v3, 7  ;;  %v4624_v61 = vrot.slane %v4437_v57, 2  ;;  %v4332_v50 = vadd.f32 %v4148_v13, %v3846_v58  ;;  %v4633_v52 = vrot.slane %v4440_v1, 2  ;;  %v6944_v4 = vld [vmem:[#allocation2 + $0x360] sm:$0xff]  ;;  %v792_v31 = vpop.f32.mrf.mxu0 }
 0x248   : > { %v2731_v14 = vmul.f32 %v6645_v63, %v2428_v41  ;;  %v1015_v7 = vrot.slane %v788_v62, 7  ;;  %v6939_v54 = vmul.f32 %v6659_v21, %v6829_v33  ;;  %v6942_v9 = vmul.f32 %v6659_v21, %v2428_v41 }
 0x249   : > { %1117 = vst [vmem:[#allocation2 + $0x1b0] sm:$0xfe] %v1014_v8  ;;  %1123 = vst [vmem:[#allocation2 + $0x390] sm:$0x1] %v1014_v8  ;;  %v4625_v37 = vsel %vm2179_vm1, %v4623_v47, %v4624_v61  ;;  %v4634_v58 = vsel %vm2179_vm1, %v4632_v19, %v4633_v52  ;;  %v2921_v56 = vrot.slane %v2725_v42, 1  ;;  %v1020_v46 = vrot.slane %v792_v31, 7  ;;  %v794_v1 = vpop.f32.mrf.mxu0 }
 0x24a   : > { %v4815_v28 = vadd.f32 %v4625_v37, %v4329_v59  ;;  %v2922_v29 = vrot.slane %v2731_v14, 1  ;;  %1118 = vst [vmem:[#allocation2 + $0x270] sm:$0xfe] %v1015_v7  ;;  %1124 = vst [vmem:[#allocation2 + $0x278] sm:$0x1] %v1015_v7  ;;  %v6947_v34 = vadd.f32 %v4634_v58, %v4332_v50  ;;  %v6958_v8 = vmul.f32 %v6823_v16, %v6944_v4 }
 0x24b   : > { %1129 = vst [vmem:[#allocation2 + $0x1c0] sm:$0xfe] %v1020_v46  ;;  %1135 = vst [vmem:[#allocation2 + $0x1d8] sm:$0x1] %v1020_v46  ;;  %v1021_v59 = vrot.slane %v794_v1, 7  ;;  %v798_v52 = vpop.f32.mrf.mxu0 }
 0x24c   : > { %v6951_v41 = vld [vmem:[#allocation2 + $0x2e0] sm:$0xff]  ;;  %v2430_v3 = vld [vmem:[#allocation2 + $0x1b8] sm:$0x3]  ;;  %v6953_v30 = vmul.f32 0.5, %v4815_v28  ;;  %v4887_v47 = vmul.f32 0.70710677, %v4815_v28  ;;  %v2923_v19 = vsel %vm1692_vm0, %v2921_v56, %v2922_v29 }
 0x24d   : > { %v5615_v13 = vpop.eup %5614  ;;  %v2577_v61 = vmul.f32 %v6766_v35, %v6951_v41  ;;  %v2727_v62 = vmul.f32 %v6771_v39, %v6951_v41  ;;  %v2733_v50 = vmul.f32 %v6771_v39, %v2430_v3  ;;  %v3213_v42 = vmul.f32 %v6785_v53, %v6951_v41  ;;  %v6968_v37 = vld [vmem:[#allocation2 + $0x388] sm:$0xff]  ;;  %1130 = vst [vmem:[#allocation2 + $0x90] sm:$0xfe] %v1021_v59  ;;  %v800_v29 = vpop.f32.mrf.mxu0 }
 0x24e   : > { %v3219_v14 = vmul.f32 %v6785_v53, %v2430_v3  ;;  %v4936_v7 = vadd.f32 1.0, %v5615_v13  ;;  %5616 = verf.f32 %v4887_v47  ;;  %1136 = vst [vmem:[#allocation2 + $0x260] sm:$0x1] %v1021_v59  ;;  %v1026_v31 = vrot.slane %v798_v52, 7 }
 0x24f   : > { %v2625_v58 = vadd.f32 %v2577_v61, %v6801_v18  ;;  %v2927_v28 = vrot.slane %v2727_v62, 1  ;;  %v2928_v56 = vrot.slane %v2733_v50, 1  ;;  %v3413_v46 = vrot.slane %v3213_v42, 2  ;;  %v804_v61 = vpop.f32.mrf.mxu0  ;;  %v2431_v42 = vld [vmem:[#allocation2 + $0x168] sm:$0x3] }
 0x250   : > { %v3414_v1 = vrot.slane %v3219_v14, 2  ;;  %v6971_v57 = vld [vmem:[#allocation2 + $0x1b0] sm:$0xff]  ;;  %v6974_v16 = vmul.f32 %v4936_v7, %v6907_v6  ;;  %v2578_v3 = vmul.f32 %v6832_v10, %v6968_v37  ;;  %1141 = vst [vmem:[#allocation2 + $0x78] sm:$0xfe] %v1026_v31  ;;  %1147 = vst [vmem:[#allocation2 + $0x40] sm:$0x1] %v1026_v31  ;;  %v2734_v63 = vmul.f32 %v6776_v51, %v2431_v42 }
 0x251   : > { %v3652_v33 = vld [vmem:[#allocation2 + $0x390] sm:$0x3]  ;;  %v1027_v47 = vrot.slane %v800_v29, 7  ;;  %v2929_v13 = vsel %vm1692_vm0, %v2927_v28, %v2928_v56  ;;  %v3799_v18 = vmul.f32 %v6808_v26, %v6971_v57  ;;  %v3949_v59 = vmul.f32 %v6811_v2, %v6971_v57  ;;  %v806_v56 = vpop.f32.mrf.mxu0 }
 0x252   : > { %v3111_v62 = vadd.f32 %v2929_v13, %v2625_v58  ;;  %v3415_v50 = vsel %vm2179_vm1, %v3413_v46, %v3414_v1  ;;  %v3955_v6 = vmul.f32 %v6811_v2, %v3652_v33  ;;  %v4435_v52 = vmul.f32 %v6817_v23, %v6971_v57 }
 0x253   : > { %1142 = vst [vmem:[#allocation2 + $0x158] sm:$0xfe] %v1027_v47  ;;  %1148 = vst [vmem:[#allocation2 + $0x1d0] sm:$0x1] %v1027_v47  ;;  %v1032_v14 = vrot.slane %v804_v61, 7  ;;  %v4149_v7 = vrot.slane %v3949_v59, 1  ;;  %v4441_v31 = vmul.f32 %v6817_v23, %v3652_v33  ;;  %v2626_v28 = vadd.f32 %v2578_v3, %v6827_v49  ;;  %v810_v33 = vpop.f32.mrf.mxu0 }
 0x254   : > { %v3597_v29 = vadd.f32 %v3415_v50, %v3111_v62  ;;  %v4150_v21 = vrot.slane %v3955_v6, 1  ;;  %v4635_v58 = vrot.slane %v4435_v52, 2  ;;  %v2728_v46 = vmul.f32 %v6776_v51, %v6968_v37  ;;  %v6993_v59 = vld [vmem:[#allocation2 + $0x270] sm:$0xff] }
 0x255   : > { %1153 = vst [vmem:[#allocation2 + $0x30] sm:$0xfe] %v1032_v14  ;;  %1159 = vst [vmem:[#allocation2 + $0x348] sm:$0x1] %v1032_v14  ;;  %v1033_v1 = vrot.slane %v806_v56, 7  ;;  %v4636_v13 = vrot.slane %v4441_v31, 2  ;;  %v3109_v47 = vadd.f32 %v2923_v19, %v6930_v17  ;;  %v3214_v62 = vmul.f32 %v6804_v0, %v6968_v37  ;;  %v812_v31 = vpop.f32.mrf.mxu0 }
 0x256   : > { %v3847_v61 = vadd.f32 %v3799_v18, %v3597_v29  ;;  %v4151_v49 = vsel %vm1692_vm0, %v4149_v7, %v4150_v21  ;;  %v2930_v3 = vrot.slane %v2728_v46, 1  ;;  %v1038_v50 = vrot.slane %v810_v33, 7  ;;  %v3650_v56 = vld [vmem:[#allocation2 + $0x148] sm:$0x3] }
 0x257   : > { %1154 = vst [vmem:[#allocation2 + $0xc0] sm:$0xfe] %v1033_v1  ;;  %1160 = vst [vmem:[#allocation2 + $0x3a8] sm:$0x1] %v1033_v1  ;;  %v4637_v6 = vsel %vm2179_vm1, %v4635_v58, %v4636_v13  ;;  %v2931_v52 = vrot.slane %v2734_v63, 1  ;;  %v3220_v14 = vmul.f32 %v6804_v0, %v2431_v42  ;;  %v8824_v19 = vrot.slane %v6942_v9, 2  ;;  %v816_v13 = vpop.f32.mrf.mxu0 }
 0x258   : > { %v4333_v17 = vadd.f32 %v4151_v49, %v3847_v61  ;;  %v8825_v18 = vrot.slane %v6939_v54, 2  ;;  %v3416_v7 = vrot.slane %v3214_v62, 2  ;;  %v3800_v29 = vmul.f32 %v6835_v5, %v6993_v59  ;;  %1165 = vst [vmem:[#allocation2 + $0x2b8] sm:$0xfe] %v1038_v50  ;;  %1171 = vst [vmem:[#allocation2 + $0x230] sm:$0x1] %v1038_v50 }
 0x259   : > { %v1039_v46 = vrot.slane %v812_v31, 7  ;;  %v2932_v63 = vsel %vm1692_vm0, %v2930_v3, %v2931_v52  ;;  %v3417_v58 = vrot.slane %v3220_v14, 2  ;;  %v3653_v1 = vld [vmem:[#allocation2 + $0x278] sm:$0x3]  ;;  %v3947_v54 = vmul.f32 %v6692_v60, %v6944_v4  ;;  %v818_v52 = vpop.f32.mrf.mxu0 }
 0x25a   : > { %v3409_v21 = vsel %vm2179_vm1, %v8825_v18, %v8824_v19  ;;  %v4819_v33 = vadd.f32 %v4637_v6, %v4333_v17  ;;  %v3112_v9 = vadd.f32 %v2932_v63, %v2626_v28  ;;  %v3950_v61 = vmul.f32 %v6814_v20, %v6993_v59 }
 0x25b   : > { %v3595_v42 = vadd.f32 %v3409_v21, %v3109_v47  ;;  %v5617_v49 = vpop.eup %5616  ;;  %1166 = vst [vmem:[#allocation2 + $0x128] sm:$0xfe] %v1039_v46  ;;  %1172 = vst [vmem:[#allocation2 + $0x298] sm:$0x1] %v1039_v46  ;;  %v1044_v62 = vrot.slane %v816_v13, 7  ;;  %v3418_v50 = vsel %vm2179_vm1, %v3416_v7, %v3417_v58  ;;  %v3953_v47 = vmul.f32 %v6692_v60, %v3650_v56  ;;  %v822_v46 = vpop.f32.mrf.mxu0  ;;  %v8826_v58 = vld [vmem:[#allocation45_spill] sm:$0xff] }
 0x25c   : > { %v4984_v6 = vmul.f32 %v6974_v16, %v4819_v33  ;;  %v4935_v28 = vadd.f32 1.0, %v5617_v49  ;;  %v3598_v14 = vadd.f32 %v3418_v50, %v3112_v9  ;;  %v3956_v31 = vmul.f32 %v6814_v20, %v3653_v1 }
 0x25d   : > { %v3845_v3 = vadd.f32 %v6958_v8, %v3595_v42  ;;  %1177 = vst [vmem:[#allocation2 + $0x120] sm:$0xfe] %v1044_v62  ;;  %1183 = vst [vmem:[#allocation2 + $0x258] sm:$0x1] %v1044_v62  ;;  %v1045_v17 = vrot.slane %v818_v52, 7  ;;  %v4143_v19 = vrot.slane %v3947_v54, 1  ;;  %v4433_v42 = vmul.f32 %v8826_v58, %v6944_v4 }
 0x25e   : > { %v4144_v18 = vrot.slane %v3953_v47, 1  ;;  %v4152_v21 = vrot.slane %v3950_v61, 1  ;;  %5119 = vmatprep.mubr.f32.mxu1 %v4984_v6  ;;  %v4959_v7 = vmul.f32 %v4935_v28, %v6953_v30  ;;  %v3848_v8 = vadd.f32 %v3800_v29, %v3598_v14  ;;  %v824_v61 = vpop.f32.mrf.mxu0  ;;  %v1216_v29 = vld [vmem:[#allocation2 + $0x340] sm:$0x3]  ;;  %v1219_v6 = vld [vmem:[#allocation2 + $0x1b8] sm:$0x3] }
 0x25f   : > { %v4153_v63 = vrot.slane %v3956_v31, 1  ;;  %1178 = vst [vmem:[#allocation2 + $0x140] sm:$0xfe] %v1045_v17  ;;  %1184 = vst [vmem:[#allocation2 + $0x220] sm:$0x1] %v1045_v17  ;;  %v1050_v16 = vrot.slane %v822_v46, 7  ;;  %v4436_v33 = vmul.f32 %v6820_v43, %v6993_v59  ;;  %v4439_v9 = vmul.f32 %v8826_v58, %v3650_v56 }
 0x260   : > { %v4145_v13 = vsel %vm1692_vm0, %v4143_v19, %v4144_v18  ;;  %v4983_v54 = vmul.f32 %v4959_v7, %v6947_v34  ;;  %v4442_v30 = vmul.f32 %v6820_v43, %v3653_v1  ;;  %v1051_v62 = vrot.slane %v824_v61, 7  ;;  %v8827_v1 = vld [vmem:[#allocation9_spill] sm:$0xff]  ;;  %v8828_v17 = vld [vmem:[#allocation31_spill] sm:$0xff] }
 0x261   : > { %v4331_v49 = vadd.f32 %v4145_v13, %v3845_v3  ;;  %1189 = vst [vmem:[#allocation2 + $0x1e0] sm:$0xfe] %v1050_v16  ;;  %1195 = vst [vmem:[#allocation2 + $0x1f8] sm:$0x1] %v1050_v16  ;;  %v4154_v50 = vsel %vm1692_vm0, %v4152_v21, %v4153_v63  ;;  %v4629_v47 = vrot.slane %v4433_v42, 2  ;;  %v4630_v52 = vrot.slane %v4439_v9, 2 }
 0x262   : > { %5120 = vmatmul.mubr.f32.vlgmr.msra.gmra.mxu1 %v4983_v54  ;;  %v7027_v28 = vadd.f32 %v4154_v50, %v3848_v8  ;;  %v4638_v14 = vrot.slane %v4436_v33, 2  ;;  %v4639_v56 = vrot.slane %v4442_v30, 2  ;;  %1190 = vst [vmem:[#allocation2 + $0x100] sm:$0xfe] %v1051_v62  ;;  %1196 = vst [vmem:[#allocation2 + $0x218] sm:$0x1] %v1051_v62  ;;  %v1513_v31 = vmul.f32 %v6846_v11, %v8827_v1 }
 0x263   : > { %v4631_v34 = vsel %vm2179_vm1, %v4629_v47, %v4630_v52  ;;  %v5663_v3 = vld [vmem:[#allocation3 + $0x178] sm:$0xff]  ;;  %v1516_v19 = vmul.f32 %v6951_v41, %v8828_v17  ;;  %v1519_v18 = vmul.f32 %v8827_v1, %v1216_v29  ;;  %v5664_v46 = vld [vmem:[#allocation3 + $0x170] sm:$0xff]  ;;  %v1522_v63 = vmul.f32 %v8828_v17, %v1219_v6  ;;  %v8830_v42 = vld [vmem:[#allocation10_spill] sm:$0xff] }
 0x264   : > { %5527 = vmatpush3.msra.mxu1 %v5663_v3  ;;  %v7035_v21 = vadd.f32 %v4631_v34, %v4331_v49  ;;  %v8829_v7 = vld [vmem:[#allocation11_spill] sm:$0xff]  ;;  %v2000_v16 = vmul.f32 %v6846_v11, %v8830_v42  ;;  %v8831_v13 = vld [vmem:[#allocation40_spill] sm:$0xff]  ;;  %v1714_v9 = vrot.slane %v1513_v31, 1  ;;  %v7045_v49 = vsel %vm2179_vm1, %v4638_v14, %v4639_v56  ;;  %v8832_v50 = vld [vmem:[#allocation41_spill] sm:$0xff] }
 0x265   : > { %5512 = vmatprep.subr.mxu1 %v5664_v46  ;;  %v1357_v8 = vmul.f32 %v6846_v11, %v8829_v7  ;;  %v1360_v33 = vmul.f32 %v6951_v41, %v8831_v13  ;;  %v1715_v54 = vrot.slane %v1519_v18, 1  ;;  %v1723_v61 = vrot.slane %v1516_v19, 1  ;;  %v5665_v52 = vld [vmem:[#allocation3 + $0x168] sm:$0xff]  ;;  %v8833_v7 = vld [vmem:[#allocation17_spill] sm:$0xff] }
 0x266   : > { %5528 = vmatpush3.msra.mxu1 %v5664_v46  ;;  %v4889_v30 = vmul.f32 0.70710677, %v7035_v21  ;;  %v1724_v62 = vrot.slane %v1522_v63, 1  ;;  %v2003_v47 = vmul.f32 %v6951_v41, %v8832_v50  ;;  %v2006_v34 = vmul.f32 %v8830_v42, %v1216_v29  ;;  %v2439_v18 = vld [vmem:[#allocation2 + $0x8] sm:$0x3]  ;;  %v5666_v63 = vld [vmem:[#allocation3 + $0x160] sm:$0xff] }
 0x267   : > { %5513 = vmatprep.subr.mxu1 %v5665_v52  ;;  %v1716_v11 = vsel %vm1692_vm0, %v1714_v9, %v1715_v54  ;;  %v2009_v3 = vmul.f32 %v8832_v50, %v1219_v6  ;;  %v2201_v31 = vrot.slane %v2000_v16, 2  ;;  %v2442_v46 = vld [vmem:[#allocation2 + $0x390] sm:$0x3]  ;;  %v2580_v9 = vmul.f32 %v6872_v48, %v8833_v7 }
 0x268   : > { %5529 = vmatpush3.msra.mxu1 %v5665_v52  ;;  %5618 = verf.f32 %v4889_v30  ;;  %v1725_v14 = vsel %vm1692_vm0, %v1723_v61, %v1724_v62  ;;  %v1892_v56 = vadd.f32 %v1716_v11, %v1357_v8  ;;  %v2210_v19 = vrot.slane %v2003_v47, 2  ;;  %v8834_v6 = vld [vmem:[#allocation19_spill] sm:$0xff]  ;;  %v5667_v61 = vld [vmem:[#allocation3 + $0x158] sm:$0xff]  ;;  %v8835_v47 = vld [vmem:[#allocation22_spill] sm:$0xff] }
 0x269   : > { %5514 = vmatprep.subr.mxu1 %v5666_v63  ;;  %v1895_v41 = vadd.f32 %v1725_v14, %v1360_v33  ;;  %v2202_v13 = vrot.slane %v2006_v34, 2  ;;  %v2211_v17 = vrot.slane %v2009_v3, 2  ;;  %v2583_v29 = vmul.f32 %v6971_v57, %v6766_v35 }
 0x26a   : > { %5530 = vmatpush3.msra.mxu1 %v5666_v63  ;;  %v2736_v16 = vmul.f32 %v6872_v48, %v8834_v6  ;;  %v2739_v8 = vmul.f32 %v6971_v57, %v6771_v39  ;;  %v2742_v54 = vmul.f32 %v8834_v6, %v2439_v18  ;;  %v2745_v62 = vmul.f32 %v6771_v39, %v2442_v46  ;;  %v5668_v63 = vld [vmem:[#allocation3 + $0x150] sm:$0xff] }
 0x26b   : > { %5515 = vmatprep.subr.mxu1 %v5667_v61  ;;  %v2203_v33 = vsel %vm2179_vm1, %v2201_v31, %v2202_v13  ;;  %v2212_v30 = vsel %vm2179_vm1, %v2210_v19, %v2211_v17  ;;  %v3222_v52 = vmul.f32 %v6872_v48, %v8835_v47  ;;  %v3225_v7 = vmul.f32 %v6971_v57, %v6785_v53  ;;  %v7071_v17 = vld [vmem:[#allocation2 + $0x290] sm:$0xff] }
 0x26c   : > { %5531 = vmatpush3.msra.mxu1 %v5667_v61  ;;  %v2379_v11 = vadd.f32 %v2203_v33, %v1892_v56  ;;  %v2382_v34 = vadd.f32 %v2212_v30, %v1895_v41  ;;  %v2936_v3 = vrot.slane %v2736_v16, 1  ;;  %v2937_v14 = vrot.slane %v2742_v54, 1  ;;  %v7075_v41 = vld [vmem:[#allocation2 + $0x1c0] sm:$0xff]  ;;  %v3661_v16 = vld [vmem:[#allocation2 + $0x210] sm:$0x3]  ;;  %v5669_v54 = vld [vmem:[#allocation3 + $0x148] sm:$0xff] }
 0x26d   : > { %5516 = vmatprep.subr.mxu1 %v5668_v63  ;;  %v2945_v35 = vrot.slane %v2739_v8, 1  ;;  %v2946_v6 = vrot.slane %v2745_v62, 1  ;;  %v3228_v13 = vmul.f32 %v8835_v47, %v2439_v18  ;;  %v3231_v56 = vmul.f32 %v6785_v53, %v2442_v46  ;;  %v3664_v18 = vld [vmem:[#allocation2 + $0x1d8] sm:$0x3] }
 0x26e   : > { %5532 = vmatpush3.msra.mxu1 %v5668_v63  ;;  %v2628_v31 = vadd.f32 %v2580_v9, %v2379_v11  ;;  %v2631_v19 = vadd.f32 %v2583_v29, %v2382_v34  ;;  %v2938_v48 = vsel %vm1692_vm0, %v2936_v3, %v2937_v14  ;;  %v3422_v61 = vrot.slane %v3222_v52, 2  ;;  %v5670_v11 = vld [vmem:[#allocation3 + $0x140] sm:$0xff]  ;;  %v5671_v63 = vld [vmem:[#allocation3 + $0x138] sm:$0xff] }
 0x26f   : > { %5517 = vmatprep.subr.mxu1 %v5669_v54  ;;  %v2947_v8 = vsel %vm1692_vm0, %v2945_v35, %v2946_v6  ;;  %v3423_v57 = vrot.slane %v3228_v13, 2  ;;  %v3431_v33 = vrot.slane %v3225_v7, 2  ;;  %v3432_v9 = vrot.slane %v3231_v56, 2 }
 0x270   : > { %5533 = vmatpush3.msra.mxu1 %v5669_v54  ;;  %v3114_v30 = vadd.f32 %v2938_v48, %v2628_v31  ;;  %v3117_v62 = vadd.f32 %v2947_v8, %v2631_v19  ;;  %v3802_v29 = vmul.f32 %v6588_v22, %v7071_v17  ;;  %v3805_v34 = vmul.f32 %v6808_v26, %v7075_v41  ;;  %v8836_v48 = vld [vmem:[#allocation27_spill] sm:$0xff] }
 0x271   : > { %5518 = vmatprep.subr.mxu1 %v5670_v11  ;;  %v3424_v46 = vsel %vm2179_vm1, %v3422_v61, %v3423_v57  ;;  %v3958_v35 = vmul.f32 %v6599_v25, %v7071_v17  ;;  %v3961_v7 = vmul.f32 %v6811_v2, %v7075_v41  ;;  %v3433_v6 = vsel %vm2179_vm1, %v3431_v33, %v3432_v9  ;;  %v5672_v33 = vld [vmem:[#allocation3 + $0x130] sm:$0xff] }
 0x272   : > { %5534 = vmatpush3.msra.mxu1 %v5670_v11  ;;  %v3600_v52 = vadd.f32 %v3424_v46, %v3114_v30  ;;  %v3964_v3 = vmul.f32 %v6599_v25, %v3661_v16  ;;  %v3967_v14 = vmul.f32 %v6811_v2, %v3664_v18  ;;  %v3603_v13 = vadd.f32 %v3433_v6, %v3117_v62 }
 0x273   : > { %5519 = vmatprep.subr.mxu1 %v5671_v63  ;;  %v4158_v31 = vrot.slane %v3958_v35, 1  ;;  %v4167_v19 = vrot.slane %v3961_v7, 1  ;;  %v4444_v56 = vmul.f32 %v8836_v48, %v7071_v17  ;;  %v4447_v57 = vmul.f32 %v6817_v23, %v7075_v41 }
 0x274   : > { %5535 = vmatpush3.msra.mxu1 %v5671_v63  ;;  %v3850_v54 = vadd.f32 %v3802_v29, %v3600_v52  ;;  %v4159_v8 = vrot.slane %v3964_v3, 1  ;;  %v4168_v61 = vrot.slane %v3967_v14, 1  ;;  %v3853_v9 = vadd.f32 %v3805_v34, %v3603_v13  ;;  %v1215_v52 = vld [vmem:[#allocation2 + $0x338] sm:$0x3]  ;;  %v5673_v3 = vld [vmem:[#allocation3 + $0x128] sm:$0xff] }
 0x275   : > { %5520 = vmatprep.subr.mxu1 %v5672_v33  ;;  %v5619_v30 = vpop.eup %5618  ;;  %v4450_v11 = vmul.f32 %v8836_v48, %v3661_v16  ;;  %v4453_v62 = vmul.f32 %v6817_v23, %v3664_v18  ;;  %v4644_v46 = vrot.slane %v4444_v56, 2  ;;  %v4820_v35 = vadd.f32 %v7045_v49, %v7027_v28  ;;  %v1218_v13 = vld [vmem:[#allocation2 + $0x1a8] sm:$0x3]  ;;  %v8837_v28 = vld [vmem:[#allocation12_spill] sm:$0xff]  ;;  %v8838_v49 = vld [vmem:[#allocation59_spill] sm:$0xff] }
 0x276   : > { %5536 = vmatpush3.msra.mxu1 %v5672_v33  ;;  %v4865_v29 = vmul.f32 0.5, %v7035_v21  ;;  %v4937_v7 = vadd.f32 1.0, %v5619_v30  ;;  %v4160_v6 = vsel %vm1692_vm0, %v4158_v31, %v4159_v8  ;;  %v4169_v14 = vsel %vm1692_vm0, %v4167_v19, %v4168_v61  ;;  %v5674_v30 = vld [vmem:[#allocation3 + $0x120] sm:$0xff]  ;;  %v8839_v8 = vld [vmem:[#allocation18_spill] sm:$0xff] }
 0x277   : > { %5521 = vmatprep.subr.mxu1 %v5673_v3  ;;  %v4336_v34 = vadd.f32 %v4160_v6, %v3850_v54  ;;  %v4645_v63 = vrot.slane %v4450_v11, 2  ;;  %v4653_v16 = vrot.slane %v4447_v57, 2  ;;  %v7101_v56 = vadd.f32 %v4169_v14, %v3853_v9  ;;  %v8840_v19 = vld [vmem:[#allocation14_spill] sm:$0xff]  ;;  %v8841_v11 = vld [vmem:[#allocation23_spill] sm:$0xff]  ;;  %v8844_v48 = vld [vmem:[#allocation29_spill] sm:$0xff] }
 0x278   : > { %5537 = vmatpush3.msra.mxu1 %v5673_v3  ;;  %v4961_v18 = vmul.f32 %v4937_v7, %v4865_v29  ;;  %v4654_v33 = vrot.slane %v4453_v62, 2  ;;  %v1512_v21 = vmul.f32 %v8838_v49, %v8837_v28  ;;  %v1356_v23 = vmul.f32 %v8838_v49, %v8839_v8  ;;  %v5675_v7 = vld [vmem:[#allocation3 + $0x118] sm:$0xff]  ;;  %v8842_v14 = vld [vmem:[#allocation15_spill] sm:$0xff] }
 0x279   : > { %5522 = vmatprep.subr.mxu1 %v5674_v30  ;;  %v4646_v31 = vsel %vm2179_vm1, %v4644_v46, %v4645_v63  ;;  %v1515_v54 = vmul.f32 %v6848_v38, %v8840_v19  ;;  %v1518_v61 = vmul.f32 %v8837_v28, %v1215_v52  ;;  %v1359_v62 = vmul.f32 %v6848_v38, %v8841_v11  ;;  %v5676_v11 = vld [vmem:[#allocation3 + $0x110] sm:$0xff] }
 0x27a   : > { %5538 = vmatpush3.msra.mxu1 %v5674_v30  ;;  %v4985_v57 = vmul.f32 %v4961_v18, %v4820_v35  ;;  %v7111_v9 = vadd.f32 %v4646_v31, %v4336_v34  ;;  %v1521_v29 = vmul.f32 %v8840_v19, %v1218_v13  ;;  %v1711_v46 = vrot.slane %v1512_v21, 1  ;;  %v8843_v18 = vld [vmem:[#allocation20_spill] sm:$0xff]  ;;  %v5677_v19 = vld [vmem:[#allocation3 + $0x108] sm:$0xff] }
 0x27b   : > { %5523 = vmatprep.subr.mxu1 %v5675_v7  ;;  %v1712_v6 = vrot.slane %v1518_v61, 1  ;;  %v1720_v3 = vrot.slane %v1515_v54, 1  ;;  %v1999_v63 = vmul.f32 %v8838_v49, %v8842_v14  ;;  %v7119_v30 = vsel %vm2179_vm1, %v4653_v16, %v4654_v33 }
 0x27c   : > { %5539 = vmatpush3.msra.mxu1 %v5675_v7  ;;  %5499 = vmatprep.mubr.f32.mxu0 %v4985_v57  ;;  %v4891_v35 = vmul.f32 0.70710677, %v7111_v9  ;;  %v1721_v34 = vrot.slane %v1521_v29, 1  ;;  %v2002_v31 = vmul.f32 %v6848_v38, %v8843_v18  ;;  %v2005_v54 = vmul.f32 %v8842_v14, %v1215_v52  ;;  %v2438_v7 = vld [vmem:[#allocation2 + $0xf0] sm:$0x3]  ;;  %v8845_v52 = vld [vmem:[#allocation30_spill] sm:$0xff] }
 0x27d   : > { %5524 = vmatprep.subr.mxu1 %v5676_v11  ;;  %v1713_v21 = vsel %vm1692_vm0, %v1711_v46, %v1712_v6  ;;  %v2008_v61 = vmul.f32 %v8843_v18, %v1218_v13  ;;  %v2198_v49 = vrot.slane %v1999_v63, 2  ;;  %v2441_v29 = vld [vmem:[#allocation2 + $0x200] sm:$0x3]  ;;  %v2579_v46 = vmul.f32 %v6901_v12, %v8844_v48  ;;  %v8846_v6 = vld [vmem:[#allocation16_spill] sm:$0xff] }
 0x27e   : > { %5540 = vmatpush3.msra.mxu1 %v5676_v11  ;;  %5620 = verf.f32 %v4891_v35  ;;  %v1722_v16 = vsel %vm1692_vm0, %v1720_v3, %v1721_v34  ;;  %v1891_v33 = vadd.f32 %v1713_v21, %v1356_v23  ;;  %v2207_v57 = vrot.slane %v2002_v31, 2  ;;  %v5678_v63 = vld [vmem:[#allocation3 + $0x100] sm:$0xff] }
 0x27f   : > { %5525 = vmatprep.subr.mxu1 %v5677_v19  ;;  %v1894_v38 = vadd.f32 %v1722_v16, %v1359_v62  ;;  %v2199_v8 = vrot.slane %v2005_v54, 2  ;;  %v2208_v28 = vrot.slane %v2008_v61, 2  ;;  %v2582_v13 = vmul.f32 %v6905_v40, %v8845_v52 }
 0x280   : > { %5541 = vmatpush3.msra.mxu1 %v5677_v19  ;;  %v2735_v11 = vmul.f32 %v6901_v12, %v8846_v6  ;;  %v2738_v23 = vmul.f32 %v6905_v40, %v6650_v15  ;;  %v2741_v3 = vmul.f32 %v8846_v6, %v2438_v7  ;;  %v2744_v34 = vmul.f32 %v6650_v15, %v2441_v29  ;;  %v8847_v19 = vld [vmem:[#allocation21_spill] sm:$0xff] }
 0x281   : > { %5526 = vmatprep.subr.mxu1 %v5678_v63  ;;  %v2200_v62 = vsel %vm2179_vm1, %v2198_v49, %v2199_v8  ;;  %v2209_v35 = vsel %vm2179_vm1, %v2207_v57, %v2208_v28  ;;  %v3221_v31 = vmul.f32 %v6901_v12, %v8847_v19  ;;  %v3224_v6 = vmul.f32 %v6905_v40, %v6679_v44  ;;  %v7145_v8 = vld [vmem:[#allocation2] sm:$0xff] }
 0x282   : > { %5542 = vmatpush3.msra.mxu1 %v5678_v63  ;;  %v2378_v21 = vadd.f32 %v2200_v62, %v1891_v33  ;;  %v2381_v54 = vadd.f32 %v2209_v35, %v1894_v38  ;;  %v2933_v61 = vrot.slane %v2735_v11, 1  ;;  %v2934_v16 = vrot.slane %v2741_v3, 1  ;;  %v7149_v63 = vld [vmem:[#allocation2 + $0xe0] sm:$0xff]  ;;  %v3660_v33 = vld [vmem:[#allocation2 + $0x70] sm:$0x3] }
 0x283   : > { %v2942_v52 = vrot.slane %v2738_v23, 1  ;;  %v2943_v48 = vrot.slane %v2744_v34, 1  ;;  %v3227_v18 = vmul.f32 %v8847_v19, %v2438_v7  ;;  %v3230_v12 = vmul.f32 %v6679_v44, %v2441_v29  ;;  %v3663_v62 = vld [vmem:[#allocation2 + $0x370] sm:$0x3] }
 0x284   : > { %v2627_v28 = vadd.f32 %v2579_v46, %v2378_v21  ;;  %v2630_v49 = vadd.f32 %v2582_v13, %v2381_v54  ;;  %v2935_v57 = vsel %vm1692_vm0, %v2933_v61, %v2934_v16  ;;  %v3419_v11 = vrot.slane %v3221_v31, 2 }
 0x285   : > { %v2944_v38 = vsel %vm1692_vm0, %v2942_v52, %v2943_v48  ;;  %v3420_v23 = vrot.slane %v3227_v18, 2  ;;  %v3428_v3 = vrot.slane %v3224_v6, 2  ;;  %v3429_v7 = vrot.slane %v3230_v12, 2 }
 0x286   : > { %v3113_v40 = vadd.f32 %v2935_v57, %v2627_v28  ;;  %v3116_v35 = vadd.f32 %v2944_v38, %v2630_v49  ;;  %v3801_v46 = vmul.f32 %v6684_v45, %v7145_v8  ;;  %v3804_v29 = vmul.f32 %v6711_v27, %v7149_v63 }
 0x287   : > { %v3421_v13 = vsel %vm2179_vm1, %v3419_v11, %v3420_v23  ;;  %v3957_v34 = vmul.f32 %v6591_v36, %v7145_v8  ;;  %v3960_v48 = vmul.f32 %v6720_v32, %v7149_v63  ;;  %v3430_v18 = vsel %vm2179_vm1, %v3428_v3, %v3429_v7 }
 0x288   : > { %v3599_v52 = vadd.f32 %v3421_v13, %v3113_v40  ;;  %v3963_v6 = vmul.f32 %v6591_v36, %v3660_v33  ;;  %v3966_v31 = vmul.f32 %v6720_v32, %v3663_v62  ;;  %v3602_v21 = vadd.f32 %v3430_v18, %v3116_v35 }
 0x289   : > { %v4155_v54 = vrot.slane %v3957_v34, 1  ;;  %v4164_v61 = vrot.slane %v3960_v48, 1  ;;  %v4443_v16 = vmul.f32 %v6596_v24, %v7145_v8  ;;  %v4446_v12 = vmul.f32 %v6745_v55, %v7149_v63  ;;  %v1217_v34 = vld [vmem:[#allocation2 + $0x80] sm:$0x3] }
 0x28a   : > { %v3849_v28 = vadd.f32 %v3801_v46, %v3599_v52  ;;  %v4156_v49 = vrot.slane %v3963_v6, 1  ;;  %v4165_v57 = vrot.slane %v3966_v31, 1  ;;  %v3852_v11 = vadd.f32 %v3804_v29, %v3602_v21  ;;  %v1220_v29 = vld [vmem:[#allocation2 + $0x168] sm:$0x3] }
 0x28b   : > { %v5621_v38 = vpop.eup %5620  ;;  %v4449_v23 = vmul.f32 %v6596_v24, %v3660_v33  ;;  %v4452_v3 = vmul.f32 %v6745_v55, %v3663_v62  ;;  %v4641_v40 = vrot.slane %v4443_v16, 2  ;;  %v4825_v35 = vadd.f32 %v7119_v30, %v7101_v56  ;;  %v5679_v21 = vld [vmem:[#allocation2 + $0x108] sm:$0xff]  ;;  %v8848_v16 = vld [vmem:[#allocation13_spill] sm:$0xff] }
 0x28c   : > { %v4867_v7 = vmul.f32 0.5, %v7111_v9  ;;  %v4939_v13 = vadd.f32 1.0, %v5621_v38  ;;  %v4157_v46 = vsel %vm1692_vm0, %v4155_v54, %v4156_v49  ;;  %v4166_v48 = vsel %vm1692_vm0, %v4164_v61, %v4165_v57  ;;  %v8849_v9 = vld [vmem:[#allocation35_spill] sm:$0xff]  ;;  %v8850_v38 = vld [vmem:[#allocation38_spill] sm:$0xff]  ;;  %v8851_v57 = vld [vmem:[#allocation48_spill] sm:$0xff] }
 0x28d   : > { %v4335_v18 = vadd.f32 %v4157_v46, %v3849_v28  ;;  %v4642_v52 = vrot.slane %v4449_v23, 2  ;;  %v4650_v6 = vrot.slane %v4446_v12, 2  ;;  %v7175_v33 = vadd.f32 %v4166_v48, %v3852_v11 }
 0x28e   : > { %v4963_v31 = vmul.f32 %v4939_v13, %v4867_v7  ;;  %v4651_v62 = vrot.slane %v4452_v3, 2  ;;  %v1514_v55 = vmul.f32 %v5679_v21, %v8848_v16  ;;  %v1358_v30 = vmul.f32 %v5679_v21, %v8849_v9  ;;  %v8852_v13 = vld [vmem:[#allocation28_spill] sm:$0xff]  ;;  %v8854_v9 = vld [vmem:[#allocation47_spill] sm:$0xff] }
 0x28f   : > { %v4643_v56 = vsel %vm2179_vm1, %v4641_v40, %v4642_v52  ;;  %v1517_v54 = vmul.f32 %v6968_v37, %v8850_v38  ;;  %v1520_v61 = vmul.f32 %v8848_v16, %v1217_v34  ;;  %v1361_v12 = vmul.f32 %v6968_v37, %v8851_v57 }
 0x290   : > { %v4987_v28 = vmul.f32 %v4963_v31, %v4825_v35  ;;  %v7183_v49 = vadd.f32 %v4643_v56, %v4335_v18  ;;  %v1523_v11 = vmul.f32 %v8850_v38, %v1220_v29  ;;  %v1717_v23 = vrot.slane %v1514_v55, 1  ;;  %v8853_v35 = vld [vmem:[#allocation44_spill] sm:$0xff] }
 0x291   : > { %v1718_v3 = vrot.slane %v1520_v61, 1  ;;  %v1726_v7 = vrot.slane %v1517_v54, 1  ;;  %v2001_v40 = vmul.f32 %v5679_v21, %v8852_v13  ;;  %v7190_v46 = vsel %vm2179_vm1, %v4650_v6, %v4651_v62  ;;  %v2440_v54 = vld [vmem:[#allocation2 + $0x148] sm:$0x3]  ;;  %v2443_v62 = vld [vmem:[#allocation2 + $0x278] sm:$0x3] }
 0x292   : > { %5124 = vmatprep.mubr.f32.mxu1 %v4987_v28  ;;  %v4890_v48 = vmul.f32 0.70710677, %v7183_v49  ;;  %v1727_v52 = vrot.slane %v1523_v11, 1  ;;  %v2004_v18 = vmul.f32 %v6968_v37, %v8853_v35  ;;  %v2007_v56 = vmul.f32 %v8852_v13, %v1217_v34  ;;  %v8855_v34 = vld [vmem:[#allocation32_spill] sm:$0xff] }
 0x293   : > { %v1719_v31 = vsel %vm1692_vm0, %v1717_v23, %v1718_v3  ;;  %v2010_v55 = vmul.f32 %v8853_v35, %v1220_v29  ;;  %v2204_v61 = vrot.slane %v2001_v40, 2  ;;  %v2581_v37 = vmul.f32 %v6944_v4, %v8854_v9  ;;  %v7216_v35 = vld [vmem:[#allocation2 + $0x188] sm:$0xff] }
 0x294   : > { %5622 = verf.f32 %v4890_v48  ;;  %v1728_v21 = vsel %vm1692_vm0, %v1726_v7, %v1727_v52  ;;  %v1893_v28 = vadd.f32 %v1719_v31, %v1358_v30  ;;  %v2213_v6 = vrot.slane %v2004_v18, 2  ;;  %v8856_v48 = vld [vmem:[#allocation34_spill] sm:$0xff] }
 0x295   : > { %v1896_v57 = vadd.f32 %v1728_v21, %v1361_v12  ;;  %v2205_v38 = vrot.slane %v2007_v56, 2  ;;  %v2214_v11 = vrot.slane %v2010_v55, 2  ;;  %v2584_v23 = vmul.f32 %v6993_v59, %v6832_v10 }
 0x296   : > { %v2737_v29 = vmul.f32 %v6944_v4, %v8855_v34  ;;  %v2740_v3 = vmul.f32 %v6993_v59, %v6776_v51  ;;  %v2743_v7 = vmul.f32 %v8855_v34, %v2440_v54  ;;  %v2746_v40 = vmul.f32 %v6776_v51, %v2443_v62 }
 0x297   : > { %v2206_v30 = vsel %vm2179_vm1, %v2204_v61, %v2205_v38  ;;  %v2215_v12 = vsel %vm2179_vm1, %v2213_v6, %v2214_v11  ;;  %v3223_v52 = vmul.f32 %v6944_v4, %v8856_v48  ;;  %v3226_v9 = vmul.f32 %v6993_v59, %v6804_v0  ;;  %v7220_v4 = vld [vmem:[#allocation2 + $0x90] sm:$0xff] }
 0x298   : > { %v2380_v18 = vadd.f32 %v2206_v30, %v1893_v28  ;;  %v2383_v31 = vadd.f32 %v2215_v12, %v1896_v57  ;;  %v2939_v56 = vrot.slane %v2737_v29, 1  ;;  %v2940_v55 = vrot.slane %v2743_v7, 1  ;;  %v3662_v57 = vld [vmem:[#allocation2 + $0x308] sm:$0x3]  ;;  %v3665_v30 = vld [vmem:[#allocation2 + $0x260] sm:$0x3] }
 0x299   : > { %v2948_v21 = vrot.slane %v2740_v3, 1  ;;  %v2949_v10 = vrot.slane %v2746_v40, 1  ;;  %v3229_v34 = vmul.f32 %v8856_v48, %v2440_v54  ;;  %v3232_v11 = vmul.f32 %v6804_v0, %v2443_v62  ;;  %v8857_v40 = vld [vmem:[#allocation58_spill] sm:$0xff] }
 0x29a   : > { %v2629_v38 = vadd.f32 %v2581_v37, %v2380_v18  ;;  %v2632_v61 = vadd.f32 %v2584_v23, %v2383_v31  ;;  %v2941_v6 = vsel %vm1692_vm0, %v2939_v56, %v2940_v55  ;;  %v3425_v29 = vrot.slane %v3223_v52, 2 }
 0x29b   : > { %v2950_v28 = vsel %vm1692_vm0, %v2948_v21, %v2949_v10  ;;  %v3426_v3 = vrot.slane %v3229_v34, 2  ;;  %v3434_v7 = vrot.slane %v3226_v9, 2  ;;  %v3435_v54 = vrot.slane %v3232_v11, 2 }
 0x29c   : > { %v3115_v59 = vadd.f32 %v2941_v6, %v2629_v38  ;;  %v3118_v12 = vadd.f32 %v2950_v28, %v2632_v61  ;;  %v3803_v37 = vmul.f32 %v8857_v40, %v7216_v35  ;;  %v3806_v62 = vmul.f32 %v6835_v5, %v7220_v4 }
 0x29d   : > { %v3427_v23 = vsel %vm2179_vm1, %v3425_v29, %v3426_v3  ;;  %v3959_v18 = vmul.f32 %v6692_v60, %v7216_v35  ;;  %v3962_v10 = vmul.f32 %v6814_v20, %v7220_v4  ;;  %v3436_v9 = vsel %vm2179_vm1, %v3434_v7, %v3435_v54 }
 0x29e   : > { %v3601_v34 = vadd.f32 %v3427_v23, %v3115_v59  ;;  %v3965_v52 = vmul.f32 %v6692_v60, %v3662_v57  ;;  %v3968_v31 = vmul.f32 %v6814_v20, %v3665_v30  ;;  %v3604_v56 = vadd.f32 %v3436_v9, %v3118_v12  ;;  %v1222_v23 = vld [vmem:[#allocation2 + $0x288] sm:$0xff]  ;;  %v1225_v9 = vld [vmem:[#allocation2 + $0x1b0] sm:$0xff] }
 0x29f   : > { %v4161_v55 = vrot.slane %v3959_v18, 1  ;;  %v4170_v21 = vrot.slane %v3962_v10, 1  ;;  %v4445_v38 = vmul.f32 %v8826_v58, %v7216_v35  ;;  %v4448_v28 = vmul.f32 %v6820_v43, %v7220_v4 }
 0x2a0   : > { %v3851_v61 = vadd.f32 %v3803_v37, %v3601_v34  ;;  %v4162_v6 = vrot.slane %v3965_v52, 1  ;;  %v4171_v11 = vrot.slane %v3968_v31, 1  ;;  %v3854_v3 = vadd.f32 %v3806_v62, %v3604_v56  ;;  %v1228_v34 = vld [vmem:[#allocation2 + $0x8] sm:$0x3] }
 0x2a1   : > { %v5623_v29 = vpop.eup %5622  ;;  %v4451_v7 = vmul.f32 %v8826_v58, %v3662_v57  ;;  %v4454_v59 = vmul.f32 %v6820_v43, %v3665_v30  ;;  %v4647_v54 = vrot.slane %v4445_v38, 2  ;;  %v4824_v12 = vadd.f32 %v7190_v46, %v7175_v33  ;;  %v1231_v57 = vld [vmem:[#allocation2 + $0x390] sm:$0x3] }
 0x2a2   : > { %v4866_v18 = vmul.f32 0.5, %v7183_v49  ;;  %v4938_v10 = vadd.f32 1.0, %v5623_v29  ;;  %v4163_v37 = vsel %vm1692_vm0, %v4161_v55, %v4162_v6  ;;  %v4172_v52 = vsel %vm1692_vm0, %v4170_v21, %v4171_v11  ;;  %v8858_v49 = vld [vmem:[#allocation11_spill] sm:$0xff] }
 0x2a3   : > { %v4337_v31 = vadd.f32 %v4163_v37, %v3851_v61  ;;  %v4648_v62 = vrot.slane %v4451_v7, 2  ;;  %v4656_v56 = vrot.slane %v4448_v28, 2  ;;  %v7246_v30 = vadd.f32 %v4172_v52, %v3854_v3  ;;  %v8859_v29 = vld [vmem:[#allocation31_spill] sm:$0xff]  ;;  %v8860_v61 = vld [vmem:[#allocation40_spill] sm:$0xff] }
 0x2a4   : > { %v4962_v58 = vmul.f32 %v4938_v10, %v4866_v18  ;;  %v4657_v38 = vrot.slane %v4454_v59, 2  ;;  %v1525_v43 = vmul.f32 %v8827_v1, %v1222_v23  ;;  %v1363_v46 = vmul.f32 %v8858_v49, %v1222_v23 }
 0x2a5   : > { %v4649_v33 = vsel %vm2179_vm1, %v4647_v54, %v4648_v62  ;;  %v1528_v55 = vmul.f32 %v8859_v29, %v1225_v9  ;;  %v1531_v6 = vmul.f32 %v8827_v1, %v1228_v34  ;;  %v1366_v11 = vmul.f32 %v8860_v61, %v1225_v9  ;;  %v2451_v62 = vld [vmem:[#allocation2 + $0x210] sm:$0x3]  ;;  %v8862_v61 = vld [vmem:[#allocation49_spill] sm:$0xff] }
 0x2a6   : > { %v4986_v20 = vmul.f32 %v4962_v58, %v4824_v12  ;;  %v7253_v21 = vadd.f32 %v4649_v33, %v4337_v31  ;;  %v1534_v28 = vmul.f32 %v8859_v29, %v1231_v57  ;;  %v1732_v3 = vrot.slane %v1525_v43, 1 }
 0x2a7   : > { %v1733_v7 = vrot.slane %v1531_v6, 1  ;;  %v1741_v59 = vrot.slane %v1528_v55, 1  ;;  %v2012_v18 = vmul.f32 %v8830_v42, %v1222_v23  ;;  %v7259_v54 = vsel %vm2179_vm1, %v4656_v56, %v4657_v38  ;;  %v2454_v56 = vld [vmem:[#allocation2 + $0x1d8] sm:$0x3] }
 0x2a8   : > { %5125 = vmatmul.mubr.f32.gmra.mxu1 %v4986_v20  ;;  %v4892_v10 = vmul.f32 0.70710677, %v7253_v21  ;;  %v1742_v37 = vrot.slane %v1534_v28, 1  ;;  %v2015_v58 = vmul.f32 %v8832_v50, %v1225_v9  ;;  %v2018_v52 = vmul.f32 %v8830_v42, %v1228_v34  ;;  %v8861_v28 = vld [vmem:[#allocation17_spill] sm:$0xff]  ;;  %v8863_v34 = vld [vmem:[#allocation19_spill] sm:$0xff] }
 0x2a9   : > { %v1734_v12 = vsel %vm1692_vm0, %v1732_v3, %v1733_v7  ;;  %v2021_v31 = vmul.f32 %v8832_v50, %v1231_v57  ;;  %v2219_v43 = vrot.slane %v2012_v18, 2  ;;  %v2586_v9 = vmul.f32 %v7071_v17, %v8861_v28  ;;  %v7284_v28 = vld [vmem:[#allocation2 + $0x2c0] sm:$0xff] }
 0x2aa   : > { %5624 = verf.f32 %v4892_v10  ;;  %v1743_v23 = vsel %vm1692_vm0, %v1741_v59, %v1742_v37  ;;  %v1898_v20 = vadd.f32 %v1734_v12, %v1363_v46  ;;  %v2228_v33 = vrot.slane %v2015_v58, 2 }
 0x2ab   : > { %v1901_v38 = vadd.f32 %v1743_v23, %v1366_v11  ;;  %v2220_v55 = vrot.slane %v2018_v52, 2  ;;  %v2229_v6 = vrot.slane %v2021_v31, 2  ;;  %v2589_v3 = vmul.f32 %v7075_v41, %v8862_v61 }
 0x2ac   : > { %v2748_v57 = vmul.f32 %v7071_v17, %v8863_v34  ;;  %v2751_v7 = vmul.f32 %v7075_v41, %v6771_v39  ;;  %v2754_v59 = vmul.f32 %v8863_v34, %v2451_v62  ;;  %v2757_v18 = vmul.f32 %v6771_v39, %v2454_v56 }
 0x2ad   : > { %v2221_v46 = vsel %vm2179_vm1, %v2219_v43, %v2220_v55  ;;  %v2230_v11 = vsel %vm2179_vm1, %v2228_v33, %v2229_v6  ;;  %v3234_v10 = vmul.f32 %v7071_v17, %v8835_v47  ;;  %v3237_v61 = vmul.f32 %v7075_v41, %v6785_v53  ;;  %v7288_v17 = vld [vmem:[#allocation2 + $0x78] sm:$0xff] }
 0x2ae   : > { %v2385_v37 = vadd.f32 %v2221_v46, %v1898_v20  ;;  %v2388_v58 = vadd.f32 %v2230_v11, %v1901_v38  ;;  %v2954_v12 = vrot.slane %v2748_v57, 1  ;;  %v2955_v52 = vrot.slane %v2754_v59, 1  ;;  %v3673_v20 = vld [vmem:[#allocation2 + $0x300] sm:$0x3] }
 0x2af   : > { %v2963_v31 = vrot.slane %v2751_v7, 1  ;;  %v2964_v23 = vrot.slane %v2757_v18, 1  ;;  %v3240_v34 = vmul.f32 %v8835_v47, %v2451_v62  ;;  %v3243_v6 = vmul.f32 %v6785_v53, %v2454_v56  ;;  %v3676_v46 = vld [vmem:[#allocation2 + $0x40] sm:$0x3] }
 0x2b0   : > { %v2634_v43 = vadd.f32 %v2586_v9, %v2385_v37  ;;  %v2637_v33 = vadd.f32 %v2589_v3, %v2388_v58  ;;  %v2956_v55 = vsel %vm1692_vm0, %v2954_v12, %v2955_v52  ;;  %v3440_v57 = vrot.slane %v3234_v10, 2 }
 0x2b1   : > { %v2965_v38 = vsel %vm1692_vm0, %v2963_v31, %v2964_v23  ;;  %v3441_v7 = vrot.slane %v3240_v34, 2  ;;  %v3449_v59 = vrot.slane %v3237_v61, 2  ;;  %v3450_v62 = vrot.slane %v3243_v6, 2  ;;  %v8864_v23 = vld [vmem:[#allocation27_spill] sm:$0xff] }
 0x2b2   : > { %v3120_v41 = vadd.f32 %v2956_v55, %v2634_v43  ;;  %v3123_v11 = vadd.f32 %v2965_v38, %v2637_v33  ;;  %v3808_v9 = vmul.f32 %v6588_v22, %v7284_v28  ;;  %v3811_v56 = vmul.f32 %v6808_v26, %v7288_v17  ;;  %v8865_v38 = vld [vmem:[#allocation56_spill] sm:$0xff] }
 0x2b3   : > { %v3442_v3 = vsel %vm2179_vm1, %v3440_v57, %v3441_v7  ;;  %v3970_v18 = vmul.f32 %v6599_v25, %v7284_v28  ;;  %v3973_v10 = vmul.f32 %v6811_v2, %v7288_v17  ;;  %v3451_v61 = vsel %vm2179_vm1, %v3449_v59, %v3450_v62 }
 0x2b4   : > { %v3606_v34 = vadd.f32 %v3442_v3, %v3120_v41  ;;  %v3976_v37 = vmul.f32 %v6599_v25, %v3673_v20  ;;  %v3979_v58 = vmul.f32 %v6811_v2, %v3676_v46  ;;  %v3609_v12 = vadd.f32 %v3451_v61, %v3123_v11  ;;  %v1221_v3 = vld [vmem:[#allocation2 + $0x2f0] sm:$0xff] }
 0x2b5   : > { %v4176_v52 = vrot.slane %v3970_v18, 1  ;;  %v4185_v31 = vrot.slane %v3973_v10, 1  ;;  %v4456_v43 = vmul.f32 %v8864_v23, %v7284_v28  ;;  %v4459_v57 = vmul.f32 %v8865_v38, %v7288_v17  ;;  %v1224_v61 = vld [vmem:[#allocation2 + $0x130] sm:$0xff] }
 0x2b6   : > { %v3856_v33 = vadd.f32 %v3808_v9, %v3606_v34  ;;  %v4177_v55 = vrot.slane %v3976_v37, 1  ;;  %v4186_v6 = vrot.slane %v3979_v58, 1  ;;  %v3859_v26 = vadd.f32 %v3811_v56, %v3609_v12  ;;  %v1227_v34 = vld [vmem:[#allocation2 + $0xf0] sm:$0x3] }
 0x2b7   : > { %v5625_v7 = vpop.eup %5624  ;;  %v4462_v59 = vmul.f32 %v8864_v23, %v3673_v20  ;;  %v4465_v41 = vmul.f32 %v8865_v38, %v3676_v46  ;;  %v4662_v62 = vrot.slane %v4456_v43, 2  ;;  %v4826_v11 = vadd.f32 %v7259_v54, %v7246_v30  ;;  %v1230_v20 = vld [vmem:[#allocation2 + $0x200] sm:$0x3]  ;;  %v8866_v38 = vld [vmem:[#allocation12_spill] sm:$0xff] }
 0x2b8   : > { %v4868_v18 = vmul.f32 0.5, %v7253_v21  ;;  %v4940_v10 = vadd.f32 1.0, %v5625_v7  ;;  %v4178_v9 = vsel %vm1692_vm0, %v4176_v52, %v4177_v55  ;;  %v4187_v37 = vsel %vm1692_vm0, %v4185_v31, %v4186_v6  ;;  %v8867_v21 = vld [vmem:[#allocation18_spill] sm:$0xff] }
 0x2b9   : > { %v4342_v58 = vadd.f32 %v4178_v9, %v3856_v33  ;;  %v4663_v56 = vrot.slane %v4462_v59, 2  ;;  %v4671_v12 = vrot.slane %v4459_v57, 2  ;;  %v7314_v46 = vadd.f32 %v4187_v37, %v3859_v26  ;;  %v8868_v7 = vld [vmem:[#allocation14_spill] sm:$0xff]  ;;  %v8869_v33 = vld [vmem:[#allocation23_spill] sm:$0xff]  ;;  %v8870_v37 = vld [vmem:[#allocation20_spill] sm:$0xff] }
 0x2ba   : > { %v4964_v23 = vmul.f32 %v4940_v10, %v4868_v18  ;;  %v4672_v43 = vrot.slane %v4465_v41, 2  ;;  %v1524_v2 = vmul.f32 %v8866_v38, %v1221_v3  ;;  %v1362_v54 = vmul.f32 %v8867_v21, %v1221_v3 }
 0x2bb   : > { %v4664_v30 = vsel %vm2179_vm1, %v4662_v62, %v4663_v56  ;;  %v1527_v52 = vmul.f32 %v8868_v7, %v1224_v61  ;;  %v1530_v55 = vmul.f32 %v8866_v38, %v1227_v34  ;;  %v1365_v6 = vmul.f32 %v8869_v33, %v1224_v61 }
 0x2bc   : > { %v4988_v25 = vmul.f32 %v4964_v23, %v4826_v11  ;;  %v7321_v31 = vadd.f32 %v4664_v30, %v4342_v58  ;;  %v1533_v57 = vmul.f32 %v8868_v7, %v1230_v20  ;;  %v1729_v26 = vrot.slane %v1524_v2, 1  ;;  %v2450_v30 = vld [vmem:[#allocation2 + $0x70] sm:$0x3]  ;;  %v8872_v7 = vld [vmem:[#allocation30_spill] sm:$0xff] }
 0x2bd   : > { %v1730_v59 = vrot.slane %v1530_v55, 1  ;;  %v1738_v41 = vrot.slane %v1527_v52, 1  ;;  %v2011_v18 = vmul.f32 %v8842_v14, %v1221_v3  ;;  %v7327_v62 = vsel %vm2179_vm1, %v4671_v12, %v4672_v43  ;;  %v2453_v12 = vld [vmem:[#allocation2 + $0x370] sm:$0x3] }
 0x2be   : > { %5500 = vmatmul.mubr.f32.vlgmr.msra.gmra.mxu0 %v4988_v25  ;;  %v4894_v10 = vmul.f32 0.70710677, %v7321_v31  ;;  %v1739_v9 = vrot.slane %v1533_v57, 1  ;;  %v2014_v23 = vmul.f32 %v8870_v37, %v1224_v61  ;;  %v2017_v58 = vmul.f32 %v8842_v14, %v1227_v34  ;;  %v8871_v57 = vld [vmem:[#allocation29_spill] sm:$0xff]  ;;  %v8873_v34 = vld [vmem:[#allocation16_spill] sm:$0xff] }
 0x2bf   : > { %v1731_v11 = vsel %vm1692_vm0, %v1729_v26, %v1730_v59  ;;  %v2020_v56 = vmul.f32 %v8870_v37, %v1230_v20  ;;  %v2216_v2 = vrot.slane %v2011_v18, 2  ;;  %v2585_v61 = vmul.f32 %v7145_v8, %v8871_v57  ;;  %v7352_v57 = vld [vmem:[#allocation2 + $0x358] sm:$0xff] }
 0x2c0   : > { %5626 = verf.f32 %v4894_v10  ;;  %v1740_v3 = vsel %vm1692_vm0, %v1738_v41, %v1739_v9  ;;  %v1897_v25 = vadd.f32 %v1731_v11, %v1362_v54  ;;  %v2225_v52 = vrot.slane %v2014_v23, 2 }
 0x2c1   : > { %v1900_v43 = vadd.f32 %v1740_v3, %v1365_v6  ;;  %v2217_v55 = vrot.slane %v2017_v58, 2  ;;  %v2226_v33 = vrot.slane %v2020_v56, 2  ;;  %v2588_v26 = vmul.f32 %v7149_v63, %v8872_v7 }
 0x2c2   : > { %v2747_v20 = vmul.f32 %v7145_v8, %v8873_v34  ;;  %v2750_v59 = vmul.f32 %v7149_v63, %v6650_v15  ;;  %v2753_v41 = vmul.f32 %v8873_v34, %v2450_v30  ;;  %v2756_v18 = vmul.f32 %v6650_v15, %v2453_v12 }
 0x2c3   : > { %v2218_v54 = vsel %vm2179_vm1, %v2216_v2, %v2217_v55  ;;  %v2227_v6 = vsel %vm2179_vm1, %v2225_v52, %v2226_v33  ;;  %v3233_v10 = vmul.f32 %v7145_v8, %v8847_v19  ;;  %v3236_v7 = vmul.f32 %v7149_v63, %v6679_v44  ;;  %v7356_v8 = vld [vmem:[#allocation2 + $0x238] sm:$0xff] }
 0x2c4   : > { %v2384_v9 = vadd.f32 %v2218_v54, %v1897_v25  ;;  %v2387_v23 = vadd.f32 %v2227_v6, %v1900_v43  ;;  %v2951_v11 = vrot.slane %v2747_v20, 1  ;;  %v2952_v58 = vrot.slane %v2753_v41, 1  ;;  %v3672_v25 = vld [vmem:[#allocation2 + $0xa8] sm:$0x3]  ;;  %v3675_v54 = vld [vmem:[#allocation2 + $0x20] sm:$0x3] }
 0x2c5   : > { %v2960_v56 = vrot.slane %v2750_v59, 1  ;;  %v2961_v3 = vrot.slane %v2756_v18, 1  ;;  %v3239_v34 = vmul.f32 %v8847_v19, %v2450_v30  ;;  %v3242_v55 = vmul.f32 %v6679_v44, %v2453_v12 }
 0x2c6   : > { %v2633_v2 = vadd.f32 %v2585_v61, %v2384_v9  ;;  %v2636_v33 = vadd.f32 %v2588_v26, %v2387_v23  ;;  %v2953_v52 = vsel %vm1692_vm0, %v2951_v11, %v2952_v58  ;;  %v3437_v20 = vrot.slane %v3233_v10, 2 }
 0x2c7   : > { %v2962_v43 = vsel %vm1692_vm0, %v2960_v56, %v2961_v3  ;;  %v3438_v59 = vrot.slane %v3239_v34, 2  ;;  %v3446_v41 = vrot.slane %v3236_v7, 2  ;;  %v3447_v30 = vrot.slane %v3242_v55, 2  ;;  %v8874_v55 = vld [vmem:[#allocation46_spill] sm:$0xff] }
 0x2c8   : > { %v3119_v63 = vadd.f32 %v2953_v52, %v2633_v2  ;;  %v3122_v6 = vadd.f32 %v2962_v43, %v2636_v33  ;;  %v3807_v61 = vmul.f32 %v6684_v45, %v7352_v57  ;;  %v3810_v12 = vmul.f32 %v6711_v27, %v7356_v8 }
 0x2c9   : > { %v3439_v26 = vsel %vm2179_vm1, %v3437_v20, %v3438_v59  ;;  %v3969_v18 = vmul.f32 %v6591_v36, %v7352_v57  ;;  %v3972_v10 = vmul.f32 %v6720_v32, %v7356_v8  ;;  %v3448_v7 = vsel %vm2179_vm1, %v3446_v41, %v3447_v30 }
 0x2ca   : > { %v3605_v34 = vadd.f32 %v3439_v26, %v3119_v63  ;;  %v3975_v9 = vmul.f32 %v6591_v36, %v3672_v25  ;;  %v3978_v23 = vmul.f32 %v6720_v32, %v3675_v54  ;;  %v3608_v11 = vadd.f32 %v3448_v7, %v3122_v6  ;;  %v1223_v26 = vld [vmem:[#allocation2 + $0x360] sm:$0xff]  ;;  %v1226_v7 = vld [vmem:[#allocation2 + $0x270] sm:$0xff] }
 0x2cb   : > { %v4173_v58 = vrot.slane %v3969_v18, 1  ;;  %v4182_v56 = vrot.slane %v3972_v10, 1  ;;  %v4455_v3 = vmul.f32 %v6596_v24, %v7352_v57  ;;  %v4458_v43 = vmul.f32 %v8874_v55, %v7356_v8 }
 0x2cc   : > { %v3855_v2 = vadd.f32 %v3807_v61, %v3605_v34  ;;  %v4174_v33 = vrot.slane %v3975_v9, 1  ;;  %v4183_v52 = vrot.slane %v3978_v23, 1  ;;  %v3858_v59 = vadd.f32 %v3810_v12, %v3608_v11  ;;  %v1229_v34 = vld [vmem:[#allocation2 + $0x148] sm:$0x3] }
 0x2cd   : > { %v5627_v20 = vpop.eup %5626  ;;  %v4461_v41 = vmul.f32 %v6596_v24, %v3672_v25  ;;  %v4464_v63 = vmul.f32 %v8874_v55, %v3675_v54  ;;  %v4659_v30 = vrot.slane %v4455_v3, 2  ;;  %v4831_v6 = vadd.f32 %v7327_v62, %v7314_v46  ;;  %v1232_v25 = vld [vmem:[#allocation2 + $0x278] sm:$0x3] }
 0x2ce   : > { %v4870_v18 = vmul.f32 0.5, %v7321_v31  ;;  %v4942_v10 = vadd.f32 1.0, %v5627_v20  ;;  %v4175_v61 = vsel %vm1692_vm0, %v4173_v58, %v4174_v33  ;;  %v4184_v9 = vsel %vm1692_vm0, %v4182_v56, %v4183_v52  ;;  %v8875_v31 = vld [vmem:[#allocation35_spill] sm:$0xff]  ;;  %v8876_v20 = vld [vmem:[#allocation38_spill] sm:$0xff] }
 0x2cf   : > { %v4341_v23 = vadd.f32 %v4175_v61, %v3855_v2  ;;  %v4660_v12 = vrot.slane %v4461_v41, 2  ;;  %v4668_v11 = vrot.slane %v4458_v43, 2  ;;  %v7382_v54 = vadd.f32 %v4184_v9, %v3858_v59  ;;  %v8877_v2 = vld [vmem:[#allocation48_spill] sm:$0xff] }
 0x2d0   : > { %v4966_v24 = vmul.f32 %v4942_v10, %v4870_v18  ;;  %v4669_v3 = vrot.slane %v4464_v63, 2  ;;  %v1526_v55 = vmul.f32 %v8848_v16, %v1223_v26  ;;  %v1364_v62 = vmul.f32 %v8875_v31, %v1223_v26  ;;  %v8878_v9 = vld [vmem:[#allocation44_spill] sm:$0xff] }
 0x2d1   : > { %v4661_v46 = vsel %vm2179_vm1, %v4659_v30, %v4660_v12  ;;  %v1529_v58 = vmul.f32 %v8876_v20, %v1226_v7  ;;  %v1532_v33 = vmul.f32 %v8848_v16, %v1229_v34  ;;  %v1367_v52 = vmul.f32 %v8877_v2, %v1226_v7 }
 0x2d2   : > { %v4990_v32 = vmul.f32 %v4966_v24, %v4831_v6  ;;  %v7389_v56 = vadd.f32 %v4661_v46, %v4341_v23  ;;  %v1535_v43 = vmul.f32 %v8876_v20, %v1232_v25  ;;  %v1735_v59 = vrot.slane %v1526_v55, 1  ;;  %v2452_v46 = vld [vmem:[#allocation2 + $0x308] sm:$0x3]  ;;  %v8880_v20 = vld [vmem:[#allocation60_spill] sm:$0xff] }
 0x2d3   : > { %v1736_v41 = vrot.slane %v1532_v33, 1  ;;  %v1744_v63 = vrot.slane %v1529_v58, 1  ;;  %v2013_v18 = vmul.f32 %v8852_v13, %v1223_v26  ;;  %v7395_v30 = vsel %vm2179_vm1, %v4668_v11, %v4669_v3  ;;  %v2455_v11 = vld [vmem:[#allocation2 + $0x260] sm:$0x3] }
 0x2d4   : > { %5129 = vmatprep.mubr.f32.mxu1 %v4990_v32  ;;  %v4893_v10 = vmul.f32 0.70710677, %v7389_v56  ;;  %v1745_v61 = vrot.slane %v1535_v43, 1  ;;  %v2016_v24 = vmul.f32 %v8878_v9, %v1226_v7  ;;  %v2019_v23 = vmul.f32 %v8852_v13, %v1229_v34  ;;  %v8879_v43 = vld [vmem:[#allocation47_spill] sm:$0xff]  ;;  %v8881_v34 = vld [vmem:[#allocation32_spill] sm:$0xff] }
 0x2d5   : > { %v1737_v6 = vsel %vm1692_vm0, %v1735_v59, %v1736_v41  ;;  %v2022_v12 = vmul.f32 %v8878_v9, %v1232_v25  ;;  %v2222_v55 = vrot.slane %v2013_v18, 2  ;;  %v2587_v7 = vmul.f32 %v7216_v35, %v8879_v43  ;;  %v7420_v43 = vld [vmem:[#allocation2 + $0x328] sm:$0xff] }
 0x2d6   : > { %5628 = verf.f32 %v4893_v10  ;;  %v1746_v26 = vsel %vm1692_vm0, %v1744_v63, %v1745_v61  ;;  %v1899_v32 = vadd.f32 %v1737_v6, %v1364_v62  ;;  %v2231_v58 = vrot.slane %v2016_v24, 2 }
 0x2d7   : > { %v1902_v3 = vadd.f32 %v1746_v26, %v1367_v52  ;;  %v2223_v33 = vrot.slane %v2019_v23, 2  ;;  %v2232_v2 = vrot.slane %v2022_v12, 2  ;;  %v2590_v59 = vmul.f32 %v7220_v4, %v8880_v20 }
 0x2d8   : > { %v2749_v25 = vmul.f32 %v7216_v35, %v8881_v34  ;;  %v2752_v41 = vmul.f32 %v7220_v4, %v6776_v51  ;;  %v2755_v63 = vmul.f32 %v8881_v34, %v2452_v46  ;;  %v2758_v18 = vmul.f32 %v6776_v51, %v2455_v11 }
 0x2d9   : > { %v2224_v62 = vsel %vm2179_vm1, %v2222_v55, %v2223_v33  ;;  %v2233_v52 = vsel %vm2179_vm1, %v2231_v58, %v2232_v2  ;;  %v3235_v10 = vmul.f32 %v7216_v35, %v8856_v48  ;;  %v3238_v20 = vmul.f32 %v7220_v4, %v6804_v0  ;;  %v7424_v35 = vld [vmem:[#allocation2 + $0x158] sm:$0xff] }
 0x2da   : > { %v2386_v61 = vadd.f32 %v2224_v62, %v1899_v32  ;;  %v2389_v24 = vadd.f32 %v2233_v52, %v1902_v3  ;;  %v2957_v6 = vrot.slane %v2749_v25, 1  ;;  %v2958_v23 = vrot.slane %v2755_v63, 1  ;;  %v3674_v32 = vld [vmem:[#allocation2 + $0xe8] sm:$0x3]  ;;  %v3677_v62 = vld [vmem:[#allocation2 + $0x1d0] sm:$0x3] }
 0x2db   : > { %v2966_v12 = vrot.slane %v2752_v41, 1  ;;  %v2967_v26 = vrot.slane %v2758_v18, 1  ;;  %v3241_v34 = vmul.f32 %v8856_v48, %v2452_v46  ;;  %v3244_v33 = vmul.f32 %v6804_v0, %v2455_v11 }
 0x2dc   : > { %v2635_v55 = vadd.f32 %v2587_v7, %v2386_v61  ;;  %v2638_v2 = vadd.f32 %v2590_v59, %v2389_v24  ;;  %v2959_v58 = vsel %vm1692_vm0, %v2957_v6, %v2958_v23  ;;  %v3443_v25 = vrot.slane %v3235_v10, 2  ;;  %v8882_v61 = vld [vmem:[#allocation55_spill] sm:$0xff] }
 0x2dd   : > { %v2968_v3 = vsel %vm1692_vm0, %v2966_v12, %v2967_v26  ;;  %v3444_v41 = vrot.slane %v3241_v34, 2  ;;  %v3452_v63 = vrot.slane %v3238_v20, 2  ;;  %v3453_v46 = vrot.slane %v3244_v33, 2 }
 0x2de   : > { %v3121_v4 = vadd.f32 %v2959_v58, %v2635_v55  ;;  %v3124_v52 = vadd.f32 %v2968_v3, %v2638_v2  ;;  %v3809_v7 = vmul.f32 %v8857_v40, %v7420_v43  ;;  %v3812_v11 = vmul.f32 %v6835_v5, %v7424_v35  ;;  %v8883_v55 = vld [vmem:[#allocation45_spill] sm:$0xff] }
 0x2df   : > { %v3445_v59 = vsel %vm2179_vm1, %v3443_v25, %v3444_v41  ;;  %v3971_v18 = vmul.f32 %v6692_v60, %v7420_v43  ;;  %v3974_v10 = vmul.f32 %v8882_v61, %v7424_v35  ;;  %v3454_v20 = vsel %vm2179_vm1, %v3452_v63, %v3453_v46  ;;  %v8884_v25 = vld [vmem:[#allocation57_spill] sm:$0xff] }
 0x2e0   : > { %v3607_v34 = vadd.f32 %v3445_v59, %v3121_v4  ;;  %v3977_v24 = vmul.f32 %v6692_v60, %v3674_v32  ;;  %v3980_v6 = vmul.f32 %v8882_v61, %v3677_v62  ;;  %v3610_v23 = vadd.f32 %v3454_v20, %v3124_v52  ;;  %v1234_v59 = vld [vmem:[#allocation2 + $0x290] sm:$0xff]  ;;  %v1237_v20 = vld [vmem:[#allocation2 + $0x1c0] sm:$0xff] }
 0x2e1   : > { %v4179_v12 = vrot.slane %v3971_v18, 1  ;;  %v4188_v26 = vrot.slane %v3974_v10, 1  ;;  %v4457_v2 = vmul.f32 %v8883_v55, %v7420_v43  ;;  %v4460_v41 = vmul.f32 %v8884_v25, %v7424_v35 }
 0x2e2   : > { %v3857_v58 = vadd.f32 %v3809_v7, %v3607_v34  ;;  %v4180_v33 = vrot.slane %v3977_v24, 1  ;;  %v4189_v3 = vrot.slane %v3980_v6, 1  ;;  %v3860_v40 = vadd.f32 %v3812_v11, %v3610_v23  ;;  %v1240_v34 = vld [vmem:[#allocation2 + $0x210] sm:$0x3] }
 0x2e3   : > { %v5629_v5 = vpop.eup %5628  ;;  %v4463_v63 = vmul.f32 %v8883_v55, %v3674_v32  ;;  %v4466_v4 = vmul.f32 %v8884_v25, %v3677_v62  ;;  %v4665_v46 = vrot.slane %v4457_v2, 2  ;;  %v4830_v52 = vadd.f32 %v7395_v30, %v7382_v54  ;;  %v1243_v32 = vld [vmem:[#allocation2 + $0x1d8] sm:$0x3] }
 0x2e4   : > { %v4869_v18 = vmul.f32 0.5, %v7389_v56  ;;  %v4941_v10 = vadd.f32 1.0, %v5629_v5  ;;  %v4181_v7 = vsel %vm1692_vm0, %v4179_v12, %v4180_v33  ;;  %v4190_v24 = vsel %vm1692_vm0, %v4188_v26, %v4189_v3 }
 0x2e5   : > { %v4343_v6 = vadd.f32 %v4181_v7, %v3857_v58  ;;  %v4666_v11 = vrot.slane %v4463_v63, 2  ;;  %v4674_v23 = vrot.slane %v4460_v41, 2  ;;  %v7450_v62 = vadd.f32 %v4190_v24, %v3860_v40  ;;  %v8885_v58 = vld [vmem:[#allocation40_spill] sm:$0xff] }
 0x2e6   : > { %v4965_v55 = vmul.f32 %v4941_v10, %v4869_v18  ;;  %v4675_v2 = vrot.slane %v4466_v4, 2  ;;  %v1537_v25 = vmul.f32 %v8827_v1, %v1234_v59  ;;  %v1369_v5 = vmul.f32 %v8858_v49, %v1234_v59 }
 0x2e7   : > { %v4667_v54 = vsel %vm2179_vm1, %v4665_v46, %v4666_v11  ;;  %v1540_v56 = vmul.f32 %v8859_v29, %v1237_v20  ;;  %v1543_v30 = vmul.f32 %v8827_v1, %v1240_v34  ;;  %v1372_v33 = vmul.f32 %v8885_v58, %v1237_v20 }
 0x2e8   : > { %v4989_v12 = vmul.f32 %v4965_v55, %v4830_v52  ;;  %v7457_v26 = vadd.f32 %v4667_v54, %v4343_v6  ;;  %v1546_v3 = vmul.f32 %v8859_v29, %v1243_v32  ;;  %v1750_v40 = vrot.slane %v1537_v25, 1  ;;  %v2463_v6 = vld [vmem:[#allocation2 + $0x300] sm:$0x3] }
 0x2e9   : > { %v1751_v41 = vrot.slane %v1543_v30, 1  ;;  %v1759_v63 = vrot.slane %v1540_v56, 1  ;;  %v2024_v4 = vmul.f32 %v8830_v42, %v1234_v59  ;;  %v7463_v46 = vsel %vm2179_vm1, %v4674_v23, %v4675_v2  ;;  %v2466_v23 = vld [vmem:[#allocation2 + $0x40] sm:$0x3] }
 0x2ea   : > { %5130 = vmatmul.mubr.f32.gmra.mxu1 %v4989_v12  ;;  %v4895_v18 = vmul.f32 0.70710677, %v7457_v26  ;;  %v1760_v10 = vrot.slane %v1546_v3, 1  ;;  %v2027_v55 = vmul.f32 %v8832_v50, %v1237_v20  ;;  %v2030_v7 = vmul.f32 %v8830_v42, %v1240_v34  ;;  %v8886_v12 = vld [vmem:[#allocation17_spill] sm:$0xff]  ;;  %v8888_v34 = vld [vmem:[#allocation19_spill] sm:$0xff] }
 0x2eb   : > { %v1752_v52 = vsel %vm1692_vm0, %v1750_v40, %v1751_v41  ;;  %v2033_v24 = vmul.f32 %v8832_v50, %v1243_v32  ;;  %v2237_v25 = vrot.slane %v2024_v4, 2  ;;  %v2592_v20 = vmul.f32 %v7284_v28, %v8886_v12  ;;  %v8887_v3 = vld [vmem:[#allocation49_spill] sm:$0xff]  ;;  %v7488_v12 = vld [vmem:[#allocation2 + $0x1f0] sm:$0xff] }
 0x2ec   : > { %5630 = verf.f32 %v4895_v18  ;;  %v1761_v59 = vsel %vm1692_vm0, %v1759_v63, %v1760_v10  ;;  %v1904_v11 = vadd.f32 %v1752_v52, %v1369_v5  ;;  %v2246_v54 = vrot.slane %v2027_v55, 2 }
 0x2ed   : > { %v1907_v2 = vadd.f32 %v1761_v59, %v1372_v33  ;;  %v2238_v56 = vrot.slane %v2030_v7, 2  ;;  %v2247_v30 = vrot.slane %v2033_v24, 2  ;;  %v2595_v40 = vmul.f32 %v7288_v17, %v8887_v3 }
 0x2ee   : > { %v2760_v32 = vmul.f32 %v7284_v28, %v8888_v34  ;;  %v2763_v41 = vmul.f32 %v7288_v17, %v6771_v39  ;;  %v2766_v63 = vmul.f32 %v8888_v34, %v2463_v6  ;;  %v2769_v4 = vmul.f32 %v6771_v39, %v2466_v23 }
 0x2ef   : > { %v2239_v5 = vsel %vm2179_vm1, %v2237_v25, %v2238_v56  ;;  %v2248_v33 = vsel %vm2179_vm1, %v2246_v54, %v2247_v30  ;;  %v3246_v18 = vmul.f32 %v7284_v28, %v8835_v47  ;;  %v3249_v3 = vmul.f32 %v7288_v17, %v6785_v53  ;;  %v7492_v28 = vld [vmem:[#allocation2 + $0x30] sm:$0xff] }
 0x2f0   : > { %v2391_v10 = vadd.f32 %v2239_v5, %v1904_v11  ;;  %v2394_v55 = vadd.f32 %v2248_v33, %v1907_v2  ;;  %v2972_v52 = vrot.slane %v2760_v32, 1  ;;  %v2973_v7 = vrot.slane %v2766_v63, 1  ;;  %v3685_v11 = vld [vmem:[#allocation2 + $0x170] sm:$0x3]  ;;  %v3688_v5 = vld [vmem:[#allocation2 + $0x348] sm:$0x3] }
 0x2f1   : > { %v2981_v24 = vrot.slane %v2763_v41, 1  ;;  %v2982_v59 = vrot.slane %v2769_v4, 1  ;;  %v3252_v34 = vmul.f32 %v8835_v47, %v2463_v6  ;;  %v3255_v30 = vmul.f32 %v6785_v53, %v2466_v23  ;;  %v8889_v4 = vld [vmem:[#allocation53_spill] sm:$0xff] }
 0x2f2   : > { %v2640_v25 = vadd.f32 %v2592_v20, %v2391_v10  ;;  %v2643_v54 = vadd.f32 %v2595_v40, %v2394_v55  ;;  %v2974_v56 = vsel %vm1692_vm0, %v2972_v52, %v2973_v7  ;;  %v3458_v32 = vrot.slane %v3246_v18, 2  ;;  %v8890_v10 = vld [vmem:[#allocation26_spill] sm:$0xff] }
 0x2f3   : > { %v2983_v2 = vsel %vm1692_vm0, %v2981_v24, %v2982_v59  ;;  %v3459_v41 = vrot.slane %v3252_v34, 2  ;;  %v3467_v63 = vrot.slane %v3249_v3, 2  ;;  %v3468_v6 = vrot.slane %v3255_v30, 2  ;;  %v8891_v52 = vld [vmem:[#allocation54_spill] sm:$0xff] }
 0x2f4   : > { %v3126_v17 = vadd.f32 %v2974_v56, %v2640_v25  ;;  %v3129_v33 = vadd.f32 %v2983_v2, %v2643_v54  ;;  %v3814_v20 = vmul.f32 %v6588_v22, %v7488_v12  ;;  %v3817_v23 = vmul.f32 %v8889_v4, %v7492_v28  ;;  %v8892_v56 = vld [vmem:[#allocation27_spill] sm:$0xff]  ;;  %v8893_v4 = vld [vmem:[#allocation56_spill] sm:$0xff] }
 0x2f5   : > { %v3460_v40 = vsel %vm2179_vm1, %v3458_v32, %v3459_v41  ;;  %v3982_v55 = vmul.f32 %v8890_v10, %v7488_v12  ;;  %v3985_v18 = vmul.f32 %v8891_v52, %v7492_v28  ;;  %v3469_v3 = vsel %vm2179_vm1, %v3467_v63, %v3468_v6 }
 0x2f6   : > { %v3612_v34 = vadd.f32 %v3460_v40, %v3126_v17  ;;  %v3988_v7 = vmul.f32 %v8890_v10, %v3685_v11  ;;  %v3991_v24 = vmul.f32 %v8891_v52, %v3688_v5  ;;  %v3615_v59 = vadd.f32 %v3469_v3, %v3129_v33  ;;  %v1233_v40 = vld [vmem:[#allocation2] sm:$0xff] }
 0x2f7   : > { %v4194_v25 = vrot.slane %v3982_v55, 1  ;;  %v4203_v54 = vrot.slane %v3985_v18, 1  ;;  %v4468_v30 = vmul.f32 %v8892_v56, %v7488_v12  ;;  %v4471_v22 = vmul.f32 %v8893_v4, %v7492_v28  ;;  %v1236_v3 = vld [vmem:[#allocation2 + $0xe0] sm:$0xff] }
 0x2f8   : > { %v3862_v2 = vadd.f32 %v3814_v20, %v3612_v34  ;;  %v4195_v32 = vrot.slane %v3988_v7, 1  ;;  %v4204_v41 = vrot.slane %v3991_v24, 1  ;;  %v3865_v47 = vadd.f32 %v3817_v23, %v3615_v59  ;;  %v1239_v34 = vld [vmem:[#allocation2 + $0x70] sm:$0x3] }
 0x2f9   : > { %v5631_v53 = vpop.eup %5630  ;;  %v4474_v63 = vmul.f32 %v8892_v56, %v3685_v11  ;;  %v4477_v17 = vmul.f32 %v8893_v4, %v3688_v5  ;;  %v4680_v6 = vrot.slane %v4468_v30, 2  ;;  %v4832_v33 = vadd.f32 %v7463_v46, %v7450_v62  ;;  %v1242_v11 = vld [vmem:[#allocation2 + $0x370] sm:$0x3] }
 0x2fa   : > { %v4871_v55 = vmul.f32 0.5, %v7457_v26  ;;  %v4943_v18 = vadd.f32 1.0, %v5631_v53  ;;  %v4196_v20 = vsel %vm1692_vm0, %v4194_v25, %v4195_v32  ;;  %v4205_v7 = vsel %vm1692_vm0, %v4203_v54, %v4204_v41  ;;  %v8894_v26 = vld [vmem:[#allocation14_spill] sm:$0xff] }
 0x2fb   : > { %v4348_v24 = vadd.f32 %v4196_v20, %v3862_v2  ;;  %v4681_v23 = vrot.slane %v4474_v63, 2  ;;  %v4689_v59 = vrot.slane %v4471_v22, 2  ;;  %v7518_v5 = vadd.f32 %v4205_v7, %v3865_v47  ;;  %v8895_v2 = vld [vmem:[#allocation23_spill] sm:$0xff] }
 0x2fc   : > { %v4967_v56 = vmul.f32 %v4943_v18, %v4871_v55  ;;  %v4690_v30 = vrot.slane %v4477_v17, 2  ;;  %v1536_v4 = vmul.f32 %v8866_v38, %v1233_v40  ;;  %v1368_v53 = vmul.f32 %v8867_v21, %v1233_v40 }
 0x2fd   : > { %v4682_v62 = vsel %vm2179_vm1, %v4680_v6, %v4681_v23  ;;  %v1539_v46 = vmul.f32 %v8894_v26, %v1236_v3  ;;  %v1542_v25 = vmul.f32 %v8866_v38, %v1239_v34  ;;  %v1371_v22 = vmul.f32 %v8895_v2, %v1236_v3  ;;  %v2462_v23 = vld [vmem:[#allocation2 + $0xa8] sm:$0x3] }
 0x2fe   : > { %v4991_v32 = vmul.f32 %v4967_v56, %v4832_v33  ;;  %v7525_v54 = vadd.f32 %v4682_v62, %v4348_v24  ;;  %v1545_v41 = vmul.f32 %v8894_v26, %v1242_v11  ;;  %v1747_v47 = vrot.slane %v1536_v4, 1  ;;  %v8897_v2 = vld [vmem:[#allocation30_spill] sm:$0xff] }
 0x2ff   : > { %v1748_v63 = vrot.slane %v1542_v25, 1  ;;  %v1756_v17 = vrot.slane %v1539_v46, 1  ;;  %v2023_v55 = vmul.f32 %v8842_v14, %v1233_v40  ;;  %v7531_v6 = vsel %vm2179_vm1, %v4689_v59, %v4690_v30  ;;  %v2465_v59 = vld [vmem:[#allocation2 + $0x20] sm:$0x3] }
 0x300   : > { %5502 = vmatprep.mubr.f32.mxu0 %v4991_v32  ;;  %v4897_v18 = vmul.f32 0.70710677, %v7525_v54  ;;  %v1757_v20 = vrot.slane %v1545_v41, 1  ;;  %v2026_v56 = vmul.f32 %v8870_v37, %v1236_v3  ;;  %v2029_v7 = vmul.f32 %v8842_v14, %v1239_v34  ;;  %v8896_v41 = vld [vmem:[#allocation29_spill] sm:$0xff]  ;;  %v8898_v34 = vld [vmem:[#allocation16_spill] sm:$0xff] }
 0x301   : > { %v1749_v33 = vsel %vm1692_vm0, %v1747_v47, %v1748_v63  ;;  %v2032_v24 = vmul.f32 %v8870_v37, %v1242_v11  ;;  %v2234_v4 = vrot.slane %v2023_v55, 2  ;;  %v2591_v3 = vmul.f32 %v7352_v57, %v8896_v41  ;;  %v7556_v41 = vld [vmem:[#allocation2 + $0x2e8] sm:$0xff] }
 0x302   : > { %5632 = verf.f32 %v4897_v18  ;;  %v1758_v40 = vsel %vm1692_vm0, %v1756_v17, %v1757_v20  ;;  %v1903_v62 = vadd.f32 %v1749_v33, %v1368_v53  ;;  %v2243_v46 = vrot.slane %v2026_v56, 2 }
 0x303   : > { %v1906_v30 = vadd.f32 %v1758_v40, %v1371_v22  ;;  %v2235_v25 = vrot.slane %v2029_v7, 2  ;;  %v2244_v32 = vrot.slane %v2032_v24, 2  ;;  %v2594_v47 = vmul.f32 %v7356_v8, %v8897_v2 }
 0x304   : > { %v2759_v11 = vmul.f32 %v7352_v57, %v8898_v34  ;;  %v2762_v63 = vmul.f32 %v7356_v8, %v6650_v15  ;;  %v2765_v17 = vmul.f32 %v8898_v34, %v2462_v23  ;;  %v2768_v55 = vmul.f32 %v6650_v15, %v2465_v59 }
 0x305   : > { %v2236_v53 = vsel %vm2179_vm1, %v2234_v4, %v2235_v25  ;;  %v2245_v22 = vsel %vm2179_vm1, %v2243_v46, %v2244_v32  ;;  %v3245_v18 = vmul.f32 %v7352_v57, %v8847_v19  ;;  %v3248_v2 = vmul.f32 %v7356_v8, %v6679_v44  ;;  %v7560_v57 = vld [vmem:[#allocation2 + $0x2d0] sm:$0xff] }
 0x306   : > { %v2390_v20 = vadd.f32 %v2236_v53, %v1903_v62  ;;  %v2393_v56 = vadd.f32 %v2245_v22, %v1906_v30  ;;  %v2969_v33 = vrot.slane %v2759_v11, 1  ;;  %v2970_v7 = vrot.slane %v2765_v17, 1  ;;  %v3684_v62 = vld [vmem:[#allocation2 + $0x228] sm:$0x3]  ;;  %v3687_v53 = vld [vmem:[#allocation2 + $0x138] sm:$0x3] }
 0x307   : > { %v2978_v24 = vrot.slane %v2762_v63, 1  ;;  %v2979_v40 = vrot.slane %v2768_v55, 1  ;;  %v3251_v34 = vmul.f32 %v8847_v19, %v2462_v23  ;;  %v3254_v32 = vmul.f32 %v6679_v44, %v2465_v59 }
 0x308   : > { %v2639_v4 = vadd.f32 %v2591_v3, %v2390_v20  ;;  %v2642_v46 = vadd.f32 %v2594_v47, %v2393_v56  ;;  %v2971_v25 = vsel %vm1692_vm0, %v2969_v33, %v2970_v7  ;;  %v3455_v11 = vrot.slane %v3245_v18, 2  ;;  %v8899_v20 = vld [vmem:[#allocation43_spill] sm:$0xff] }
 0x309   : > { %v2980_v30 = vsel %vm1692_vm0, %v2978_v24, %v2979_v40  ;;  %v3456_v63 = vrot.slane %v3251_v34, 2  ;;  %v3464_v17 = vrot.slane %v3248_v2, 2  ;;  %v3465_v23 = vrot.slane %v3254_v32, 2 }
 0x30a   : > { %v3125_v8 = vadd.f32 %v2971_v25, %v2639_v4  ;;  %v3128_v22 = vadd.f32 %v2980_v30, %v2642_v46  ;;  %v3813_v3 = vmul.f32 %v6684_v45, %v7556_v41  ;;  %v3816_v59 = vmul.f32 %v6711_v27, %v7560_v57  ;;  %v8900_v4 = vld [vmem:[#allocation25_spill] sm:$0xff] }
 0x30b   : > { %v3457_v47 = vsel %vm2179_vm1, %v3455_v11, %v3456_v63  ;;  %v3981_v55 = vmul.f32 %v6591_v36, %v7556_v41  ;;  %v3984_v18 = vmul.f32 %v8899_v20, %v7560_v57  ;;  %v3466_v2 = vsel %vm2179_vm1, %v3464_v17, %v3465_v23  ;;  %v8901_v11 = vld [vmem:[#allocation46_spill] sm:$0xff] }
 0x30c   : > { %v3611_v34 = vadd.f32 %v3457_v47, %v3125_v8  ;;  %v3987_v56 = vmul.f32 %v6591_v36, %v3684_v62  ;;  %v3990_v33 = vmul.f32 %v8899_v20, %v3687_v53  ;;  %v3614_v7 = vadd.f32 %v3466_v2, %v3128_v22  ;;  %v1235_v47 = vld [vmem:[#allocation2 + $0x188] sm:$0xff]  ;;  %v1238_v2 = vld [vmem:[#allocation2 + $0x90] sm:$0xff] }
 0x30d   : > { %v4191_v24 = vrot.slane %v3981_v55, 1  ;;  %v4200_v40 = vrot.slane %v3984_v18, 1  ;;  %v4467_v46 = vmul.f32 %v8900_v4, %v7556_v41  ;;  %v4470_v63 = vmul.f32 %v8901_v11, %v7560_v57 }
 0x30e   : > { %v3861_v25 = vadd.f32 %v3813_v3, %v3611_v34  ;;  %v4192_v32 = vrot.slane %v3987_v56, 1  ;;  %v4201_v30 = vrot.slane %v3990_v33, 1  ;;  %v3864_v45 = vadd.f32 %v3816_v59, %v3614_v7  ;;  %v1241_v34 = vld [vmem:[#allocation2 + $0x308] sm:$0x3] }
 0x30f   : > { %v5633_v27 = vpop.eup %5632  ;;  %v4473_v17 = vmul.f32 %v8900_v4, %v3684_v62  ;;  %v4476_v8 = vmul.f32 %v8901_v11, %v3687_v53  ;;  %v4677_v23 = vrot.slane %v4467_v46, 2  ;;  %v4837_v22 = vadd.f32 %v7531_v6, %v7518_v5  ;;  %v1244_v62 = vld [vmem:[#allocation2 + $0x260] sm:$0x3] }
 0x310   : > { %v4873_v55 = vmul.f32 0.5, %v7525_v54  ;;  %v4945_v18 = vadd.f32 1.0, %v5633_v27  ;;  %v4193_v3 = vsel %vm1692_vm0, %v4191_v24, %v4192_v32  ;;  %v4202_v56 = vsel %vm1692_vm0, %v4200_v40, %v4201_v30  ;;  %v8902_v54 = vld [vmem:[#allocation38_spill] sm:$0xff] }
 0x311   : > { %v4347_v33 = vadd.f32 %v4193_v3, %v3861_v25  ;;  %v4678_v59 = vrot.slane %v4473_v17, 2  ;;  %v4686_v7 = vrot.slane %v4470_v63, 2  ;;  %v7586_v53 = vadd.f32 %v4202_v56, %v3864_v45  ;;  %v8903_v25 = vld [vmem:[#allocation48_spill] sm:$0xff] }
 0x312   : > { %v4969_v4 = vmul.f32 %v4945_v18, %v4873_v55  ;;  %v4687_v46 = vrot.slane %v4476_v8, 2  ;;  %v1538_v11 = vmul.f32 %v8848_v16, %v1235_v47  ;;  %v1370_v27 = vmul.f32 %v8875_v31, %v1235_v47 }
 0x313   : > { %v4679_v5 = vsel %vm2179_vm1, %v4677_v23, %v4678_v59  ;;  %v1541_v6 = vmul.f32 %v8902_v54, %v1238_v2  ;;  %v1544_v24 = vmul.f32 %v8848_v16, %v1241_v34  ;;  %v1373_v30 = vmul.f32 %v8903_v25, %v1238_v2  ;;  %v2464_v59 = vld [vmem:[#allocation2 + $0xe8] sm:$0x3]  ;;  %v8905_v25 = vld [vmem:[#allocation60_spill] sm:$0xff] }
 0x314   : > { %v4993_v32 = vmul.f32 %v4969_v4, %v4837_v22  ;;  %v7593_v40 = vadd.f32 %v4679_v5, %v4347_v33  ;;  %v1547_v63 = vmul.f32 %v8902_v54, %v1244_v62  ;;  %v1753_v45 = vrot.slane %v1538_v11, 1 }
 0x315   : > { %v1754_v17 = vrot.slane %v1544_v24, 1  ;;  %v1762_v8 = vrot.slane %v1541_v6, 1  ;;  %v2025_v55 = vmul.f32 %v8852_v13, %v1235_v47  ;;  %v7599_v23 = vsel %vm2179_vm1, %v4686_v7, %v4687_v46  ;;  %v2467_v7 = vld [vmem:[#allocation2 + $0x1d0] sm:$0x3] }
 0x316   : > { %5134 = vmatprep.mubr.f32.mxu1 %v4993_v32  ;;  %v4896_v18 = vmul.f32 0.70710677, %v7593_v40  ;;  %v1763_v3 = vrot.slane %v1547_v63, 1  ;;  %v2028_v4 = vmul.f32 %v8878_v9, %v1238_v2  ;;  %v2031_v56 = vmul.f32 %v8852_v13, %v1241_v34  ;;  %v8904_v63 = vld [vmem:[#allocation47_spill] sm:$0xff]  ;;  %v8906_v34 = vld [vmem:[#allocation32_spill] sm:$0xff] }
 0x317   : > { %v1755_v22 = vsel %vm1692_vm0, %v1753_v45, %v1754_v17  ;;  %v2034_v33 = vmul.f32 %v8878_v9, %v1244_v62  ;;  %v2240_v11 = vrot.slane %v2025_v55, 2  ;;  %v2593_v2 = vmul.f32 %v7420_v43, %v8904_v63  ;;  %v3680_v63 = vld [vmem:[#allocation2 + $0x38] sm:$0xff] }
 0x318   : > { %5634 = verf.f32 %v4896_v18  ;;  %v1764_v47 = vsel %vm1692_vm0, %v1762_v8, %v1763_v3  ;;  %v1905_v5 = vadd.f32 %v1755_v22, %v1370_v27  ;;  %v2249_v6 = vrot.slane %v2028_v4, 2 }
 0x319   : > { %v1908_v46 = vadd.f32 %v1764_v47, %v1373_v30  ;;  %v2241_v24 = vrot.slane %v2031_v56, 2  ;;  %v2250_v32 = vrot.slane %v2034_v33, 2  ;;  %v2596_v45 = vmul.f32 %v7424_v35, %v8905_v25 }
 0x31a   : > { %v2761_v62 = vmul.f32 %v7420_v43, %v8906_v34  ;;  %v2764_v17 = vmul.f32 %v7424_v35, %v6776_v51  ;;  %v2767_v8 = vmul.f32 %v8906_v34, %v2464_v59  ;;  %v2770_v55 = vmul.f32 %v6776_v51, %v2467_v7  ;;  %v3683_v51 = vld [vmem:[#allocation2 + $0xc0] sm:$0xff] }
 0x31b   : > { %v2242_v27 = vsel %vm2179_vm1, %v2240_v11, %v2241_v24  ;;  %v2251_v30 = vsel %vm2179_vm1, %v2249_v6, %v2250_v32  ;;  %v3247_v18 = vmul.f32 %v7420_v43, %v8856_v48  ;;  %v3250_v25 = vmul.f32 %v7424_v35, %v6804_v0  ;;  %v3686_v43 = vld [vmem:[#allocation2 + $0x280] sm:$0x3] }
 0x31c   : > { %v2392_v3 = vadd.f32 %v2242_v27, %v1905_v5  ;;  %v2395_v4 = vadd.f32 %v2251_v30, %v1908_v46  ;;  %v2975_v22 = vrot.slane %v2761_v62, 1  ;;  %v2976_v56 = vrot.slane %v2767_v8, 1  ;;  %v3689_v8 = vld [vmem:[#allocation2 + $0x3a8] sm:$0x3] }
 0x31d   : > { %v2984_v33 = vrot.slane %v2764_v17, 1  ;;  %v2985_v47 = vrot.slane %v2770_v55, 1  ;;  %v3253_v34 = vmul.f32 %v8856_v48, %v2464_v59  ;;  %v3256_v32 = vmul.f32 %v6804_v0, %v2467_v7  ;;  %v8907_v55 = vld [vmem:[#allocation58_spill] sm:$0xff]  ;;  %v8916_v48 = vld [vmem:[#allocation24_spill] sm:$0xff] }
 0x31e   : > { %v2641_v11 = vadd.f32 %v2593_v2, %v2392_v3  ;;  %v2644_v24 = vadd.f32 %v2596_v45, %v2395_v4  ;;  %v2977_v6 = vsel %vm1692_vm0, %v2975_v22, %v2976_v56  ;;  %v3461_v46 = vrot.slane %v3247_v18, 2  ;;  %v8908_v45 = vld [vmem:[#allocation61_spill] sm:$0xff] }
 0x31f   : > { %v2986_v5 = vsel %vm1692_vm0, %v2984_v33, %v2985_v47  ;;  %v3462_v62 = vrot.slane %v3253_v34, 2  ;;  %v3470_v17 = vrot.slane %v3250_v25, 2  ;;  %v3471_v35 = vrot.slane %v3256_v32, 2 }
 0x320   : > { %v3127_v27 = vadd.f32 %v2977_v6, %v2641_v11  ;;  %v3130_v30 = vadd.f32 %v2986_v5, %v2644_v24  ;;  %v3815_v59 = vmul.f32 %v8907_v55, %v3680_v63  ;;  %v3818_v3 = vmul.f32 %v8908_v45, %v3683_v51  ;;  %v8909_v11 = vld [vmem:[#allocation45_spill] sm:$0xff] }
 0x321   : > { %v3463_v2 = vsel %vm2179_vm1, %v3461_v46, %v3462_v62  ;;  %v3983_v4 = vmul.f32 %v6692_v60, %v3680_v63  ;;  %v3986_v7 = vmul.f32 %v8882_v61, %v3683_v51  ;;  %v3472_v22 = vsel %vm2179_vm1, %v3470_v17, %v3471_v35  ;;  %v8910_v46 = vld [vmem:[#allocation57_spill] sm:$0xff] }
 0x322   : > { %v3613_v56 = vadd.f32 %v3463_v2, %v3127_v27  ;;  %v3989_v34 = vmul.f32 %v6692_v60, %v3686_v43  ;;  %v3992_v25 = vmul.f32 %v8882_v61, %v3689_v8  ;;  %v3616_v18 = vadd.f32 %v3472_v22, %v3130_v30  ;;  %v1246_v35 = vld [vmem:[#allocation2 + $0x2c0] sm:$0xff]  ;;  %v7686_v60 = vld [vmem:[#allocation2 + $0x2b8] sm:$0xff] }
 0x323   : > { %v4197_v33 = vrot.slane %v3983_v4, 1  ;;  %v4206_v47 = vrot.slane %v3986_v7, 1  ;;  %v4469_v24 = vmul.f32 %v8909_v11, %v3680_v63  ;;  %v4472_v62 = vmul.f32 %v8910_v46, %v3683_v51  ;;  %v1252_v7 = vld [vmem:[#allocation2 + $0x300] sm:$0x3] }
 0x324   : > { %v3863_v6 = vadd.f32 %v3815_v59, %v3613_v56  ;;  %v4198_v32 = vrot.slane %v3989_v34, 1  ;;  %v4207_v5 = vrot.slane %v3992_v25, 1  ;;  %v3866_v55 = vadd.f32 %v3818_v3, %v3616_v18  ;;  %v1249_v59 = vld [vmem:[#allocation2 + $0x78] sm:$0xff] }
 0x325   : > { %v5635_v45 = vpop.eup %5634  ;;  %v4475_v0 = vmul.f32 %v8909_v11, %v3686_v43  ;;  %v4478_v17 = vmul.f32 %v8910_v46, %v3689_v8  ;;  %v4683_v27 = vrot.slane %v4469_v24, 2  ;;  %v4836_v30 = vadd.f32 %v7599_v23, %v7586_v53  ;;  %v1255_v43 = vld [vmem:[#allocation2 + $0x40] sm:$0x3]  ;;  %v7682_v11 = vld [vmem:[#allocation2 + $0x250] sm:$0xff] }
 0x326   : > { %v4872_v2 = vmul.f32 0.5, %v7593_v40  ;;  %v4944_v4 = vadd.f32 1.0, %v5635_v45  ;;  %v4199_v63 = vsel %vm1692_vm0, %v4197_v33, %v4198_v32  ;;  %v4208_v51 = vsel %vm1692_vm0, %v4206_v47, %v4207_v5 }
 0x327   : > { %v4349_v22 = vadd.f32 %v4199_v63, %v3863_v6  ;;  %v4684_v3 = vrot.slane %v4475_v0, 2  ;;  %v4692_v56 = vrot.slane %v4472_v62, 2  ;;  %v7644_v8 = vadd.f32 %v4208_v51, %v3866_v55 }
 0x328   : > { %v4968_v34 = vmul.f32 %v4944_v4, %v4872_v2  ;;  %v4693_v25 = vrot.slane %v4478_v17, 2  ;;  %v1549_v18 = vmul.f32 %v8827_v1, %v1246_v35  ;;  %v1375_v40 = vmul.f32 %v8858_v49, %v1246_v35 }
 0x329   : > { %v4685_v53 = vsel %vm2179_vm1, %v4683_v27, %v4684_v3  ;;  %v1552_v23 = vmul.f32 %v8859_v29, %v1249_v59  ;;  %v1555_v45 = vmul.f32 %v8827_v1, %v1252_v7  ;;  %v1378_v0 = vmul.f32 %v8885_v58, %v1249_v59 }
 0x32a   : > { %v4992_v33 = vmul.f32 %v4968_v34, %v4836_v30  ;;  %v7651_v47 = vadd.f32 %v4685_v53, %v4349_v22  ;;  %v1558_v24 = vmul.f32 %v8859_v29, %v1255_v43  ;;  %v1768_v55 = vrot.slane %v1549_v18, 1  ;;  %v2475_v22 = vld [vmem:[#allocation2 + $0x170] sm:$0x3] }
 0x32b   : > { %v1769_v6 = vrot.slane %v1555_v45, 1  ;;  %v1777_v32 = vrot.slane %v1552_v23, 1  ;;  %v2036_v5 = vmul.f32 %v8830_v42, %v1246_v35  ;;  %v7657_v62 = vsel %vm2179_vm1, %v4692_v56, %v4693_v25  ;;  %v2478_v56 = vld [vmem:[#allocation2 + $0x348] sm:$0x3]  ;;  %v8911_v23 = vld [vmem:[#allocation17_spill] sm:$0xff] }
 0x32c   : > { %5135 = vmatmul.mubr.f32.gmra.mxu1 %v4992_v33  ;;  %v4898_v17 = vmul.f32 0.70710677, %v7651_v47  ;;  %v1778_v27 = vrot.slane %v1558_v24, 1  ;;  %v2039_v30 = vmul.f32 %v8832_v50, %v1249_v59  ;;  %v2042_v4 = vmul.f32 %v8830_v42, %v1252_v7  ;;  %v8912_v45 = vld [vmem:[#allocation49_spill] sm:$0xff]  ;;  %v8913_v7 = vld [vmem:[#allocation19_spill] sm:$0xff] }
 0x32d   : > { %v1770_v2 = vsel %vm1692_vm0, %v1768_v55, %v1769_v6  ;;  %v2045_v63 = vmul.f32 %v8832_v50, %v1255_v43  ;;  %v2255_v51 = vrot.slane %v2036_v5, 2  ;;  %v2598_v59 = vmul.f32 %v7488_v12, %v8911_v23 }
 0x32e   : > { %5636 = verf.f32 %v4898_v17  ;;  %v1779_v35 = vsel %vm1692_vm0, %v1777_v32, %v1778_v27  ;;  %v1910_v3 = vadd.f32 %v1770_v2, %v1375_v40  ;;  %v2264_v34 = vrot.slane %v2039_v30, 2  ;;  %v8914_v32 = vld [vmem:[#allocation22_spill] sm:$0xff] }
 0x32f   : > { %v1913_v25 = vadd.f32 %v1779_v35, %v1378_v0  ;;  %v2256_v18 = vrot.slane %v2042_v4, 2  ;;  %v2265_v53 = vrot.slane %v2045_v63, 2  ;;  %v2601_v33 = vmul.f32 %v7492_v28, %v8912_v45  ;;  %v8915_v35 = vld [vmem:[#allocation51_spill] sm:$0xff] }
 0x330   : > { %v2772_v43 = vmul.f32 %v7488_v12, %v8913_v7  ;;  %v2775_v24 = vmul.f32 %v7492_v28, %v6771_v39  ;;  %v2778_v55 = vmul.f32 %v8913_v7, %v2475_v22  ;;  %v2781_v6 = vmul.f32 %v6771_v39, %v2478_v56 }
 0x331   : > { %v2257_v40 = vsel %vm2179_vm1, %v2255_v51, %v2256_v18  ;;  %v2266_v0 = vsel %vm2179_vm1, %v2264_v34, %v2265_v53  ;;  %v3258_v5 = vmul.f32 %v7488_v12, %v8914_v32  ;;  %v3261_v46 = vmul.f32 %v7492_v28, %v8915_v35 }
 0x332   : > { %v2397_v17 = vadd.f32 %v2257_v40, %v1910_v3  ;;  %v2400_v27 = vadd.f32 %v2266_v0, %v1913_v25  ;;  %v2990_v30 = vrot.slane %v2772_v43, 1  ;;  %v2991_v2 = vrot.slane %v2778_v55, 1  ;;  %v3697_v3 = vld [vmem:[#allocation2 + $0x3a0] sm:$0x3]  ;;  %v3700_v40 = vld [vmem:[#allocation2 + $0x230] sm:$0x3] }
 0x333   : > { %v2999_v4 = vrot.slane %v2775_v24, 1  ;;  %v3000_v63 = vrot.slane %v2781_v6, 1  ;;  %v3264_v61 = vmul.f32 %v8914_v32, %v2475_v22  ;;  %v3267_v53 = vmul.f32 %v8915_v35, %v2478_v56 }
 0x334   : > { %v2646_v51 = vadd.f32 %v2598_v59, %v2397_v17  ;;  %v2649_v34 = vadd.f32 %v2601_v33, %v2400_v27  ;;  %v2992_v18 = vsel %vm1692_vm0, %v2990_v30, %v2991_v2  ;;  %v3476_v43 = vrot.slane %v3258_v5, 2  ;;  %v8917_v17 = vld [vmem:[#allocation53_spill] sm:$0xff] }
 0x335   : > { %v3001_v25 = vsel %vm1692_vm0, %v2999_v4, %v3000_v63  ;;  %v3477_v24 = vrot.slane %v3264_v61, 2  ;;  %v3485_v55 = vrot.slane %v3261_v46, 2  ;;  %v3486_v22 = vrot.slane %v3267_v53, 2 }
 0x336   : > { %v3132_v0 = vadd.f32 %v2992_v18, %v2646_v51  ;;  %v3135_v6 = vadd.f32 %v3001_v25, %v2649_v34  ;;  %v3820_v59 = vmul.f32 %v8916_v48, %v7682_v11  ;;  %v3823_v56 = vmul.f32 %v8917_v17, %v7686_v60  ;;  %v8918_v34 = vld [vmem:[#allocation27_spill] sm:$0xff] }
 0x337   : > { %v3478_v33 = vsel %vm2179_vm1, %v3476_v43, %v3477_v24  ;;  %v3994_v27 = vmul.f32 %v8890_v10, %v7682_v11  ;;  %v3997_v5 = vmul.f32 %v8891_v52, %v7686_v60  ;;  %v3487_v61 = vsel %vm2179_vm1, %v3485_v55, %v3486_v22  ;;  %v8919_v24 = vld [vmem:[#allocation56_spill] sm:$0xff] }
 0x338   : > { %v3618_v46 = vadd.f32 %v3478_v33, %v3132_v0  ;;  %v4000_v30 = vmul.f32 %v8890_v10, %v3697_v3  ;;  %v4003_v2 = vmul.f32 %v8891_v52, %v3700_v40  ;;  %v3621_v4 = vadd.f32 %v3487_v61, %v3135_v6  ;;  %v1245_v33 = vld [vmem:[#allocation2 + $0x358] sm:$0xff] }
 0x339   : > { %v4212_v63 = vrot.slane %v3994_v27, 1  ;;  %v4221_v51 = vrot.slane %v3997_v5, 1  ;;  %v4480_v18 = vmul.f32 %v8918_v34, %v7682_v11  ;;  %v4483_v9 = vmul.f32 %v8919_v24, %v7686_v60  ;;  %v1248_v61 = vld [vmem:[#allocation2 + $0x238] sm:$0xff] }
 0x33a   : > { %v3868_v53 = vadd.f32 %v3820_v59, %v3618_v46  ;;  %v4213_v25 = vrot.slane %v4000_v30, 1  ;;  %v4222_v43 = vrot.slane %v4003_v2, 1  ;;  %v3871_v31 = vadd.f32 %v3823_v56, %v3621_v4  ;;  %v1251_v46 = vld [vmem:[#allocation2 + $0xa8] sm:$0x3] }
 0x33b   : > { %v5637_v13 = vpop.eup %5636  ;;  %v4486_v55 = vmul.f32 %v8918_v34, %v3697_v3  ;;  %v4489_v0 = vmul.f32 %v8919_v24, %v3700_v40  ;;  %v4698_v22 = vrot.slane %v4480_v18, 2  ;;  %v4838_v6 = vadd.f32 %v7657_v62, %v7644_v8  ;;  %v1254_v3 = vld [vmem:[#allocation2 + $0x20] sm:$0x3] }
 0x33c   : > { %v4874_v27 = vmul.f32 0.5, %v7651_v47  ;;  %v4946_v5 = vadd.f32 1.0, %v5637_v13  ;;  %v4214_v59 = vsel %vm1692_vm0, %v4212_v63, %v4213_v25  ;;  %v4223_v30 = vsel %vm1692_vm0, %v4221_v51, %v4222_v43 }
 0x33d   : > { %v4354_v2 = vadd.f32 %v4214_v59, %v3868_v53  ;;  %v4699_v56 = vrot.slane %v4486_v55, 2  ;;  %v4707_v4 = vrot.slane %v4483_v9, 2  ;;  %v7712_v40 = vadd.f32 %v4223_v30, %v3871_v31  ;;  %v8920_v53 = vld [vmem:[#allocation23_spill] sm:$0xff] }
 0x33e   : > { %v4970_v54 = vmul.f32 %v4946_v5, %v4874_v27  ;;  %v4708_v18 = vrot.slane %v4489_v0, 2  ;;  %v1548_v16 = vmul.f32 %v8866_v38, %v1245_v33  ;;  %v1374_v13 = vmul.f32 %v8867_v21, %v1245_v33 }
 0x33f   : > { %v4700_v8 = vsel %vm2179_vm1, %v4698_v22, %v4699_v56  ;;  %v1551_v47 = vmul.f32 %v8894_v26, %v1248_v61  ;;  %v1554_v62 = vmul.f32 %v8866_v38, %v1251_v46  ;;  %v1377_v9 = vmul.f32 %v8920_v53, %v1248_v61 }
 0x340   : > { %v4994_v63 = vmul.f32 %v4970_v54, %v4838_v6  ;;  %v7719_v51 = vadd.f32 %v4700_v8, %v4354_v2  ;;  %v1557_v25 = vmul.f32 %v8894_v26, %v1254_v3  ;;  %v1765_v31 = vrot.slane %v1548_v16, 1  ;;  %v2474_v2 = vld [vmem:[#allocation2 + $0x228] sm:$0x3] }
 0x341   : > { %v1766_v43 = vrot.slane %v1554_v62, 1  ;;  %v1774_v55 = vrot.slane %v1551_v47, 1  ;;  %v2035_v0 = vmul.f32 %v8842_v14, %v1245_v33  ;;  %v7725_v22 = vsel %vm2179_vm1, %v4707_v4, %v4708_v18  ;;  %v2477_v4 = vld [vmem:[#allocation2 + $0x138] sm:$0x3] }
 0x342   : > { %5503 = vmatmul.mubr.f32.gmra.mxu0 %v4994_v63  ;;  %v4900_v27 = vmul.f32 0.70710677, %v7719_v51  ;;  %v1775_v5 = vrot.slane %v1557_v25, 1  ;;  %v2038_v54 = vmul.f32 %v8870_v37, %v1248_v61  ;;  %v2041_v59 = vmul.f32 %v8842_v14, %v1251_v46  ;;  %v8921_v63 = vld [vmem:[#allocation29_spill] sm:$0xff]  ;;  %v8922_v25 = vld [vmem:[#allocation30_spill] sm:$0xff]  ;;  %v8923_v46 = vld [vmem:[#allocation16_spill] sm:$0xff] }
 0x343   : > { %v1767_v6 = vsel %vm1692_vm0, %v1765_v31, %v1766_v43  ;;  %v2044_v30 = vmul.f32 %v8870_v37, %v1254_v3  ;;  %v2252_v16 = vrot.slane %v2035_v0, 2  ;;  %v2597_v61 = vmul.f32 %v7556_v41, %v8921_v63  ;;  %v7750_v63 = vld [vmem:[#allocation2 + $0xf8] sm:$0xff] }
 0x344   : > { %5638 = verf.f32 %v4900_v27  ;;  %v1776_v33 = vsel %vm1692_vm0, %v1774_v55, %v1775_v5  ;;  %v1909_v56 = vadd.f32 %v1767_v6, %v1374_v13  ;;  %v2261_v8 = vrot.slane %v2038_v54, 2 }
 0x345   : > { %v1912_v18 = vadd.f32 %v1776_v33, %v1377_v9  ;;  %v2253_v47 = vrot.slane %v2041_v59, 2  ;;  %v2262_v62 = vrot.slane %v2044_v30, 2  ;;  %v2600_v31 = vmul.f32 %v7560_v57, %v8922_v25 }
 0x346   : > { %v2771_v3 = vmul.f32 %v7556_v41, %v8923_v46  ;;  %v2774_v43 = vmul.f32 %v7560_v57, %v6650_v15  ;;  %v2777_v55 = vmul.f32 %v8923_v46, %v2474_v2  ;;  %v2780_v0 = vmul.f32 %v6650_v15, %v2477_v4  ;;  %v7754_v15 = vld [vmem:[#allocation2 + $0x1e8] sm:$0xff] }
 0x347   : > { %v2254_v13 = vsel %vm2179_vm1, %v2252_v16, %v2253_v47  ;;  %v2263_v9 = vsel %vm2179_vm1, %v2261_v8, %v2262_v62  ;;  %v3257_v27 = vmul.f32 %v7556_v41, %v8847_v19  ;;  %v3260_v25 = vmul.f32 %v7560_v57, %v6679_v44 }
 0x348   : > { %v2396_v5 = vadd.f32 %v2254_v13, %v1909_v56  ;;  %v2399_v54 = vadd.f32 %v2263_v9, %v1912_v18  ;;  %v2987_v6 = vrot.slane %v2771_v3, 1  ;;  %v2988_v59 = vrot.slane %v2777_v55, 1  ;;  %v3696_v56 = vld [vmem:[#allocation2 + $0xa0] sm:$0x3]  ;;  %v3699_v13 = vld [vmem:[#allocation2 + $0x350] sm:$0x3] }
 0x349   : > { %v2996_v30 = vrot.slane %v2774_v43, 1  ;;  %v2997_v33 = vrot.slane %v2780_v0, 1  ;;  %v3263_v46 = vmul.f32 %v8847_v19, %v2474_v2  ;;  %v3266_v62 = vmul.f32 %v6679_v44, %v2477_v4  ;;  %v8924_v19 = vld [vmem:[#allocation37_spill] sm:$0xff] }
 0x34a   : > { %v2645_v16 = vadd.f32 %v2597_v61, %v2396_v5  ;;  %v2648_v8 = vadd.f32 %v2600_v31, %v2399_v54  ;;  %v2989_v47 = vsel %vm1692_vm0, %v2987_v6, %v2988_v59  ;;  %v3473_v3 = vrot.slane %v3257_v27, 2  ;;  %v8925_v5 = vld [vmem:[#allocation42_spill] sm:$0xff] }
 0x34b   : > { %v2998_v18 = vsel %vm1692_vm0, %v2996_v30, %v2997_v33  ;;  %v3474_v43 = vrot.slane %v3263_v46, 2  ;;  %v3482_v55 = vrot.slane %v3260_v25, 2  ;;  %v3483_v2 = vrot.slane %v3266_v62, 2 }
 0x34c   : > { %v3131_v9 = vadd.f32 %v2989_v47, %v2645_v16  ;;  %v3134_v0 = vadd.f32 %v2998_v18, %v2648_v8  ;;  %v3819_v61 = vmul.f32 %v8924_v19, %v7750_v63  ;;  %v3822_v4 = vmul.f32 %v8925_v5, %v7754_v15  ;;  %v8926_v8 = vld [vmem:[#allocation25_spill] sm:$0xff] }
 0x34d   : > { %v3475_v31 = vsel %vm2179_vm1, %v3473_v3, %v3474_v43  ;;  %v3993_v54 = vmul.f32 %v6591_v36, %v7750_v63  ;;  %v3996_v27 = vmul.f32 %v8899_v20, %v7754_v15  ;;  %v3484_v25 = vsel %vm2179_vm1, %v3482_v55, %v3483_v2  ;;  %v8927_v43 = vld [vmem:[#allocation46_spill] sm:$0xff] }
 0x34e   : > { %v3617_v46 = vadd.f32 %v3475_v31, %v3131_v9  ;;  %v3999_v6 = vmul.f32 %v6591_v36, %v3696_v56  ;;  %v4002_v59 = vmul.f32 %v8899_v20, %v3699_v13  ;;  %v3620_v30 = vadd.f32 %v3484_v25, %v3134_v0 }
 0x34f   : > { %v4209_v33 = vrot.slane %v3993_v54, 1  ;;  %v4218_v16 = vrot.slane %v3996_v27, 1  ;;  %v4479_v47 = vmul.f32 %v8926_v8, %v7750_v63  ;;  %v4482_v5 = vmul.f32 %v8927_v43, %v7754_v15  ;;  %v1264_v27 = vld [vmem:[#allocation2 + $0x170] sm:$0x3] }
 0x350   : > { %v3867_v62 = vadd.f32 %v3819_v61, %v3617_v46  ;;  %v4210_v18 = vrot.slane %v3999_v6, 1  ;;  %v4219_v3 = vrot.slane %v4002_v59, 1  ;;  %v3870_v44 = vadd.f32 %v3822_v4, %v3620_v30  ;;  %v1267_v4 = vld [vmem:[#allocation2 + $0x348] sm:$0x3] }
 0x351   : > { %v5639_v19 = vpop.eup %5638  ;;  %v4485_v55 = vmul.f32 %v8926_v8, %v3696_v56  ;;  %v4488_v9 = vmul.f32 %v8927_v43, %v3699_v13  ;;  %v4695_v2 = vrot.slane %v4479_v47, 2  ;;  %v4843_v0 = vadd.f32 %v7725_v22, %v7712_v40 }
 0x352   : > { %v4876_v31 = vmul.f32 0.5, %v7719_v51  ;;  %v4948_v54 = vadd.f32 1.0, %v5639_v19  ;;  %v4211_v61 = vsel %vm1692_vm0, %v4209_v33, %v4210_v18  ;;  %v4220_v25 = vsel %vm1692_vm0, %v4218_v16, %v4219_v3 }
 0x353   : > { %v4353_v46 = vadd.f32 %v4211_v61, %v3867_v62  ;;  %v4696_v6 = vrot.slane %v4485_v55, 2  ;;  %v4704_v59 = vrot.slane %v4482_v5, 2  ;;  %v7780_v56 = vadd.f32 %v4220_v25, %v3870_v44 }
 0x354   : > { %v4972_v30 = vmul.f32 %v4948_v54, %v4876_v31  ;;  %v4705_v13 = vrot.slane %v4488_v9, 2  ;;  %v1561_v47 = vmul.f32 %v7488_v12, %v8827_v1  ;;  %v1381_v19 = vmul.f32 %v7488_v12, %v8858_v49 }
 0x355   : > { %v4697_v40 = vsel %vm2179_vm1, %v4695_v2, %v4696_v6  ;;  %v1564_v51 = vmul.f32 %v7492_v28, %v8859_v29  ;;  %v1567_v22 = vmul.f32 %v8827_v1, %v1264_v27  ;;  %v1384_v44 = vmul.f32 %v7492_v28, %v8885_v58  ;;  %v2487_v6 = vld [vmem:[#allocation2 + $0x3a0] sm:$0x3] }
 0x356   : > { %v4996_v33 = vmul.f32 %v4972_v30, %v4843_v0  ;;  %v7790_v5 = vadd.f32 %v4697_v40, %v4353_v46  ;;  %v1570_v16 = vmul.f32 %v8859_v29, %v1267_v4  ;;  %v1786_v62 = vrot.slane %v1561_v47, 1 }
 0x357   : > { %v1787_v18 = vrot.slane %v1567_v22, 1  ;;  %v1795_v3 = vrot.slane %v1564_v51, 1  ;;  %v2048_v55 = vmul.f32 %v7488_v12, %v8830_v42  ;;  %v7798_v9 = vsel %vm2179_vm1, %v4704_v59, %v4705_v13  ;;  %v2490_v13 = vld [vmem:[#allocation2 + $0x230] sm:$0x3] }
 0x358   : > { %5139 = vmatprep.mubr.f32.mxu1 %v4996_v33  ;;  %v4899_v2 = vmul.f32 0.70710677, %v7790_v5  ;;  %v1796_v0 = vrot.slane %v1570_v16, 1  ;;  %v2051_v31 = vmul.f32 %v7492_v28, %v8832_v50  ;;  %v2054_v61 = vmul.f32 %v8830_v42, %v1264_v27 }
 0x359   : > { %v1788_v54 = vsel %vm1692_vm0, %v1786_v62, %v1787_v18  ;;  %v2057_v25 = vmul.f32 %v8832_v50, %v1267_v4  ;;  %v2273_v46 = vrot.slane %v2048_v55, 2  ;;  %v2604_v28 = vmul.f32 %v7682_v11, %v8911_v23 }
 0x35a   : > { %5640 = verf.f32 %v4899_v2  ;;  %v1797_v12 = vsel %vm1692_vm0, %v1795_v3, %v1796_v0  ;;  %v1916_v30 = vadd.f32 %v1788_v54, %v1381_v19  ;;  %v2282_v59 = vrot.slane %v2051_v31, 2 }
 0x35b   : > { %v1919_v47 = vadd.f32 %v1797_v12, %v1384_v44  ;;  %v2274_v40 = vrot.slane %v2054_v61, 2  ;;  %v2283_v51 = vrot.slane %v2057_v25, 2  ;;  %v2607_v22 = vmul.f32 %v7686_v60, %v8912_v45  ;;  %v7824_v25 = vld [vmem:[#allocation2 + $0x160] sm:$0xff] }
 0x35c   : > { %v2784_v27 = vmul.f32 %v7682_v11, %v8913_v7  ;;  %v2787_v4 = vmul.f32 %v7686_v60, %v6771_v39  ;;  %v2790_v33 = vmul.f32 %v8913_v7, %v2487_v6  ;;  %v2793_v16 = vmul.f32 %v6771_v39, %v2490_v13 }
 0x35d   : > { %v2275_v19 = vsel %vm2179_vm1, %v2273_v46, %v2274_v40  ;;  %v2284_v44 = vsel %vm2179_vm1, %v2282_v59, %v2283_v51  ;;  %v3270_v62 = vmul.f32 %v7682_v11, %v8914_v32  ;;  %v3273_v54 = vmul.f32 %v7686_v60, %v8915_v35  ;;  %v7828_v51 = vld [vmem:[#allocation2 + $0x120] sm:$0xff] }
 0x35e   : > { %v2403_v18 = vadd.f32 %v2275_v19, %v1916_v30  ;;  %v2406_v3 = vadd.f32 %v2284_v44, %v1919_v47  ;;  %v3008_v55 = vrot.slane %v2784_v27, 1  ;;  %v3009_v2 = vrot.slane %v2790_v33, 1  ;;  %v3709_v30 = vld [vmem:[#allocation2 + $0xd0] sm:$0x3]  ;;  %v3712_v19 = vld [vmem:[#allocation2 + $0x258] sm:$0x3] }
 0x35f   : > { %v3017_v0 = vrot.slane %v2787_v4, 1  ;;  %v3018_v31 = vrot.slane %v2793_v16, 1  ;;  %v3276_v61 = vmul.f32 %v8914_v32, %v2487_v6  ;;  %v3279_v40 = vmul.f32 %v8915_v35, %v2490_v13 }
 0x360   : > { %v2652_v46 = vadd.f32 %v2604_v28, %v2403_v18  ;;  %v2655_v12 = vadd.f32 %v2607_v22, %v2406_v3  ;;  %v3010_v59 = vsel %vm1692_vm0, %v3008_v55, %v3009_v2  ;;  %v3494_v27 = vrot.slane %v3270_v62, 2 }
 0x361   : > { %v3019_v47 = vsel %vm1692_vm0, %v3017_v0, %v3018_v31  ;;  %v3495_v4 = vrot.slane %v3276_v61, 2  ;;  %v3503_v33 = vrot.slane %v3273_v54, 2  ;;  %v3504_v6 = vrot.slane %v3279_v40, 2 }
 0x362   : > { %v3138_v44 = vadd.f32 %v3010_v59, %v2652_v46  ;;  %v3141_v16 = vadd.f32 %v3019_v47, %v2655_v12  ;;  %v3826_v28 = vmul.f32 %v8916_v48, %v7824_v25  ;;  %v3829_v13 = vmul.f32 %v8917_v17, %v7828_v51 }
 0x363   : > { %v3496_v22 = vsel %vm2179_vm1, %v3494_v27, %v3495_v4  ;;  %v4006_v18 = vmul.f32 %v8890_v10, %v7824_v25  ;;  %v4009_v62 = vmul.f32 %v8891_v52, %v7828_v51  ;;  %v3505_v3 = vsel %vm2179_vm1, %v3503_v33, %v3504_v6 }
 0x364   : > { %v3624_v55 = vadd.f32 %v3496_v22, %v3138_v44  ;;  %v4012_v2 = vmul.f32 %v8890_v10, %v3709_v30  ;;  %v4015_v0 = vmul.f32 %v8891_v52, %v3712_v19  ;;  %v3627_v31 = vadd.f32 %v3505_v3, %v3141_v16 }
 0x365   : > { %v4230_v54 = vrot.slane %v4006_v18, 1  ;;  %v4239_v61 = vrot.slane %v4009_v62, 1  ;;  %v4492_v46 = vmul.f32 %v8918_v34, %v7824_v25  ;;  %v4495_v47 = vmul.f32 %v8919_v24, %v7828_v51  ;;  %v1263_v62 = vld [vmem:[#allocation2 + $0x228] sm:$0x3] }
 0x366   : > { %v3874_v12 = vadd.f32 %v3826_v28, %v3624_v55  ;;  %v4231_v59 = vrot.slane %v4012_v2, 1  ;;  %v4240_v40 = vrot.slane %v4015_v0, 1  ;;  %v3877_v4 = vadd.f32 %v3829_v13, %v3627_v31  ;;  %v1266_v13 = vld [vmem:[#allocation2 + $0x138] sm:$0x3] }
 0x367   : > { %v5641_v27 = vpop.eup %5640  ;;  %v4498_v33 = vmul.f32 %v8918_v34, %v3709_v30  ;;  %v4501_v44 = vmul.f32 %v8919_v24, %v3712_v19  ;;  %v4716_v6 = vrot.slane %v4492_v46, 2  ;;  %v4842_v16 = vadd.f32 %v7798_v9, %v7780_v56 }
 0x368   : > { %v4875_v22 = vmul.f32 0.5, %v7790_v5  ;;  %v4947_v18 = vadd.f32 1.0, %v5641_v27  ;;  %v4232_v28 = vsel %vm1692_vm0, %v4230_v54, %v4231_v59  ;;  %v4241_v3 = vsel %vm1692_vm0, %v4239_v61, %v4240_v40 }
 0x369   : > { %v4360_v55 = vadd.f32 %v4232_v28, %v3874_v12  ;;  %v4717_v2 = vrot.slane %v4498_v33, 2  ;;  %v4725_v0 = vrot.slane %v4495_v47, 2  ;;  %v7854_v30 = vadd.f32 %v4241_v3, %v3877_v4 }
 0x36a   : > { %v4971_v31 = vmul.f32 %v4947_v18, %v4875_v22  ;;  %v4726_v19 = vrot.slane %v4501_v44, 2  ;;  %v1560_v46 = vmul.f32 %v7556_v41, %v8866_v38  ;;  %v1380_v5 = vmul.f32 %v7556_v41, %v8867_v21 }
 0x36b   : > { %v4718_v56 = vsel %vm2179_vm1, %v4716_v6, %v4717_v2  ;;  %v1563_v9 = vmul.f32 %v7560_v57, %v8894_v26  ;;  %v1566_v54 = vmul.f32 %v8866_v38, %v1263_v62  ;;  %v1383_v59 = vmul.f32 %v7560_v57, %v8920_v53  ;;  %v2486_v2 = vld [vmem:[#allocation2 + $0xa0] sm:$0x3] }
 0x36c   : > { %v4995_v61 = vmul.f32 %v4971_v31, %v4842_v16  ;;  %v7864_v12 = vadd.f32 %v4718_v56, %v4360_v55  ;;  %v1569_v40 = vmul.f32 %v8894_v26, %v1266_v13  ;;  %v1783_v47 = vrot.slane %v1560_v46, 1 }
 0x36d   : > { %v1784_v27 = vrot.slane %v1566_v54, 1  ;;  %v1792_v4 = vrot.slane %v1563_v9, 1  ;;  %v2047_v33 = vmul.f32 %v7556_v41, %v8842_v14  ;;  %v7872_v44 = vsel %vm2179_vm1, %v4725_v0, %v4726_v19  ;;  %v2489_v19 = vld [vmem:[#allocation2 + $0x350] sm:$0x3]  ;;  %v8928_v54 = vld [vmem:[#allocation29_spill] sm:$0xff] }
 0x36e   : > { %5140 = vmatmul.mubr.f32.gmra.mxu1 %v4995_v61  ;;  %v4903_v6 = vmul.f32 0.70710677, %v7864_v12  ;;  %v1793_v16 = vrot.slane %v1569_v40, 1  ;;  %v2050_v22 = vmul.f32 %v7560_v57, %v8870_v37  ;;  %v2053_v28 = vmul.f32 %v8842_v14, %v1263_v62  ;;  %v8929_v61 = vld [vmem:[#allocation30_spill] sm:$0xff]  ;;  %v8930_v62 = vld [vmem:[#allocation16_spill] sm:$0xff] }
 0x36f   : > { %v1785_v18 = vsel %vm1692_vm0, %v1783_v47, %v1784_v27  ;;  %v2056_v3 = vmul.f32 %v8870_v37, %v1266_v13  ;;  %v2270_v55 = vrot.slane %v2047_v33, 2  ;;  %v2603_v57 = vmul.f32 %v7750_v63, %v8928_v54  ;;  %v8931_v47 = vld [vmem:[#allocation33_spill] sm:$0xff]  ;;  %v8933_v54 = vld [vmem:[#allocation36_spill] sm:$0xff] }
 0x370   : > { %5642 = verf.f32 %v4903_v6  ;;  %v1794_v41 = vsel %vm1692_vm0, %v1792_v4, %v1793_v16  ;;  %v1915_v31 = vadd.f32 %v1785_v18, %v1380_v5  ;;  %v2279_v0 = vrot.slane %v2050_v22, 2  ;;  %v8932_v6 = vld [vmem:[#allocation21_spill] sm:$0xff]  ;;  %v7898_v14 = vld [vmem:[#allocation2 + $0x318] sm:$0xff] }
 0x371   : > { %v1918_v46 = vadd.f32 %v1794_v41, %v1383_v59  ;;  %v2271_v56 = vrot.slane %v2053_v28, 2  ;;  %v2280_v9 = vrot.slane %v2056_v3, 2  ;;  %v2606_v40 = vmul.f32 %v7754_v15, %v8929_v61 }
 0x372   : > { %v2783_v13 = vmul.f32 %v7750_v63, %v8930_v62  ;;  %v2786_v27 = vmul.f32 %v7754_v15, %v8931_v47  ;;  %v2789_v4 = vmul.f32 %v8930_v62, %v2486_v2  ;;  %v2792_v33 = vmul.f32 %v8931_v47, %v2489_v19  ;;  %v7902_v47 = vld [vmem:[#allocation2 + $0x28] sm:$0xff] }
 0x373   : > { %v2272_v5 = vsel %vm2179_vm1, %v2270_v55, %v2271_v56  ;;  %v2281_v59 = vsel %vm2179_vm1, %v2279_v0, %v2280_v9  ;;  %v3269_v16 = vmul.f32 %v7750_v63, %v8932_v6  ;;  %v3272_v37 = vmul.f32 %v7754_v15, %v8933_v54 }
 0x374   : > { %v2402_v22 = vadd.f32 %v2272_v5, %v1915_v31  ;;  %v2405_v18 = vadd.f32 %v2281_v59, %v1918_v46  ;;  %v3005_v28 = vrot.slane %v2783_v13, 1  ;;  %v3006_v3 = vrot.slane %v2789_v4, 1  ;;  %v3708_v31 = vld [vmem:[#allocation2 + $0x68] sm:$0x3]  ;;  %v3711_v5 = vld [vmem:[#allocation2 + $0x378] sm:$0x3] }
 0x375   : > { %v3014_v41 = vrot.slane %v2786_v27, 1  ;;  %v3015_v61 = vrot.slane %v2792_v33, 1  ;;  %v3275_v62 = vmul.f32 %v8932_v6, %v2486_v2  ;;  %v3278_v9 = vmul.f32 %v8933_v54, %v2489_v19  ;;  %v8934_v6 = vld [vmem:[#allocation37_spill] sm:$0xff] }
 0x376   : > { %v2651_v55 = vadd.f32 %v2603_v57, %v2402_v22  ;;  %v2654_v0 = vadd.f32 %v2606_v40, %v2405_v18  ;;  %v3007_v56 = vsel %vm1692_vm0, %v3005_v28, %v3006_v3  ;;  %v3491_v13 = vrot.slane %v3269_v16, 2  ;;  %v8935_v22 = vld [vmem:[#allocation42_spill] sm:$0xff] }
 0x377   : > { %v3016_v46 = vsel %vm1692_vm0, %v3014_v41, %v3015_v61  ;;  %v3492_v27 = vrot.slane %v3275_v62, 2  ;;  %v3500_v4 = vrot.slane %v3272_v37, 2  ;;  %v3501_v2 = vrot.slane %v3278_v9, 2 }
 0x378   : > { %v3137_v59 = vadd.f32 %v3007_v56, %v2651_v55  ;;  %v3140_v33 = vadd.f32 %v3016_v46, %v2654_v0  ;;  %v3825_v57 = vmul.f32 %v8934_v6, %v7898_v14  ;;  %v3828_v19 = vmul.f32 %v8935_v22, %v7902_v47 }
 0x379   : > { %v3493_v40 = vsel %vm2179_vm1, %v3491_v13, %v3492_v27  ;;  %v4005_v18 = vmul.f32 %v6591_v36, %v7898_v14  ;;  %v4008_v61 = vmul.f32 %v8899_v20, %v7902_v47  ;;  %v3502_v37 = vsel %vm2179_vm1, %v3500_v4, %v3501_v2 }
 0x37a   : > { %v3623_v62 = vadd.f32 %v3493_v40, %v3137_v59  ;;  %v4011_v16 = vmul.f32 %v6591_v36, %v3708_v31  ;;  %v4014_v28 = vmul.f32 %v8899_v20, %v3711_v5  ;;  %v3626_v3 = vadd.f32 %v3502_v37, %v3140_v33 }
 0x37b   : > { %v4227_v41 = vrot.slane %v4005_v18, 1  ;;  %v4236_v55 = vrot.slane %v4008_v61, 1  ;;  %v4491_v0 = vmul.f32 %v8926_v8, %v7898_v14  ;;  %v4494_v13 = vmul.f32 %v8927_v43, %v7902_v47  ;;  %v1276_v61 = vld [vmem:[#allocation2 + $0x3a0] sm:$0x3] }
 0x37c   : > { %v3873_v56 = vadd.f32 %v3825_v57, %v3623_v62  ;;  %v4228_v9 = vrot.slane %v4011_v16, 1  ;;  %v4237_v46 = vrot.slane %v4014_v28, 1  ;;  %v3876_v22 = vadd.f32 %v3828_v19, %v3626_v3  ;;  %v1279_v19 = vld [vmem:[#allocation2 + $0x230] sm:$0x3] }
 0x37d   : > { %v5643_v27 = vpop.eup %5642  ;;  %v4497_v4 = vmul.f32 %v8926_v8, %v3708_v31  ;;  %v4500_v59 = vmul.f32 %v8927_v43, %v3711_v5  ;;  %v4713_v2 = vrot.slane %v4491_v0, 2  ;;  %v4849_v33 = vadd.f32 %v7872_v44, %v7854_v30 }
 0x37e   : > { %v4879_v40 = vmul.f32 0.5, %v7864_v12  ;;  %v4951_v18 = vadd.f32 1.0, %v5643_v27  ;;  %v4229_v57 = vsel %vm1692_vm0, %v4227_v41, %v4228_v9  ;;  %v4238_v37 = vsel %vm1692_vm0, %v4236_v55, %v4237_v46 }
 0x37f   : > { %v4359_v62 = vadd.f32 %v4229_v57, %v3873_v56  ;;  %v4714_v16 = vrot.slane %v4497_v4, 2  ;;  %v4722_v28 = vrot.slane %v4494_v13, 2  ;;  %v7928_v31 = vadd.f32 %v4238_v37, %v3876_v22 }
 0x380   : > { %v4975_v3 = vmul.f32 %v4951_v18, %v4879_v40  ;;  %v4723_v5 = vrot.slane %v4500_v59, 2  ;;  %v1573_v0 = vmul.f32 %v7682_v11, %v8827_v1  ;;  %v1387_v12 = vmul.f32 %v7682_v11, %v8858_v49 }
 0x381   : > { %v4715_v30 = vsel %vm2179_vm1, %v4713_v2, %v4714_v16  ;;  %v1576_v44 = vmul.f32 %v7686_v60, %v8859_v29  ;;  %v1579_v41 = vmul.f32 %v8827_v1, %v1276_v61  ;;  %v1390_v22 = vmul.f32 %v7686_v60, %v8885_v58  ;;  %v2499_v16 = vld [vmem:[#allocation2 + $0xd0] sm:$0x3] }
 0x382   : > { %v4999_v55 = vmul.f32 %v4975_v3, %v4849_v33  ;;  %v7938_v56 = vadd.f32 %v4715_v30, %v4359_v62  ;;  %v1582_v9 = vmul.f32 %v8859_v29, %v1279_v19  ;;  %v1804_v46 = vrot.slane %v1573_v0, 1 }
 0x383   : > { %v1805_v13 = vrot.slane %v1579_v41, 1  ;;  %v1813_v27 = vrot.slane %v1576_v44, 1  ;;  %v2060_v4 = vmul.f32 %v7682_v11, %v8830_v42  ;;  %v7946_v59 = vsel %vm2179_vm1, %v4722_v28, %v4723_v5  ;;  %v2502_v5 = vld [vmem:[#allocation2 + $0x258] sm:$0x3] }
 0x384   : > { %5144 = vmatprep.mubr.f32.mxu1 %v4999_v55  ;;  %v4902_v2 = vmul.f32 0.70710677, %v7938_v56  ;;  %v1814_v33 = vrot.slane %v1582_v9, 1  ;;  %v2063_v40 = vmul.f32 %v7686_v60, %v8832_v50  ;;  %v2066_v57 = vmul.f32 %v8830_v42, %v1276_v61 }
 0x385   : > { %v1806_v18 = vsel %vm1692_vm0, %v1804_v46, %v1805_v13  ;;  %v2069_v37 = vmul.f32 %v8832_v50, %v1279_v19  ;;  %v2291_v62 = vrot.slane %v2060_v4, 2  ;;  %v2610_v60 = vmul.f32 %v7824_v25, %v8911_v23 }
 0x386   : > { %5644 = verf.f32 %v4902_v2  ;;  %v1815_v11 = vsel %vm1692_vm0, %v1813_v27, %v1814_v33  ;;  %v1922_v3 = vadd.f32 %v1806_v18, %v1387_v12  ;;  %v2300_v28 = vrot.slane %v2063_v40, 2 }
 0x387   : > { %v1925_v0 = vadd.f32 %v1815_v11, %v1390_v22  ;;  %v2292_v30 = vrot.slane %v2066_v57, 2  ;;  %v2301_v44 = vrot.slane %v2069_v37, 2  ;;  %v2613_v41 = vmul.f32 %v7828_v51, %v8912_v45  ;;  %v7972_v37 = vld [vmem:[#allocation2 + $0x1a0] sm:$0xff] }
 0x388   : > { %v2796_v61 = vmul.f32 %v7824_v25, %v8913_v7  ;;  %v2799_v19 = vmul.f32 %v7828_v51, %v6771_v39  ;;  %v2802_v55 = vmul.f32 %v8913_v7, %v2499_v16  ;;  %v2805_v9 = vmul.f32 %v6771_v39, %v2502_v5 }
 0x389   : > { %v2293_v12 = vsel %vm2179_vm1, %v2291_v62, %v2292_v30  ;;  %v2302_v22 = vsel %vm2179_vm1, %v2300_v28, %v2301_v44  ;;  %v3282_v46 = vmul.f32 %v7824_v25, %v8914_v32  ;;  %v3285_v18 = vmul.f32 %v7828_v51, %v8915_v35  ;;  %v7976_v44 = vld [vmem:[#allocation2 + $0x1e0] sm:$0xff] }
 0x38a   : > { %v2409_v13 = vadd.f32 %v2293_v12, %v1922_v3  ;;  %v2412_v27 = vadd.f32 %v2302_v22, %v1925_v0  ;;  %v3026_v4 = vrot.slane %v2796_v61, 1  ;;  %v3027_v2 = vrot.slane %v2802_v55, 1  ;;  %v3721_v3 = vld [vmem:[#allocation2 + $0x268] sm:$0x3]  ;;  %v3724_v12 = vld [vmem:[#allocation2 + $0x1f8] sm:$0x3] }
 0x38b   : > { %v3035_v33 = vrot.slane %v2799_v19, 1  ;;  %v3036_v40 = vrot.slane %v2805_v9, 1  ;;  %v3288_v57 = vmul.f32 %v8914_v32, %v2499_v16  ;;  %v3291_v30 = vmul.f32 %v8915_v35, %v2502_v5 }
 0x38c   : > { %v2658_v62 = vadd.f32 %v2610_v60, %v2409_v13  ;;  %v2661_v11 = vadd.f32 %v2613_v41, %v2412_v27  ;;  %v3028_v28 = vsel %vm1692_vm0, %v3026_v4, %v3027_v2  ;;  %v3512_v61 = vrot.slane %v3282_v46, 2 }
 0x38d   : > { %v3037_v0 = vsel %vm1692_vm0, %v3035_v33, %v3036_v40  ;;  %v3513_v19 = vrot.slane %v3288_v57, 2  ;;  %v3521_v55 = vrot.slane %v3285_v18, 2  ;;  %v3522_v16 = vrot.slane %v3291_v30, 2 }
 0x38e   : > { %v3144_v22 = vadd.f32 %v3028_v28, %v2658_v62  ;;  %v3147_v9 = vadd.f32 %v3037_v0, %v2661_v11  ;;  %v3832_v60 = vmul.f32 %v8916_v48, %v7972_v37  ;;  %v3835_v5 = vmul.f32 %v8917_v17, %v7976_v44 }
 0x38f   : > { %v3514_v41 = vsel %vm2179_vm1, %v3512_v61, %v3513_v19  ;;  %v4018_v13 = vmul.f32 %v8890_v10, %v7972_v37  ;;  %v4021_v46 = vmul.f32 %v8891_v52, %v7976_v44  ;;  %v3523_v27 = vsel %vm2179_vm1, %v3521_v55, %v3522_v16 }
 0x390   : > { %v3630_v4 = vadd.f32 %v3514_v41, %v3144_v22  ;;  %v4024_v2 = vmul.f32 %v8890_v10, %v3721_v3  ;;  %v4027_v33 = vmul.f32 %v8891_v52, %v3724_v12  ;;  %v3633_v40 = vadd.f32 %v3523_v27, %v3147_v9 }
 0x391   : > { %v4248_v18 = vrot.slane %v4018_v13, 1  ;;  %v4257_v57 = vrot.slane %v4021_v46, 1  ;;  %v4504_v62 = vmul.f32 %v8918_v34, %v7972_v37  ;;  %v4507_v0 = vmul.f32 %v8919_v24, %v7976_v44  ;;  %v1275_v46 = vld [vmem:[#allocation2 + $0xa0] sm:$0x3] }
 0x392   : > { %v3880_v11 = vadd.f32 %v3832_v60, %v3630_v4  ;;  %v4249_v28 = vrot.slane %v4024_v2, 1  ;;  %v4258_v30 = vrot.slane %v4027_v33, 1  ;;  %v3883_v19 = vadd.f32 %v3835_v5, %v3633_v40  ;;  %v1278_v5 = vld [vmem:[#allocation2 + $0x350] sm:$0x3] }
 0x393   : > { %v5645_v61 = vpop.eup %5644  ;;  %v4510_v55 = vmul.f32 %v8918_v34, %v3721_v3  ;;  %v4513_v22 = vmul.f32 %v8919_v24, %v3724_v12  ;;  %v4734_v16 = vrot.slane %v4504_v62, 2  ;;  %v4848_v9 = vadd.f32 %v7946_v59, %v7928_v31 }
 0x394   : > { %v4878_v41 = vmul.f32 0.5, %v7938_v56  ;;  %v4950_v13 = vadd.f32 1.0, %v5645_v61  ;;  %v4250_v60 = vsel %vm1692_vm0, %v4248_v18, %v4249_v28  ;;  %v4259_v27 = vsel %vm1692_vm0, %v4257_v57, %v4258_v30 }
 0x395   : > { %v4366_v4 = vadd.f32 %v4250_v60, %v3880_v11  ;;  %v4735_v2 = vrot.slane %v4510_v55, 2  ;;  %v4743_v33 = vrot.slane %v4507_v0, 2  ;;  %v8002_v3 = vadd.f32 %v4259_v27, %v3883_v19  ;;  %v8936_v55 = vld [vmem:[#allocation15_spill] sm:$0xff] }
 0x396   : > { %v4974_v40 = vmul.f32 %v4950_v13, %v4878_v41  ;;  %v4744_v12 = vrot.slane %v4513_v22, 2  ;;  %v1572_v62 = vmul.f32 %v7750_v63, %v8866_v38  ;;  %v1386_v56 = vmul.f32 %v7750_v63, %v8867_v21  ;;  %v8937_v13 = vld [vmem:[#allocation20_spill] sm:$0xff] }
 0x397   : > { %v4736_v31 = vsel %vm2179_vm1, %v4734_v16, %v4735_v2  ;;  %v1575_v59 = vmul.f32 %v7754_v15, %v8894_v26  ;;  %v1578_v18 = vmul.f32 %v8866_v38, %v1275_v46  ;;  %v1389_v28 = vmul.f32 %v7754_v15, %v8920_v53  ;;  %v8939_v53 = vld [vmem:[#allocation30_spill] sm:$0xff] }
 0x398   : > { %v4998_v57 = vmul.f32 %v4974_v40, %v4848_v9  ;;  %v8012_v11 = vadd.f32 %v4736_v31, %v4366_v4  ;;  %v1581_v30 = vmul.f32 %v8894_v26, %v1278_v5  ;;  %v1801_v0 = vrot.slane %v1572_v62, 1  ;;  %v2498_v62 = vld [vmem:[#allocation2 + $0x68] sm:$0x3] }
 0x399   : > { %v1802_v61 = vrot.slane %v1578_v18, 1  ;;  %v1810_v19 = vrot.slane %v1575_v59, 1  ;;  %v2059_v22 = vmul.f32 %v7750_v63, %v8936_v55  ;;  %v8020_v16 = vsel %vm2179_vm1, %v4743_v33, %v4744_v12  ;;  %v2501_v12 = vld [vmem:[#allocation2 + $0x378] sm:$0x3] }
 0x39a   : > { %5145 = vmatmul.mubr.f32.gmra.mxu1 %v4998_v57  ;;  %v4906_v41 = vmul.f32 0.70710677, %v8012_v11  ;;  %v1811_v9 = vrot.slane %v1581_v30, 1  ;;  %v2062_v60 = vmul.f32 %v7754_v15, %v8937_v13  ;;  %v2065_v4 = vmul.f32 %v8936_v55, %v1275_v46  ;;  %v8938_v30 = vld [vmem:[#allocation29_spill] sm:$0xff]  ;;  %v8940_v46 = vld [vmem:[#allocation16_spill] sm:$0xff] }
 0x39b   : > { %v1803_v27 = vsel %vm1692_vm0, %v1801_v0, %v1802_v61  ;;  %v2068_v2 = vmul.f32 %v8937_v13, %v1278_v5  ;;  %v2288_v40 = vrot.slane %v2059_v22, 2  ;;  %v2609_v15 = vmul.f32 %v7898_v14, %v8938_v30  ;;  %v8941_v61 = vld [vmem:[#allocation33_spill] sm:$0xff] }
 0x39c   : > { %5646 = verf.f32 %v4906_v41  ;;  %v1812_v63 = vsel %vm1692_vm0, %v1810_v19, %v1811_v9  ;;  %v1921_v31 = vadd.f32 %v1803_v27, %v1386_v56  ;;  %v2297_v33 = vrot.slane %v2062_v60, 2  ;;  %v8942_v9 = vld [vmem:[#allocation21_spill] sm:$0xff] }
 0x39d   : > { %v1924_v59 = vadd.f32 %v1812_v63, %v1389_v28  ;;  %v2289_v18 = vrot.slane %v2065_v4, 2  ;;  %v2298_v57 = vrot.slane %v2068_v2, 2  ;;  %v2612_v0 = vmul.f32 %v7902_v47, %v8939_v53  ;;  %v8046_v55 = vld [vmem:[#allocation2 + $0x2a0] sm:$0xff] }
 0x39e   : > { %v2795_v5 = vmul.f32 %v7898_v14, %v8940_v46  ;;  %v2798_v22 = vmul.f32 %v7902_v47, %v8941_v61  ;;  %v2801_v19 = vmul.f32 %v8940_v46, %v2498_v62  ;;  %v2804_v41 = vmul.f32 %v8941_v61, %v2501_v12  ;;  %v8050_v61 = vld [vmem:[#allocation2 + $0x208] sm:$0xff] }
 0x39f   : > { %v2290_v56 = vsel %vm2179_vm1, %v2288_v40, %v2289_v18  ;;  %v2299_v28 = vsel %vm2179_vm1, %v2297_v33, %v2298_v57  ;;  %v3281_v60 = vmul.f32 %v7898_v14, %v8942_v9  ;;  %v3284_v13 = vmul.f32 %v7902_v47, %v8933_v54 }
 0x3a0   : > { %v2408_v27 = vadd.f32 %v2290_v56, %v1921_v31  ;;  %v2411_v4 = vadd.f32 %v2299_v28, %v1924_v59  ;;  %v3023_v2 = vrot.slane %v2795_v5, 1  ;;  %v3024_v63 = vrot.slane %v2801_v19, 1  ;;  %v3720_v31 = vld [vmem:[#allocation2 + $0x10] sm:$0x3] }
 0x3a1   : > { %v3032_v53 = vrot.slane %v2798_v22, 1  ;;  %v3033_v30 = vrot.slane %v2804_v41, 1  ;;  %v3287_v46 = vmul.f32 %v8942_v9, %v2498_v62  ;;  %v3290_v57 = vmul.f32 %v8933_v54, %v2501_v12  ;;  %v3723_v56 = vld [vmem:[#allocation2 + $0x190] sm:$0x3] }
 0x3a2   : > { %v2657_v40 = vadd.f32 %v2609_v15, %v2408_v27  ;;  %v2660_v33 = vadd.f32 %v2612_v0, %v2411_v4  ;;  %v3025_v18 = vsel %vm1692_vm0, %v3023_v2, %v3024_v63  ;;  %v3509_v5 = vrot.slane %v3281_v60, 2  ;;  %v8943_v27 = vld [vmem:[#allocation42_spill] sm:$0xff] }
 0x3a3   : > { %v3034_v59 = vsel %vm1692_vm0, %v3032_v53, %v3033_v30  ;;  %v3510_v22 = vrot.slane %v3287_v46, 2  ;;  %v3518_v19 = vrot.slane %v3284_v13, 2  ;;  %v3519_v62 = vrot.slane %v3290_v57, 2 }
 0x3a4   : > { %v3143_v28 = vadd.f32 %v3025_v18, %v2657_v40  ;;  %v3146_v41 = vadd.f32 %v3034_v59, %v2660_v33  ;;  %v3831_v15 = vmul.f32 %v8934_v6, %v8046_v55  ;;  %v3834_v12 = vmul.f32 %v8943_v27, %v8050_v61 }
 0x3a5   : > { %v3511_v0 = vsel %vm2179_vm1, %v3509_v5, %v3510_v22  ;;  %v4017_v4 = vmul.f32 %v6591_v36, %v8046_v55  ;;  %v4020_v53 = vmul.f32 %v8899_v20, %v8050_v61  ;;  %v3520_v13 = vsel %vm2179_vm1, %v3518_v19, %v3519_v62 }
 0x3a6   : > { %v3629_v30 = vadd.f32 %v3511_v0, %v3143_v28  ;;  %v4023_v46 = vmul.f32 %v6591_v36, %v3720_v31  ;;  %v4026_v60 = vmul.f32 %v8899_v20, %v3723_v56  ;;  %v3632_v2 = vadd.f32 %v3520_v13, %v3146_v41  ;;  %v1288_v13 = vld [vmem:[#allocation2 + $0xd0] sm:$0x3] }
 0x3a7   : > { %v4245_v63 = vrot.slane %v4017_v4, 1  ;;  %v4254_v40 = vrot.slane %v4020_v53, 1  ;;  %v4503_v33 = vmul.f32 %v8926_v8, %v8046_v55  ;;  %v8069_v5 = vmul.f32 %v8927_v43, %v8050_v61 }
 0x3a8   : > { %v3879_v18 = vadd.f32 %v3831_v15, %v3629_v30  ;;  %v4246_v57 = vrot.slane %v4023_v46, 1  ;;  %v4255_v59 = vrot.slane %v4026_v60, 1  ;;  %v3882_v19 = vadd.f32 %v3834_v12, %v3632_v2  ;;  %v1291_v12 = vld [vmem:[#allocation2 + $0x258] sm:$0x3] }
 0x3a9   : > { %v5647_v22 = vpop.eup %5646  ;;  %v4509_v28 = vmul.f32 %v8926_v8, %v3720_v31  ;;  %v8073_v62 = vmul.f32 %v8927_v43, %v3723_v56  ;;  %v4731_v41 = vrot.slane %v4503_v33, 2  ;;  %v4855_v0 = vadd.f32 %v8020_v16, %v8002_v3 }
 0x3aa   : > { %v4882_v4 = vmul.f32 0.5, %v8012_v11  ;;  %v4954_v15 = vadd.f32 1.0, %v5647_v22  ;;  %v4247_v53 = vsel %vm1692_vm0, %v4245_v63, %v4246_v57  ;;  %v4256_v30 = vsel %vm1692_vm0, %v4254_v40, %v4255_v59 }
 0x3ab   : > { %v4365_v46 = vadd.f32 %v4247_v53, %v3879_v18  ;;  %v4732_v60 = vrot.slane %v4509_v28, 2  ;;  %v8080_v31 = vadd.f32 %v4256_v30, %v3882_v19  ;;  %v4740_v56 = vrot.slane %v8069_v5, 2 }
 0x3ac   : > { %v4978_v2 = vmul.f32 %v4954_v15, %v4882_v4  ;;  %v1585_v33 = vmul.f32 %v7824_v25, %v8827_v1  ;;  %v4741_v11 = vrot.slane %v8073_v62, 2  ;;  %v1588_v16 = vmul.f32 %v7828_v51, %v8859_v29 }
 0x3ad   : > { %v4733_v3 = vsel %vm2179_vm1, %v4731_v41, %v4732_v60  ;;  %v1591_v63 = vmul.f32 %v8827_v1, %v1288_v13  ;;  %v1393_v57 = vmul.f32 %v7824_v25, %v8858_v49  ;;  %v1594_v59 = vmul.f32 %v8859_v29, %v1291_v12 }
 0x3ae   : > { %v5002_v40 = vmul.f32 %v4978_v2, %v4855_v0  ;;  %v8090_v18 = vadd.f32 %v4733_v3, %v4365_v46  ;;  %v1822_v22 = vrot.slane %v1585_v33, 1  ;;  %v1831_v28 = vrot.slane %v1588_v16, 1  ;;  %v2511_v46 = vld [vmem:[#allocation2 + $0x268] sm:$0x3]  ;;  %v2514_v33 = vld [vmem:[#allocation2 + $0x1f8] sm:$0x3] }
 0x3af   : > { %v1823_v19 = vrot.slane %v1591_v63, 1  ;;  %v2072_v41 = vmul.f32 %v7824_v25, %v8830_v42  ;;  %v1396_v1 = vmul.f32 %v7828_v51, %v8885_v58  ;;  %v1832_v0 = vrot.slane %v1594_v59, 1 }
 0x3b0   : > { %5149 = vmatprep.mubr.f32.mxu1 %v5002_v40  ;;  %v4905_v4 = vmul.f32 0.70710677, %v8090_v18  ;;  %v2075_v15 = vmul.f32 %v7828_v51, %v8832_v50  ;;  %v2078_v29 = vmul.f32 %v8830_v42, %v1288_v13  ;;  %v2081_v53 = vmul.f32 %v8832_v50, %v1291_v12 }
 0x3b1   : > { %v1824_v49 = vsel %vm1692_vm0, %v1822_v22, %v1823_v19  ;;  %v2309_v30 = vrot.slane %v2072_v41, 2  ;;  %v1833_v25 = vsel %vm1692_vm0, %v1831_v28, %v1832_v0  ;;  %v2616_v51 = vmul.f32 %v7972_v37, %v8911_v23 }
 0x3b2   : > { %5648 = verf.f32 %v4905_v4  ;;  %v1928_v60 = vadd.f32 %v1824_v49, %v1393_v57  ;;  %v2318_v2 = vrot.slane %v2075_v15, 2  ;;  %v1931_v3 = vadd.f32 %v1833_v25, %v1396_v1  ;;  %v3733_v49 = vld [vmem:[#allocation2 + $0x398] sm:$0x3]  ;;  %v3736_v25 = vld [vmem:[#allocation2 + $0x2c8] sm:$0x3] }
 0x3b3   : > { %v2310_v58 = vrot.slane %v2078_v29, 2  ;;  %v2319_v16 = vrot.slane %v2081_v53, 2  ;;  %v2619_v63 = vmul.f32 %v7976_v44, %v8912_v45  ;;  %v2808_v42 = vmul.f32 %v7972_v37, %v8913_v7 }
 0x3b4   : > { %v2811_v50 = vmul.f32 %v7976_v44, %v6771_v39  ;;  %v2814_v13 = vmul.f32 %v8913_v7, %v2511_v46  ;;  %v2817_v57 = vmul.f32 %v6771_v39, %v2514_v33  ;;  %v3294_v23 = vmul.f32 %v7972_v37, %v8914_v32 }
 0x3b5   : > { %v2311_v12 = vsel %vm2179_vm1, %v2309_v30, %v2310_v58  ;;  %v2320_v40 = vsel %vm2179_vm1, %v2318_v2, %v2319_v16  ;;  %v3044_v45 = vrot.slane %v2808_v42, 1  ;;  %v3297_v4 = vmul.f32 %v7976_v44, %v8915_v35  ;;  %v8126_v58 = vld [vmem:[#allocation2 + $0x2b0] sm:$0xff] }
 0x3b6   : > { %v2415_v59 = vadd.f32 %v2311_v12, %v1928_v60  ;;  %v2418_v22 = vadd.f32 %v2320_v40, %v1931_v3  ;;  %v3045_v19 = vrot.slane %v2814_v13, 1  ;;  %v3053_v28 = vrot.slane %v2811_v50, 1 }
 0x3b7   : > { %v3054_v41 = vrot.slane %v2817_v57, 1  ;;  %v3300_v7 = vmul.f32 %v8914_v32, %v2511_v46  ;;  %v3303_v39 = vmul.f32 %v8915_v35, %v2514_v33  ;;  %v3530_v29 = vrot.slane %v3294_v23, 2 }
 0x3b8   : > { %v2664_v1 = vadd.f32 %v2616_v51, %v2415_v59  ;;  %v2667_v0 = vadd.f32 %v2619_v63, %v2418_v22  ;;  %v3046_v15 = vsel %vm1692_vm0, %v3044_v45, %v3045_v19  ;;  %v3539_v30 = vrot.slane %v3297_v4, 2  ;;  %v1287_v4 = vld [vmem:[#allocation2 + $0x68] sm:$0x3] }
 0x3b9   : > { %v3055_v37 = vsel %vm1692_vm0, %v3053_v28, %v3054_v41  ;;  %v3531_v53 = vrot.slane %v3300_v7, 2  ;;  %v3540_v3 = vrot.slane %v3303_v39, 2  ;;  %v3838_v32 = vmul.f32 %v8126_v58, %v8916_v48 }
 0x3ba   : > { %v3150_v60 = vadd.f32 %v3046_v15, %v2664_v1  ;;  %v3153_v2 = vadd.f32 %v3055_v37, %v2667_v0  ;;  %v3841_v35 = vmul.f32 %v8126_v58, %v8917_v17  ;;  %v4030_v46 = vmul.f32 %v8126_v58, %v8890_v10  ;;  %v1290_v0 = vld [vmem:[#allocation2 + $0x378] sm:$0x3] }
 0x3bb   : > { %v3532_v44 = vsel %vm2179_vm1, %v3530_v29, %v3531_v53  ;;  %v4033_v33 = vmul.f32 %v8126_v58, %v8891_v52  ;;  %v3541_v16 = vsel %vm2179_vm1, %v3539_v30, %v3540_v3  ;;  %v4036_v63 = vmul.f32 %v8890_v10, %v3733_v49 }
 0x3bc   : > { %v3636_v51 = vadd.f32 %v3532_v44, %v3150_v60  ;;  %v4039_v42 = vmul.f32 %v8891_v52, %v3736_v25  ;;  %v3639_v50 = vadd.f32 %v3541_v16, %v3153_v2  ;;  %v4266_v48 = vrot.slane %v4030_v46, 1  ;;  %v8944_v2 = vld [vmem:[#allocation15_spill] sm:$0xff]  ;;  %v8946_v46 = vld [vmem:[#allocation20_spill] sm:$0xff] }
 0x3bd   : > { %v4275_v13 = vrot.slane %v4033_v33, 1  ;;  %v4516_v12 = vmul.f32 %v8126_v58, %v8918_v34  ;;  %v4267_v40 = vrot.slane %v4036_v63, 1  ;;  %v8144_v23 = vmul.f32 %v8126_v58, %v8919_v24  ;;  %v8945_v44 = vld [vmem:[#allocation23_spill] sm:$0xff] }
 0x3be   : > { %v3886_v17 = vadd.f32 %v3838_v32, %v3636_v51  ;;  %v4276_v57 = vrot.slane %v4039_v42, 1  ;;  %v4522_v22 = vmul.f32 %v8918_v34, %v3733_v49  ;;  %v8148_v10 = vmul.f32 %v8919_v24, %v3736_v25  ;;  %v2510_v63 = vld [vmem:[#allocation2 + $0x10] sm:$0x3] }
 0x3bf   : > { %v5649_v59 = vpop.eup %5648  ;;  %v4752_v52 = vrot.slane %v4516_v12, 2  ;;  %v4742_v45 = vsel %vm2179_vm1, %v4740_v56, %v4741_v11  ;;  %v4881_v19 = vmul.f32 0.5, %v8090_v18  ;;  %v4268_v41 = vsel %vm1692_vm0, %v4266_v48, %v4267_v40  ;;  %v2513_v48 = vld [vmem:[#allocation2 + $0x190] sm:$0x3]  ;;  %v8947_v40 = vld [vmem:[#allocation29_spill] sm:$0xff] }
 0x3c0   : > { %v4953_v28 = vadd.f32 1.0, %v5649_v59  ;;  %v4854_v7 = vadd.f32 %v4742_v45, %v8080_v31  ;;  %v8158_v1 = vadd.f32 %v3841_v35, %v3639_v50  ;;  %v4372_v34 = vadd.f32 %v4268_v41, %v3886_v17  ;;  %v8950_v45 = vld [vmem:[#allocation33_spill] sm:$0xff] }
 0x3c1   : > { %v4753_v24 = vrot.slane %v4522_v22, 2  ;;  %v8161_v62 = vsel %vm1692_vm0, %v4275_v13, %v4276_v57  ;;  %v4761_v5 = vrot.slane %v8144_v23, 2  ;;  %v1584_v56 = vmul.f32 %v7898_v14, %v8866_v38  ;;  %v8948_v57 = vld [vmem:[#allocation30_spill] sm:$0xff]  ;;  %v8949_v22 = vld [vmem:[#allocation16_spill] sm:$0xff] }
 0x3c2   : > { %v4977_v15 = vmul.f32 %v4953_v28, %v4881_v19  ;;  %v4762_v18 = vrot.slane %v8148_v10, 2  ;;  %v1587_v31 = vmul.f32 %v7902_v47, %v8894_v26  ;;  %v1590_v39 = vmul.f32 %v8866_v38, %v1287_v4 }
 0x3c3   : > { %v4754_v11 = vsel %vm2179_vm1, %v4752_v52, %v4753_v24  ;;  %v1392_v29 = vmul.f32 %v7898_v14, %v8867_v21  ;;  %v1593_v53 = vmul.f32 %v8894_v26, %v1290_v0  ;;  %v1819_v30 = vrot.slane %v1584_v56, 1 }
 0x3c4   : > { %v5001_v49 = vmul.f32 %v4977_v15, %v4854_v7  ;;  %v8171_v37 = vadd.f32 %v4754_v11, %v4372_v34  ;;  %v1820_v25 = vrot.slane %v1590_v39, 1  ;;  %v1828_v60 = vrot.slane %v1587_v31, 1 }
 0x3c5   : > { %v2071_v3 = vmul.f32 %v7898_v14, %v8944_v2  ;;  %v1395_v38 = vmul.f32 %v7902_v47, %v8945_v44  ;;  %v1829_v35 = vrot.slane %v1593_v53, 1  ;;  %v2074_v33 = vmul.f32 %v7902_v47, %v8946_v46 }
 0x3c6   : > { %5150 = vmatmul.mubr.f32.gmra.mxu1 %v5001_v49  ;;  %v4909_v32 = vmul.f32 0.70710677, %v8171_v37  ;;  %v1821_v21 = vsel %vm1692_vm0, %v1819_v30, %v1820_v25  ;;  %v2077_v26 = vmul.f32 %v8944_v2, %v1287_v4  ;;  %v2080_v16 = vmul.f32 %v8946_v46, %v1290_v0  ;;  %v3735_v46 = vld [vmem:[#allocation2 + $0x1c8] sm:$0x3] }
 0x3c7   : > { %v2306_v51 = vrot.slane %v2071_v3, 2  ;;  %v1830_v14 = vsel %vm1692_vm0, %v1828_v60, %v1829_v35  ;;  %v1927_v42 = vadd.f32 %v1821_v21, %v1392_v29  ;;  %v2315_v50 = vrot.slane %v2074_v33, 2 }
 0x3c8   : > { %5650 = verf.f32 %v4909_v32  ;;  %v1930_v13 = vadd.f32 %v1830_v14, %v1395_v38  ;;  %v2307_v12 = vrot.slane %v2077_v26, 2  ;;  %v2316_v17 = vrot.slane %v2080_v16, 2  ;;  %v3732_v32 = vld [vmem:[#allocation2 + $0xb0] sm:$0x3] }
 0x3c9   : > { %v2615_v47 = vmul.f32 %v8046_v55, %v8947_v40  ;;  %v2618_v59 = vmul.f32 %v8050_v61, %v8948_v57  ;;  %v2807_v52 = vmul.f32 %v8046_v55, %v8949_v22  ;;  %v2810_v19 = vmul.f32 %v8050_v61, %v8950_v45  ;;  %v1253_v40 = vld [vmem:[#allocation2 + $0xe8] sm:$0x3] }
 0x3ca   : > { %v2813_v28 = vmul.f32 %v8949_v22, %v2510_v63  ;;  %v2308_v41 = vsel %vm2179_vm1, %v2306_v51, %v2307_v12  ;;  %v2317_v4 = vsel %vm2179_vm1, %v2315_v50, %v2316_v17  ;;  %v2816_v7 = vmul.f32 %v8950_v45, %v2513_v48  ;;  %v1250_v17 = vld [vmem:[#allocation2 + $0x158] sm:$0xff] }
 0x3cb   : > { %v3293_v34 = vmul.f32 %v8046_v55, %v8942_v9  ;;  %v2414_v24 = vadd.f32 %v2308_v41, %v1927_v42  ;;  %v2417_v0 = vadd.f32 %v2317_v4, %v1930_v13  ;;  %v3041_v15 = vrot.slane %v2807_v52, 1  ;;  %v8952_v4 = vld [vmem:[#allocation38_spill] sm:$0xff] }
 0x3cc   : > { %v3042_v56 = vrot.slane %v2813_v28, 1  ;;  %v3050_v11 = vrot.slane %v2810_v19, 1  ;;  %v3051_v31 = vrot.slane %v2816_v7, 1  ;;  %v3296_v39 = vmul.f32 %v8050_v61, %v8933_v54  ;;  %v8951_v19 = vld [vmem:[#allocation13_spill] sm:$0xff] }
 0x3cd   : > { %v3299_v49 = vmul.f32 %v8942_v9, %v2510_v63  ;;  %v2663_v29 = vadd.f32 %v2615_v47, %v2414_v24  ;;  %v2666_v53 = vadd.f32 %v2618_v59, %v2417_v0  ;;  %v3302_v25 = vmul.f32 %v8933_v54, %v2513_v48  ;;  %v1247_v48 = vld [vmem:[#allocation2 + $0x328] sm:$0xff] }
 0x3ce   : > { %v3043_v30 = vsel %vm1692_vm0, %v3041_v15, %v3042_v56  ;;  %v3052_v60 = vsel %vm1692_vm0, %v3050_v11, %v3051_v31  ;;  %v3527_v55 = vrot.slane %v3293_v34, 2  ;;  %v3536_v3 = vrot.slane %v3296_v39, 2  ;;  %v8953_v15 = vld [vmem:[#allocation35_spill] sm:$0xff] }
 0x3cf   : > { %v3528_v2 = vrot.slane %v3299_v49, 2  ;;  %v3149_v44 = vadd.f32 %v3043_v30, %v2663_v29  ;;  %v3152_v38 = vadd.f32 %v3052_v60, %v2666_v53  ;;  %v3537_v35 = vrot.slane %v3302_v25, 2  ;;  %v8954_v29 = vld [vmem:[#allocation28_spill] sm:$0xff] }
 0x3d0   : > { %v3837_v61 = vmul.f32 %v8126_v58, %v8934_v6  ;;  %v4375_v9 = vadd.f32 %v8161_v62, %v8158_v1  ;;  %v4029_v54 = vmul.f32 %v8126_v58, %v6591_v36  ;;  %v4763_v21 = vsel %vm2179_vm1, %v4761_v5, %v4762_v18  ;;  %v8955_v30 = vld [vmem:[#allocation48_spill] sm:$0xff] }
 0x3d1   : > { %v3529_v33 = vsel %vm2179_vm1, %v3527_v55, %v3528_v2  ;;  %v4032_v16 = vmul.f32 %v8126_v58, %v8899_v20  ;;  %v4035_v6 = vmul.f32 %v6591_v36, %v3732_v32  ;;  %v3538_v51 = vsel %vm2179_vm1, %v3536_v3, %v3537_v35  ;;  %v8956_v55 = vld [vmem:[#allocation44_spill] sm:$0xff] }
 0x3d2   : > { %v3635_v26 = vadd.f32 %v3529_v33, %v3149_v44  ;;  %v4038_v1 = vmul.f32 %v8899_v20, %v3735_v46  ;;  %v4263_v62 = vrot.slane %v4029_v54, 1  ;;  %v4515_v63 = vmul.f32 %v8126_v58, %v8926_v8  ;;  %v8255_v35 = vld [vmem:[#allocation2 + $0x38] sm:$0xff] }
 0x3d3   : > { %v3638_v14 = vadd.f32 %v3538_v51, %v3152_v38  ;;  %v3840_v23 = vmul.f32 %v8126_v58, %v8943_v27  ;;  %v4264_v5 = vrot.slane %v4035_v6, 1  ;;  %v4521_v42 = vmul.f32 %v8926_v8, %v3732_v32  ;;  %v1256_v27 = vld [vmem:[#allocation2 + $0x1d0] sm:$0x3] }
 0x3d4   : > { %v3885_v10 = vadd.f32 %v3837_v61, %v3635_v26  ;;  %v4749_v50 = vrot.slane %v4515_v63, 2  ;;  %v4861_v36 = vadd.f32 %v4763_v21, %v4375_v9  ;;  %v4885_v13 = vmul.f32 0.5, %v8171_v37  ;;  %v2476_v61 = vld [vmem:[#allocation2 + $0x280] sm:$0x3]  ;;  %v2479_v21 = vld [vmem:[#allocation2 + $0x3a8] sm:$0x3] }
 0x3d5   : > { %v5651_v18 = vpop.eup %5650  ;;  %v4265_v20 = vsel %vm1692_vm0, %v4263_v62, %v4264_v5  ;;  %v4272_v47 = vrot.slane %v4032_v16, 1  ;;  %v4273_v57 = vrot.slane %v4038_v1, 1  ;;  %v4750_v22 = vrot.slane %v4521_v42, 2  ;;  %v8957_v1 = vld [vmem:[#allocation47_spill] sm:$0xff]  ;;  %v8958_v63 = vld [vmem:[#allocation32_spill] sm:$0xff] }
 0x3d6   : > { %v4957_v12 = vadd.f32 1.0, %v5651_v18  ;;  %v4371_v59 = vadd.f32 %v4265_v20, %v3885_v10  ;;  %v8231_v45 = vadd.f32 %v3840_v23, %v3638_v14  ;;  %v8235_v8 = vmul.f32 %v8126_v58, %v8927_v43  ;;  %v8959_v23 = vld [vmem:[#allocation50_spill] sm:$0xff] }
 0x3d7   : > { %v1550_v28 = vmul.f32 %v8951_v19, %v1247_v48  ;;  %v8239_v37 = vmul.f32 %v8927_v43, %v3735_v46  ;;  %v4751_v41 = vsel %vm2179_vm1, %v4749_v50, %v4750_v22  ;;  %v1553_v7 = vmul.f32 %v8952_v4, %v1250_v17  ;;  %v8257_v46 = vld [vmem:[#allocation2 + $0xc0] sm:$0xff] }
 0x3d8   : > { %v4981_v52 = vmul.f32 %v4957_v12, %v4885_v13  ;;  %v1556_v34 = vmul.f32 %v8951_v19, %v1253_v40  ;;  %v8244_v0 = vadd.f32 %v4751_v41, %v4371_v59  ;;  %v1376_v56 = vmul.f32 %v8953_v15, %v1247_v48  ;;  %v8962_v41 = vld [vmem:[#allocation52_spill] sm:$0xff] }
 0x3d9   : > { %v1559_v11 = vmul.f32 %v8952_v4, %v1256_v27  ;;  %v1771_v31 = vrot.slane %v1550_v28, 1  ;;  %v1780_v49 = vrot.slane %v1553_v7, 1  ;;  %v2037_v53 = vmul.f32 %v8954_v29, %v1247_v48  ;;  %v8960_v48 = vld [vmem:[#allocation34_spill] sm:$0xff] }
 0x3da   : > { %v5005_v24 = vmul.f32 %v4981_v52, %v4861_v36  ;;  %v1772_v39 = vrot.slane %v1556_v34, 1  ;;  %v4908_v43 = vmul.f32 0.70710677, %v8244_v0  ;;  %v1379_v25 = vmul.f32 %v8955_v30, %v1250_v17  ;;  %v8280_v34 = vld [vmem:[#allocation2 + $0xb8] sm:$0xff] }
 0x3db   : > { %v1781_v60 = vrot.slane %v1559_v11, 1  ;;  %v2040_v2 = vmul.f32 %v8956_v55, %v1250_v17  ;;  %v2043_v32 = vmul.f32 %v8954_v29, %v1253_v40  ;;  %v2046_v44 = vmul.f32 %v8956_v55, %v1256_v27 }
 0x3dc   : > { %5154 = vmatprep.mubr.f32.mxu1 %v5005_v24  ;;  %v1773_v3 = vsel %vm1692_vm0, %v1771_v31, %v1772_v39  ;;  %v2258_v38 = vrot.slane %v2037_v53, 2  ;;  %5652 = verf.f32 %v4908_v43  ;;  %v4274_v26 = vsel %vm1692_vm0, %v4272_v47, %v4273_v57  ;;  %v8961_v57 = vld [vmem:[#allocation60_spill] sm:$0xff] }
 0x3dd   : > { %v1782_v9 = vsel %vm1692_vm0, %v1780_v49, %v1781_v60  ;;  %v1911_v33 = vadd.f32 %v1773_v3, %v1376_v56  ;;  %v2267_v54 = vrot.slane %v2040_v2, 2  ;;  %v2259_v6 = vrot.slane %v2043_v32, 2  ;;  %v8963_v60 = vld [vmem:[#allocation39_spill] sm:$0xff] }
 0x3de   : > { %v1914_v16 = vadd.f32 %v1782_v9, %v1379_v25  ;;  %v2268_v51 = vrot.slane %v2046_v44, 2  ;;  %v2599_v62 = vmul.f32 %v8957_v1, %v8255_v35  ;;  %v2773_v14 = vmul.f32 %v8958_v63, %v8255_v35  ;;  %v8287_v25 = vld [vmem:[#allocation2 + $0x128] sm:$0xff]  ;;  %v3701_v44 = vld [vmem:[#allocation2 + $0x298] sm:$0x3] }
 0x3df   : > { %v2776_v10 = vmul.f32 %v8959_v23, %v8257_v46  ;;  %v2779_v5 = vmul.f32 %v8958_v63, %v2476_v61  ;;  %v2260_v18 = vsel %vm2179_vm1, %v2258_v38, %v2259_v6  ;;  %v2782_v50 = vmul.f32 %v8959_v23, %v2479_v21  ;;  %v8964_v38 = vld [vmem:[#allocation58_spill] sm:$0xff] }
 0x3e0   : > { %v2269_v42 = vsel %vm2179_vm1, %v2267_v54, %v2268_v51  ;;  %v3259_v36 = vmul.f32 %v8960_v48, %v8255_v35  ;;  %v2398_v13 = vadd.f32 %v2260_v18, %v1911_v33  ;;  %v2993_v20 = vrot.slane %v2773_v14, 1  ;;  %v8966_v51 = vld [vmem:[#allocation55_spill] sm:$0xff] }
 0x3e1   : > { %v2401_v12 = vadd.f32 %v2269_v42, %v1914_v16  ;;  %v2994_v17 = vrot.slane %v2779_v5, 1  ;;  %v4758_v40 = vrot.slane %v8235_v8, 2  ;;  %v4759_v47 = vrot.slane %v8239_v37, 2  ;;  %v3698_v37 = vld [vmem:[#allocation2 + $0x2f8] sm:$0x3] }
 0x3e2   : > { %v2602_v59 = vmul.f32 %v8961_v57, %v8257_v46  ;;  %v3265_v22 = vmul.f32 %v8960_v48, %v2476_v61  ;;  %v2647_v27 = vadd.f32 %v2599_v62, %v2398_v13  ;;  %v3002_v52 = vrot.slane %v2776_v10, 1 }
 0x3e3   : > { %v3003_v28 = vrot.slane %v2782_v50, 1  ;;  %v3262_v7 = vmul.f32 %v8962_v41, %v8257_v46  ;;  %v2995_v24 = vsel %vm1692_vm0, %v2993_v20, %v2994_v17  ;;  %v3268_v56 = vmul.f32 %v8962_v41, %v2479_v21  ;;  %v8965_v21 = vld [vmem:[#allocation45_spill] sm:$0xff] }
 0x3e4   : > { %v3479_v8 = vrot.slane %v3259_v36, 2  ;;  %v3480_v11 = vrot.slane %v3265_v22, 2  ;;  %v2650_v31 = vadd.f32 %v2602_v59, %v2401_v12  ;;  %v3133_v39 = vadd.f32 %v2995_v24, %v2647_v27  ;;  %v1265_v20 = vld [vmem:[#allocation2 + $0x280] sm:$0x3]  ;;  %v1268_v27 = vld [vmem:[#allocation2 + $0x3a8] sm:$0x3] }
 0x3e5   : > { %v4374_v49 = vadd.f32 %v4274_v26, %v8231_v45  ;;  %v4760_v53 = vsel %vm2179_vm1, %v4758_v40, %v4759_v47  ;;  %v3995_v2 = vmul.f32 %v8963_v60, %v8280_v34  ;;  %v3004_v3 = vsel %vm1692_vm0, %v3002_v52, %v3003_v28  ;;  %v8967_v40 = vld [vmem:[#allocation61_spill] sm:$0xff] }
 0x3e6   : > { %v3481_v43 = vsel %vm2179_vm1, %v3479_v8, %v3480_v11  ;;  %v3821_v61 = vmul.f32 %v8964_v38, %v8280_v34  ;;  %v4001_v9 = vmul.f32 %v8963_v60, %v3698_v37  ;;  %v3488_v33 = vrot.slane %v3262_v7, 2 }
 0x3e7   : > { %v3619_v32 = vadd.f32 %v3481_v43, %v3133_v39  ;;  %v3489_v45 = vrot.slane %v3268_v56, 2  ;;  %v4215_v54 = vrot.slane %v3995_v2, 1  ;;  %v4481_v26 = vmul.f32 %v8965_v21, %v8280_v34 }
 0x3e8   : > { %v3136_v16 = vadd.f32 %v3004_v3, %v2650_v31  ;;  %v8299_v62 = vmul.f32 %v8966_v51, %v8287_v25  ;;  %v4216_v14 = vrot.slane %v4001_v9, 1  ;;  %v8302_v5 = vmul.f32 %v8966_v51, %v3701_v44 }
 0x3e9   : > { %v3869_v6 = vadd.f32 %v3821_v61, %v3619_v32  ;;  %v5653_v10 = vpop.eup %5652  ;;  %v4487_v18 = vmul.f32 %v8965_v21, %v3698_v37  ;;  %v4701_v42 = vrot.slane %v4481_v26, 2  ;;  %v4860_v50 = vadd.f32 %v4760_v53, %v4374_v49 }
 0x3ea   : > { %v4884_v36 = vmul.f32 0.5, %v8244_v0  ;;  %v4956_v13 = vadd.f32 1.0, %v5653_v10  ;;  %v4217_v12 = vsel %vm1692_vm0, %v4215_v54, %v4216_v14  ;;  %v3490_v17 = vsel %vm2179_vm1, %v3488_v33, %v3489_v45  ;;  %v2491_v10 = vld [vmem:[#allocation2 + $0x298] sm:$0x3] }
 0x3eb   : > { %v3824_v47 = vmul.f32 %v8967_v40, %v8287_v25  ;;  %v4355_v59 = vadd.f32 %v4217_v12, %v3869_v6  ;;  %v4702_v22 = vrot.slane %v4487_v18, 2  ;;  %v3622_v28 = vadd.f32 %v3490_v17, %v3136_v16  ;;  %v2488_v6 = vld [vmem:[#allocation2 + $0x2f8] sm:$0x3] }
 0x3ec   : > { %v4980_v52 = vmul.f32 %v4956_v13, %v4884_v36  ;;  %v4224_v7 = vrot.slane %v8299_v62, 1  ;;  %v1562_v24 = vmul.f32 %v8255_v35, %v8951_v19  ;;  %v4225_v0 = vrot.slane %v8302_v5, 1  ;;  %v8968_v5 = vld [vmem:[#allocation57_spill] sm:$0xff] }
 0x3ed   : > { %v4703_v56 = vsel %vm2179_vm1, %v4701_v42, %v4702_v22  ;;  %v1565_v8 = vmul.f32 %v8257_v46, %v8952_v4  ;;  %v1568_v11 = vmul.f32 %v8951_v19, %v1265_v20  ;;  %v1382_v39 = vmul.f32 %v8255_v35, %v8953_v15 }
 0x3ee   : > { %v5004_v37 = vmul.f32 %v4980_v52, %v4860_v50  ;;  %v8318_v31 = vadd.f32 %v4703_v56, %v4355_v59  ;;  %v1571_v49 = vmul.f32 %v8952_v4, %v1268_v27  ;;  %v1789_v53 = vrot.slane %v1562_v24, 1 }
 0x3ef   : > { %v1790_v43 = vrot.slane %v1568_v11, 1  ;;  %v1798_v2 = vrot.slane %v1565_v8, 1  ;;  %v2049_v3 = vmul.f32 %v8255_v35, %v8954_v29  ;;  %v1385_v61 = vmul.f32 %v8257_v46, %v8955_v30 }
 0x3f0   : > { %5155 = vmatmul.mubr.f32.gmra.mxu1 %v5004_v37  ;;  %v4901_v32 = vmul.f32 0.70710677, %v8318_v31  ;;  %v1799_v9 = vrot.slane %v1571_v49, 1  ;;  %v2052_v33 = vmul.f32 %v8257_v46, %v8956_v55  ;;  %v2055_v54 = vmul.f32 %v8954_v29, %v1265_v20 }
 0x3f1   : > { %v1791_v45 = vsel %vm1692_vm0, %v1789_v53, %v1790_v43  ;;  %v2058_v26 = vmul.f32 %v8956_v55, %v1268_v27  ;;  %v2276_v16 = vrot.slane %v2049_v3, 2  ;;  %v4484_v18 = vmul.f32 %v8968_v5, %v8287_v25  ;;  %v8352_v3 = vld [vmem:[#allocation2 + $0x88] sm:$0xff] }
 0x3f2   : > { %5654 = verf.f32 %v4901_v32  ;;  %v1800_v35 = vsel %vm1692_vm0, %v1798_v2, %v1799_v9  ;;  %v1917_v62 = vadd.f32 %v1791_v45, %v1382_v39  ;;  %v2285_v14 = vrot.slane %v2052_v33, 2  ;;  %v3710_v45 = vld [vmem:[#allocation2 + $0x180] sm:$0x3] }
 0x3f3   : > { %v1920_v42 = vadd.f32 %v1800_v35, %v1385_v61  ;;  %v2277_v50 = vrot.slane %v2055_v54, 2  ;;  %v2286_v46 = vrot.slane %v2058_v26, 2  ;;  %v4490_v36 = vmul.f32 %v8968_v5, %v3701_v44 }
 0x3f4   : > { %v2785_v13 = vmul.f32 %v8280_v34, %v8958_v63  ;;  %v2788_v12 = vmul.f32 %v8287_v25, %v8959_v23  ;;  %v2791_v20 = vmul.f32 %v8958_v63, %v2488_v6  ;;  %v2605_v59 = vmul.f32 %v8280_v34, %v8957_v1 }
 0x3f5   : > { %v2278_v17 = vsel %vm2179_vm1, %v2276_v16, %v2277_v50  ;;  %v2794_v22 = vmul.f32 %v8959_v23, %v2491_v10  ;;  %v3271_v27 = vmul.f32 %v8280_v34, %v8960_v48  ;;  %v2287_v44 = vsel %vm2179_vm1, %v2285_v14, %v2286_v46  ;;  %v8367_v50 = vld [vmem:[#allocation2 + $0x140] sm:$0xff] }
 0x3f6   : > { %v2404_v52 = vadd.f32 %v2278_v17, %v1917_v62  ;;  %v3011_v24 = vrot.slane %v2785_v13, 1  ;;  %v3012_v56 = vrot.slane %v2791_v20, 1  ;;  %v3872_v8 = vadd.f32 %v3824_v47, %v3622_v28 }
 0x3f7   : > { %v4710_v11 = vrot.slane %v4484_v18, 2  ;;  %v2407_v37 = vadd.f32 %v2287_v44, %v1920_v42  ;;  %v3277_v39 = vmul.f32 %v8960_v48, %v2488_v6  ;;  %v4711_v49 = vrot.slane %v4490_v36, 2 }
 0x3f8   : > { %v2608_v53 = vmul.f32 %v8287_v25, %v8961_v57  ;;  %v2653_v43 = vadd.f32 %v2605_v59, %v2404_v52  ;;  %v3020_v2 = vrot.slane %v2788_v12, 1  ;;  %v3013_v32 = vsel %vm1692_vm0, %v3011_v24, %v3012_v56 }
 0x3f9   : > { %v3021_v61 = vrot.slane %v2794_v22, 1  ;;  %v3497_v9 = vrot.slane %v3271_v27, 2  ;;  %v3498_v33 = vrot.slane %v3277_v39, 2  ;;  %v4226_v47 = vsel %vm1692_vm0, %v4224_v7, %v4225_v0  ;;  %v3713_v27 = vld [vmem:[#allocation2 + $0x220] sm:$0x3] }
 0x3fa   : > { %v3139_v28 = vadd.f32 %v3013_v32, %v2653_v43  ;;  %v3274_v54 = vmul.f32 %v8287_v25, %v8962_v41  ;;  %v3280_v26 = vmul.f32 %v8962_v41, %v2491_v10  ;;  %v4358_v16 = vadd.f32 %v4226_v47, %v3872_v8  ;;  %v1280_v43 = vld [vmem:[#allocation2 + $0x298] sm:$0x3] }
 0x3fb   : > { %v2656_v6 = vadd.f32 %v2608_v53, %v2407_v37  ;;  %v3499_v35 = vsel %vm2179_vm1, %v3497_v9, %v3498_v33  ;;  %v4007_v62 = vmul.f32 %v8963_v60, %v8352_v3  ;;  %v3827_v18 = vmul.f32 %v8964_v38, %v8352_v3  ;;  %v1277_v37 = vld [vmem:[#allocation2 + $0x2f8] sm:$0x3] }
 0x3fc   : > { %v3625_v14 = vadd.f32 %v3499_v35, %v3139_v28  ;;  %v4013_v42 = vmul.f32 %v8963_v60, %v3710_v45  ;;  %v4712_v7 = vsel %vm2179_vm1, %v4710_v11, %v4711_v49  ;;  %v3022_v0 = vsel %vm1692_vm0, %v3020_v2, %v3021_v61 }
 0x3fd   : > { %v4233_v10 = vrot.slane %v4007_v62, 1  ;;  %v4493_v46 = vmul.f32 %v8965_v21, %v8352_v3  ;;  %v3506_v36 = vrot.slane %v3274_v54, 2  ;;  %v3507_v13 = vrot.slane %v3280_v26, 2 }
 0x3fe   : > { %v3875_v12 = vadd.f32 %v3827_v18, %v3625_v14  ;;  %v4234_v20 = vrot.slane %v4013_v42, 1  ;;  %v4844_v59 = vadd.f32 %v4712_v7, %v4358_v16  ;;  %v3142_v22 = vadd.f32 %v3022_v0, %v2656_v6 }
 0x3ff   : > { %v5655_v17 = vpop.eup %5654  ;;  %v4499_v44 = vmul.f32 %v8965_v21, %v3710_v45  ;;  %v4719_v52 = vrot.slane %v4493_v46, 2  ;;  %v4877_v24 = vmul.f32 0.5, %v8318_v31  ;;  %v4010_v8 = vmul.f32 %v8966_v51, %v8367_v50 }
 0x400   : > { %v4949_v56 = vadd.f32 1.0, %v5655_v17  ;;  %v4235_v11 = vsel %vm1692_vm0, %v4233_v10, %v4234_v20  ;;  %v3830_v39 = vmul.f32 %v8967_v40, %v8367_v50  ;;  %v3508_v32 = vsel %vm2179_vm1, %v3506_v36, %v3507_v13 }
 0x401   : > { %v4361_v49 = vadd.f32 %v4235_v11, %v3875_v12  ;;  %v4720_v53 = vrot.slane %v4499_v44, 2  ;;  %v4016_v61 = vmul.f32 %v8966_v51, %v3713_v27  ;;  %v1574_v31 = vmul.f32 %v8280_v34, %v8951_v19  ;;  %v2500_v12 = vld [vmem:[#allocation2 + $0x180] sm:$0x3] }
 0x402   : > { %v4973_v2 = vmul.f32 %v4949_v56, %v4877_v24  ;;  %v3628_v9 = vadd.f32 %v3508_v32, %v3142_v22  ;;  %v1577_v45 = vmul.f32 %v8287_v25, %v8952_v4  ;;  %v1580_v47 = vmul.f32 %v8951_v19, %v1277_v37 }
 0x403   : > { %v4721_v33 = vsel %vm2179_vm1, %v4719_v52, %v4720_v53  ;;  %v4242_v54 = vrot.slane %v4010_v8, 1  ;;  %v1583_v16 = vmul.f32 %v8952_v4, %v1280_v43  ;;  %v1807_v6 = vrot.slane %v1574_v31, 1 }
 0x404   : > { %v4997_v28 = vmul.f32 %v4973_v2, %v4844_v59  ;;  %v8386_v26 = vadd.f32 %v4721_v33, %v4361_v49  ;;  %v1808_v35 = vrot.slane %v1580_v47, 1  ;;  %v1816_v62 = vrot.slane %v1577_v45, 1  ;;  %v2503_v2 = vld [vmem:[#allocation2 + $0x220] sm:$0x3] }
 0x405   : > { %v2061_v14 = vmul.f32 %v8280_v34, %v8954_v29  ;;  %v1388_v42 = vmul.f32 %v8280_v34, %v8953_v15  ;;  %v1817_v7 = vrot.slane %v1583_v16, 1  ;;  %v2064_v0 = vmul.f32 %v8287_v25, %v8956_v55 }
 0x406   : > { %5505 = vmatprep.mubr.f32.mxu1 %v4997_v28  ;;  %v4904_v18 = vmul.f32 0.70710677, %v8386_v26  ;;  %v1809_v10 = vsel %vm1692_vm0, %v1807_v6, %v1808_v35  ;;  %v2067_v46 = vmul.f32 %v8954_v29, %v1277_v37  ;;  %v2070_v36 = vmul.f32 %v8956_v55, %v1280_v43  ;;  %v8418_v28 = vld [vmem:[#allocation2 + $0x58] sm:$0xff] }
 0x407   : > { %v2294_v13 = vrot.slane %v2061_v14, 2  ;;  %v4243_v20 = vrot.slane %v4016_v61, 1  ;;  %v1818_v17 = vsel %vm1692_vm0, %v1816_v62, %v1817_v7  ;;  %v1923_v59 = vadd.f32 %v1809_v10, %v1388_v42  ;;  %v3722_v14 = vld [vmem:[#allocation2 + $0x248] sm:$0x3] }
 0x408   : > { %5656 = verf.f32 %v4904_v18  ;;  %v3878_v22 = vadd.f32 %v3830_v39, %v3628_v9  ;;  %v4496_v34 = vmul.f32 %v8968_v5, %v8367_v50  ;;  %v1391_v44 = vmul.f32 %v8287_v25, %v8955_v30 }
 0x409   : > { %v2295_v52 = vrot.slane %v2067_v46, 2  ;;  %v2303_v24 = vrot.slane %v2064_v0, 2  ;;  %v2304_v56 = vrot.slane %v2070_v36, 2  ;;  %v2797_v8 = vmul.f32 %v8352_v3, %v8958_v63 }
 0x40a   : > { %v2803_v11 = vmul.f32 %v8958_v63, %v2500_v12  ;;  %v4502_v37 = vmul.f32 %v8968_v5, %v3713_v27  ;;  %v1926_v49 = vadd.f32 %v1818_v17, %v1391_v44  ;;  %v3283_v39 = vmul.f32 %v8352_v3, %v8960_v48 }
 0x40b   : > { %v2296_v53 = vsel %vm2179_vm1, %v2294_v13, %v2295_v52  ;;  %v2611_v25 = vmul.f32 %v8352_v3, %v8957_v1  ;;  %v3029_v32 = vrot.slane %v2797_v8, 1  ;;  %v4244_v31 = vsel %vm1692_vm0, %v4242_v54, %v4243_v20 }
 0x40c   : > { %v2410_v43 = vadd.f32 %v2296_v53, %v1923_v59  ;;  %v3030_v61 = vrot.slane %v2803_v11, 1  ;;  %v3289_v9 = vmul.f32 %v8960_v48, %v2500_v12  ;;  %v4728_v33 = vrot.slane %v4496_v34, 2  ;;  %v8433_v59 = vpop.f32.mrf.mxu1 }
 0x40d   : > { %v2305_v27 = vsel %vm2179_vm1, %v2303_v24, %v2304_v56  ;;  %v2800_v47 = vmul.f32 %v8367_v50, %v8959_v23  ;;  %v2806_v16 = vmul.f32 %v8959_v23, %v2503_v2  ;;  %v3515_v35 = vrot.slane %v3283_v39, 2 }
 0x40e   : > { %v2659_v45 = vadd.f32 %v2611_v25, %v2410_v43  ;;  %v3031_v6 = vsel %vm1692_vm0, %v3029_v32, %v3030_v61  ;;  %v3516_v62 = vrot.slane %v3289_v9, 2  ;;  %v4364_v18 = vadd.f32 %v4244_v31, %v3878_v22  ;;  %v8440_v61 = vld [vmem:[#allocation2 + $0x100] sm:$0xff] }
 0x40f   : > { %v4729_v54 = vrot.slane %v4502_v37, 2  ;;  %v2413_v42 = vadd.f32 %v2305_v27, %v1926_v49  ;;  %v2614_v0 = vmul.f32 %v8367_v50, %v8961_v57  ;;  %v3286_v10 = vmul.f32 %v8367_v50, %v8962_v41  ;;  %v1289_v9 = vld [vmem:[#allocation2 + $0x180] sm:$0x3]  ;;  %v8443_v27 = vpop.f32.mrf.mxu1 }
 0x410   : > { %v3145_v7 = vadd.f32 %v3031_v6, %v2659_v45  ;;  %v3517_v46 = vsel %vm2179_vm1, %v3515_v35, %v3516_v62  ;;  %v4019_v36 = vmul.f32 %v8963_v60, %v8418_v28  ;;  %v3292_v13 = vmul.f32 %v8962_v41, %v2503_v2  ;;  %v3725_v35 = vld [vmem:[#allocation2 + $0x218] sm:$0x3] }
 0x411   : > { %v3833_v20 = vmul.f32 %v8964_v38, %v8418_v28  ;;  %v4025_v17 = vmul.f32 %v8963_v60, %v3722_v14  ;;  %v3038_v22 = vrot.slane %v2800_v47, 1  ;;  %v3039_v34 = vrot.slane %v2806_v16, 1  ;;  %v1292_v16 = vld [vmem:[#allocation2 + $0x220] sm:$0x3] }
 0x412   : > { %v3631_v12 = vadd.f32 %v3517_v46, %v3145_v7  ;;  %v4251_v44 = vrot.slane %v4019_v36, 1  ;;  %v4505_v52 = vmul.f32 %v8965_v21, %v8418_v28  ;;  %v4730_v24 = vsel %vm2179_vm1, %v4728_v33, %v4729_v54 }
 0x413   : > { %v2662_v56 = vadd.f32 %v2614_v0, %v2413_v42  ;;  %v4252_v11 = vrot.slane %v4025_v17, 1  ;;  %v4850_v49 = vadd.f32 %v4730_v24, %v4364_v18  ;;  %v4880_v53 = vmul.f32 0.5, %v8386_v26 }
 0x414   : > { %v3881_v8 = vadd.f32 %v3833_v20, %v3631_v12  ;;  %v4511_v39 = vmul.f32 %v8965_v21, %v3722_v14  ;;  %v4737_v43 = vrot.slane %v4505_v52, 2  ;;  %v3524_v25 = vrot.slane %v3286_v10, 2  ;;  %v8448_v14 = vpop.f32.mrf.mxu1 }
 0x415   : > { %v5657_v37 = vpop.eup %5656  ;;  %v3525_v32 = vrot.slane %v3292_v13, 2  ;;  %v4253_v31 = vsel %vm1692_vm0, %v4251_v44, %v4252_v11  ;;  %v3040_v33 = vsel %vm1692_vm0, %v3038_v22, %v3039_v34  ;;  %v1586_v62 = vmul.f32 %v8352_v3, %v8951_v19  ;;  %v2512_v11 = vld [vmem:[#allocation2 + $0x248] sm:$0x3] }
 0x416   : > { %v4952_v2 = vadd.f32 1.0, %v5657_v37  ;;  %v4367_v45 = vadd.f32 %v4253_v31, %v3881_v8  ;;  %v4738_v47 = vrot.slane %v4511_v39, 2  ;;  %v3148_v26 = vadd.f32 %v3040_v33, %v2662_v56  ;;  %v8466_v52 = vpop.f32.mrf.mxu1 }
 0x417   : > { %v4022_v18 = vmul.f32 %v8966_v51, %v8440_v61  ;;  %v1589_v42 = vmul.f32 %v8367_v50, %v8952_v4  ;;  %v1592_v7 = vmul.f32 %v8951_v19, %v1289_v9  ;;  %v3526_v10 = vsel %vm2179_vm1, %v3524_v25, %v3525_v32 }
 0x418   : > { %v4976_v6 = vmul.f32 %v4952_v2, %v4880_v53  ;;  %v4739_v54 = vsel %vm2179_vm1, %v4737_v43, %v4738_v47  ;;  %v1595_v36 = vmul.f32 %v8952_v4, %v1292_v16  ;;  %v4028_v13 = vmul.f32 %v8966_v51, %v3725_v35  ;;  %v8481_v31 = vpop.f32.mrf.mxu1 }
 0x419   : > { %v8457_v46 = vadd.f32 %v4739_v54, %v4367_v45  ;;  %v1825_v12 = vrot.slane %v1586_v62, 1  ;;  %v1826_v20 = vrot.slane %v1592_v7, 1  ;;  %v2073_v17 = vmul.f32 %v8352_v3, %v8954_v29 }
 0x41a   : > { %v5000_v0 = vmul.f32 %v4976_v6, %v4850_v49  ;;  %v3634_v22 = vadd.f32 %v3526_v10, %v3148_v26  ;;  %v1394_v19 = vmul.f32 %v8352_v3, %v8953_v15  ;;  %v1834_v44 = vrot.slane %v1589_v42, 1 }
 0x41b   : > { %v4907_v34 = vmul.f32 0.70710677, %v8457_v46  ;;  %v1827_v24 = vsel %vm1692_vm0, %v1825_v12, %v1826_v20  ;;  %v1835_v4 = vrot.slane %v1595_v36, 1  ;;  %v2079_v56 = vmul.f32 %v8954_v29, %v1289_v9  ;;  %v5501_v36 = vpop.f32.mrf.mxu0 }
 0x41c   : > { %5506 = vmatmul.mubr.f32.vlgmr.msra.gmra.mxu1 %v5000_v0  ;;  %v2312_v8 = vrot.slane %v2073_v17, 2  ;;  %v3836_v37 = vmul.f32 %v8967_v40, %v8440_v61  ;;  %v4260_v49 = vrot.slane %v4022_v18, 1  ;;  %v1929_v53 = vadd.f32 %v1827_v24, %v1394_v19  ;;  %v2515_v18 = vld [vmem:[#allocation2 + $0x218] sm:$0x3] }
 0x41d   : > { %5658 = verf.f32 %v4907_v34  ;;  %v4261_v39 = vrot.slane %v4028_v13, 1  ;;  %v4508_v15 = vmul.f32 %v8968_v5, %v8440_v61  ;;  %v4514_v3 = vmul.f32 %v8968_v5, %v3725_v35  ;;  %v5426_v13 = vpop.f32.mrf.mxu1  ;;  %v3734_v17 = vld [vmem:[#allocation2 + $0x2d8] sm:$0x3] }
 0x41e   : > { %v2313_v43 = vrot.slane %v2079_v56, 2  ;;  %v2076_v2 = vmul.f32 %v8367_v50, %v8956_v55  ;;  %v2082_v29 = vmul.f32 %v8956_v55, %v1292_v16  ;;  %v2809_v25 = vmul.f32 %v8418_v28, %v8958_v63 }
 0x41f   : > { %v2815_v32 = vmul.f32 %v8958_v63, %v2512_v11  ;;  %v3884_v9 = vadd.f32 %v3836_v37, %v3634_v22  ;;  %v1836_v33 = vsel %vm1692_vm0, %v1834_v44, %v1835_v4  ;;  %v3295_v47 = vmul.f32 %v8418_v28, %v8960_v48 }
 0x420   : > { %v2314_v45 = vsel %vm2179_vm1, %v2312_v8, %v2313_v43  ;;  %v2617_v26 = vmul.f32 %v8418_v28, %v8957_v1  ;;  %v3047_v55 = vrot.slane %v2809_v25, 1  ;;  %v4262_v35 = vsel %vm1692_vm0, %v4260_v49, %v4261_v39  ;;  %v5226_v8 = vpop.f32.mrf.mxu0 }
 0x421   : > { %v2416_v6 = vadd.f32 %v2314_v45, %v1929_v53  ;;  %v3048_v16 = vrot.slane %v2815_v32, 1  ;;  %v4746_v62 = vrot.slane %v4508_v15, 2  ;;  %v1397_v63 = vmul.f32 %v8367_v50, %v8955_v30 }
 0x422   : > { %v3301_v54 = vmul.f32 %v8960_v48, %v2512_v11  ;;  %v4747_v42 = vrot.slane %v4514_v3, 2  ;;  %v2321_v7 = vrot.slane %v2076_v2, 2  ;;  %v2322_v0 = vrot.slane %v2082_v29, 2  ;;  %v5428_v11 = vpop.f32.mrf.mxu1  ;;  %v5504_v43 = vpop.f32.mrf.mxu0 }
 0x423   : > { %v2665_v10 = vadd.f32 %v2617_v26, %v2416_v6  ;;  %v1932_v12 = vadd.f32 %v1836_v33, %v1397_v63  ;;  %v3049_v1 = vsel %vm1692_vm0, %v3047_v55, %v3048_v16  ;;  %v3533_v28 = vrot.slane %v3295_v47, 2 }
 0x424   : > { %v3534_v20 = vrot.slane %v3301_v54, 2  ;;  %v2812_v22 = vmul.f32 %v8440_v61, %v8959_v23  ;;  %v2818_v30 = vmul.f32 %v8959_v23, %v2515_v18  ;;  %v3839_v48 = vmul.f32 %v8126_v58, %v8964_v38  ;;  %v5429_v47 = vpop.f32.mrf.mxu1 }
 0x425   : > { %v3151_v50 = vadd.f32 %v3049_v1, %v2665_v10  ;;  %v4370_v34 = vadd.f32 %v4262_v35, %v3884_v9  ;;  %v4031_v44 = vmul.f32 %v8126_v58, %v8963_v60  ;;  %v2323_v24 = vsel %vm2179_vm1, %v2321_v7, %v2322_v0  ;;  %v5236_v35 = vpop.f32.mrf.mxu0 }
 0x426   : > { %v3535_v19 = vsel %vm2179_vm1, %v3533_v28, %v3534_v20  ;;  %v4037_v56 = vmul.f32 %v8963_v60, %v3734_v17  ;;  %v4748_v23 = vsel %vm2179_vm1, %v4746_v62, %v4747_v42  ;;  %v2419_v37 = vadd.f32 %v2323_v24, %v1932_v12  ;;  %v3737_v42 = vld [vmem:[#allocation2 + $0x310] sm:$0x3] }
 0x427   : > { %v3637_v4 = vadd.f32 %v3535_v19, %v3151_v50  ;;  %v4269_v49 = vrot.slane %v4031_v44, 1  ;;  %v4517_v38 = vmul.f32 %v8126_v58, %v8965_v21  ;;  %v3056_v53 = vrot.slane %v2812_v22, 1  ;;  %v5685_v50 = vld [vmem:[%s5895_s26 + $0x10] sm:$0xff] }
 0x428   : > { %v3057_v39 = vrot.slane %v2818_v30, 1  ;;  %v4270_v3 = vrot.slane %v4037_v56, 1  ;;  %v4856_v29 = vadd.f32 %v4748_v23, %v4370_v34  ;;  %v4883_v60 = vmul.f32 0.5, %v8457_v46  ;;  %v5684_v30 = vld [vmem:[%s5895_s26 + $0x18] sm:$0xff] }
 0x429   : > { %v3887_v15 = vadd.f32 %v3839_v48, %v3637_v4  ;;  %v4523_v25 = vmul.f32 %v8965_v21, %v3734_v17  ;;  %v4755_v32 = vrot.slane %v4517_v38, 2  ;;  %v2620_v33 = vmul.f32 %v8440_v61, %v8961_v57  ;;  %v5683_v17 = vld [vmem:[%s5895_s26] sm:$0xff] }
 0x42a   : > { %v5659_v2 = vpop.eup %5658  ;;  %v3298_v58 = vmul.f32 %v8440_v61, %v8962_v41  ;;  %v4271_v45 = vsel %vm1692_vm0, %v4269_v49, %v4270_v3  ;;  %v3304_v6 = vmul.f32 %v8962_v41, %v2515_v18  ;;  %v3058_v21 = vsel %vm1692_vm0, %v3056_v53, %v3057_v39 }
 0x42b   : > { %v4955_v9 = vadd.f32 1.0, %v5659_v2  ;;  %v4373_v26 = vadd.f32 %v4271_v45, %v3887_v15  ;;  %v4756_v55 = vrot.slane %v4523_v25, 2  ;;  %v2668_v46 = vadd.f32 %v2620_v33, %v2419_v37 }
 0x42c   : > { %v5424_v57 = vadd.f32 %v8466_v52, %v8448_v14  ;;  %v5421_v62 = vadd.f32 %v8443_v27, %v8433_v59  ;;  %v5427_v41 = vadd.f32 %v5426_v13, %v8481_v31  ;;  %v5430_v63 = vadd.f32 %v5429_v47, %v5428_v11  ;;  %v5681_v59 = vld [vmem:[#allocation2 + $0x2b0] sm:$0xff]  ;;  %v5682_v13 = vld [vmem:[%s5895_s26 + $0x8] sm:$0xff] }
 0x42d   : > { %v4979_v16 = vmul.f32 %v4955_v9, %v4883_v60  ;;  %v4757_v61 = vsel %vm2179_vm1, %v4755_v32, %v4756_v55  ;;  %v3542_v54 = vrot.slane %v3298_v58, 2  ;;  %v3543_v10 = vrot.slane %v3304_v6, 2  ;;  %v5686_v55 = vld [vmem:[%s5895_s26 + $0x28] sm:$0xff] }
 0x42e   : > { %v4859_v7 = vadd.f32 %v4757_v61, %v4373_v26  ;;  %v5232_v0 = vadd.f32 %v5501_v36, %v5424_v57  ;;  %v5227_v14 = vadd.f32 %v5421_v62, %v5226_v8  ;;  %v5242_v52 = vadd.f32 %v5504_v43, %v5430_v63  ;;  %v5431_v2 = vpop.f32.mrf.mxu1 }
 0x42f   : > { %v5003_v18 = vmul.f32 %v4979_v16, %v4856_v29  ;;  %v5237_v12 = vadd.f32 %v5427_v41, %v5236_v35  ;;  %v3154_v1 = vadd.f32 %v3058_v21, %v2668_v46  ;;  %v4034_v27 = vmul.f32 %v5681_v59, %v8966_v51  ;;  %v5687_v21 = vld [vmem:[%s5895_s26 + $0x20] sm:$0xff] }
 0x430   : > { %v4910_v31 = vmul.f32 0.70710677, %v4859_v7  ;;  %v5266_v28 = vadd.f32 %v5682_v13, %v5232_v0  ;;  %v4040_v20 = vmul.f32 %v8966_v51, %v3737_v42  ;;  %v5265_v22 = vadd.f32 %v5683_v17, %v5227_v14  ;;  %v5432_v29 = vpop.f32.mrf.mxu1 }
 0x431   : > { %5508 = vmatprep.mubr.f32.mxu1 %v5003_v18  ;;  %v5268_v36 = vadd.f32 %v5684_v30, %v5242_v52  ;;  %v5267_v48 = vadd.f32 %v5685_v50, %v5237_v12  ;;  %v3544_v34 = vsel %vm2179_vm1, %v3542_v54, %v3543_v10  ;;  %v3842_v19 = vmul.f32 %v5681_v59, %v8967_v40  ;;  %v5688_v18 = vld [vmem:[%s5895_s26 + $0x38] sm:$0xff] }
 0x432   : > { %5660 = verf.f32 %v4910_v31  ;;  %5274 = vst [vmem:[%s8534_s13 + $0x8] sm:$0xff] %v5266_v28  ;;  %5273 = vst [vmem:[%s8534_s13] sm:$0xff] %v5265_v22  ;;  %v3640_v51 = vadd.f32 %v3544_v34, %v3154_v1  ;;  %v4278_v44 = vrot.slane %v4034_v27, 1  ;;  %v4279_v24 = vrot.slane %v4040_v20, 1 }
 0x433   : > { %5276 = vst [vmem:[%s8534_s13 + $0x18] sm:$0xff] %v5268_v36  ;;  %5275 = vst [vmem:[%s8534_s13 + $0x10] sm:$0xff] %v5267_v48  ;;  %v4520_v4 = vmul.f32 %v5681_v59, %v8968_v5  ;;  %v4526_v56 = vmul.f32 %v8968_v5, %v3737_v42  ;;  %v4886_v15 = vmul.f32 0.5, %v4859_v7  ;;  %v5433_v47 = vadd.f32 %v5432_v29, %v5431_v2  ;;  %v5689_v7 = vld [vmem:[%s5895_s26 + $0x30] sm:$0xff] }
 0x434   : > { %v3890_v8 = vadd.f32 %v3842_v19, %v3640_v51  ;;  %v4280_v11 = vsel %vm1692_vm0, %v4278_v44, %v4279_v24 }
 0x435   : > { %v4764_v23 = vrot.slane %v4520_v4, 2  ;;  %v4765_v37 = vrot.slane %v4526_v56, 2 }
 0x436   : > { %v4376_v49 = vadd.f32 %v4280_v11, %v3890_v8 }
 0x437   : > { %v4766_v38 = vsel %vm2179_vm1, %v4764_v23, %v4765_v37 }
 0x438   : > { %v4862_v39 = vadd.f32 %v4766_v38, %v4376_v49 }
 0x43f   : > { %v5661_v53 = vpop.eup %5660 }
 0x440   : > { %v4958_v3 = vadd.f32 1.0, %v5661_v53 }
 0x442   : > { %v4982_v43 = vmul.f32 %v4958_v3, %v4886_v15 }
 0x444   : > { %v5006_v40 = vmul.f32 %v4982_v43, %v4862_v39 }
 0x446   : > { %5509 = vmatmul.mubr.f32.gmra.mxu1 %v5006_v40 }
 0x45a   : > { %v5434_v5 = vpop.f32.mrf.mxu1 }
 0x45c   : > { %v5435_v60 = vpop.f32.mrf.mxu1 }
 0x45d   : > { %v5436_v58 = vadd.f32 %v5435_v60, %v5434_v5 }
 0x486   : > { %v5437_v25 = vpop.f32.mrf.mxu1 }
 0x488   : > { %v5438_v32 = vpop.f32.mrf.mxu1 }
 0x489   : > { %v5439_v62 = vadd.f32 %v5438_v32, %v5437_v25 }
 0x4b0   : > { %v5440_v9 = vpop.f32.mrf.mxu1 }
 0x4b2   : > { %v5441_v33 = vpop.f32.mrf.mxu1 }
 0x4b3   : > { %v5442_v35 = vadd.f32 %v5441_v33, %v5440_v9 }
 0x4dc   : > { %v5507_v45 = vpop.f32.mrf.mxu1 }
 0x4dd   : > { %v5252_v6 = vadd.f32 %v5507_v45, %v5436_v58 }
 0x4de   : > { %v5246_v26 = vpop.f32.mrf.mxu1 }
 0x4df   : > { %v5270_v16 = vadd.f32 %v5686_v55, %v5252_v6  ;;  %v5247_v46 = vadd.f32 %v5433_v47, %v5246_v26 }
 0x4e1   : > { %5278 = vst [vmem:[%s8534_s13 + $0x28] sm:$0xff] %v5270_v16  ;;  %v5269_v57 = vadd.f32 %v5687_v21, %v5247_v46 }
 0x4e3   : > { %5277 = vst [vmem:[%s8534_s13 + $0x20] sm:$0xff] %v5269_v57 }
 0x506   : > { %v5510_v61 = vpop.f32.mrf.mxu1 }
 0x507   : > { %v5262_v41 = vadd.f32 %v5510_v61, %v5442_v35 }
 0x508   : > { %v5256_v63 = vpop.f32.mrf.mxu1 }
 0x509   : > { %v5272_v54 = vadd.f32 %v5688_v18, %v5262_v41  ;;  %v5257_v42 = vadd.f32 %v5439_v62, %v5256_v63 }
 0x50b   : > { %5280 = vst [vmem:[%s8534_s13 + $0x38] sm:$0xff] %v5272_v54  ;;  %v5271_v0 = vadd.f32 %v5689_v7, %v5257_v42 }
 0x50d   : > { %5279 = vst [vmem:[%s8534_s13 + $0x30] sm:$0xff] %v5271_v0 }
 0x50e   : > { %5729 = shalt.err (!%p5726_p0)
}
 0x50f   : > { %s5730_s26 = scalar_lea.hbm %s8556_s18, 1024  ;;  %s5734_s11 = scalar_lea.hbm %s8611_s6, 2048 }
 0x510   : > { %p5731_p1 = scmp.ne.s32.totalorder %s8556_s18, %s5730_s26  ;;  %p5735_p4 = scmp.lt.s32.totalorder %s8556_s18, %s8611_s6 }
 0x511   : > { %p5736_p7 = scmp.lt.s32.totalorder %s5734_s11, %s5730_s26 }
 0x512   : > { %p5732_p2 = pnand %p5731_p1, %p5862_p5 }
 0x513   : > { %p5737_p8 = por %p5736_p7, %p5735_p4 }
 0x514   : > { %p5733_p3 = pneg %p5732_p2 }
 0x516   : > { %p5738_p6 = pnand %p5737_p8, %p5733_p3 }
 0x518   : > { %5741 = shalt.err (!%p5738_p6)
}
 0x519   : > { %s5787_s14 = smov 128   ;;  %s5788_s16 = smov 8  }
 0x51a   : > { %5547 = dma.vmem_to_hbm [thread:$0]  (%p5862_p5), %s8558_s15, 1024, %s8556_s18, %s8565_s25, %s5787_s14, %s5787_s14, %s5788_s16  }
 0x51b PF: > { %p5559_p9 = scmp.ge.s32.totalorder %s5780_s24, 2  ;;  %s5310_s17 = sand.u32 1, %s5768_s21  }
 0x51c   : > { %p8969_p10 = scmp.ne.s32.totalorder %s8769_s8, 0  ;;  %s5311_s19 = scalar_lea.sflag [#allocation5], %s5310_s17 }
 0x51e   : > { %p5554_p11 = pnand %p5559_p9, %p8969_p10 }
 0x520   : > { %p5555_p12 = pneg %p5554_p11 }
 0x522   : > { %5763 = dma.done.wait (%p5555_p12), %s5311_s19, 1024  }
 0x523   : > { %5765 = vsyncadd (%p5555_p12), %s5311_s19, 4294966272  ;;  %p17_p13 = scmp.ge.s32.totalorder %s5849_s27, 4   ;;  %s8970_s21 = smov %s5772_s22 }
 0x524   : > { %s8971_s22 = smov %s5776_s23  ;;  %s8972_s23 = smov %s5860_s30 }
 0x525   : > { %s8973_s24 = smov %s5849_s27  ;;  %19 = sbr.rel (!%p17_p13) target bundleno = 4 (0x4), region = 86 }
 0x52a   :  { %5316 = vsyncpa [#allocation4], 1 }
 0x52b   :  { %5318 = vsyncpa [#allocation4 + $0x1], 1 }
 0x52c   :  { %5319 = vsyncpa [#allocation5], 1 }
 0x52d   :  { %5321 = vsyncpa [#allocation5 + $0x1], 1 }

</bundles_post_ra>
